<compile_context>
chip_gen: v6e
topology: v6e:2x2x1
jax: 0.10.0
libtpu: 0.0.40
codegen_flags: <defaults>
</compile_context>

<pallas_src>
import jax
import jax.numpy as jnp
import numpy as np
from jax import lax
from jax.experimental import pallas as pl
from jax.experimental.pallas import tpu as pltpu


# Row counts of the padded, 10x10-embedded activation grids inside the kernel.
_R1 = 432   # conv1 rows: 4 parity groups x (10x10) = 400, zero-padded to 432
_R2 = 112   # conv2 rows: 10x10 embedding (valid at Y,X <= 8), padded to 112
_R3 = 80    # conv3 rows: 10x10 embedding (valid at Y,X <= 6), padded to 80


# ----------------------------------------------------------------------------
# Fused conv stack kernel: conv1 -> conv2 -> conv3, all VMEM-resident.
# ----------------------------------------------------------------------------
def _fused_conv_kernel(cols1_ref, w1_ref, b1_ref, w2_ref, b2_ref, w3_ref, b3_ref,
                       out_ref, im2_ref, im3_ref):
    # ---- conv1 (already im2col'd in the wrapper, parity-grouped rows) -----
    a1 = jnp.dot(cols1_ref[...], w1_ref[...], preferred_element_type=jnp.float32)
    a1 = jnp.maximum(a1 + b1_ref[...], 0.0).astype(jnp.bfloat16)       # (432, 32)

    # ---- conv2 (4x4, stride 2) == 16 stride-1 taps over the parity groups -
    # im2col row d = Y*10 + X  <->  conv2 output (oy2, ox2) = (Y, X), Y,X <= 8.
    # Source a1 row for tap (i2, j2) is a pure shift of d -> one copy per tap.
    for i2 in range(4):
        for j2 in range(4):
            g = (i2 % 2) * 2 + (j2 % 2)                 # parity group of tap
            off = g * 100 + (i2 // 2) * 10 + (j2 // 2)
            k = (i2 * 4 + j2) * 32
            im2_ref[:, k:k + 32] = a1[off:off + _R2, :]
    a2 = jnp.dot(im2_ref[...], w2_ref[...], preferred_element_type=jnp.float32)
    a2 = jnp.maximum(a2 + b2_ref[...], 0.0).astype(jnp.bfloat16)       # (112, 64)

    # ---- conv3 (3x3, stride 1) on the 10x10-embedded conv2 output ---------
    for i3 in range(3):
        for j3 in range(3):
            off = i3 * 10 + j3
            k = (i3 * 3 + j3) * 64
            im3_ref[:, k:k + 64] = a2[off:off + _R3, :]
    a3 = jnp.dot(im3_ref[...], w3_ref[...], preferred_element_type=jnp.float32)
    a3 = jnp.maximum(a3 + b3_ref[...], 0.0).astype(out_ref.dtype)      # (80, 64)

    # ---- extract the 7x7 valid rows (row e = oy3*10 + ox3) ----------------
    for y in range(7):
        out_ref[y * 7:y * 7 + 7, :] = a3[y * 10:y * 10 + 7, :]


def conv_stack(cols1, w1, b1, w2, b2, w3, b3):
    """Fused conv1+conv2+conv3 (+ReLU). cols1: (B, 432, 256) bf16 -> (B, 49, 64) bf16."""
    B = cols1.shape[0]
    flops = 2 * B * (_R1 * 256 * 32 + _R2 * 512 * 64 + _R3 * 576 * 64)
    bytes_accessed = (cols1.size * 2 + (w1.size + w2.size + w3.size) * 2
                      + (b1.size + b2.size + b3.size) * 4 + B * 49 * 64 * 2)
    return pl.pallas_call(
        _fused_conv_kernel,
        out_shape=jax.ShapeDtypeStruct((B, 49, 64), jnp.bfloat16),
        grid_spec=pltpu.PrefetchScalarGridSpec(
            num_scalar_prefetch=0,
            grid=(B,),
            in_specs=[
                pl.BlockSpec((None, _R1, 256), lambda b: (b, 0, 0)),
                pl.BlockSpec((256, 32), lambda b: (0, 0)),
                pl.BlockSpec((1, 32), lambda b: (0, 0)),
                pl.BlockSpec((512, 64), lambda b: (0, 0)),
                pl.BlockSpec((1, 64), lambda b: (0, 0)),
                pl.BlockSpec((576, 64), lambda b: (0, 0)),
                pl.BlockSpec((1, 64), lambda b: (0, 0)),
            ],
            out_specs=pl.BlockSpec((None, 49, 64), lambda b: (b, 0, 0)),
            scratch_shapes=[
                pltpu.VMEM((_R2, 512), jnp.bfloat16),   # conv2 im2col
                pltpu.VMEM((_R3, 576), jnp.bfloat16),   # conv3 im2col
            ],
        ),
        compiler_params=pltpu.CompilerParams(dimension_semantics=("parallel",)),
        cost_estimate=pl.CostEstimate(flops=flops, transcendentals=0,
                                      bytes_accessed=bytes_accessed),
    )(cols1, w1, b1, w2, b2, w3, b3)


# ----------------------------------------------------------------------------
# Final Linear + ReLU: single-block matmul kernel (whole K in one step).
# ----------------------------------------------------------------------------
def _linear_relu_kernel(x_ref, w_ref, b_ref, o_ref):
    acc = jnp.dot(x_ref[...], w_ref[...], preferred_element_type=jnp.float32)
    o_ref[...] = jnp.maximum(acc + b_ref[...], 0.0).astype(o_ref.dtype)


def fused_linear_relu(x, w, b, *, out_dtype=jnp.float32):
    """relu(x @ w + b).  x:(M,K) bf16, w:(K,N) bf16, b:(1,N) f32."""
    M, K = x.shape
    K2, N = w.shape
    assert K == K2 and b.shape == (1, N)
    flops = 2 * M * K * N
    bytes_accessed = (x.size * x.dtype.itemsize + w.size * w.dtype.itemsize
                      + b.size * 4 + M * N * jnp.dtype(out_dtype).itemsize)
    return pl.pallas_call(
        _linear_relu_kernel,
        out_shape=jax.ShapeDtypeStruct((M, N), out_dtype),
        grid_spec=pltpu.PrefetchScalarGridSpec(
            num_scalar_prefetch=0,
            grid=(1,),
            in_specs=[pl.BlockSpec((M, K), lambda i: (0, 0)),
                      pl.BlockSpec((K, N), lambda i: (0, 0)),
                      pl.BlockSpec((1, N), lambda i: (0, 0))],
            out_specs=pl.BlockSpec((M, N), lambda i: (0, 0)),
        ),
        compiler_params=pltpu.CompilerParams(dimension_semantics=("arbitrary",)),
        cost_estimate=pl.CostEstimate(flops=flops, transcendentals=0,
                                      bytes_accessed=bytes_accessed),
    )(x, w, b)


# ----------------------------------------------------------------------------
# conv1 im2col (XLA layout plumbing on the raw input, ~0.4 MB).
# ----------------------------------------------------------------------------
def conv1_im2col(state_nchw):
    """8x8/stride-4 conv1 im2col via space-to-depth; rows parity-grouped.

    Returns (B, 432, 256) bf16.  Row r = g*100 + Y*10 + X, where the conv1
    output position is (2Y+p, 2X+q) and g = p*2+q; cols = (i1, j1, dy, dx, c).
    The 1/255 scale is folded into w1, so raw pixel values are fed directly.
    """
    B = state_nchw.shape[0]
    x = jnp.transpose(state_nchw, (0, 2, 3, 1))                       # NCHW -> NHWC
    x = x.reshape(B, 21, 4, 21, 4, 4)
    x = jnp.transpose(x, (0, 1, 3, 2, 4, 5)).reshape(B, 21, 21, 64)   # space-to-depth
    taps = [x[:, i:i + 20, j:j + 20, :] for i in (0, 1) for j in (0, 1)]
    p = jnp.concatenate(taps, axis=-1)                                # (B, 20, 20, 256)
    p = p.reshape(B, 10, 2, 10, 2, 256)
    p = jnp.transpose(p, (0, 2, 4, 1, 3, 5)).reshape(B, 400, 256)     # parity-grouped
    p = jnp.pad(p, ((0, 0), (0, _R1 - 400), (0, 0)))
    return p.astype(jnp.bfloat16)


# ----------------------------------------------------------------------------
# Deterministic parameter init (orthogonal gain sqrt(2), zero bias),
# pre-packed offline into kernel-friendly layouts.
# ----------------------------------------------------------------------------
def make_params(seed=0):
    std = float(np.sqrt(2.0))
    keys = jax.random.split(jax.random.PRNGKey(seed), 4)
    ortho = jax.nn.initializers.orthogonal(scale=std)

    w1 = ortho(keys[0], (32, 4 * 8 * 8), jnp.float32).reshape(32, 4, 8, 8)
    w2 = ortho(keys[1], (64, 32 * 4 * 4), jnp.float32).reshape(64, 32, 4, 4)
    w3 = ortho(keys[2], (64, 64 * 3 * 3), jnp.float32).reshape(64, 64, 3, 3)
    w4 = ortho(keys[3], (512, 64 * 7 * 7), jnp.float32)

    # conv1: (O,C,KH,KW) with KH = 4*i1+dy, KW = 4*j1+dx -> K = (i1,j1,dy,dx,c).
    # The 1/255 input normalization is folded in here (conv is linear).
    w1r = w1.reshape(32, 4, 2, 4, 2, 4)                  # (o, c, i1, dy, j1, dx)
    w1_2d = jnp.transpose(w1r, (2, 4, 3, 5, 1, 0)).reshape(256, 32) * (1.0 / 255.0)

    def conv_w2d(w):                                     # (O,I,KH,KW) -> (KH*KW*I, O)
        return jnp.transpose(w, (2, 3, 1, 0)).reshape(-1, w.shape[0])

    # Linear: PyTorch flattens NCHW (c,h,w); our features are (h,w,c).
    w4_hwc = jnp.transpose(w4.reshape(512, 64, 7, 7), (2, 3, 1, 0)).reshape(3136, 512)

    kernel_params = {
        "w1": w1_2d.astype(jnp.bfloat16), "b1": jnp.zeros((1, 32), jnp.float32),
        "w2": conv_w2d(w2).astype(jnp.bfloat16), "b2": jnp.zeros((1, 64), jnp.float32),
        "w3": conv_w2d(w3).astype(jnp.bfloat16), "b3": jnp.zeros((1, 64), jnp.float32),
        "w4": w4_hwc.astype(jnp.bfloat16), "b4": jnp.zeros((1, 512), jnp.float32),
    }
    torch_layout = {"w1": w1, "w2": w2, "w3": w3, "w4": w4}
    return kernel_params, torch_layout


# ----------------------------------------------------------------------------
# Full forward pass
# ----------------------------------------------------------------------------
@jax.jit
def cnn_forward(state_nchw, params):
    cols1 = conv1_im2col(state_nchw)                                   # (B, 432, 256)
    feats = conv_stack(cols1, params["w1"], params["b1"], params["w2"],
                       params["b2"], params["w3"], params["b3"])       # (B, 49, 64)
    flat = feats.reshape(feats.shape[0], 49 * 64)                      # free reshape
    return fused_linear_relu(flat, params["w4"], params["b4"],
                             out_dtype=jnp.float32)                    # (B, 512)


# Pure-JAX f32 reference matching the PyTorch module (biases are zero).
def reference_forward(state_nchw, tp):
    dn = ("NCHW", "OIHW", "NCHW")
    x = state_nchw.astype(jnp.float32) / 255.0
    x = jax.nn.relu(lax.conv_general_dilated(x, tp["w1"], (4, 4), "VALID",
                                             dimension_numbers=dn))
    x = jax.nn.relu(lax.conv_general_dilated(x, tp["w2"], (2, 2), "VALID",
                                             dimension_numbers=dn))
    x = jax.nn.relu(lax.conv_general_dilated(x, tp["w3"], (1, 1), "VALID",
                                             dimension_numbers=dn))
    x = x.reshape(x.shape[0], -1)                                      # NCHW flatten
    return jax.nn.relu(x @ tp["w4"].T)


if __name__ == "__main__":
    key = jax.random.PRNGKey(0)
    # The conv stack requires 84x84 input to produce the 64*7*7 flatten the
    # Linear layer expects; keep batch small.
    state = jax.random.uniform(key, (2, 4, 84, 84), jnp.float32, 0.0, 255.0)

    params, torch_layout = make_params(seed=0)
    out = cnn_forward(state, params)
    out = jax.block_until_ready(out)

    assert out.shape == (2, 512), out.shape
    assert bool(jnp.all(out >= 0.0))            # ReLU output
    assert bool(jnp.all(jnp.isfinite(out)))

    # bf16 kernel path vs f32 reference; loose tolerance for bf16 drift.
    ref = reference_forward(state, torch_layout)
    np.testing.assert_allclose(np.asarray(out), np.asarray(ref), rtol=0.1, atol=0.5)

    print("KERNEL_OK")
</pallas_src>

<mosaic_0001>
module attributes {stable_mosaic.version = 11 : i64} {
  func.func @_fused_conv_kernel(%arg0: i32, %arg1: memref<1x432x256xbf16, #tpu.memory_space<vmem>>, %arg2: memref<256x32xbf16, #tpu.memory_space<vmem>>, %arg3: memref<1x32xf32, #tpu.memory_space<vmem>>, %arg4: memref<512x64xbf16, #tpu.memory_space<vmem>>, %arg5: memref<1x64xf32, #tpu.memory_space<vmem>>, %arg6: memref<576x64xbf16, #tpu.memory_space<vmem>>, %arg7: memref<1x64xf32, #tpu.memory_space<vmem>>, %arg8: memref<1x49x64xbf16, #tpu.memory_space<vmem>>, %arg9: memref<112x512xbf16, #tpu.memory_space<vmem>>, %arg10: memref<80x576xbf16, #tpu.memory_space<vmem>>) attributes {dimension_semantics = [#tpu.dimension_semantics<parallel>], iteration_bounds = array<i64: 2>, scalar_prefetch = 0 : i64, scratch_operands = 2 : i64, tpu.core_type = #tpu.core_type<tc>, window_params = [{transform_indices = @transform_0, window_bounds = array<i64: 1, 432, 256>}, {pipeline_mode = #tpu.pipeline_mode<synchronous>, transform_indices = @transform_1, window_bounds = array<i64: 256, 32>}, {pipeline_mode = #tpu.pipeline_mode<synchronous>, transform_indices = @transform_2, window_bounds = array<i64: 1, 32>}, {pipeline_mode = #tpu.pipeline_mode<synchronous>, transform_indices = @transform_3, window_bounds = array<i64: 512, 64>}, {pipeline_mode = #tpu.pipeline_mode<synchronous>, transform_indices = @transform_4, window_bounds = array<i64: 1, 64>}, {pipeline_mode = #tpu.pipeline_mode<synchronous>, transform_indices = @transform_5, window_bounds = array<i64: 576, 64>}, {pipeline_mode = #tpu.pipeline_mode<synchronous>, transform_indices = @transform_6, window_bounds = array<i64: 1, 64>}, {transform_indices = @transform_7, window_bounds = array<i64: 1, 49, 64>}]} {
    %c0 = arith.constant 0 : index
    %c0_0 = arith.constant 0 : index
    %c0_1 = arith.constant 0 : index
    %0 = vector.load %arg1[%c0, %c0_0, %c0_1] : memref<1x432x256xbf16, #tpu.memory_space<vmem>>, vector<1x432x256xbf16>
    %1 = vector.shape_cast %0 : vector<1x432x256xbf16> to vector<432x256xbf16>
    %c0_2 = arith.constant 0 : index
    %c0_3 = arith.constant 0 : index
    %2 = vector.load %arg2[%c0_2, %c0_3] : memref<256x32xbf16, #tpu.memory_space<vmem>>, vector<256x32xbf16>
    %cst = arith.constant dense<0.000000e+00> : vector<432x32xf32>
    %3 = tpu.matmul %1, %2, %cst {dimension_numbers = #tpu.dot_dimension_numbers<[1], [0], [0], [1], [0, 0, 1, 1], [], []>} : vector<432x256xbf16>, vector<256x32xbf16>, vector<432x32xf32> -> vector<432x32xf32>
    %c0_4 = arith.constant 0 : index
    %c0_5 = arith.constant 0 : index
    %4 = vector.load %arg3[%c0_4, %c0_5] : memref<1x32xf32, #tpu.memory_space<vmem>>, vector<1x32xf32>
    %5 = vector.broadcast %4 : vector<1x32xf32> to vector<432x32xf32>
    %6 = arith.addf %3, %5 : vector<432x32xf32>
    %cst_6 = arith.constant 0.000000e+00 : f32
    %7 = vector.broadcast %cst_6 : f32 to vector<432x32xf32>
    %8 = arith.maximumf %6, %7 : vector<432x32xf32>
    %9 = arith.truncf %8 : vector<432x32xf32> to vector<432x32xbf16>
    %10 = vector.extract_strided_slice %9 {offsets = [0, 0], sizes = [112, 32], strides = [1, 1]} : vector<432x32xbf16> to vector<112x32xbf16>
    %c0_7 = arith.constant 0 : index
    %c0_8 = arith.constant 0 : index
    %11 = vector.load %arg9[%c0_7, %c0_8] : memref<112x512xbf16, #tpu.memory_space<vmem>>, vector<112x32xbf16>
    tpu.vector_store %arg9[%c0_7, %c0_8], %10 {strides = array<i32>} : memref<112x512xbf16, #tpu.memory_space<vmem>>, vector<112x32xbf16>,
    %12 = vector.extract_strided_slice %9 {offsets = [100, 0], sizes = [112, 32], strides = [1, 1]} : vector<432x32xbf16> to vector<112x32xbf16>
    %c0_9 = arith.constant 0 : index
    %c32 = arith.constant 32 : index
    %13 = vector.load %arg9[%c0_9, %c32] : memref<112x512xbf16, #tpu.memory_space<vmem>>, vector<112x32xbf16>
    tpu.vector_store %arg9[%c0_9, %c32], %12 {strides = array<i32>} : memref<112x512xbf16, #tpu.memory_space<vmem>>, vector<112x32xbf16>,
    %14 = vector.extract_strided_slice %9 {offsets = [1, 0], sizes = [112, 32], strides = [1, 1]} : vector<432x32xbf16> to vector<112x32xbf16>
    %c0_10 = arith.constant 0 : index
    %c64 = arith.constant 64 : index
    %15 = vector.load %arg9[%c0_10, %c64] : memref<112x512xbf16, #tpu.memory_space<vmem>>, vector<112x32xbf16>
    tpu.vector_store %arg9[%c0_10, %c64], %14 {strides = array<i32>} : memref<112x512xbf16, #tpu.memory_space<vmem>>, vector<112x32xbf16>,
    %16 = vector.extract_strided_slice %9 {offsets = [101, 0], sizes = [112, 32], strides = [1, 1]} : vector<432x32xbf16> to vector<112x32xbf16>
    %c0_11 = arith.constant 0 : index
    %c96 = arith.constant 96 : index
    %17 = vector.load %arg9[%c0_11, %c96] : memref<112x512xbf16, #tpu.memory_space<vmem>>, vector<112x32xbf16>
    tpu.vector_store %arg9[%c0_11, %c96], %16 {strides = array<i32>} : memref<112x512xbf16, #tpu.memory_space<vmem>>, vector<112x32xbf16>,
    %18 = vector.extract_strided_slice %9 {offsets = [200, 0], sizes = [112, 32], strides = [1, 1]} : vector<432x32xbf16> to vector<112x32xbf16>
    %c0_12 = arith.constant 0 : index
    %c128 = arith.constant 128 : index
    %19 = vector.load %arg9[%c0_12, %c128] : memref<112x512xbf16, #tpu.memory_space<vmem>>, vector<112x32xbf16>
    tpu.vector_store %arg9[%c0_12, %c128], %18 {strides = array<i32>} : memref<112x512xbf16, #tpu.memory_space<vmem>>, vector<112x32xbf16>,
    %20 = vector.extract_strided_slice %9 {offsets = [300, 0], sizes = [112, 32], strides = [1, 1]} : vector<432x32xbf16> to vector<112x32xbf16>
    %c0_13 = arith.constant 0 : index
    %c160 = arith.constant 160 : index
    %21 = vector.load %arg9[%c0_13, %c160] : memref<112x512xbf16, #tpu.memory_space<vmem>>, vector<112x32xbf16>
    tpu.vector_store %arg9[%c0_13, %c160], %20 {strides = array<i32>} : memref<112x512xbf16, #tpu.memory_space<vmem>>, vector<112x32xbf16>,
    %22 = vector.extract_strided_slice %9 {offsets = [201, 0], sizes = [112, 32], strides = [1, 1]} : vector<432x32xbf16> to vector<112x32xbf16>
    %c0_14 = arith.constant 0 : index
    %c192 = arith.constant 192 : index
    %23 = vector.load %arg9[%c0_14, %c192] : memref<112x512xbf16, #tpu.memory_space<vmem>>, vector<112x32xbf16>
    tpu.vector_store %arg9[%c0_14, %c192], %22 {strides = array<i32>} : memref<112x512xbf16, #tpu.memory_space<vmem>>, vector<112x32xbf16>,
    %24 = vector.extract_strided_slice %9 {offsets = [301, 0], sizes = [112, 32], strides = [1, 1]} : vector<432x32xbf16> to vector<112x32xbf16>
    %c0_15 = arith.constant 0 : index
    %c224 = arith.constant 224 : index
    %25 = vector.load %arg9[%c0_15, %c224] : memref<112x512xbf16, #tpu.memory_space<vmem>>, vector<112x32xbf16>
    tpu.vector_store %arg9[%c0_15, %c224], %24 {strides = array<i32>} : memref<112x512xbf16, #tpu.memory_space<vmem>>, vector<112x32xbf16>,
    %26 = vector.extract_strided_slice %9 {offsets = [10, 0], sizes = [112, 32], strides = [1, 1]} : vector<432x32xbf16> to vector<112x32xbf16>
    %c0_16 = arith.constant 0 : index
    %c256 = arith.constant 256 : index
    %27 = vector.load %arg9[%c0_16, %c256] : memref<112x512xbf16, #tpu.memory_space<vmem>>, vector<112x32xbf16>
    tpu.vector_store %arg9[%c0_16, %c256], %26 {strides = array<i32>} : memref<112x512xbf16, #tpu.memory_space<vmem>>, vector<112x32xbf16>,
    %28 = vector.extract_strided_slice %9 {offsets = [110, 0], sizes = [112, 32], strides = [1, 1]} : vector<432x32xbf16> to vector<112x32xbf16>
    %c0_17 = arith.constant 0 : index
    %c288 = arith.constant 288 : index
    %29 = vector.load %arg9[%c0_17, %c288] : memref<112x512xbf16, #tpu.memory_space<vmem>>, vector<112x32xbf16>
    tpu.vector_store %arg9[%c0_17, %c288], %28 {strides = array<i32>} : memref<112x512xbf16, #tpu.memory_space<vmem>>, vector<112x32xbf16>,
    %30 = vector.extract_strided_slice %9 {offsets = [11, 0], sizes = [112, 32], strides = [1, 1]} : vector<432x32xbf16> to vector<112x32xbf16>
    %c0_18 = arith.constant 0 : index
    %c320 = arith.constant 320 : index
    %31 = vector.load %arg9[%c0_18, %c320] : memref<112x512xbf16, #tpu.memory_space<vmem>>, vector<112x32xbf16>
    tpu.vector_store %arg9[%c0_18, %c320], %30 {strides = array<i32>} : memref<112x512xbf16, #tpu.memory_space<vmem>>, vector<112x32xbf16>,
    %32 = vector.extract_strided_slice %9 {offsets = [111, 0], sizes = [112, 32], strides = [1, 1]} : vector<432x32xbf16> to vector<112x32xbf16>
    %c0_19 = arith.constant 0 : index
    %c352 = arith.constant 352 : index
    %33 = vector.load %arg9[%c0_19, %c352] : memref<112x512xbf16, #tpu.memory_space<vmem>>, vector<112x32xbf16>
    tpu.vector_store %arg9[%c0_19, %c352], %32 {strides = array<i32>} : memref<112x512xbf16, #tpu.memory_space<vmem>>, vector<112x32xbf16>,
    %34 = vector.extract_strided_slice %9 {offsets = [210, 0], sizes = [112, 32], strides = [1, 1]} : vector<432x32xbf16> to vector<112x32xbf16>
    %c0_20 = arith.constant 0 : index
    %c384 = arith.constant 384 : index
    %35 = vector.load %arg9[%c0_20, %c384] : memref<112x512xbf16, #tpu.memory_space<vmem>>, vector<112x32xbf16>
    tpu.vector_store %arg9[%c0_20, %c384], %34 {strides = array<i32>} : memref<112x512xbf16, #tpu.memory_space<vmem>>, vector<112x32xbf16>,
    %36 = vector.extract_strided_slice %9 {offsets = [310, 0], sizes = [112, 32], strides = [1, 1]} : vector<432x32xbf16> to vector<112x32xbf16>
    %c0_21 = arith.constant 0 : index
    %c416 = arith.constant 416 : index
    %37 = vector.load %arg9[%c0_21, %c416] : memref<112x512xbf16, #tpu.memory_space<vmem>>, vector<112x32xbf16>
    tpu.vector_store %arg9[%c0_21, %c416], %36 {strides = array<i32>} : memref<112x512xbf16, #tpu.memory_space<vmem>>, vector<112x32xbf16>,
    %38 = vector.extract_strided_slice %9 {offsets = [211, 0], sizes = [112, 32], strides = [1, 1]} : vector<432x32xbf16> to vector<112x32xbf16>
    %c0_22 = arith.constant 0 : index
    %c448 = arith.constant 448 : index
    %39 = vector.load %arg9[%c0_22, %c448] : memref<112x512xbf16, #tpu.memory_space<vmem>>, vector<112x32xbf16>
    tpu.vector_store %arg9[%c0_22, %c448], %38 {strides = array<i32>} : memref<112x512xbf16, #tpu.memory_space<vmem>>, vector<112x32xbf16>,
    %40 = vector.extract_strided_slice %9 {offsets = [311, 0], sizes = [112, 32], strides = [1, 1]} : vector<432x32xbf16> to vector<112x32xbf16>
    %c0_23 = arith.constant 0 : index
    %c480 = arith.constant 480 : index
    %41 = vector.load %arg9[%c0_23, %c480] : memref<112x512xbf16, #tpu.memory_space<vmem>>, vector<112x32xbf16>
    tpu.vector_store %arg9[%c0_23, %c480], %40 {strides = array<i32>} : memref<112x512xbf16, #tpu.memory_space<vmem>>, vector<112x32xbf16>,
    %c0_24 = arith.constant 0 : index
    %c0_25 = arith.constant 0 : index
    %42 = vector.load %arg9[%c0_24, %c0_25] : memref<112x512xbf16, #tpu.memory_space<vmem>>, vector<112x512xbf16>
    %c0_26 = arith.constant 0 : index
    %c0_27 = arith.constant 0 : index
    %43 = vector.load %arg4[%c0_26, %c0_27] : memref<512x64xbf16, #tpu.memory_space<vmem>>, vector<512x64xbf16>
    %cst_28 = arith.constant dense<0.000000e+00> : vector<112x64xf32>
    %44 = tpu.matmul %42, %43, %cst_28 {dimension_numbers = #tpu.dot_dimension_numbers<[1], [0], [0], [1], [0, 0, 1, 1], [], []>} : vector<112x512xbf16>, vector<512x64xbf16>, vector<112x64xf32> -> vector<112x64xf32>
    %c0_29 = arith.constant 0 : index
    %c0_30 = arith.constant 0 : index
    %45 = vector.load %arg5[%c0_29, %c0_30] : memref<1x64xf32, #tpu.memory_space<vmem>>, vector<1x64xf32>
    %46 = vector.broadcast %45 : vector<1x64xf32> to vector<112x64xf32>
    %47 = arith.addf %44, %46 : vector<112x64xf32>
    %cst_31 = arith.constant 0.000000e+00 : f32
    %48 = vector.broadcast %cst_31 : f32 to vector<112x64xf32>
    %49 = arith.maximumf %47, %48 : vector<112x64xf32>
    %50 = arith.truncf %49 : vector<112x64xf32> to vector<112x64xbf16>
    %51 = vector.extract_strided_slice %50 {offsets = [0, 0], sizes = [80, 64], strides = [1, 1]} : vector<112x64xbf16> to vector<80x64xbf16>
    %c0_32 = arith.constant 0 : index
    %c0_33 = arith.constant 0 : index
    %52 = vector.load %arg10[%c0_32, %c0_33] : memref<80x576xbf16, #tpu.memory_space<vmem>>, vector<80x64xbf16>
    tpu.vector_store %arg10[%c0_32, %c0_33], %51 {strides = array<i32>} : memref<80x576xbf16, #tpu.memory_space<vmem>>, vector<80x64xbf16>,
    %53 = vector.extract_strided_slice %50 {offsets = [1, 0], sizes = [80, 64], strides = [1, 1]} : vector<112x64xbf16> to vector<80x64xbf16>
    %c0_34 = arith.constant 0 : index
    %c64_35 = arith.constant 64 : index
    %54 = vector.load %arg10[%c0_34, %c64_35] : memref<80x576xbf16, #tpu.memory_space<vmem>>, vector<80x64xbf16>
    tpu.vector_store %arg10[%c0_34, %c64_35], %53 {strides = array<i32>} : memref<80x576xbf16, #tpu.memory_space<vmem>>, vector<80x64xbf16>,
    %55 = vector.extract_strided_slice %50 {offsets = [2, 0], sizes = [80, 64], strides = [1, 1]} : vector<112x64xbf16> to vector<80x64xbf16>
    %c0_36 = arith.constant 0 : index
    %c128_37 = arith.constant 128 : index
    %56 = vector.load %arg10[%c0_36, %c128_37] : memref<80x576xbf16, #tpu.memory_space<vmem>>, vector<80x64xbf16>
    tpu.vector_store %arg10[%c0_36, %c128_37], %55 {strides = array<i32>} : memref<80x576xbf16, #tpu.memory_space<vmem>>, vector<80x64xbf16>,
    %57 = vector.extract_strided_slice %50 {offsets = [10, 0], sizes = [80, 64], strides = [1, 1]} : vector<112x64xbf16> to vector<80x64xbf16>
    %c0_38 = arith.constant 0 : index
    %c192_39 = arith.constant 192 : index
    %58 = vector.load %arg10[%c0_38, %c192_39] : memref<80x576xbf16, #tpu.memory_space<vmem>>, vector<80x64xbf16>
    tpu.vector_store %arg10[%c0_38, %c192_39], %57 {strides = array<i32>} : memref<80x576xbf16, #tpu.memory_space<vmem>>, vector<80x64xbf16>,
    %59 = vector.extract_strided_slice %50 {offsets = [11, 0], sizes = [80, 64], strides = [1, 1]} : vector<112x64xbf16> to vector<80x64xbf16>
    %c0_40 = arith.constant 0 : index
    %c256_41 = arith.constant 256 : index
    %60 = vector.load %arg10[%c0_40, %c256_41] : memref<80x576xbf16, #tpu.memory_space<vmem>>, vector<80x64xbf16>
    tpu.vector_store %arg10[%c0_40, %c256_41], %59 {strides = array<i32>} : memref<80x576xbf16, #tpu.memory_space<vmem>>, vector<80x64xbf16>,
    %61 = vector.extract_strided_slice %50 {offsets = [12, 0], sizes = [80, 64], strides = [1, 1]} : vector<112x64xbf16> to vector<80x64xbf16>
    %c0_42 = arith.constant 0 : index
    %c320_43 = arith.constant 320 : index
    %62 = vector.load %arg10[%c0_42, %c320_43] : memref<80x576xbf16, #tpu.memory_space<vmem>>, vector<80x64xbf16>
    tpu.vector_store %arg10[%c0_42, %c320_43], %61 {strides = array<i32>} : memref<80x576xbf16, #tpu.memory_space<vmem>>, vector<80x64xbf16>,
    %63 = vector.extract_strided_slice %50 {offsets = [20, 0], sizes = [80, 64], strides = [1, 1]} : vector<112x64xbf16> to vector<80x64xbf16>
    %c0_44 = arith.constant 0 : index
    %c384_45 = arith.constant 384 : index
    %64 = vector.load %arg10[%c0_44, %c384_45] : memref<80x576xbf16, #tpu.memory_space<vmem>>, vector<80x64xbf16>
    tpu.vector_store %arg10[%c0_44, %c384_45], %63 {strides = array<i32>} : memref<80x576xbf16, #tpu.memory_space<vmem>>, vector<80x64xbf16>,
    %65 = vector.extract_strided_slice %50 {offsets = [21, 0], sizes = [80, 64], strides = [1, 1]} : vector<112x64xbf16> to vector<80x64xbf16>
    %c0_46 = arith.constant 0 : index
    %c448_47 = arith.constant 448 : index
    %66 = vector.load %arg10[%c0_46, %c448_47] : memref<80x576xbf16, #tpu.memory_space<vmem>>, vector<80x64xbf16>
    tpu.vector_store %arg10[%c0_46, %c448_47], %65 {strides = array<i32>} : memref<80x576xbf16, #tpu.memory_space<vmem>>, vector<80x64xbf16>,
    %67 = vector.extract_strided_slice %50 {offsets = [22, 0], sizes = [80, 64], strides = [1, 1]} : vector<112x64xbf16> to vector<80x64xbf16>
    %c0_48 = arith.constant 0 : index
    %c512 = arith.constant 512 : index
    %68 = vector.load %arg10[%c0_48, %c512] : memref<80x576xbf16, #tpu.memory_space<vmem>>, vector<80x64xbf16>
    tpu.vector_store %arg10[%c0_48, %c512], %67 {strides = array<i32>} : memref<80x576xbf16, #tpu.memory_space<vmem>>, vector<80x64xbf16>,
    %c0_49 = arith.constant 0 : index
    %c0_50 = arith.constant 0 : index
    %69 = vector.load %arg10[%c0_49, %c0_50] : memref<80x576xbf16, #tpu.memory_space<vmem>>, vector<80x576xbf16>
    %c0_51 = arith.constant 0 : index
    %c0_52 = arith.constant 0 : index
    %70 = vector.load %arg6[%c0_51, %c0_52] : memref<576x64xbf16, #tpu.memory_space<vmem>>, vector<576x64xbf16>
    %cst_53 = arith.constant dense<0.000000e+00> : vector<80x64xf32>
    %71 = tpu.matmul %69, %70, %cst_53 {dimension_numbers = #tpu.dot_dimension_numbers<[1], [0], [0], [1], [0, 0, 1, 1], [], []>} : vector<80x576xbf16>, vector<576x64xbf16>, vector<80x64xf32> -> vector<80x64xf32>
    %c0_54 = arith.constant 0 : index
    %c0_55 = arith.constant 0 : index
    %72 = vector.load %arg7[%c0_54, %c0_55] : memref<1x64xf32, #tpu.memory_space<vmem>>, vector<1x64xf32>
    %73 = vector.broadcast %72 : vector<1x64xf32> to vector<80x64xf32>
    %74 = arith.addf %71, %73 : vector<80x64xf32>
    %cst_56 = arith.constant 0.000000e+00 : f32
    %75 = vector.broadcast %cst_56 : f32 to vector<80x64xf32>
    %76 = arith.maximumf %74, %75 : vector<80x64xf32>
    %77 = arith.truncf %76 : vector<80x64xf32> to vector<80x64xbf16>
    %78 = vector.extract_strided_slice %77 {offsets = [0, 0], sizes = [7, 64], strides = [1, 1]} : vector<80x64xbf16> to vector<7x64xbf16>
    %c0_57 = arith.constant 0 : index
    %c0_58 = arith.constant 0 : index
    %c0_59 = arith.constant 0 : index
    %79 = vector.load %arg8[%c0_57, %c0_58, %c0_59] : memref<1x49x64xbf16, #tpu.memory_space<vmem>>, vector<1x7x64xbf16>
    %80 = vector.shape_cast %79 : vector<1x7x64xbf16> to vector<7x64xbf16>
    %81 = vector.shape_cast %78 : vector<7x64xbf16> to vector<1x7x64xbf16>
    tpu.vector_store %arg8[%c0_57, %c0_58, %c0_59], %81 {strides = array<i32>} : memref<1x49x64xbf16, #tpu.memory_space<vmem>>, vector<1x7x64xbf16>,
    %82 = vector.extract_strided_slice %77 {offsets = [10, 0], sizes = [7, 64], strides = [1, 1]} : vector<80x64xbf16> to vector<7x64xbf16>
    %c0_60 = arith.constant 0 : index
    %c7 = arith.constant 7 : index
    %c0_61 = arith.constant 0 : index
    %83 = vector.load %arg8[%c0_60, %c7, %c0_61] : memref<1x49x64xbf16, #tpu.memory_space<vmem>>, vector<1x7x64xbf16>
    %84 = vector.shape_cast %83 : vector<1x7x64xbf16> to vector<7x64xbf16>
    %85 = vector.shape_cast %82 : vector<7x64xbf16> to vector<1x7x64xbf16>
    tpu.vector_store %arg8[%c0_60, %c7, %c0_61], %85 {strides = array<i32>} : memref<1x49x64xbf16, #tpu.memory_space<vmem>>, vector<1x7x64xbf16>,
    %86 = vector.extract_strided_slice %77 {offsets = [20, 0], sizes = [7, 64], strides = [1, 1]} : vector<80x64xbf16> to vector<7x64xbf16>
    %c0_62 = arith.constant 0 : index
    %c14 = arith.constant 14 : index
    %c0_63 = arith.constant 0 : index
    %87 = vector.load %arg8[%c0_62, %c14, %c0_63] : memref<1x49x64xbf16, #tpu.memory_space<vmem>>, vector<1x7x64xbf16>
    %88 = vector.shape_cast %87 : vector<1x7x64xbf16> to vector<7x64xbf16>
    %89 = vector.shape_cast %86 : vector<7x64xbf16> to vector<1x7x64xbf16>
    tpu.vector_store %arg8[%c0_62, %c14, %c0_63], %89 {strides = array<i32>} : memref<1x49x64xbf16, #tpu.memory_space<vmem>>, vector<1x7x64xbf16>,
    %90 = vector.extract_strided_slice %77 {offsets = [30, 0], sizes = [7, 64], strides = [1, 1]} : vector<80x64xbf16> to vector<7x64xbf16>
    %c0_64 = arith.constant 0 : index
    %c21 = arith.constant 21 : index
    %c0_65 = arith.constant 0 : index
    %91 = vector.load %arg8[%c0_64, %c21, %c0_65] : memref<1x49x64xbf16, #tpu.memory_space<vmem>>, vector<1x7x64xbf16>
    %92 = vector.shape_cast %91 : vector<1x7x64xbf16> to vector<7x64xbf16>
    %93 = vector.shape_cast %90 : vector<7x64xbf16> to vector<1x7x64xbf16>
    tpu.vector_store %arg8[%c0_64, %c21, %c0_65], %93 {strides = array<i32>} : memref<1x49x64xbf16, #tpu.memory_space<vmem>>, vector<1x7x64xbf16>,
    %94 = vector.extract_strided_slice %77 {offsets = [40, 0], sizes = [7, 64], strides = [1, 1]} : vector<80x64xbf16> to vector<7x64xbf16>
    %c0_66 = arith.constant 0 : index
    %c28 = arith.constant 28 : index
    %c0_67 = arith.constant 0 : index
    %95 = vector.load %arg8[%c0_66, %c28, %c0_67] : memref<1x49x64xbf16, #tpu.memory_space<vmem>>, vector<1x7x64xbf16>
    %96 = vector.shape_cast %95 : vector<1x7x64xbf16> to vector<7x64xbf16>
    %97 = vector.shape_cast %94 : vector<7x64xbf16> to vector<1x7x64xbf16>
    tpu.vector_store %arg8[%c0_66, %c28, %c0_67], %97 {strides = array<i32>} : memref<1x49x64xbf16, #tpu.memory_space<vmem>>, vector<1x7x64xbf16>,
    %98 = vector.extract_strided_slice %77 {offsets = [50, 0], sizes = [7, 64], strides = [1, 1]} : vector<80x64xbf16> to vector<7x64xbf16>
    %c0_68 = arith.constant 0 : index
    %c35 = arith.constant 35 : index
    %c0_69 = arith.constant 0 : index
    %99 = vector.load %arg8[%c0_68, %c35, %c0_69] : memref<1x49x64xbf16, #tpu.memory_space<vmem>>, vector<1x7x64xbf16>
    %100 = vector.shape_cast %99 : vector<1x7x64xbf16> to vector<7x64xbf16>
    %101 = vector.shape_cast %98 : vector<7x64xbf16> to vector<1x7x64xbf16>
    tpu.vector_store %arg8[%c0_68, %c35, %c0_69], %101 {strides = array<i32>} : memref<1x49x64xbf16, #tpu.memory_space<vmem>>, vector<1x7x64xbf16>,
    %102 = vector.extract_strided_slice %77 {offsets = [60, 0], sizes = [7, 64], strides = [1, 1]} : vector<80x64xbf16> to vector<7x64xbf16>
    %c0_70 = arith.constant 0 : index
    %c42 = arith.constant 42 : index
    %c0_71 = arith.constant 0 : index
    %103 = vector.load %arg8[%c0_70, %c42, %c0_71] : memref<1x49x64xbf16, #tpu.memory_space<vmem>>, vector<1x7x64xbf16>
    %104 = vector.shape_cast %103 : vector<1x7x64xbf16> to vector<7x64xbf16>
    %105 = vector.shape_cast %102 : vector<7x64xbf16> to vector<1x7x64xbf16>
    tpu.vector_store %arg8[%c0_70, %c42, %c0_71], %105 {strides = array<i32>} : memref<1x49x64xbf16, #tpu.memory_space<vmem>>, vector<1x7x64xbf16>,
    return
  }
  func.func @transform_0(%arg0: i32) -> (i32, i32, i32) {
    %c0_i32 = arith.constant 0 : i32
    %c0_i32_0 = arith.constant 0 : i32
    %c0_i32_1 = arith.constant 0 : i32
    return %arg0, %c0_i32, %c0_i32_0 : i32, i32, i32
  }
  func.func @transform_1(%arg0: i32) -> (i32, i32) {
    %c0_i32 = arith.constant 0 : i32
    %c0_i32_0 = arith.constant 0 : i32
    %c0_i32_1 = arith.constant 0 : i32
    return %c0_i32, %c0_i32_0 : i32, i32
  }
  func.func @transform_2(%arg0: i32) -> (i32, i32) {
    %c0_i32 = arith.constant 0 : i32
    %c0_i32_0 = arith.constant 0 : i32
    %c0_i32_1 = arith.constant 0 : i32
    return %c0_i32, %c0_i32_0 : i32, i32
  }
  func.func @transform_3(%arg0: i32) -> (i32, i32) {
    %c0_i32 = arith.constant 0 : i32
    %c0_i32_0 = arith.constant 0 : i32
    %c0_i32_1 = arith.constant 0 : i32
    return %c0_i32, %c0_i32_0 : i32, i32
  }
  func.func @transform_4(%arg0: i32) -> (i32, i32) {
    %c0_i32 = arith.constant 0 : i32
    %c0_i32_0 = arith.constant 0 : i32
    %c0_i32_1 = arith.constant 0 : i32
    return %c0_i32, %c0_i32_0 : i32, i32
  }
  func.func @transform_5(%arg0: i32) -> (i32, i32) {
    %c0_i32 = arith.constant 0 : i32
    %c0_i32_0 = arith.constant 0 : i32
    %c0_i32_1 = arith.constant 0 : i32
    return %c0_i32, %c0_i32_0 : i32, i32
  }
  func.func @transform_6(%arg0: i32) -> (i32, i32) {
    %c0_i32 = arith.constant 0 : i32
    %c0_i32_0 = arith.constant 0 : i32
    %c0_i32_1 = arith.constant 0 : i32
    return %c0_i32, %c0_i32_0 : i32, i32
  }
  func.func @transform_7(%arg0: i32) -> (i32, i32, i32) {
    %c0_i32 = arith.constant 0 : i32
    %c0_i32_0 = arith.constant 0 : i32
    %c0_i32_1 = arith.constant 0 : i32
    return %arg0, %c0_i32, %c0_i32_0 : i32, i32, i32
  }
}

module attributes {stable_mosaic.version = 11 : i64} {
  func.func @_linear_relu_kernel(%arg0: i32, %arg1: memref<2x3136xbf16, #tpu.memory_space<vmem>>, %arg2: memref<3136x512xbf16, #tpu.memory_space<vmem>>, %arg3: memref<1x512xf32, #tpu.memory_space<vmem>>, %arg4: memref<2x512xf32, #tpu.memory_space<vmem>>) attributes {dimension_semantics = [#tpu.dimension_semantics<arbitrary>], iteration_bounds = array<i64: 1>, scalar_prefetch = 0 : i64, scratch_operands = 0 : i64, tpu.core_type = #tpu.core_type<tc>, window_params = [{pipeline_mode = #tpu.pipeline_mode<synchronous>, transform_indices = @transform_0, window_bounds = array<i64: 2, 3136>}, {pipeline_mode = #tpu.pipeline_mode<synchronous>, transform_indices = @transform_1, window_bounds = array<i64: 3136, 512>}, {pipeline_mode = #tpu.pipeline_mode<synchronous>, transform_indices = @transform_2, window_bounds = array<i64: 1, 512>}, {pipeline_mode = #tpu.pipeline_mode<synchronous>, transform_indices = @transform_3, window_bounds = array<i64: 2, 512>}]} {
    %c0 = arith.constant 0 : index
    %c0_0 = arith.constant 0 : index
    %0 = vector.load %arg1[%c0, %c0_0] : memref<2x3136xbf16, #tpu.memory_space<vmem>>, vector<2x3136xbf16>
    %c0_1 = arith.constant 0 : index
    %c0_2 = arith.constant 0 : index
    %1 = vector.load %arg2[%c0_1, %c0_2] : memref<3136x512xbf16, #tpu.memory_space<vmem>>, vector<3136x512xbf16>
    %cst = arith.constant dense<0.000000e+00> : vector<2x512xf32>
    %2 = tpu.matmul %0, %1, %cst {dimension_numbers = #tpu.dot_dimension_numbers<[1], [0], [0], [1], [0, 0, 1, 1], [], []>} : vector<2x3136xbf16>, vector<3136x512xbf16>, vector<2x512xf32> -> vector<2x512xf32>
    %c0_3 = arith.constant 0 : index
    %c0_4 = arith.constant 0 : index
    %3 = vector.load %arg3[%c0_3, %c0_4] : memref<1x512xf32, #tpu.memory_space<vmem>>, vector<1x512xf32>
    %4 = vector.broadcast %3 : vector<1x512xf32> to vector<2x512xf32>
    %5 = arith.addf %2, %4 : vector<2x512xf32>
    %cst_5 = arith.constant 0.000000e+00 : f32
    %6 = vector.broadcast %cst_5 : f32 to vector<2x512xf32>
    %7 = arith.maximumf %5, %6 : vector<2x512xf32>
    %c0_6 = arith.constant 0 : index
    %c0_7 = arith.constant 0 : index
    %8 = vector.load %arg4[%c0_6, %c0_7] : memref<2x512xf32, #tpu.memory_space<vmem>>, vector<2x512xf32>
    tpu.vector_store %arg4[%c0_6, %c0_7], %7 {strides = array<i32>} : memref<2x512xf32, #tpu.memory_space<vmem>>, vector<2x512xf32>,
    return
  }
  func.func @transform_0(%arg0: i32) -> (i32, i32) {
    %c0_i32 = arith.constant 0 : i32
    %c0_i32_0 = arith.constant 0 : i32
    %c0_i32_1 = arith.constant 0 : i32
    return %c0_i32, %c0_i32_0 : i32, i32
  }
  func.func @transform_1(%arg0: i32) -> (i32, i32) {
    %c0_i32 = arith.constant 0 : i32
    %c0_i32_0 = arith.constant 0 : i32
    %c0_i32_1 = arith.constant 0 : i32
    return %c0_i32, %c0_i32_0 : i32, i32
  }
  func.func @transform_2(%arg0: i32) -> (i32, i32) {
    %c0_i32 = arith.constant 0 : i32
    %c0_i32_0 = arith.constant 0 : i32
    %c0_i32_1 = arith.constant 0 : i32
    return %c0_i32, %c0_i32_0 : i32, i32
  }
  func.func @transform_3(%arg0: i32) -> (i32, i32) {
    %c0_i32 = arith.constant 0 : i32
    %c0_i32_0 = arith.constant 0 : i32
    %c0_i32_1 = arith.constant 0 : i32
    return %c0_i32, %c0_i32_0 : i32, i32
  }
}

</mosaic_0001>

<bundles_post_ra>
// kernel: cnn_forward.2
= control target key start
LH: loop header
LB: loop body
LE: loop exit
PB: predicated region body
PF: predicated region fallthrough
CT: control target
= control target key end

     0   :  { %s6133_s24 = smov 0   ;;  %s9208_s0 = inlined_call_operand.vmem [shape: bf16[2,432,256], index: 0, kind: input, shape index: {}]   ;;  %s9209_s1 = inlined_call_operand.vmem [shape: bf16[256,32], index: 1, kind: input, shape index: {}]   ;;  %s9210_s2 = inlined_call_operand.vmem [shape: f32[1,32], index: 2, kind: input, shape index: {}]   ;;  %s9211_s3 = inlined_call_operand.vmem [shape: bf16[512,64], index: 3, kind: input, shape index: {}]   ;;  %s9212_s4 = inlined_call_operand.vmem [shape: f32[1,64], index: 4, kind: input, shape index: {}]   ;;  %s9213_s5 = inlined_call_operand.vmem [shape: bf16[576,64], index: 5, kind: input, shape index: {}]   ;;  %s9214_s6 = inlined_call_operand.vmem [shape: f32[1,64], index: 6, kind: input, shape index: {}]   ;;  %s9215_s7 = inlined_call_operand.vmem [shape: bf16[2,49,64], index: 7, kind: output, shape index: {}]  }
   0x1 LB: > { %s5222_s25 = sadd.s32 4294967295, %s6085_s24   ;;  %p5226_p0 = scmp.ge.s32.totalorder %s6085_s24, 1  ;;  %s6085_s24 = sphi %s6133_s24, %s17_s24  }
   0x2   : > { %p237_p1 = scmp.lt.s32.totalorder %s6085_s24, 3 }
   0x4   : > { %p238_p2 = pnand %p5226_p0, %p237_p1 }
   0x6   : > { %241 = sbr.rel (%p238_p2) target bundleno = 1362 (0x552), region = 48 }
   0xb   : > { %v5851_v0 = vld [vmem:[%s9209_s1 + $0x38] sm:$0xff]   ;;  %v6087_v1 = vmov 0   ;;  %v5852_v2 = vld [vmem:[%s9209_s1 + $0x30] sm:$0xff]   ;;  %p269_p3 = scmp.lt.s32.totalorder %s5222_s25, 1  ;;  %v5853_v3 = vld [vmem:[%s9209_s1 + $0x28] sm:$0xff]   ;;  %vm1118_vm0 = vcmask 257024  }
   0xc   : > { %739 = vmatprep.subr.bf16.mxu0 %v6087_v1  ;;  %v5854_v4 = vld [vmem:[%s9209_s1 + $0x20] sm:$0xff]   ;;  %v5855_v5 = vld [vmem:[%s9209_s1 + $0x18] sm:$0xff]   ;;  %v5856_v7 = vld [vmem:[%s9209_s1 + $0x10] sm:$0xff]   ;;  %vm1269_vm1 = vsmask.f32 3328  ;;  %vm2238_vm6 = vcmask 1042432  }
   0xd   : > { %740 = vmatpush1.bf16.msra.mxu0 %v5851_v0  ;;  %s9497_s25 = smov (!%p269_p3, %s5222_s25), 1  ;;  %v5857_v8 = vld [vmem:[%s9209_s1 + $0x8] sm:$0xff]   ;;  %v5858_v9 = vld [vmem:[%s9209_s1] sm:$0xff]   ;;  %v5859_v10 = vld [vmem:[%s9209_s1 + $0x78] sm:$0xff]   ;;  %vm1270_vm2 = vsmask.f32 7440 }
   0xe   : > { %741 = vmatprep.subr.bf16.mxu0 %v6087_v1  ;;  %s5835_s11 = smul.u32 432, %s9497_s25  ;;  %v5860_v11 = vld [vmem:[%s9209_s1 + $0x70] sm:$0xff]   ;;  %v5861_v12 = vld [vmem:[%s9209_s1 + $0x68] sm:$0xff]   ;;  %v5862_v13 = vld [vmem:[%s9209_s1 + $0x60] sm:$0xff]   ;;  %vm2414_vm4 = vsmask.f32 2304 }
   0xf   : > { %v5863_v14 = vld [vmem:[%s9209_s1 + $0x58] sm:$0xff]   ;;  %v5864_v15 = vld [vmem:[%s9209_s1 + $0x50] sm:$0xff]   ;;  %v5865_v16 = vld [vmem:[%s9209_s1 + $0x48] sm:$0xff]   ;;  %vm2415_vm5 = vsmask.f32 6416  ;;  %vm2239_vm7 = vcmask 1046532  }
  0x10   : > { %s6162_s16 = scalar_lea.vmem %s9208_s0, %s5835_s11  ;;  %v5866_v17 = vld [vmem:[%s9209_s1 + $0x40] sm:$0xff]   ;;  %vm6266_vm3 = vmor %vm1269_vm1, %vm1270_vm2  ;;  %vm1166_vm10 = vcmask 1041408   ;;  %vm1167_vm11 = vcmask 1045508   ;;  %s6089_s21 = smov 32   ;;  %vm1473_vm13 = vsmask.f32 1280 }
  0x11   : > { %742 = vmatpush1.bf16.msra.mxu0 %v5852_v2  ;;  %v5869_v6 = vld [vmem:[%s6162_s16 + $0x4] ss:$8 sps:$4 sm:$0xff]   ;;  %v5867_v18 = vld [vmem:[%s6162_s16] ss:$8 sps:$4 sm:$0xff]   ;;  %v5870_v19 = vld [vmem:[%s6162_s16 + $0x14] ss:$8 sps:$4 sm:$0xff]  }
  0x12   : > { %743 = vmatprep.subr.bf16.mxu0 %v6087_v1  ;;  %771 = vmatprep.mubr.bf16.mxu0 %v5869_v6  ;;  %v5872_v20 = vld [vmem:[%s6162_s16 + $0x10] ss:$8 sps:$4 sm:$0xff]   ;;  %v5873_v21 = vld [vmem:[%s6162_s16 + $0x24] ss:$8 sps:$4 sm:$0xff]   ;;  %v5875_v22 = vld [vmem:[%s6162_s16 + $0x20] ss:$8 sps:$4 sm:$0xff]  }
  0x13   : > { %v5876_v23 = vld [vmem:[%s6162_s16 + $0x34] ss:$8 sps:$4 sm:$0xff]   ;;  %v5878_v24 = vld [vmem:[%s6162_s16 + $0x30] ss:$8 sps:$4 sm:$0xff]   ;;  %v5879_v25 = vld [vmem:[%s6162_s16 + $0x44] ss:$8 sps:$4 sm:$0xff]  }
  0x14   : > { %v5881_v26 = vld [vmem:[%s6162_s16 + $0x40] ss:$8 sps:$4 sm:$0xff]   ;;  %v5882_v27 = vld [vmem:[%s6162_s16 + $0x54] ss:$8 sps:$4 sm:$0xff]   ;;  %v5884_v28 = vld [vmem:[%s6162_s16 + $0x50] ss:$8 sps:$4 sm:$0xff]  }
  0x15   : > { %744 = vmatpush1.bf16.msra.mxu0 %v5853_v3  ;;  %v5885_v29 = vld [vmem:[%s6162_s16 + $0x64] ss:$8 sps:$4 sm:$0xff]   ;;  %v5887_v30 = vld [vmem:[%s6162_s16 + $0x60] ss:$8 sps:$4 sm:$0xff]   ;;  %v5888_v31 = vld [vmem:[%s6162_s16 + $0x74] ss:$8 sps:$4 sm:$0xff]  }
  0x16   : > { %745 = vmatprep.subr.bf16.mxu0 %v6087_v1  ;;  %v5890_v32 = vld [vmem:[%s6162_s16 + $0x70] ss:$8 sps:$4 sm:$0xff]   ;;  %v5891_v33 = vld [vmem:[%s6162_s16 + $0x84] ss:$8 sps:$4 sm:$0xff]   ;;  %v5893_v34 = vld [vmem:[%s6162_s16 + $0x80] ss:$8 sps:$4 sm:$0xff]  }
  0x17   : > { %v5894_v35 = vld [vmem:[%s6162_s16 + $0x94] ss:$8 sps:$4 sm:$0xff]   ;;  %v5896_v36 = vld [vmem:[%s6162_s16 + $0x90] ss:$8 sps:$4 sm:$0xff]   ;;  %v5897_v37 = vld [vmem:[%s6162_s16 + $0xa4] ss:$8 sps:$4 sm:$0xff]  }
  0x18   : > { %v5899_v38 = vld [vmem:[%s6162_s16 + $0xa0] ss:$8 sps:$4 sm:$0xff]   ;;  %v5900_v39 = vld [vmem:[%s6162_s16 + $0xb4] ss:$8 sps:$4 sm:$0xff]   ;;  %v5902_v40 = vld [vmem:[%s6162_s16 + $0xb0] ss:$8 sps:$4 sm:$0xff]  }
  0x19   : > { %746 = vmatpush1.bf16.msra.mxu0 %v5854_v4  ;;  %v5903_v41 = vld [vmem:[%s6162_s16 + $0xc4] ss:$8 sps:$4 sm:$0xff]   ;;  %v5905_v42 = vld [vmem:[%s6162_s16 + $0xc0] ss:$8 sps:$4 sm:$0xff]   ;;  %v5906_v43 = vld [vmem:[%s6162_s16 + $0xd4] ss:$8 sps:$4 sm:$0xff]  }
  0x1a   : > { %747 = vmatprep.subr.bf16.mxu0 %v6087_v1  ;;  %v5908_v44 = vld [vmem:[%s6162_s16 + $0xd0] ss:$8 sps:$4 sm:$0xff]   ;;  %v5909_v45 = vld [vmem:[%s6162_s16 + $0xe4] ss:$8 sps:$4 sm:$0xff]   ;;  %v5911_v46 = vld [vmem:[%s6162_s16 + $0xe0] ss:$8 sps:$4 sm:$0xff]  }
  0x1b   : > { %v5912_v47 = vld [vmem:[%s6162_s16 + $0xf4] ss:$8 sps:$4 sm:$0xff]   ;;  %v5914_v48 = vld [vmem:[%s6162_s16 + $0xf0] ss:$8 sps:$4 sm:$0xff]   ;;  %v5915_v49 = vld [vmem:[%s6162_s16 + $0x104] ss:$8 sps:$4 sm:$0xff]  }
  0x1c   : > { %v5917_v50 = vld [vmem:[%s6162_s16 + $0x100] ss:$8 sps:$4 sm:$0xff]   ;;  %v5918_v51 = vld [vmem:[%s6162_s16 + $0x114] ss:$8 sps:$4 sm:$0xff]   ;;  %v5920_v52 = vld [vmem:[%s6162_s16 + $0x110] ss:$8 sps:$4 sm:$0xff]  }
  0x1d   : > { %748 = vmatpush1.bf16.msra.mxu0 %v5855_v5  ;;  %v5921_v53 = vld [vmem:[%s6162_s16 + $0x124] ss:$8 sps:$4 sm:$0xff]   ;;  %v5923_v54 = vld [vmem:[%s6162_s16 + $0x120] ss:$8 sps:$4 sm:$0xff]   ;;  %v5924_v55 = vld [vmem:[%s6162_s16 + $0x134] ss:$8 sps:$4 sm:$0xff]  }
  0x1e   : > { %749 = vmatprep.subr.bf16.mxu0 %v6087_v1  ;;  %v5926_v56 = vld [vmem:[%s6162_s16 + $0x130] ss:$8 sps:$4 sm:$0xff]   ;;  %v5927_v57 = vld [vmem:[%s6162_s16 + $0x144] ss:$8 sps:$4 sm:$0xff]   ;;  %v5929_v58 = vld [vmem:[%s6162_s16 + $0x140] ss:$8 sps:$4 sm:$0xff]  }
  0x1f   : > { %v5930_v59 = vld [vmem:[%s6162_s16 + $0x154] ss:$8 sps:$4 sm:$0xff]   ;;  %v5932_v60 = vld [vmem:[%s6162_s16 + $0x150] ss:$8 sps:$4 sm:$0xff]   ;;  %v5933_v61 = vld [vmem:[%s6162_s16 + $0x164] ss:$8 sps:$4 sm:$0xff]  }
  0x20   : > { %v5935_v62 = vld [vmem:[%s6162_s16 + $0x160] ss:$8 sps:$4 sm:$0xff]   ;;  %v5936_v63 = vld [vmem:[%s6162_s16 + $0x174] ss:$8 sps:$4 sm:$0xff]   ;;  %v5938_v0 = vld [vmem:[%s6162_s16 + $0x170] ss:$8 sps:$4 sm:$0xff]  }
  0x21   : > { %750 = vmatpush1.bf16.msra.mxu0 %v5856_v7  ;;  %v5941_v2 = vld [vmem:[%s6162_s16 + $0x180] ss:$8 sps:$4 sm:$0xff]   ;;  %v5942_v3 = vld [vmem:[%s6162_s16 + $0x194] ss:$8 sps:$4 sm:$0xff]   ;;  %vm6290_vm8 = vmor %vm2414_vm4, %vm2415_vm5  ;;  %vm1474_vm14 = vsmask.f32 5392 }
  0x22   : > { %751 = vmatprep.subr.bf16.mxu0 %v6087_v1  ;;  %v6251_v4 = vld [vmem:[%s9210_s2] ss:$0 sm:$0xff]  ;;  %vm6311_vm9 = vmor %vm2238_vm6, %vm2239_vm7  ;;  %vm2312_vm2 = vcmask 1040384   ;;  %vm2313_vm5 = vcmask 1044484   ;;  %s6090_s22 = smov 96   ;;  %s5836_s10 = smul.u32 28, %s9497_s25 }
  0x23   : > { %vm6484_vm12 = vmor %vm1166_vm10, %vm1167_vm11  ;;  %vm2546_vm7 = vsmask.f32 256  ;;  %vm2547_vm10 = vsmask.f32 4368 }
  0x24   : > { %vm6538_vm15 = vmor %vm1473_vm13, %vm1474_vm14  ;;  %vm1254_vm14 = vcmask 519424   ;;  %s9124_s12 = scalar_lea.vmem %s9215_s7, %s5836_s10 }
  0x25   : > { %752 = vmatpush1.bf16.msra.mxu0 %v5857_v8  ;;  %vm6556_vm6 = vmor %vm2312_vm2, %vm2313_vm5  ;;  %vm1458_vm2 = vcmask 781824   ;;  %vm1653_vm5 = vcmask 1044224  }
  0x26   : > { %753 = vmatprep.subr.bf16.mxu0 %v6087_v1  ;;  %vm6599_vm11 = vmor %vm2546_vm7, %vm2547_vm10  ;;  %vm4778_vm10 = vcmask 523264  }
  0x29   : > { %754 = vmatpush1.bf16.msra.mxu0 %v5858_v9 }
  0x2a   : > { %755 = vmatprep.subr.bf16.mxu0 %v6087_v1 }
  0x2d   : > { %756 = vmatpush2.bf16.msra.mxu0 %v5859_v10  ;;  %v5944_v10 = vld [vmem:[%s6162_s16 + $0x190] ss:$8 sps:$4 sm:$0xff]  }
  0x2e   : > { %757 = vmatprep.subr.bf16.mxu0 %v6087_v1 }
  0x31   : > { %758 = vmatpush2.bf16.msra.mxu0 %v5860_v11 }
  0x32   : > { %759 = vmatprep.subr.bf16.mxu0 %v6087_v1 }
  0x35   : > { %760 = vmatpush2.bf16.msra.mxu0 %v5861_v12 }
  0x36   : > { %761 = vmatprep.subr.bf16.mxu0 %v6087_v1 }
  0x39   : > { %762 = vmatpush2.bf16.msra.mxu0 %v5862_v13  ;;  %v5945_v13 = vld [vmem:[%s6162_s16 + $0x1a4] ss:$8 sps:$4 sm:$0xff]  }
  0x3a   : > { %763 = vmatprep.subr.bf16.mxu0 %v6087_v1 }
  0x3d   : > { %764 = vmatpush2.bf16.msra.mxu0 %v5863_v14 }
  0x3e   : > { %765 = vmatprep.subr.bf16.mxu0 %v6087_v1 }
  0x41   : > { %766 = vmatpush2.bf16.msra.mxu0 %v5864_v15 }
  0x42   : > { %767 = vmatprep.subr.bf16.mxu0 %v6087_v1 }
  0x45   : > { %768 = vmatpush2.bf16.msra.mxu0 %v5865_v16 }
  0x46   : > { %769 = vmatprep.subr.bf16.mxu0 %v6087_v1  ;;  %v5939_v1 = vld [vmem:[%s6162_s16 + $0x184] ss:$8 sps:$4 sm:$0xff]  }
  0x49   : > { %770 = vmatpush2.bf16.msra.mxu0 %v5866_v17 }
  0x4c   : > { %772 = vmatmul.mubr.bf16.vlgmr.msra.gmra.mxu0 %v5867_v18 }
  0x4d   : > { %779 = vmatprep.mubr.bf16.mxu0 %v5870_v19 }
  0x54   : > { %780 = vmatmul.mubr.bf16.gmra.mxu0 %v5872_v20 }
  0x55   : > { %787 = vmatprep.mubr.bf16.mxu0 %v5873_v21 }
  0x5c   : > { %788 = vmatmul.mubr.bf16.gmra.mxu0 %v5875_v22 }
  0x5d   : > { %795 = vmatprep.mubr.bf16.mxu0 %v5876_v23 }
  0x64   : > { %796 = vmatmul.mubr.bf16.gmra.mxu0 %v5878_v24 }
  0x65   : > { %803 = vmatprep.mubr.bf16.mxu0 %v5879_v25 }
  0x6c   : > { %804 = vmatmul.mubr.bf16.gmra.mxu0 %v5881_v26 }
  0x6d   : > { %811 = vmatprep.mubr.bf16.mxu0 %v5882_v27 }
  0x74   : > { %812 = vmatmul.mubr.bf16.gmra.mxu0 %v5884_v28 }
  0x75   : > { %819 = vmatprep.mubr.bf16.mxu0 %v5885_v29  ;;  %v9305_v29 = vmov 0 }
  0x76   : > { %v9306_v29 = vsel %vm6266_vm3, 4294967295, %v9305_v29 }
  0x77   : > { %9307 = vst [vmem:[#allocation4_spill] sm:$0xff] %v9306_v29 }
  0x7c   : > { %820 = vmatmul.mubr.bf16.gmra.mxu0 %v5887_v30  ;;  %v5947_v30 = vld [vmem:[%s6162_s16 + $0x1a0] ss:$8 sps:$4 sm:$0xff]   ;;  %s6088_s16 = smov 64  }
  0x7d   : > { %827 = vmatprep.mubr.bf16.mxu0 %v5888_v31 }
  0x84   : > { %828 = vmatmul.mubr.bf16.gmra.mxu0 %v5890_v32 }
  0x85   : > { %835 = vmatprep.mubr.bf16.mxu0 %v5891_v33 }
  0x8c   : > { %836 = vmatmul.mubr.bf16.gmra.mxu0 %v5893_v34 }
  0x8d   : > { %843 = vmatprep.mubr.bf16.mxu0 %v5894_v35 }
  0x94   : > { %844 = vmatmul.mubr.bf16.gmra.mxu0 %v5896_v36 }
  0x95   : > { %851 = vmatprep.mubr.bf16.mxu0 %v5897_v37 }
  0x9c   : > { %852 = vmatmul.mubr.bf16.gmra.mxu0 %v5899_v38 }
  0x9d   : > { %859 = vmatprep.mubr.bf16.mxu0 %v5900_v39 }
  0xa4   : > { %860 = vmatmul.mubr.bf16.gmra.mxu0 %v5902_v40 }
  0xa5   : > { %867 = vmatprep.mubr.bf16.mxu0 %v5903_v41 }
  0xac   : > { %868 = vmatmul.mubr.bf16.gmra.mxu0 %v5905_v42 }
  0xad   : > { %875 = vmatprep.mubr.bf16.mxu0 %v5906_v43 }
  0xb4   : > { %876 = vmatmul.mubr.bf16.gmra.mxu0 %v5908_v44 }
  0xb5   : > { %883 = vmatprep.mubr.bf16.mxu0 %v5909_v45 }
  0xbc   : > { %884 = vmatmul.mubr.bf16.gmra.mxu0 %v5911_v46 }
  0xbd   : > { %891 = vmatprep.mubr.bf16.mxu0 %v5912_v47 }
  0xc4   : > { %892 = vmatmul.mubr.bf16.gmra.mxu0 %v5914_v48 }
  0xc5   : > { %899 = vmatprep.mubr.bf16.mxu0 %v5915_v49 }
  0xcc   : > { %900 = vmatmul.mubr.bf16.gmra.mxu0 %v5917_v50 }
  0xcd   : > { %907 = vmatprep.mubr.bf16.mxu0 %v5918_v51 }
  0xd4   : > { %908 = vmatmul.mubr.bf16.gmra.mxu0 %v5920_v52 }
  0xd5   : > { %915 = vmatprep.mubr.bf16.mxu0 %v5921_v53 }
  0xdc   : > { %916 = vmatmul.mubr.bf16.gmra.mxu0 %v5923_v54 }
  0xdd   : > { %923 = vmatprep.mubr.bf16.mxu0 %v5924_v55 }
  0xe4   : > { %924 = vmatmul.mubr.bf16.gmra.mxu0 %v5926_v56 }
  0xe5   : > { %931 = vmatprep.mubr.bf16.mxu0 %v5927_v57 }
  0xec   : > { %932 = vmatmul.mubr.bf16.gmra.mxu0 %v5929_v58 }
  0xed   : > { %939 = vmatprep.mubr.bf16.mxu0 %v5930_v59  ;;  %v9308_v59 = vmov 0 }
  0xee   : > { %v9309_v59 = vsel %vm6290_vm8, 4294967295, %v9308_v59 }
  0xef   : > { %9310 = vst [vmem:[#allocation5_spill] sm:$0xff] %v9309_v59 }
  0xf4   : > { %940 = vmatmul.mubr.bf16.gmra.mxu0 %v5932_v60 }
  0xf5   : > { %947 = vmatprep.mubr.bf16.mxu0 %v5933_v61 }
  0xfc   : > { %948 = vmatmul.mubr.bf16.gmra.mxu0 %v5935_v62 }
  0xfd   : > { %955 = vmatprep.mubr.bf16.mxu0 %v5936_v63 }
 0x104   : > { %956 = vmatmul.mubr.bf16.gmra.mxu0 %v5938_v0 }
 0x105   : > { %963 = vmatprep.mubr.bf16.mxu0 %v5939_v1 }
 0x10c   : > { %v773_v5 = vpop.f32.mrf.mxu0  ;;  %964 = vmatmul.mubr.bf16.gmra.mxu0 %v5941_v2 }
 0x10d   : > { %v774_v6 = vadd.f32 %v6251_v4, %v773_v5  ;;  %971 = vmatprep.mubr.bf16.mxu0 %v5942_v3 }
 0x10e   : > { %v775_v7 = vpop.f32.mrf.mxu0 }
 0x10f   : > { %v988_v8 = vmax.f32 %v774_v6, 0.0 }
 0x110   : > { %v776_v9 = vpop.f32.mrf.mxu0 }
 0x111   : > { %v5516_v11 = vpack.c.bf16 %v988_v8, %v988_v8  ;;  %v777_v12 = vadd.f32 %v6251_v4, %v776_v9 }
 0x112   : > { %v778_v14 = vpop.f32.mrf.mxu0 }
 0x113   : > { %v1273_v15 = vshrl.u32 %v5516_v11, 16  ;;  %v1276_v16 = vshll.u32 %v5516_v11, 16  ;;  %v989_v17 = vmax.f32 %v777_v12, 0.0  ;;  %1119 = vst.msk [vmem:[#allocation2] sm:$0xf] %vm1118_vm0, %v5516_v11 }
 0x114   : > { %v781_v18 = vpop.f32.mrf.mxu0  ;;  %972 = vmatmul.mubr.bf16.gmra.mxu0 %v5944_v10 }
 0x115   : > { %v1275_v19 = vrot.slane %v1273_v15, 4  ;;  %v1278_v20 = vrot.slane %v1276_v16, 5  ;;  %v6258_v21 = vpack.c.bf16 %v989_v17, %v989_v17  ;;  %v782_v22 = vadd.f32 %v6251_v4, %v781_v18  ;;  %979 = vmatprep.mubr.bf16.mxu0 %v5945_v13 }
 0x116   : > { %v783_v23 = vpop.f32.mrf.mxu0 }
 0x117   : > { %v990_v24 = vmax.f32 %v782_v22, 0.0  ;;  %v1279_v25 = vor.u32 %v1278_v20, %v1275_v19  ;;  %v1282_v26 = vshll.u32 %v6258_v21, 16  ;;  %v1286_v27 = vshrl.u32 %v6258_v21, 16  ;;  %1120 = vst.msk [vmem:[#allocation2 + $0x10] sm:$0xf] %vm1118_vm0, %v6258_v21 }
 0x118   : > { %v784_v28 = vpop.f32.mrf.mxu0  ;;  %v5354_v46 = vrot.slane %v6258_v21, 9 }
 0x119   : > { %v6271_v31 = vpack.c.bf16 %v990_v24, %v990_v24  ;;  %v785_v32 = vadd.f32 %v6251_v4, %v784_v28  ;;  %v1280_v33 = vrot.slane %v1279_v25, 4  ;;  %v1284_v34 = vrot.slane %v1282_v26, 5 }
 0x11a   : > { %v786_v35 = vpop.f32.mrf.mxu0  ;;  %v1288_v36 = vrot.slane %v1286_v27, 4  ;;  %v2417_v37 = vrot.slane %v1286_v27, 5  ;;  %v2418_v38 = vrot.slane %v1282_v26, 6 }
 0x11b   : > { %v1296_v39 = vshrl.u32 %v6271_v31, 16  ;;  %v991_v40 = vmax.f32 %v785_v32, 0.0  ;;  %v1285_v41 = vsel %vm6266_vm3, %v1280_v33, %v1284_v34  ;;  %1121 = vst.msk [vmem:[#allocation2 + $0x20] sm:$0xf] %vm1118_vm0, %v6271_v31  ;;  %v1292_v44 = vshll.u32 %v6271_v31, 16 }
 0x11c   : > { %v789_v42 = vpop.f32.mrf.mxu0  ;;  %1416 = vrot.lane.b32.xlu0 %v1285_v41, %s6088_s16  ;;  %v1289_v43 = vor.u32 %v1288_v36, %v1284_v34  ;;  %v2419_v45 = vor.u32 %v2418_v38, %v2417_v37  ;;  %980 = vmatmul.mubr.bf16.gmra.mxu0 %v5947_v30  ;;  %v2243_v51 = vrot.slane %v6271_v31, 5 }
 0x11d   : > { %v6282_v47 = vpack.c.bf16 %v991_v40, %v991_v40  ;;  %v790_v48 = vadd.f32 %v6251_v4, %v789_v42  ;;  %v2421_v49 = vrot.slane %v1296_v39, 5  ;;  %v1298_v50 = vrot.slane %v1296_v39, 4 }
 0x11e   : > { %v791_v52 = vpop.f32.mrf.mxu0  ;;  %v1290_v53 = vrot.slane %v1289_v43, 4  ;;  %v1294_v54 = vrot.slane %v1292_v44, 5  ;;  %v2422_v55 = vrot.slane %v1292_v44, 6  ;;  %v2420_v60 = vrot.slane %v2419_v45, 4 }
 0x11f   : > { %v1302_v56 = vshll.u32 %v6282_v47, 16  ;;  %v1306_v57 = vshrl.u32 %v6282_v47, 16  ;;  %v992_v58 = vmax.f32 %v790_v48, 0.0  ;;  %1122 = vst.msk [vmem:[#allocation2 + $0x30] sm:$0xf] %vm1118_vm0, %v6282_v47  ;;  %v2246_v1 = vrot.slane %v6282_v47, 5 }
 0x120   : > { %v792_v61 = vpop.f32.mrf.mxu0  ;;  %v1295_v62 = vsel %vm6266_vm3, %v1290_v53, %v1294_v54  ;;  %v2423_v63 = vor.u32 %v2422_v55, %v2421_v49  ;;  %v1299_v0 = vor.u32 %v1298_v50, %v1294_v54  ;;  %v2245_v11 = vrot.slane %v2243_v51, 4 }
 0x121   : > { %v6299_v2 = vpack.c.bf16 %v992_v58, %v992_v58  ;;  %v793_v3 = vadd.f32 %v6251_v4, %v792_v61  ;;  %1418 = vrot.lane.b32.xlu1 %v1295_v62, %s6088_s16  ;;  %v2426_v5 = vrot.slane %v1306_v57, 5  ;;  %v2427_v6 = vrot.slane %v1302_v56, 6 }
 0x122   : > { %v794_v7 = vpop.f32.mrf.mxu0  ;;  %v2424_v8 = vsel %vm6290_vm8, %v2420_v60, %v2423_v63  ;;  %v1300_v9 = vrot.slane %v1299_v0, 4  ;;  %v1304_v10 = vrot.slane %v1302_v56, 5  ;;  %v2425_v14 = vrot.slane %v2423_v63, 4 }
 0x123   : > { %v1316_v12 = vshrl.u32 %v6299_v2, 16  ;;  %v993_v13 = vmax.f32 %v793_v3, 0.0  ;;  %2490 = vrot.lane.b32.xlu0 %v2424_v8, %s6088_s16  ;;  %v2428_v15 = vor.u32 %v2427_v6, %v2426_v5  ;;  %1123 = vst.msk [vmem:[#allocation2 + $0x40] sm:$0xf] %vm1118_vm0, %v6299_v2  ;;  %v2249_v17 = vrot.slane %v6299_v2, 5 }
 0x124   : > { %v797_v18 = vpop.f32.mrf.mxu0  ;;  %v1308_v19 = vrot.slane %v1306_v57, 4  ;;  %v1312_v20 = vshll.u32 %v6299_v2, 16  ;;  %v2247_v22 = vsel %vm6311_vm9, %v2245_v11, %v2246_v1  ;;  %v1305_v26 = vsel %vm6266_vm3, %v1300_v9, %v1304_v10 }
 0x125   : > { %v6321_v23 = vpack.c.bf16 %v993_v13, %v993_v13  ;;  %v798_v24 = vadd.f32 %v6251_v4, %v797_v18  ;;  %v2429_v25 = vsel %vm6290_vm8, %v2425_v14, %v2428_v15  ;;  %2299 = vst.msk [vmem:[#allocation2 + $0x18] sm:$0xf] %vm1118_vm0, %v2247_v22  ;;  %v2431_v31 = vrot.slane %v1316_v12, 5 }
 0x126   : > { %v799_v27 = vpop.f32.mrf.mxu0  ;;  %2492 = vrot.lane.b32.xlu1 %v2429_v25, %s6088_s16  ;;  %v1309_v28 = vor.u32 %v1308_v19, %v1304_v10  ;;  %v1314_v30 = vrot.slane %v1312_v20, 5  ;;  %v2432_v32 = vrot.slane %v1312_v20, 6  ;;  %v1318_v36 = vrot.slane %v1316_v12, 4 }
 0x127   : > { %v1322_v33 = vshll.u32 %v6321_v23, 16  ;;  %v1326_v34 = vshrl.u32 %v6321_v23, 16  ;;  %v994_v35 = vmax.f32 %v798_v24, 0.0  ;;  %1420 = vrot.lane.b32.xlu0 %v1305_v26, %s6088_s16  ;;  %1124 = vst.msk [vmem:[#allocation2 + $0x50] sm:$0xf] %vm1118_vm0, %v6321_v23  ;;  %v2430_v39 = vrot.slane %v2428_v15, 4 }
 0x128   : > { %v800_v37 = vpop.f32.mrf.mxu0  ;;  %v1310_v38 = vrot.slane %v1309_v28, 4  ;;  %v2433_v40 = vor.u32 %v2432_v32, %v2431_v31  ;;  %v2244_v41 = vsel %vm6311_vm9, %v5354_v46, %v2243_v51  ;;  %v1319_v52 = vor.u32 %v1318_v36, %v1314_v30 }
 0x129   : > { %v6339_v42 = vpack.c.bf16 %v994_v35, %v994_v35  ;;  %v801_v43 = vadd.f32 %v6251_v4, %v800_v37  ;;  %v2436_v44 = vrot.slane %v1326_v34, 5  ;;  %v2437_v45 = vrot.slane %v1322_v33, 6  ;;  %2298 = vst.msk [vmem:[#allocation2 + $0x8] sm:$0xf] %vm1118_vm0, %v2244_v41 }
 0x12a   : > { %v802_v48 = vpop.f32.mrf.mxu0  ;;  %v1315_v49 = vsel %vm6266_vm3, %v1310_v38, %v1314_v30  ;;  %v2434_v50 = vsel %vm6290_vm8, %v2430_v39, %v2433_v40  ;;  %v2435_v46 = vrot.slane %v2433_v40, 4  ;;  %v1320_v55 = vrot.slane %v1319_v52, 4 }
 0x12b   : > { %v1336_v21 = vshrl.u32 %v6339_v42, 16  ;;  %v995_v53 = vmax.f32 %v801_v43, 0.0  ;;  %1422 = vrot.lane.b32.xlu1 %v1315_v49, %s6088_s16  ;;  %2494 = vrot.lane.b32.xlu0 %v2434_v50, %s6088_s16  ;;  %v2438_v51 = vor.u32 %v2437_v45, %v2436_v44  ;;  %1125 = vst.msk [vmem:[#allocation2 + $0x60] sm:$0xf] %vm1118_vm0, %v6339_v42  ;;  %v1324_v56 = vrot.slane %v1322_v33, 5 }
 0x12c   : > { %v805_v54 = vpop.f32.mrf.mxu0  ;;  %v1328_v57 = vrot.slane %v1326_v34, 4  ;;  %v1332_v58 = vshll.u32 %v6339_v42, 16  ;;  %v2251_v63 = vrot.slane %v2249_v17, 4  ;;  %v2255_v12 = vrot.slane %v6339_v42, 5 }
 0x12d   : > { %v6353_v60 = vpack.c.bf16 %v995_v53, %v995_v53  ;;  %v806_v61 = vadd.f32 %v6251_v4, %v805_v54  ;;  %v2439_v62 = vsel %vm6290_vm8, %v2435_v46, %v2438_v51  ;;  %v1325_v3 = vsel %vm6266_vm3, %v1320_v55, %v1324_v56 }
 0x12e   : > { %v807_v0 = vpop.f32.mrf.mxu0  ;;  %v1329_v5 = vor.u32 %v1328_v57, %v1324_v56  ;;  %v1334_v6 = vrot.slane %v1332_v58, 5  ;;  %v2441_v7 = vrot.slane %v1336_v21, 5  ;;  %v2442_v11 = vrot.slane %v1332_v58, 6 }
 0x12f   : > { %v1342_v8 = vshll.u32 %v6353_v60, 16  ;;  %v1346_v9 = vshrl.u32 %v6353_v60, 16  ;;  %v996_v10 = vmax.f32 %v806_v61, 0.0  ;;  %2496 = vrot.lane.b32.xlu1 %v2439_v62, %s6088_s16  ;;  %1424 = vrot.lane.b32.xlu0 %v1325_v3, %s6088_s16  ;;  %1126 = vst.msk [vmem:[#allocation2 + $0x70] sm:$0xf] %vm1118_vm0, %v6353_v60  ;;  %v2440_v15 = vrot.slane %v2438_v51, 4 }
 0x130   : > { %v808_v13 = vpop.f32.mrf.mxu0  ;;  %v1330_v14 = vrot.slane %v1329_v5, 4  ;;  %v1338_v18 = vrot.slane %v1336_v21, 4  ;;  %v2443_v22 = vor.u32 %v2442_v11, %v2441_v7  ;;  %v2252_v34 = vrot.slane %v6321_v23, 5 }
 0x131   : > { %v6369_v19 = vpack.c.bf16 %v996_v10, %v996_v10  ;;  %v809_v20 = vadd.f32 %v6251_v4, %v808_v13  ;;  %v2446_v24 = vrot.slane %v1346_v9, 5  ;;  %v2447_v27 = vrot.slane %v1342_v8, 6 }
 0x132   : > { %v810_v25 = vpop.f32.mrf.mxu0  ;;  %v1335_v26 = vsel %vm6266_vm3, %v1330_v14, %v1334_v6  ;;  %v1339_v28 = vor.u32 %v1338_v18, %v1334_v6  ;;  %v1344_v30 = vrot.slane %v1342_v8, 5  ;;  %v2444_v33 = vsel %vm6290_vm8, %v2440_v15, %v2443_v22 }
 0x133   : > { %v1356_v31 = vshrl.u32 %v6369_v19, 16  ;;  %v997_v32 = vmax.f32 %v809_v20, 0.0  ;;  %1426 = vrot.lane.b32.xlu1 %v1335_v26, %s6088_s16  ;;  %1127 = vst.msk [vmem:[#allocation2 + $0x80] sm:$0xf] %vm1118_vm0, %v6369_v19  ;;  %2498 = vrot.lane.b32.xlu0 %v2444_v33, %s6088_s16  ;;  %v2445_v36 = vrot.slane %v2443_v22, 4  ;;  %v2448_v37 = vor.u32 %v2447_v27, %v2446_v24 }
 0x134   : > { %v813_v35 = vpop.f32.mrf.mxu0  ;;  %v1340_v38 = vrot.slane %v1339_v28, 4  ;;  %v1348_v39 = vrot.slane %v1346_v9, 4  ;;  %v1352_v43 = vshll.u32 %v6369_v19, 16  ;;  %v2253_v58 = vsel %vm6311_vm9, %v2251_v63, %v2252_v34 }
 0x135   : > { %v6382_v40 = vpack.c.bf16 %v997_v32, %v997_v32  ;;  %v814_v41 = vadd.f32 %v6251_v4, %v813_v35  ;;  %v2451_v44 = vrot.slane %v1356_v31, 5  ;;  %v2449_v48 = vsel %vm6290_vm8, %v2445_v36, %v2448_v37  ;;  %2301 = vst.msk [vmem:[#allocation2 + $0x38] sm:$0xf] %vm1118_vm0, %v2253_v58 }
 0x136   : > { %v815_v45 = vpop.f32.mrf.mxu0  ;;  %v1345_v49 = vsel %vm6266_vm3, %v1340_v38, %v1344_v30  ;;  %v1349_v50 = vor.u32 %v1348_v39, %v1344_v30  ;;  %v2450_v52 = vrot.slane %v2448_v37, 4  ;;  %v1354_v51 = vrot.slane %v1352_v43, 5 }
 0x137   : > { %v1362_v21 = vshll.u32 %v6382_v40, 16  ;;  %v1366_v53 = vshrl.u32 %v6382_v40, 16  ;;  %v998_v46 = vmax.f32 %v814_v41, 0.0  ;;  %2500 = vrot.lane.b32.xlu1 %v2449_v48, %s6088_s16  ;;  %1128 = vst.msk [vmem:[#allocation2 + $0x90] sm:$0xf] %vm1118_vm0, %v6382_v40  ;;  %1428 = vrot.lane.b32.xlu0 %v1345_v49, %s6088_s16  ;;  %v2452_v56 = vrot.slane %v1352_v43, 6 }
 0x138   : > { %v816_v54 = vpop.f32.mrf.mxu0  ;;  %v1350_v55 = vrot.slane %v1349_v50, 4  ;;  %v1358_v57 = vrot.slane %v1356_v31, 4  ;;  %v2248_v33 = vrot.slane %v2246_v1, 4  ;;  %v2257_v47 = vrot.slane %v2255_v12, 4 }
 0x139   : > { %v6400_v61 = vpack.c.bf16 %v998_v46, %v998_v46  ;;  %v817_v62 = vadd.f32 %v6251_v4, %v816_v54  ;;  %v2456_v0 = vrot.slane %v1366_v53, 5  ;;  %v2457_v3 = vrot.slane %v1362_v21, 6 }
 0x13a   : > { %v818_v5 = vpop.f32.mrf.mxu0  ;;  %v1355_v6 = vsel %vm6266_vm3, %v1350_v55, %v1354_v51  ;;  %v2453_v7 = vor.u32 %v2452_v56, %v2451_v44  ;;  %v1359_v8 = vor.u32 %v1358_v57, %v1354_v51  ;;  %v1364_v9 = vrot.slane %v1362_v21, 5 }
 0x13b   : > { %9313 = vst [vmem:[#allocation6_spill] sm:$0xff] %v6400_v61  ;;  %v9219_v10 = vshrl.u32 %v6400_v61, 16  ;;  %v999_v11 = vmax.f32 %v817_v62, 0.0  ;;  %1430 = vrot.lane.b32.xlu1 %v1355_v6, %s6088_s16  ;;  %v6408_v63 = vor.u32 %v2457_v3, %v2456_v0  ;;  %v1368_v13 = vrot.slane %v1366_v53, 4  ;;  %1129 = vst.msk [vmem:[#allocation2 + $0xa0] sm:$0xf] %vm1118_vm0, %v6400_v61 }
 0x13c   : > { %v2454_v14 = vsel %vm6290_vm8, %v2450_v52, %v2453_v7  ;;  %v821_v15 = vpop.f32.mrf.mxu0  ;;  %v2455_v18 = vrot.slane %v2453_v7, 4  ;;  %v1360_v20 = vrot.slane %v1359_v8, 4  ;;  %v9218_v22 = vshll.u32 %v6400_v61, 16 }
 0x13d   : > { %9314 = vst [vmem:[#allocation7_spill] sm:$0xff] %v6408_v63  ;;  %v6415_v24 = vpack.c.bf16 %v999_v11, %v999_v11  ;;  %2502 = vrot.lane.b32.xlu0 %v2454_v14, %s6088_s16  ;;  %v822_v25 = vadd.f32 %v6251_v4, %v821_v15  ;;  %v1369_v26 = vor.u32 %v1368_v13, %v1364_v9  ;;  %v1378_v27 = vrot.slane %v9219_v10, 4 }
 0x13e   : > { %v823_v28 = vpop.f32.mrf.mxu0  ;;  %v2459_v30 = vsel %vm6290_vm8, %v2455_v18, %v6408_v63  ;;  %v1365_v31 = vsel %vm6266_vm3, %v1360_v20, %v1364_v9  ;;  %v1374_v32 = vrot.slane %v9218_v22, 5  ;;  %v2250_v43 = vsel %vm6311_vm9, %v2248_v33, %v2249_v17 }
 0x13f   : > { %9315 = vst [vmem:[#allocation8_spill] sm:$0xff] %v6415_v24  ;;  %v9217_v35 = vshrl.u32 %v6415_v24, 16  ;;  %v1000_v36 = vmax.f32 %v822_v25, 0.0  ;;  %2504 = vrot.lane.b32.xlu1 %v2459_v30, %s6088_s16  ;;  %v1370_v37 = vrot.slane %v1369_v26, 4  ;;  %v9216_v38 = vshll.u32 %v6415_v24, 16 }
 0x140   : > { %1130 = vst.msk [vmem:[#allocation2 + $0xb0] sm:$0xf] %vm1118_vm0, %v6415_v24  ;;  %v824_v39 = vpop.f32.mrf.mxu0  ;;  %v1379_v41 = vor.u32 %v1378_v27, %v1374_v32  ;;  %v9227_v1 = vrot.slane %v6353_v60, 5  ;;  %2300 = vst.msk [vmem:[#allocation2 + $0x28] sm:$0xf] %vm1118_vm0, %v2250_v43  ;;  %v2254_v21 = vrot.slane %v2252_v34, 4 }
 0x141   : > { %v6442_v44 = vpack.c.bf16 %v1000_v36, %v1000_v36  ;;  %1432 = vrot.lane.b32.xlu0 %v1365_v31, %s6088_s16  ;;  %v825_v45 = vadd.f32 %v6251_v4, %v824_v39  ;;  %v1375_v48 = vsel %vm6266_vm3, %v1370_v37, %v1374_v32  ;;  %v1384_v2 = vrot.slane %v9216_v38, 5 }
 0x142   : > { %v826_v17 = vpop.f32.mrf.mxu0  ;;  %v1380_v49 = vrot.slane %v1379_v41, 4  ;;  %v1388_v50 = vrot.slane %v9217_v35, 4  ;;  %v2259_v52 = vsel %vm6311_vm9, %v2257_v47, %v9227_v1  ;;  %v2256_v55 = vsel %vm6311_vm9, %v2254_v21, %v2255_v12 }
 0x143   : > { %9316 = vst [vmem:[#allocation9_spill] sm:$0xff] %v6442_v44  ;;  %v1001_v53 = vmax.f32 %v825_v45, 0.0  ;;  %1434 = vrot.lane.b32.xlu1 %v1375_v48, %s6088_s16  ;;  %v6461_v46 = vshll.u32 %v6442_v44, 16  ;;  %v6464_v51 = vshrl.u32 %v6442_v44, 16  ;;  %1131 = vst.msk [vmem:[#allocation2 + $0xc0] sm:$0xf] %vm1118_vm0, %v6442_v44 }
 0x144   : > { %2303 = vst.msk [vmem:[#allocation2 + $0x58] sm:$0xf] %vm1118_vm0, %v2259_v52  ;;  %v829_v54 = vpop.f32.mrf.mxu0  ;;  %v1385_v23 = vsel %vm6266_vm3, %v1380_v49, %v1384_v2  ;;  %v1389_v34 = vor.u32 %v1388_v50, %v1384_v2  ;;  %2302 = vst.msk [vmem:[#allocation2 + $0x48] sm:$0xf] %vm1118_vm0, %v2256_v55  ;;  %v5327_v12 = vrot.slane %v6442_v44, 10 }
 0x145   : > { %9317 = vst [vmem:[#allocation10_spill] sm:$0xff] %v6461_v46  ;;  %9318 = vst [vmem:[#allocation11_spill] sm:$0xff] %v6464_v51  ;;  %v6475_v56 = vpack.c.bf16 %v1001_v53, %v1001_v53  ;;  %v830_v57 = vadd.f32 %v6251_v4, %v829_v54  ;;  %1436 = vrot.lane.b32.xlu0 %v1385_v23, %s6088_s16  ;;  %v1394_v58 = vrot.slane %v6461_v46, 5  ;;  %v1398_v62 = vrot.slane %v6464_v51, 4 }
 0x146   : > { %v831_v0 = vpop.f32.mrf.mxu0  ;;  %v1390_v3 = vrot.slane %v1389_v34, 4  ;;  %v1476_v32 = vrot.slane %v6464_v51, 6  ;;  %v1477_v33 = vrot.slane %v6461_v46, 7 }
 0x147   : > { %9319 = vst [vmem:[#allocation12_spill] sm:$0xff] %v6475_v56  ;;  %v1002_v5 = vmax.f32 %v830_v57, 0.0  ;;  %v1171_v6 = vrot.slane %v6475_v56, 6  ;;  %v1399_v7 = vor.u32 %v1398_v62, %v1394_v58  ;;  %v6491_v8 = vshll.u32 %v6475_v56, 16  ;;  %1132 = vst.msk [vmem:[#allocation2 + $0xd0] sm:$0xf] %vm1118_vm0, %v6475_v56 }
 0x148   : > { %v832_v9 = vpop.f32.mrf.mxu0  ;;  %v1395_v11 = vsel %vm6266_vm3, %v1390_v3, %v1394_v58  ;;  %v6498_v13 = vshrl.u32 %v6475_v56, 16  ;;  %v1478_v54 = vor.u32 %v1477_v33, %v1476_v32  ;;  %v5355_v33 = vrot.slane %v6475_v56, 11 }
 0x149   : > { %9322 = vst [vmem:[#allocation13_spill] sm:$0xff] %v6491_v8  ;;  %v6500_v14 = vpack.c.bf16 %v1002_v5, %v1002_v5  ;;  %v833_v15 = vadd.f32 %v6251_v4, %v832_v9  ;;  %1438 = vrot.lane.b32.xlu1 %v1395_v11, %s6088_s16  ;;  %v1172_v18 = vsel %vm6484_vm12, %v5327_v12, %v1171_v6  ;;  %v1400_v20 = vrot.slane %v1399_v7, 4 }
 0x14a   : > { %9323 = vst [vmem:[#allocation14_spill] sm:$0xff] %v6498_v13  ;;  %v834_v25 = vpop.f32.mrf.mxu0  ;;  %1212 = vrot.lane.b32.xlu0 %v1172_v18, %s6089_s21  ;;  %v1404_v26 = vrot.slane %v6491_v8, 5  ;;  %v1408_v27 = vrot.slane %v6498_v13, 4  ;;  %v1480_v28 = vrot.slane %v6498_v13, 6  ;;  %v1481_v31 = vrot.slane %v6491_v8, 7 }
 0x14b   : > { %9324 = vst [vmem:[#allocation15_spill] sm:$0xff] %v6500_v14  ;;  %v6511_v30 = vshll.u32 %v6500_v14, 16  ;;  %v1003_v36 = vmax.f32 %v833_v15, 0.0  ;;  %v6517_v41 = vshrl.u32 %v6500_v14, 16  ;;  %v1174_v48 = vrot.slane %v6500_v14, 6 }
 0x14c   : > { %v837_v37 = vpop.f32.mrf.mxu0  ;;  %v1409_v39 = vor.u32 %v1408_v27, %v1404_v26  ;;  %v1405_v47 = vsel %vm6266_vm3, %v1400_v20, %v1404_v26  ;;  %v1482_v49 = vor.u32 %v1481_v31, %v1480_v28  ;;  %v1173_v53 = vrot.slane %v1171_v6, 4 }
 0x14d   : > { %9325 = vst [vmem:[#allocation16_spill] sm:$0xff] %v6511_v30  ;;  %9326 = vst [vmem:[#allocation17_spill] sm:$0xff] %v6517_v41  ;;  %v838_v43 = vadd.f32 %v6251_v4, %v837_v37  ;;  %v1414_v45 = vrot.slane %v6511_v30, 5  ;;  %v1487_v50 = vrot.slane %v6517_v41, 6  ;;  %v1488_v52 = vrot.slane %v6511_v30, 7 }
 0x14e   : > { %v839_v2 = vpop.f32.mrf.mxu0  ;;  %1440 = vrot.lane.b32.xlu0 %v1405_v47, %s6088_s16  ;;  %v1410_v17 = vrot.slane %v1409_v39, 4  ;;  %v6527_v23 = vpack.c.bf16 %v1003_v36, %v1003_v36  ;;  %v1175_v58 = vsel %vm6484_vm12, %v1173_v53, %v1174_v48  ;;  %v1484_v3 = vrot.slane %v1482_v49, 4 }
 0x14f   : > { %v1004_v21 = vmax.f32 %v838_v43, 0.0  ;;  %v6531_v57 = vor.u32 %v1488_v52, %v1487_v50  ;;  %v2317_v12 = vrot.slane %v6500_v14, 7  ;;  %v1479_v6 = vrot.slane %v1478_v54, 4 }
 0x150   : > { %9327 = vst [vmem:[#allocation18_spill] sm:$0xff] %v6527_v23  ;;  %v840_v34 = vpop.f32.mrf.mxu0  ;;  %v1415_v55 = vsel %vm6266_vm3, %v1410_v17, %v1414_v45  ;;  %v2320_v11 = vrot.slane %v6527_v23, 7  ;;  %v6550_v15 = vshrl.u32 %v6527_v23, 16  ;;  %v1177_v27 = vrot.slane %v6527_v23, 6 }
 0x151   : > { %1442 = vrot.lane.b32.xlu1 %v1415_v55, %s6088_s16  ;;  %v6543_v5 = vpack.c.bf16 %v1004_v21, %v1004_v21  ;;  %v1490_v9 = vsel %vm6538_vm15, %v1484_v3, %v6531_v57  ;;  %v1483_v18 = vsel %vm6538_vm15, %v1479_v6, %v1482_v49  ;;  %v2319_v25 = vrot.slane %v2317_v12, 4 }
 0x152   : > { %v842_v62 = vpop.f32.mrf.mxu0  ;;  %1214 = vrot.lane.b32.xlu0 %v1175_v58, %s6089_s21  ;;  %9330 = vst [vmem:[#allocation19_spill] sm:$0xff] %v6550_v15  ;;  %v6562_v28 = vshll.u32 %v6527_v23, 16  ;;  %v841_v32 = vadd.f32 %v6251_v4, %v840_v34  ;;  %v2555_v47 = vrot.slane %v6550_v15, 7  ;;  %v2318_v45 = vsel %vm6556_vm6, %v5355_v33, %v2317_v12 }
 0x153   : > { %v1503_v31 = vshrl.u32 %v6543_v5, 16  ;;  %v1506_v36 = vshll.u32 %v6543_v5, 16  ;;  %v2321_v37 = vsel %vm6556_vm6, %v2319_v25, %v2320_v11  ;;  %v1180_v39 = vrot.slane %v6543_v5, 6 }
 0x154   : > { %v845_v7 = vpop.f32.mrf.mxu0  ;;  %9333 = vst [vmem:[#allocation20_spill] sm:$0xff] %v6562_v28  ;;  %v2551_v2 = vrot.slane %v6517_v41, 7  ;;  %v1179_v17 = vrot.slane %v1177_v27, 4  ;;  %v1495_v50 = vrot.slane %v6550_v15, 6  ;;  %v1498_v52 = vrot.slane %v6562_v28, 7 }
 0x155   : > { %1613 = vrot.lane.b32.xlu1 %v1490_v9, %s6090_s22  ;;  %v1005_v21 = vmax.f32 %v841_v32, 0.0  ;;  %v846_v53 = vadd.f32 %v6251_v4, %v845_v7  ;;  %v1176_v54 = vrot.slane %v1174_v48, 4  ;;  %v2556_v55 = vor.u32 %v2555_v47, %v6562_v28 }
 0x156   : > { %1611 = vrot.lane.b32.xlu0 %v1483_v18, %s6090_s22  ;;  %v847_v26 = vpop.f32.mrf.mxu0  ;;  %v1181_v34 = vsel %vm6484_vm12, %v1179_v17, %v1180_v39  ;;  %v1505_v62 = vrot.slane %v1503_v31, 6  ;;  %v1508_v3 = vrot.slane %v1506_v36, 7  ;;  %v2552_v12 = vor.u32 %v2551_v2, %v6511_v30 }
 0x157   : > { %v1178_v48 = vsel %vm6484_vm12, %v1176_v54, %v1177_v27  ;;  %v2554_v7 = vrot.slane %v2551_v2, 4  ;;  %v1499_v9 = vor.u32 %v1498_v52, %v1495_v50  ;;  %v6603_v25 = vpack.c.bf16 %v1005_v21, %v1005_v21 }
 0x158   : > { %v848_v43 = vpop.f32.mrf.mxu0  ;;  %v1006_v26 = vmax.f32 %v846_v53, 0.0  ;;  %v5356_v32 = vrot.slane %v6498_v13, 11  ;;  %v6608_v33 = vor.u32 %v1508_v3, %v1505_v62  ;;  %v2323_v17 = vrot.slane %v6543_v5, 7 }
 0x159   : > { %2360 = vrot.lane.b32.xlu1 %v2321_v37, %s6089_s21  ;;  %v2557_v27 = vsel %vm6599_vm11, %v2554_v7, %v2556_v55  ;;  %v1501_v2 = vrot.slane %v1499_v9, 4  ;;  %v1513_v50 = vshrl.u32 %v6603_v25, 16  ;;  %v1491_v21 = vrot.slane %v6531_v57, 4 }
 0x15a   : > { %2358 = vrot.lane.b32.xlu0 %v2318_v45, %s6089_s21  ;;  %v850_v49 = vpop.f32.mrf.mxu0  ;;  %v2553_v45 = vsel %vm6599_vm11, %v5356_v32, %v2552_v12  ;;  %v6618_v52 = vpack.c.bf16 %v1006_v26, %v1006_v26  ;;  %v1183_v53 = vrot.slane %v6603_v25, 6  ;;  %v2326_v55 = vrot.slane %v6603_v25, 7 }
 0x15b   : > { %v1510_v54 = vsel %vm6538_vm15, %v1501_v2, %v6608_v33  ;;  %v1516_v62 = vshll.u32 %v6603_v25, 16  ;;  %v849_v57 = vadd.f32 %v6251_v4, %v848_v43  ;;  %v2322_v12 = vrot.slane %v2320_v11, 4 }
 0x15c   : > { %v853_v58 = vpop.f32.mrf.mxu0  ;;  %v1526_v26 = vshll.u32 %v6618_v52, 16  ;;  %v1185_v25 = vrot.slane %v1183_v53, 4  ;;  %v1186_v32 = vrot.slane %v6618_v52, 6 }
 0x15d   : > { %1218 = vrot.lane.b32.xlu1 %v1181_v34, %s6089_s21  ;;  %v2325_v34 = vrot.slane %v2323_v17, 4  ;;  %v1518_v43 = vrot.slane %v1516_v62, 7  ;;  %v2324_v11 = vsel %vm6556_vm6, %v2322_v12, %v2323_v17 }
 0x15e   : > { %1216 = vrot.lane.b32.xlu0 %v1178_v48, %s6089_s21  ;;  %v855_v18 = vpop.f32.mrf.mxu0  ;;  %v1500_v48 = vsel %vm6538_vm15, %v1491_v21, %v1499_v9  ;;  %v1515_v9 = vrot.slane %v1513_v50, 6  ;;  %v2559_v21 = vrot.slane %v1503_v31, 7  ;;  %v1528_v31 = vrot.slane %v1526_v26, 7 }
 0x15f   : > { %v1523_v18 = vshrl.u32 %v6618_v52, 16 }
 0x160   : > { %v6610_v37 = vpop.f32.mrf.mxu0  ;;  %v1519_v12 = vor.u32 %v1518_v43, %v1515_v9  ;;  %v2558_v43 = vrot.slane %v2555_v47, 4  ;;  %v2329_v47 = vrot.slane %v6618_v52, 7 }
 0x161   : > { %2608 = vrot.lane.b32.xlu1 %v2557_v27, %s6090_s22  ;;  %v2327_v27 = vsel %vm6556_vm6, %v2325_v34, %v2326_v55 }
 0x162   : > { %2606 = vrot.lane.b32.xlu0 %v2553_v45, %s6090_s22  ;;  %v858_v49 = vpop.f32.mrf.mxu0  ;;  %v6641_v45 = vrot.slane %v1513_v50, 7  ;;  %v854_v50 = vadd.f32 %v6251_v4, %v853_v58 }
 0x163   : > { %v1182_v49 = vrot.slane %v1180_v39, 4  ;;  %v1525_v39 = vrot.slane %v1523_v18, 6 }
 0x164   : > { %v6627_v3 = vpop.f32.mrf.mxu0  ;;  %v2564_v17 = vor.u32 %v6641_v45, %v1516_v62  ;;  %v1008_v9 = vmax.f32 %v854_v50, 0.0  ;;  %v2328_v50 = vrot.slane %v2326_v55, 4 }
 0x165   : > { %1617 = vrot.lane.b32.xlu1 %v1510_v54, %s6090_s22  ;;  %v1007_v54 = vmax.f32 %v849_v57, 0.0  ;;  %v1184_v58 = vsel %vm6484_vm12, %v1182_v49, %v1183_v53 }
 0x166   : > { %1615 = vrot.lane.b32.xlu0 %v1500_v48, %s6090_s22  ;;  %v863_v7 = vpop.f32.mrf.mxu0  ;;  %v1187_v48 = vsel %vm6484_vm12, %v1185_v25, %v1186_v32  ;;  %v2560_v25 = vor.u32 %v2559_v21, %v1506_v36  ;;  %v1511_v36 = vrot.slane %v6608_v33, 4  ;;  %v2331_v33 = vrot.slane %v2329_v47, 4 }
 0x167   : > { %v2562_v7 = vrot.slane %v2559_v21, 4 }
 0x168   : > { %v6643_v2 = vpop.f32.mrf.mxu0  ;;  %v2561_v5 = vsel %vm6599_vm11, %v2558_v43, %v2560_v25  ;;  %v1520_v25 = vsel %vm6538_vm15, %v1511_v36, %v1519_v12  ;;  %v857_v43 = vadd.f32 %v6251_v4, %v6610_v37 }
 0x169   : > { %2364 = vrot.lane.b32.xlu1 %v2327_v27, %s6089_s21  ;;  %v6670_v27 = vpack.c.bf16 %v1007_v54, %v1007_v54  ;;  %v6687_v54 = vpack.c.bf16 %v1008_v9, %v1008_v9 }
 0x16a   : > { %2362 = vrot.lane.b32.xlu0 %v2324_v11, %s6089_s21  ;;  %v866_v34 = vpop.f32.mrf.mxu0  ;;  %v2565_v11 = vsel %vm6599_vm11, %v2562_v7, %v2564_v17 }
 0x16b   : > { %v1521_v34 = vrot.slane %v1519_v12, 4  ;;  %v1533_v49 = vshrl.u32 %v6670_v27, 16  ;;  %v1189_v7 = vrot.slane %v6670_v27, 6  ;;  %v1546_v9 = vshll.u32 %v6687_v54, 16 }
 0x16c   : > { %v6663_v57 = vpop.f32.mrf.mxu0 }
 0x16d   : > { %1222 = vrot.lane.b32.xlu1 %v1187_v48, %s6089_s21  ;;  %v6677_v48 = vor.u32 %v1528_v31, %v1525_v39  ;;  %v1536_v31 = vshll.u32 %v6670_v27, 16  ;;  %v6714_v36 = vrot.slane %v1533_v49, 7  ;;  %v1535_v37 = vrot.slane %v1533_v49, 6 }
 0x16e   : > { %1220 = vrot.lane.b32.xlu0 %v1184_v58, %s6089_s21  ;;  %v871_v62 = vpop.f32.mrf.mxu0 }
 0x16f   : > { %v1530_v39 = vsel %vm6538_vm15, %v1521_v34, %v6677_v48  ;;  %v2330_v34 = vsel %vm6556_vm6, %v2328_v50, %v2329_v47  ;;  %v1188_v47 = vrot.slane %v1186_v32, 4  ;;  %v2567_v50 = vrot.slane %v1523_v18, 7 }
 0x170   : > { %v872_v38 = vpop.f32.mrf.mxu0 }
 0x171   : > { %2612 = vrot.lane.b32.xlu1 %v2565_v11, %s6090_s22  ;;  %v873_v53 = vadd.f32 %v6251_v4, %v872_v38  ;;  %v2332_v38 = vrot.slane %v6670_v27, 7 }
 0x172   : > { %2610 = vrot.lane.b32.xlu0 %v2561_v5, %s6090_s22  ;;  %v874_v21 = vpop.f32.mrf.mxu0  ;;  %v1191_v5 = vrot.slane %v1189_v7, 4 }
 0x173   : > { %v1013_v17 = vmax.f32 %v873_v53, 0.0  ;;  %v1192_v53 = vrot.slane %v6687_v54, 6  ;;  %v2333_v12 = vsel %vm6556_vm6, %v2331_v33, %v2332_v38  ;;  %v1009_v33 = vmax.f32 %v857_v43, 0.0 }
 0x174   : > { %v877_v58 = vpop.f32.mrf.mxu0 }
 0x175   : > { %1621 = vrot.lane.b32.xlu1 %v1530_v39, %s6090_s22  ;;  %v6698_v62 = vpack.c.bf16 %v1013_v17, %v1013_v17  ;;  %v878_v55 = vadd.f32 %v6251_v4, %v877_v58  ;;  %v1538_v17 = vrot.slane %v1536_v31, 7  ;;  %v1193_v32 = vsel %vm6484_vm12, %v1191_v5, %v1192_v53 }
 0x176   : > { %1619 = vrot.lane.b32.xlu0 %v1520_v25, %s6090_s22  ;;  %v879_v11 = vpop.f32.mrf.mxu0  ;;  %v1190_v5 = vsel %vm6484_vm12, %v1188_v47, %v1189_v7  ;;  %v6750_v35 = vpack.c.bf16 %v1009_v33, %v1009_v33 }
 0x177   : > { %9336 = vst [vmem:[#allocation21_spill] sm:$0xff] %v6698_v62  ;;  %v1014_v21 = vmax.f32 %v878_v55, 0.0  ;;  %1712 = vst.msk [vmem:[#allocation2 + $0x4] sm:$0xf] %vm1118_vm0, %v6698_v62  ;;  %v1543_v55 = vshrl.u32 %v6687_v54, 16  ;;  %v862_v11 = vadd.f32 %v6251_v4, %v6627_v3 }
 0x178   : > { %v880_v39 = vpop.f32.mrf.mxu0  ;;  %9339 = vst [vmem:[#allocation24_spill] sm:$0xff] %v6750_v35 }
 0x179   : > { %2368 = vrot.lane.b32.xlu1 %v2333_v12, %s6089_s21  ;;  %v6721_v58 = vpack.c.bf16 %v1014_v21, %v1014_v21  ;;  %v881_v25 = vadd.f32 %v6251_v4, %v880_v39  ;;  %v2570_v12 = vrot.slane %v2567_v50, 4  ;;  %v2572_v21 = vor.u32 %v6714_v36, %v1536_v31 }
 0x17a   : > { %2366 = vrot.lane.b32.xlu0 %v2330_v34, %s6089_s21  ;;  %v882_v49 = vpop.f32.mrf.mxu0  ;;  %v1539_v39 = vor.u32 %v1538_v17, %v1535_v37  ;;  %v1545_v43 = vrot.slane %v1543_v55, 6  ;;  %v1548_v34 = vrot.slane %v1546_v9, 7  ;;  %v865_v37 = vadd.f32 %v6251_v4, %v6643_v2 }
 0x17b   : > { %9337 = vst [vmem:[#allocation22_spill] sm:$0xff] %v6721_v58  ;;  %v1015_v18 = vmax.f32 %v881_v25, 0.0  ;;  %1713 = vst.msk [vmem:[#allocation2 + $0x14] sm:$0xf] %vm1118_vm0, %v6721_v58  ;;  %v2568_v25 = vor.u32 %v2567_v50, %v1526_v26  ;;  %v1010_v22 = vmax.f32 %v862_v11, 0.0  ;;  %v2573_v52 = vsel %vm6599_vm11, %v2570_v12, %v2572_v21 }
 0x17c   : > { %v885_v3 = vpop.f32.mrf.mxu0  ;;  %v1541_v26 = vrot.slane %v1539_v39, 4  ;;  %v6757_v7 = vor.u32 %v1548_v34, %v1545_v43  ;;  %v1531_v2 = vrot.slane %v6677_v48, 4  ;;  %v1011_v11 = vmax.f32 %v865_v37, 0.0 }
 0x17d   : > { %1226 = vrot.lane.b32.xlu1 %v1193_v32, %s6089_s21  ;;  %v6744_v49 = vpack.c.bf16 %v1015_v18, %v1015_v18  ;;  %v886_v31 = vadd.f32 %v6251_v4, %v885_v3  ;;  %v2566_v32 = vrot.slane %v6641_v45, 4  ;;  %v6768_v45 = vld [vmem:[%s9210_s2] ss:$0 sm:$0xff]  ;;  %v2335_v18 = vrot.slane %v6687_v54, 7 }
 0x17e   : > { %1224 = vrot.lane.b32.xlu0 %v1190_v5, %s6089_s21  ;;  %v887_v17 = vpop.f32.mrf.mxu0  ;;  %v870_v12 = vadd.f32 %v6768_v45, %v6663_v57  ;;  %v1553_v48 = vshrl.u32 %v6750_v35, 16  ;;  %v1195_v43 = vrot.slane %v6750_v35, 6  ;;  %v1550_v3 = vsel %vm6538_vm15, %v1541_v26, %v6757_v7 }
 0x17f   : > { %9338 = vst [vmem:[#allocation23_spill] sm:$0xff] %v6744_v49  ;;  %v1016_v10 = vmax.f32 %v886_v31, 0.0  ;;  %1714 = vst.msk [vmem:[#allocation2 + $0x24] sm:$0xf] %vm1118_vm0, %v6744_v49  ;;  %v2569_v4 = vsel %vm6599_vm11, %v2566_v32, %v2568_v25  ;;  %v2337_v57 = vrot.slane %v2335_v18, 4  ;;  %v9220_v5 = vrot.slane %v6750_v35, 7 }
 0x180   : > { %v888_v47 = vpop.f32.mrf.mxu0  ;;  %v1556_v25 = vshll.u32 %v6750_v35, 16  ;;  %v2334_v37 = vrot.slane %v2332_v38, 4  ;;  %v6795_v26 = vpack.c.bf16 %v1011_v11, %v1011_v11  ;;  %v1194_v38 = vrot.slane %v1192_v53, 4 }
 0x181   : > { %2616 = vrot.lane.b32.xlu1 %v2573_v52, %s6090_s22  ;;  %v6763_v50 = vpack.c.bf16 %v1016_v10, %v1016_v10  ;;  %v889_v33 = vadd.f32 %v6768_v45, %v888_v47  ;;  %v6776_v10 = vpack.c.bf16 %v1010_v22, %v1010_v22  ;;  %v1540_v22 = vsel %vm6538_vm15, %v1531_v2, %v1539_v39 }
 0x182   : > { %2614 = vrot.lane.b32.xlu0 %v2569_v4, %s6090_s22  ;;  %v890_v21 = vpop.f32.mrf.mxu0  ;;  %9343 = vst [vmem:[#allocation28_spill] sm:$0xff] %v6795_v26  ;;  %v1012_v47 = vmax.f32 %v870_v12, 0.0  ;;  %v2339_v27 = vsel %vm6556_vm6, %v2337_v57, %v9220_v5  ;;  %v1555_v2 = vrot.slane %v1553_v48, 6  ;;  %v1558_v11 = vrot.slane %v1556_v25, 7 }
 0x183   : > { %9340 = vst [vmem:[#allocation25_spill] sm:$0xff] %v6763_v50  ;;  %9341 = vst [vmem:[#allocation26_spill] sm:$0xff] %v6776_v10  ;;  %v1017_v34 = vmax.f32 %v889_v33, 0.0  ;;  %v9221_v52 = vshll.u32 %v6776_v10, 16  ;;  %v1197_v33 = vrot.slane %v1195_v43, 4  ;;  %v1198_v21 = vrot.slane %v6776_v10, 6 }
 0x184   : > { %1715 = vst.msk [vmem:[#allocation2 + $0x34] sm:$0xf] %vm1118_vm0, %v6763_v50  ;;  %v893_v31 = vpop.f32.mrf.mxu0  ;;  %v9224_v57 = vshrl.u32 %v6776_v10, 16  ;;  %v6819_v53 = vpack.c.bf16 %v1012_v47, %v1012_v47  ;;  %v1551_v54 = vrot.slane %v6757_v7, 4  ;;  %v6914_v30 = vshrl.u32 %v6721_v58, 16 }
 0x185   : > { %1625 = vrot.lane.b32.xlu1 %v1550_v3, %s6090_s22  ;;  %v6791_v17 = vpack.c.bf16 %v1017_v34, %v1017_v34  ;;  %v894_v32 = vadd.f32 %v6768_v45, %v893_v31  ;;  %v6799_v3 = vrot.slane %v1553_v48, 7  ;;  %v2336_v34 = vsel %vm6556_vm6, %v2334_v37, %v2335_v18 }
 0x186   : > { %1623 = vrot.lane.b32.xlu0 %v1540_v22, %s6090_s22  ;;  %v895_v4 = vpop.f32.mrf.mxu0  ;;  %v2575_v31 = vrot.slane %v1543_v55, 7  ;;  %9346 = vst [vmem:[#allocation31_spill] sm:$0xff] %v6819_v53  ;;  %v1565_v47 = vrot.slane %v9224_v57, 6  ;;  %v6870_v57 = vshrl.u32 %v6698_v62, 16  ;;  %9354 = vst [vmem:[#allocation39_spill] sm:$0xff] %v6914_v30  ;;  %v1605_v8 = vrot.slane %v6914_v30, 6 }
 0x187   : > { %9342 = vst [vmem:[#allocation27_spill] sm:$0xff] %v6791_v17  ;;  %9344 = vst [vmem:[#allocation29_spill] sm:$0xff] %v6799_v3  ;;  %v1018_v39 = vmax.f32 %v894_v32, 0.0  ;;  %v9222_v4 = vshll.u32 %v6795_v26, 16  ;;  %v2580_v37 = vor.u32 %v6799_v3, %v1556_v25  ;;  %v1863_v46 = vrot.slane %v6914_v30, 4 }
 0x188   : > { %1716 = vst.msk [vmem:[#allocation2 + $0x44] sm:$0xf] %vm1118_vm0, %v6791_v17  ;;  %v896_v12 = vpop.f32.mrf.mxu0  ;;  %v2578_v18 = vrot.slane %v2575_v31, 4  ;;  %v2576_v25 = vor.u32 %v2575_v31, %v1546_v9  ;;  %9350 = vst [vmem:[#allocation35_spill] sm:$0xff] %v6870_v57  ;;  %v1887_v14 = vshll.u32 %v6791_v17, 16 }
 0x189   : > { %2372 = vrot.lane.b32.xlu1 %v2339_v27, %s6089_s21  ;;  %v6814_v22 = vpack.c.bf16 %v1018_v39, %v1018_v39  ;;  %v897_v32 = vadd.f32 %v6768_v45, %v896_v12  ;;  %v1199_v27 = vsel %vm6484_vm12, %v1197_v33, %v1198_v21  ;;  %v1196_v39 = vsel %vm6484_vm12, %v1194_v38, %v1195_v43 }
 0x18a   : > { %2370 = vrot.lane.b32.xlu0 %v2336_v34, %s6089_s21  ;;  %v898_v48 = vpop.f32.mrf.mxu0  ;;  %v1559_v12 = vor.u32 %v1558_v11, %v1555_v2  ;;  %v1568_v34 = vrot.slane %v9221_v52, 7  ;;  %v2574_v33 = vrot.slane %v6714_v36, 4  ;;  %v9223_v43 = vshrl.u32 %v6795_v26, 16 }
 0x18b   : > { %9345 = vst [vmem:[#allocation30_spill] sm:$0xff] %v6814_v22  ;;  %v1019_v55 = vmax.f32 %v897_v32, 0.0  ;;  %1717 = vst.msk [vmem:[#allocation2 + $0x54] sm:$0xf] %vm1118_vm0, %v6814_v22  ;;  %v9225_v38 = vshrl.u32 %v6819_v53, 16  ;;  %v1201_v2 = vrot.slane %v6795_v26, 6  ;;  %v2581_v36 = vsel %vm6599_vm11, %v2578_v18, %v2580_v37 }
 0x18c   : > { %v901_v48 = vpop.f32.mrf.mxu0  ;;  %v1561_v31 = vrot.slane %v1559_v12, 4  ;;  %v6857_v52 = vshll.u32 %v6698_v62, 16  ;;  %v2577_v7 = vsel %vm6599_vm11, %v2574_v33, %v2576_v25 }
 0x18d   : > { %1230 = vrot.lane.b32.xlu1 %v1199_v27, %s6089_s21  ;;  %v6837_v32 = vpack.c.bf16 %v1019_v55, %v1019_v55  ;;  %v902_v5 = vadd.f32 %v6768_v45, %v901_v48  ;;  %v9226_v27 = vshll.u32 %v6819_v53, 16  ;;  %v6850_v55 = vor.u32 %v1568_v34, %v1565_v47 }
 0x18e   : > { %1228 = vrot.lane.b32.xlu0 %v1196_v39, %s6089_s21  ;;  %v903_v11 = vpop.f32.mrf.mxu0  ;;  %v1575_v39 = vrot.slane %v9223_v43, 6  ;;  %v1578_v48 = vrot.slane %v9222_v4, 7  ;;  %9348 = vst [vmem:[#allocation33_spill] sm:$0xff] %v6857_v52  ;;  %v6859_v18 = vpop.permute.xlu0 %1416  ;;  %v1203_v47 = vrot.slane %v1201_v2, 4  ;;  %v1204_v34 = vrot.slane %v6819_v53, 6 }
 0x18f   : > { %9347 = vst [vmem:[#allocation32_spill] sm:$0xff] %v6837_v32  ;;  %v1020_v9 = vmax.f32 %v902_v5, 0.0  ;;  %1718 = vst.msk [vmem:[#allocation2 + $0x64] sm:$0xf] %vm1118_vm0, %v6837_v32  ;;  %v1200_v4 = vrot.slane %v1198_v21, 4  ;;  %v1588_v33 = vrot.slane %v9226_v27, 7  ;;  %v1570_v21 = vsel %vm6538_vm15, %v1561_v31, %v6850_v55 }
 0x190   : > { %v904_v11 = vpop.f32.mrf.mxu0  ;;  %v1598_v1 = vrot.slane %v6857_v52, 7  ;;  %v6900_v31 = vshll.u32 %v6721_v58, 16 }
 0x191   : > { %2620 = vrot.lane.b32.xlu1 %v2581_v36, %s6090_s22  ;;  %v6864_v5 = vpack.c.bf16 %v1020_v9, %v1020_v9  ;;  %v905_v37 = vadd.f32 %v6768_v45, %v904_v11  ;;  %v1585_v36 = vrot.slane %v9225_v38, 6  ;;  %v1579_v11 = vor.u32 %v1578_v48, %v1575_v39 }
 0x192   : > { %2618 = vrot.lane.b32.xlu0 %v2577_v7, %s6090_s22  ;;  %v906_v43 = vpop.f32.mrf.mxu0  ;;  %v1207_v7 = vrot.slane %v6698_v62, 6  ;;  %9352 = vst [vmem:[#allocation37_spill] sm:$0xff] %v6900_v31  ;;  %v6903_v48 = vshrl.u32 %v6744_v49, 16  ;;  %v6927_v62 = vshll.u32 %v6744_v49, 16  ;;  %v9358_v63 = vrot.slane %v6900_v31, 5 }
 0x193   : > { %9349 = vst [vmem:[#allocation34_spill] sm:$0xff] %v6864_v5  ;;  %v1021_v25 = vmax.f32 %v905_v37, 0.0  ;;  %1719 = vst.msk [vmem:[#allocation2 + $0x74] sm:$0xf] %vm1118_vm0, %v6864_v5  ;;  %v6878_v9 = vpop.permute.xlu1 %1418  ;;  %v1560_v43 = vsel %vm6538_vm15, %v1551_v54, %v1559_v12  ;;  %v1595_v37 = vrot.slane %v6870_v57, 6  ;;  %v1205_v12 = vsel %vm6484_vm12, %v1203_v47, %v1204_v34 }
 0x194   : > { %v909_v38 = vpop.f32.mrf.mxu0  ;;  %v1202_v54 = vsel %vm6484_vm12, %v1200_v4, %v1201_v2  ;;  %9353 = vst [vmem:[#allocation38_spill] sm:$0xff] %v6903_v48  ;;  %v1581_v47 = vrot.slane %v1579_v11, 4  ;;  %v1210_v4 = vrot.slane %v6721_v58, 6  ;;  %v1206_v2 = vrot.slane %v1204_v34, 4  ;;  %9356 = vst [vmem:[#allocation41_spill] sm:$0xff] %v6927_v62 }
 0x195   : > { %1629 = vrot.lane.b32.xlu1 %v1570_v21, %s6090_s22  ;;  %v6887_v27 = vpop.permute.xlu0 %2490  ;;  %v6891_v28 = vpack.c.bf16 %v1021_v25, %v1021_v25  ;;  %v910_v15 = vadd.f32 %v6768_v45, %v909_v38  ;;  %v6905_v21 = vor.u32 %v1588_v33, %v1585_v36  ;;  %v1571_v25 = vrot.slane %v6850_v55, 4 }
 0x196   : > { %1627 = vrot.lane.b32.xlu0 %v1560_v43, %s6090_s22  ;;  %v911_v39 = vpop.f32.mrf.mxu0  ;;  %v1209_v33 = vrot.slane %v1207_v7, 4  ;;  %v1599_v55 = vor.u32 %v1598_v1, %v1595_v37  ;;  %v1608_v34 = vrot.slane %v6900_v31, 7  ;;  %v1857_v1 = vrot.slane %v6870_v57, 4 }
 0x197   : > { %9351 = vst [vmem:[#allocation36_spill] sm:$0xff] %v6891_v28  ;;  %v1022_v38 = vmax.f32 %v910_v15, 0.0  ;;  %1720 = vst.msk [vmem:[#allocation2 + $0x84] sm:$0xf] %vm1118_vm0, %v6891_v28  ;;  %v1858_v37 = vrot.slane %v6857_v52, 5  ;;  %v1580_v13 = vsel %vm6538_vm15, %v1571_v25, %v1579_v11  ;;  %v1881_v57 = vshrl.u32 %v6763_v50, 16 }
 0x198   : > { %v6910_v43 = vpop.permute.xlu1 %2492  ;;  %v912_v39 = vpop.f32.mrf.mxu0  ;;  %v1211_v53 = vsel %vm6484_vm12, %v1209_v33, %v1210_v4  ;;  %v1601_v11 = vrot.slane %v1599_v55, 4  ;;  %v1591_v25 = vrot.slane %v6905_v21, 4  ;;  %v1864_v26 = vor.u32 %v1863_v46, %v9358_v63 }
 0x199   : > { %1234 = vrot.lane.b32.xlu1 %v1205_v12, %s6089_s21  ;;  %v6917_v36 = vpop.permute.xlu0 %1420  ;;  %v6919_v15 = vpack.c.bf16 %v1022_v38, %v1022_v38  ;;  %v913_v41 = vadd.f32 %v6768_v45, %v912_v39  ;;  %v1590_v39 = vsel %vm6538_vm15, %v1581_v47, %v6905_v21  ;;  %v1859_v10 = vor.u32 %v1858_v37, %v1857_v1 }
 0x19a   : > { %1232 = vrot.lane.b32.xlu0 %v1202_v54, %s6089_s21  ;;  %v914_v12 = vpop.f32.mrf.mxu0  ;;  %v1877_v54 = vshll.u32 %v6763_v50, 16  ;;  %v2839_v35 = vrot.slane %v6903_v48, 5  ;;  %v1883_v46 = vrot.slane %v1881_v57, 4  ;;  %v1873_v1 = vrot.slane %v6903_v48, 4 }
 0x19b   : > { %9355 = vst [vmem:[#allocation40_spill] sm:$0xff] %v6919_v15  ;;  %v1023_v38 = vmax.f32 %v913_v41, 0.0  ;;  %1721 = vst.msk [vmem:[#allocation2 + $0x94] sm:$0xf] %vm1118_vm0, %v6919_v15  ;;  %v1208_v12 = vsel %vm6484_vm12, %v1206_v2, %v1207_v7  ;;  %v1609_v7 = vor.u32 %v1608_v34, %v1605_v8  ;;  %v1869_v2 = vrot.slane %v6927_v62, 5 }
 0x19c   : > { %v917_v51 = vpop.f32.mrf.mxu0  ;;  %v2836_v8 = vrot.slane %v6900_v31, 6  ;;  %v6964_v21 = vrot.slane %v1877_v54, 5  ;;  %v2844_v23 = vrot.slane %v1881_v57, 5  ;;  %v2845_v56 = vrot.slane %v1877_v54, 6 }
 0x19d   : > { %1633 = vrot.lane.b32.xlu1 %v1590_v39, %s6090_s22  ;;  %v6944_v41 = vpop.permute.xlu1 %1422  ;;  %v6946_v52 = vpop.permute.xlu0 %2494  ;;  %v6950_v3 = vpack.c.bf16 %v1023_v38, %v1023_v38  ;;  %v918_v47 = vadd.f32 %v6768_v45, %v917_v51  ;;  %v2840_v51 = vrot.slane %v6927_v62, 6  ;;  %v9363_v50 = vshrl.u32 %v6891_v28, 16 }
 0x19e   : > { %1631 = vrot.lane.b32.xlu0 %v1580_v13, %s6090_s22  ;;  %v919_v39 = vpop.f32.mrf.mxu0  ;;  %v2835_v13 = vrot.slane %v6914_v30, 5  ;;  %v1865_v30 = vrot.slane %v1864_v26, 4 }
 0x19f   : > { %9357 = vst [vmem:[#allocation42_spill] sm:$0xff] %v6950_v3  ;;  %v1024_v4 = vmax.f32 %v918_v47, 0.0  ;;  %1722 = vst.msk [vmem:[#allocation2 + $0xa4] sm:$0xf] %vm1118_vm0, %v6950_v3  ;;  %v1891_v47 = vshrl.u32 %v6791_v17, 16  ;;  %v1610_v39 = vsel %vm6538_vm15, %v1601_v11, %v1609_v7  ;;  %v1897_v7 = vshll.u32 %v6814_v22, 16 }
 0x1a0   : > { %v920_v33 = vpop.f32.mrf.mxu0  ;;  %v2837_v44 = vor.u32 %v2836_v8, %v2835_v13  ;;  %v1870_v54 = vsel %vm6266_vm3, %v1865_v30, %v1869_v2  ;;  %v2850_v13 = vrot.slane %v1887_v14, 6 }
 0x1a1   : > { %1238 = vrot.lane.b32.xlu1 %v1211_v53, %s6089_s21  ;;  %v6967_v34 = vpop.permute.xlu1 %2496  ;;  %v6969_v63 = vpop.permute.xlu0 %1424  ;;  %v6972_v37 = vpack.c.bf16 %v1024_v4, %v1024_v4  ;;  %v921_v38 = vadd.f32 %v6768_v45, %v920_v33  ;;  %v1600_v53 = vsel %vm6538_vm15, %v1591_v25, %v1599_v55  ;;  %v1860_v4 = vrot.slane %v1859_v10, 4 }
 0x1a2   : > { %1236 = vrot.lane.b32.xlu0 %v1208_v12, %s6089_s21  ;;  %v922_v62 = vpop.f32.mrf.mxu0  ;;  %v2841_v33 = vor.u32 %v2840_v51, %v2839_v35  ;;  %v1884_v55 = vor.u32 %v1883_v46, %v6964_v21  ;;  %v1901_v25 = vshrl.u32 %v6814_v22, 16  ;;  %v2849_v51 = vrot.slane %v1891_v47, 5 }
 0x1a3   : > { %9359 = vst [vmem:[#allocation43_spill] sm:$0xff] %v6972_v37  ;;  %v1025_v48 = vmax.f32 %v921_v38, 0.0  ;;  %1723 = vst.msk [vmem:[#allocation2 + $0xb4] sm:$0xf] %vm1118_vm0, %v6972_v37  ;;  %v1874_v62 = vor.u32 %v1873_v1, %v1869_v2  ;;  %v7004_v38 = vor.u32 %v2845_v56, %v2844_v23  ;;  %v7017_v56 = vrot.slane %v1897_v7, 5 }
 0x1a4   : > { %v925_v12 = vpop.f32.mrf.mxu0  ;;  %v2843_v1 = vrot.slane %v2841_v33, 4  ;;  %v1885_v2 = vrot.slane %v1884_v55, 4  ;;  %v1893_v23 = vrot.slane %v1891_v47, 4  ;;  %v2854_v61 = vrot.slane %v1901_v25, 5 }
 0x1a5   : > { %1637 = vrot.lane.b32.xlu1 %v1610_v39, %s6090_s22  ;;  %v6985_v11 = vpop.permute.xlu1 %1426  ;;  %v6988_v26 = vpack.c.bf16 %v1025_v48, %v1025_v48  ;;  %v926_v57 = vadd.f32 %v6768_v45, %v925_v12  ;;  %v6993_v10 = vpop.permute.xlu0 %2498  ;;  %v9361_v48 = vrot.slane %v6900_v31, 5  ;;  %v2838_v39 = vrot.slane %v2837_v44, 4 }
 0x1a6   : > { %1635 = vrot.lane.b32.xlu0 %v1600_v53, %s6090_s22  ;;  %v927_v35 = vpop.f32.mrf.mxu0  ;;  %v1889_v12 = vrot.slane %v1887_v14, 5  ;;  %v1911_v31 = vshrl.u32 %v6837_v32, 16  ;;  %v1903_v44 = vrot.slane %v1901_v25, 4  ;;  %v2855_v55 = vrot.slane %v1897_v7, 6 }
 0x1a7   : > { %9360 = vst [vmem:[#allocation44_spill] sm:$0xff] %v6988_v26  ;;  %v1026_v8 = vmax.f32 %v926_v57, 0.0  ;;  %1724 = vst.msk [vmem:[#allocation2 + $0xc4] sm:$0xf] %vm1118_vm0, %v6988_v26  ;;  %v1862_v46 = vsel %vm6266_vm3, %v1860_v4, %v9361_v48  ;;  %v1875_v57 = vrot.slane %v1874_v62, 4  ;;  %v2851_v48 = vor.u32 %v2850_v13, %v2849_v51 }
 0x1a8   : > { %v7006_v53 = vpop.f32.mrf.mxu0  ;;  %v1917_v14 = vshll.u32 %v6864_v5, 16  ;;  %v2847_v62 = vsel %vm6290_vm8, %v2843_v1, %v7004_v38  ;;  %v2842_v47 = vsel %vm6290_vm8, %v2838_v39, %v2841_v33  ;;  %v1890_v7 = vsel %vm6266_vm3, %v1885_v2, %v1889_v12 }
 0x1a9   : > { %1993 = vrot.lane.b32.xlu1 %v1870_v54, %s6088_s16  ;;  %v7009_v30 = vpop.permute.xlu1 %2500  ;;  %v7011_v35 = vpack.c.bf16 %v1026_v8, %v1026_v8  ;;  %v7014_v24 = vpop.permute.xlu0 %1428  ;;  %v1921_v54 = vshrl.u32 %v6864_v5, 16  ;;  %v1907_v8 = vshll.u32 %v6837_v32, 16  ;;  %v1880_v25 = vsel %vm6266_vm3, %v1875_v57, %v6964_v21 }
 0x1aa   : > { %1991 = vrot.lane.b32.xlu0 %v1862_v46, %s6088_s16  ;;  %v930_v4 = vpop.f32.mrf.mxu0  ;;  %v2848_v51 = vrot.slane %v7004_v38, 4  ;;  %v1904_v1 = vor.u32 %v1903_v44, %v7017_v56  ;;  %v2853_v2 = vrot.slane %v2851_v48, 4  ;;  %v7046_v32 = vor.u32 %v2855_v55, %v2854_v61 }
 0x1ab   : > { %1725 = vst.msk [vmem:[#allocation2 + $0xd4] sm:$0xf] %vm1118_vm0, %v7011_v35  ;;  %v1894_v4 = vor.u32 %v1893_v23, %v1889_v12  ;;  %v2859_v21 = vrot.slane %v1911_v31, 5  ;;  %v2864_v57 = vrot.slane %v1921_v54, 5  ;;  %v1909_v38 = vrot.slane %v1907_v8, 5 }
 0x1ac   : > { %v7027_v46 = vpop.f32.mrf.mxu0  ;;  %v2860_v22 = vrot.slane %v1907_v8, 6  ;;  %v7048_v13 = vrot.slane %v1917_v14, 5  ;;  %v1937_v12 = vshll.u32 %v6919_v15, 16  ;;  %v2865_v44 = vrot.slane %v1917_v14, 6 }
 0x1ad   : > { %2910 = vrot.lane.b32.xlu1 %v2847_v62, %s6088_s16  ;;  %v1927_v62 = vshll.u32 %v6891_v28, 16  ;;  %v7042_v33 = vpop.permute.xlu1 %1430  ;;  %v1913_v23 = vrot.slane %v1911_v31, 4  ;;  %v1905_v61 = vrot.slane %v1904_v1, 4  ;;  %v1895_v55 = vrot.slane %v1894_v4, 4 }
 0x1ae   : > { %2908 = vrot.lane.b32.xlu0 %v2842_v47, %s6088_s16  ;;  %v935_v5 = vpop.f32.mrf.mxu0  ;;  %v1923_v47 = vrot.slane %v1921_v54, 4  ;;  %v2869_v8 = vrot.slane %v9363_v50, 5  ;;  %v2852_v31 = vsel %vm6290_vm8, %v2848_v51, %v2851_v48  ;;  %v2861_v14 = vor.u32 %v2860_v22, %v2859_v21 }
 0x1af   : > { %v7044_v39 = vpop.permute.xlu0 %2502  ;;  %v1941_v5 = vshrl.u32 %v6919_v15, 16  ;;  %v2857_v15 = vsel %vm6290_vm8, %v2853_v2, %v7046_v32  ;;  %v1914_v50 = vor.u32 %v1913_v23, %v1909_v38  ;;  %v1910_v2 = vsel %vm6266_vm3, %v1905_v61, %v1909_v38 }
 0x1b0   : > { %9362 = vst [vmem:[#allocation45_spill] sm:$0xff] %v7044_v39  ;;  %v7050_v17 = vpop.f32.mrf.mxu0  ;;  %v2870_v39 = vrot.slane %v1927_v62, 6  ;;  %v1900_v22 = vsel %vm6266_vm3, %v1895_v55, %v7017_v56  ;;  %v2858_v48 = vrot.slane %v7046_v32, 4  ;;  %v9272_v23 = vshll.u32 %v6972_v37, 16  ;;  %v5948_v55 = vld [vmem:[%s9211_s3 + $0x78] sm:$0xff]  }
 0x1b1   : > { %1997 = vrot.lane.b32.xlu1 %v1890_v7, %s6088_s16  ;;  %v1924_v7 = vor.u32 %v1923_v47, %v7048_v13  ;;  %v7068_v1 = vpop.permute.xlu1 %2504  ;;  %v2874_v4 = vrot.slane %v1941_v5, 5  ;;  %v2863_v38 = vrot.slane %v2861_v14, 4  ;;  %v7085_v58 = vrot.slane %v1927_v62, 5  ;;  %5590 = vmatprep.subr.bf16.mxu1 %v5948_v55 }
 0x1b2   : > { %1995 = vrot.lane.b32.xlu0 %v1880_v25, %s6088_s16  ;;  %v938_v49 = vpop.f32.mrf.mxu0  ;;  %v2871_v51 = vor.u32 %v2870_v39, %v2869_v8  ;;  %v9274_v32 = vshrl.u32 %v6972_v37, 16  ;;  %v1915_v39 = vrot.slane %v1914_v50, 4  ;;  %v929_v62 = vadd.f32 %v6768_v45, %v7006_v53 }
 0x1b3   : > { %v7058_v54 = vpop.permute.xlu0 %1432  ;;  %v2866_v49 = vor.u32 %v2865_v44, %v2864_v57  ;;  %v1943_v57 = vrot.slane %v1941_v5, 4  ;;  %v9273_v44 = vshll.u32 %v6950_v3, 16  ;;  %v1925_v61 = vrot.slane %v1924_v7, 4 }
 0x1b4   : > { %9364 = vst [vmem:[#allocation46_spill] sm:$0xff] %v7058_v54  ;;  %v7066_v25 = vpop.f32.mrf.mxu0  ;;  %v2875_v54 = vrot.slane %v1937_v12, 6  ;;  %v2873_v8 = vrot.slane %v2871_v51, 4  ;;  %v9367_v7 = vshrl.u32 %v6891_v28, 16  ;;  %v1963_v53 = vrot.slane %v9274_v32, 4 }
 0x1b5   : > { %2914 = vrot.lane.b32.xlu1 %v2857_v15, %s6088_s16  ;;  %v7079_v15 = vrot.slane %v1937_v12, 5  ;;  %v2868_v5 = vrot.slane %v2866_v49, 4  ;;  %v7105_v50 = vpop.permute.xlu1 %1434  ;;  %v7110_v47 = vrot.slane %v9273_v44, 5  ;;  %v7124_v44 = vshll.u32 %v6988_v26, 16 }
 0x1b6   : > { %2912 = vrot.lane.b32.xlu0 %v2852_v31, %s6088_s16  ;;  %v943_v21 = vpop.f32.mrf.mxu0  ;;  %v7091_v12 = vor.u32 %v2875_v54, %v2874_v4  ;;  %v7127_v32 = vshrl.u32 %v6988_v26, 16 }
 0x1b7   : > { %v7083_v31 = vpop.permute.xlu0 %1436  ;;  %v1933_v21 = vrot.slane %v9367_v7, 4  ;;  %v1944_v4 = vor.u32 %v1943_v57, %v7079_v15  ;;  %v5949_v7 = vld [vmem:[%s9211_s3 + $0x38] sm:$0xff]   ;;  %v934_v57 = vadd.f32 %v6768_v45, %v7027_v46  ;;  %9369 = vst [vmem:[#allocation49_spill] sm:$0xff] %v7124_v44  ;;  %v1930_v46 = vsel %vm6266_vm3, %v1925_v61, %v7085_v58 }
 0x1b8   : > { %9365 = vst [vmem:[#allocation47_spill] sm:$0xff] %v7083_v31  ;;  %v7087_v56 = vpop.f32.mrf.mxu0  ;;  %9366 = vst [vmem:[#allocation48_spill] sm:$0xff] %v7091_v12  ;;  %5591 = vmatpush3.bf16.msra.mxu1 %v5949_v7 }
 0x1b9   : > { %2001 = vrot.lane.b32.xlu1 %v1910_v2, %s6088_s16  ;;  %v7103_v2 = vrot.slane %v9272_v23, 5  ;;  %9370 = vst [vmem:[#allocation50_spill] sm:$0xff] %v7127_v32 }
 0x1ba   : > { %1999 = vrot.lane.b32.xlu0 %v1900_v22, %s6088_s16  ;;  %v946_v54 = vpop.f32.mrf.mxu0  ;;  %v9368_v22 = vshrl.u32 %v6950_v3, 16 }
 0x1bb   : > { %v2867_v54 = vsel %vm6290_vm8, %v2863_v38, %v2866_v49  ;;  %v2862_v49 = vsel %vm6290_vm8, %v2858_v48, %v2861_v14  ;;  %v5950_v38 = vld [vmem:[%s9211_s3 + $0x70] sm:$0xff]   ;;  %v2877_v14 = vsel %vm6290_vm8, %v2873_v8, %v7091_v12  ;;  %v2872_v48 = vsel %vm6290_vm8, %v2868_v5, %v2871_v51  ;;  %v7153_v7 = vpop.permute.xlu1 %1438 }
 0x1bc   : > { %v1953_v28 = vrot.slane %v9368_v22, 4  ;;  %v1213_v23 = vpop.permute.xlu0 %1212  ;;  %v7129_v37 = vpop.f32.mrf.mxu0  ;;  %v1027_v22 = vmax.f32 %v929_v62, 0.0  ;;  %9371 = vst [vmem:[#allocation51_spill] sm:$0xff] %v7153_v7  ;;  %v1934_v62 = vor.u32 %v1933_v21, %v7085_v58  ;;  %5592 = vmatprep.subr.bf16.mxu1 %v5950_v38  ;;  %v1028_v8 = vmax.f32 %v934_v57, 0.0  ;;  %v5952_v38 = vld [vmem:[%s9211_s3 + $0x68] sm:$0xff]  }
 0x1bd   : > { %2918 = vrot.lane.b32.xlu1 %v2867_v54, %s6088_s16  ;;  %1255 = vst.msk [vmem:[#allocation2] sm:$0xf] %vm1254_vm14, %v1213_v23  ;;  %v1920_v23 = vsel %vm6266_vm3, %v1915_v39, %v7048_v13  ;;  %v7155_v54 = vrot.slane %v1944_v4, 4  ;;  %v5951_v39 = vld [vmem:[%s9211_s3 + $0x30] sm:$0xff]   ;;  %v1969_v51 = vrot.slane %v7124_v44, 5  ;;  %v1973_v5 = vrot.slane %v7127_v32, 4 }
 0x1be   : > { %2916 = vrot.lane.b32.xlu0 %v2862_v49, %s6088_s16  ;;  %1459 = vst.msk [vmem:[#allocation2] sm:$0xf] %vm1458_vm2, %v6859_v18  ;;  %v951_v61 = vpop.f32.mrf.mxu0  ;;  %v1964_v49 = vor.u32 %v1963_v53, %v7103_v2  ;;  %v1954_v13 = vor.u32 %v1953_v28, %v7110_v47  ;;  %v7168_v4 = vshrl.u32 %v7011_v35, 16  ;;  %v937_v28 = vadd.f32 %v6768_v45, %v7050_v17 }
 0x1bf   : > { %v7176_v21 = vshll.u32 %v7011_v35, 16  ;;  %v2047_v53 = vrot.slane %v7127_v32, 6  ;;  %v2048_v57 = vrot.slane %v7124_v44, 7  ;;  %5593 = vmatpush3.bf16.msra.mxu1 %v5951_v39  ;;  %v7183_v61 = vpack.c.bf16 %v1027_v22, %v1027_v22 }
 0x1c0   : > { %v7163_v18 = vpop.permute.xlu0 %1440  ;;  %v7170_v58 = vpop.f32.mrf.mxu0  ;;  %v1760_v17 = vrot.slane %v7011_v35, 6  ;;  %v1983_v55 = vrot.slane %v7168_v4, 4  ;;  %v1935_v32 = vrot.slane %v1934_v62, 4  ;;  %v1965_v44 = vrot.slane %v1964_v49, 4  ;;  %5594 = vmatprep.subr.bf16.mxu1 %v5952_v38 }
 0x1c1   : > { %9372 = vst [vmem:[#allocation52_spill] sm:$0xff] %v7163_v18  ;;  %2005 = vrot.lane.b32.xlu1 %v1930_v46, %s6088_s16  ;;  %9373 = vst [vmem:[#allocation53_spill] sm:$0xff] %v7176_v21  ;;  %v5353_v46 = vrot.slane %v6988_v26, 10  ;;  %v7191_v39 = vrot.slane %v1954_v13, 4  ;;  %v1979_v3 = vrot.slane %v7176_v21, 5  ;;  %v7194_v18 = vpack.c.bf16 %v1028_v8, %v1028_v8  ;;  %v5953_v8 = vld [vmem:[%s9211_s3 + $0x28] sm:$0xff]  }
 0x1c2   : > { %2003 = vrot.lane.b32.xlu0 %v1920_v23, %s6088_s16  ;;  %v954_v12 = vpop.f32.mrf.mxu0  ;;  %v1974_v23 = vor.u32 %v1973_v5, %v1969_v51  ;;  %v1762_v31 = vrot.slane %v1760_v17, 4  ;;  %v2049_v62 = vor.u32 %v2048_v57, %v2047_v53  ;;  %v2051_v49 = vrot.slane %v7168_v4, 6  ;;  %v5954_v5 = vld [vmem:[%s9211_s3 + $0x60] sm:$0xff]  }
 0x1c3   : > { %v7189_v59 = vpop.permute.xlu1 %1442  ;;  %v1029_v12 = vmax.f32 %v937_v28, 0.0  ;;  %v2052_v13 = vrot.slane %v7176_v21, 7  ;;  %v7210_v38 = vshll.u32 %v7183_v61, 16  ;;  %v1984_v28 = vor.u32 %v1983_v55, %v1979_v3  ;;  %5595 = vmatpush3.bf16.msra.mxu1 %v5953_v8 }
 0x1c4   : > { %v1215_v22 = vpop.permute.xlu0 %1214  ;;  %v7197_v7 = vpop.f32.mrf.mxu0  ;;  %v9375_v53 = vrot.slane %v6369_v19, 5  ;;  %v1950_v21 = vsel %vm6266_vm3, %v7155_v54, %v7110_v47  ;;  %v7233_v55 = vshrl.u32 %v7194_v18, 16  ;;  %v1960_v47 = vsel %vm6266_vm3, %v7191_v39, %v7103_v2  ;;  %5596 = vmatprep.subr.bf16.mxu1 %v5954_v5 }
 0x1c5   : > { %2922 = vrot.lane.b32.xlu1 %v2877_v14, %s6088_s16  ;;  %1256 = vst.msk [vmem:[#allocation2 + $0x10] sm:$0xf] %vm1254_vm14, %v1215_v22  ;;  %9374 = vst [vmem:[#allocation54_spill] sm:$0xff] %v7210_v38  ;;  %v942_v14 = vadd.f32 %v6768_v45, %v7066_v25  ;;  %v7230_v25 = vsel %vm6484_vm12, %v5353_v46, %v1760_v17  ;;  %v7252_v46 = vor.u32 %v2052_v13, %v2051_v49  ;;  %v5956_v17 = vld [vmem:[%s9211_s3 + $0x58] sm:$0xff]  }
 0x1c6   : > { %1460 = vst.msk [vmem:[#allocation2 + $0x10] sm:$0xf] %vm1458_vm2, %v6878_v9  ;;  %2920 = vrot.lane.b32.xlu0 %v2872_v48, %s6088_s16  ;;  %v2263_v57 = vrot.slane %v9375_v53, 4  ;;  %v959_v22 = vpop.f32.mrf.mxu0  ;;  %v1940_v9 = vsel %vm6266_vm3, %v1935_v32, %v7079_v15  ;;  %v1970_v48 = vsel %vm6266_vm3, %v1965_v44, %v1969_v51  ;;  %9376 = vst [vmem:[#allocation55_spill] sm:$0xff] %v7233_v55  ;;  %v1975_v15 = vrot.slane %v1974_v23, 4 }
 0x1c7   : > { %v1614_v26 = vpop.permute.xlu1 %1613  ;;  %v9377_v32 = vrot.slane %v7183_v61, 6  ;;  %v2050_v51 = vrot.slane %v2049_v62, 4  ;;  %v7255_v2 = vshrl.u32 %v7183_v61, 16  ;;  %v1985_v39 = vrot.slane %v1984_v28, 4 }
 0x1c8   : > { %1655 = vst.msk [vmem:[#allocation2 + $0x10] sm:$0xf] %vm1653_vm5, %v1614_v26  ;;  %v1612_v53 = vpop.permute.xlu0 %1611  ;;  %v7246_v54 = vpop.f32.mrf.mxu0  ;;  %v7250_v26 = vpack.c.bf16 %v1029_v12, %v1029_v12  ;;  %v1989_v23 = vrot.slane %v7210_v38, 5  ;;  %v9286_v12 = vrot.slane %v6382_v40, 5  ;;  %v5359_v13 = vrot.slane %v7011_v35, 11 }
 0x1c9   : > { %v7244_v44 = vsel %vm6484_vm12, %v1762_v31, %v9377_v32  ;;  %2009 = vrot.lane.b32.xlu1 %v1950_v21, %s6088_s16  ;;  %1654 = vst.msk [vmem:[#allocation2] sm:$0xf] %vm1653_vm5, %v1612_v53  ;;  %v5955_v31 = vld [vmem:[%s9211_s3 + $0x20] sm:$0xff]   ;;  %v1030_v21 = vmax.f32 %v942_v14, 0.0  ;;  %v2738_v8 = vrot.slane %v7183_v61, 7  ;;  %v2058_v5 = vrot.slane %v7255_v2, 6 }
 0x1ca   : > { %2007 = vrot.lane.b32.xlu0 %v1940_v9, %s6088_s16  ;;  %v962_v62 = vpop.f32.mrf.mxu0  ;;  %v2059_v22 = vrot.slane %v7210_v38, 7  ;;  %5597 = vmatpush3.bf16.msra.mxu1 %v5955_v31  ;;  %v5957_v14 = vld [vmem:[%s9211_s3 + $0x18] sm:$0xff]   ;;  %v7274_v28 = vshll.u32 %v7194_v18, 16  ;;  %v1980_v53 = vsel %vm6266_vm3, %v1975_v15, %v1979_v3  ;;  %v945_v32 = vadd.f32 %v6768_v45, %v7087_v56 }
 0x1cb   : > { %v2361_v49 = vpop.permute.xlu1 %2360  ;;  %v2265_v31 = vsel %vm6311_vm9, %v2263_v57, %v9286_v12  ;;  %5598 = vmatprep.subr.bf16.mxu1 %v5956_v17  ;;  %v9288_v3 = vshrl.u32 %v7250_v26, 16  ;;  %v7296_v56 = vsel %vm6538_vm15, %v2050_v51, %v7252_v46  ;;  %v2055_v57 = vrot.slane %v7252_v46, 4  ;;  %v5958_v46 = vld [vmem:[%s9211_s3 + $0x50] sm:$0xff]  }
 0x1cc   : > { %9378 = vst [vmem:[#allocation56_spill] sm:$0xff] %v7274_v28  ;;  %2401 = vst.msk [vmem:[#allocation2 + $0x18] sm:$0xf] %vm1254_vm14, %v2361_v49  ;;  %v2359_v9 = vpop.permute.xlu0 %2358  ;;  %v7285_v62 = vpop.f32.mrf.mxu0  ;;  %v2966_v17 = vrot.slane %v7255_v2, 7  ;;  %v9379_v51 = vrot.slane %v6353_v60, 5  ;;  %v958_v12 = vadd.f32 %v6768_v45, %v7197_v7  ;;  %v9381_v15 = vrot.slane %v6369_v19, 5 }
 0x1cd   : > { %2533 = vst.msk [vmem:[#allocation2 + $0x18] sm:$0xf] %vm1458_vm2, %v6910_v43  ;;  %2013 = vrot.lane.b32.xlu1 %v1970_v48, %s6088_s16  ;;  %v7303_v43 = vpack.c.bf16 %v1030_v21, %v1030_v21  ;;  %v7307_v48 = vsel %vm6266_vm3, %v1985_v39, %v1989_v23  ;;  %v9380_v21 = vrot.slane %v7183_v61, 6  ;;  %v1766_v23 = vrot.slane %v7194_v18, 6 }
 0x1ce   : > { %2400 = vst.msk [vmem:[#allocation2 + $0x8] sm:$0xf] %vm1254_vm14, %v2359_v9  ;;  %2011 = vrot.lane.b32.xlu0 %v1960_v47, %s6088_s16  ;;  %v2260_v49 = vrot.slane %v9379_v51, 4  ;;  %v967_v9 = vpop.f32.mrf.mxu0  ;;  %v7319_v47 = vor.u32 %v2059_v22, %v2058_v5  ;;  %5599 = vmatpush3.bf16.msra.mxu1 %v5957_v14  ;;  %v2740_v51 = vrot.slane %v2738_v8, 4  ;;  %v5959_v22 = vld [vmem:[%s9211_s3 + $0x10] sm:$0xff]   ;;  %v2741_v19 = vrot.slane %v7194_v18, 7 }
 0x1cf   : > { %2305 = vst.msk [vmem:[#allocation2 + $0x78] sm:$0xf] %vm1118_vm0, %v2265_v31  ;;  %v1219_v31 = vpop.permute.xlu1 %1218  ;;  %v1765_v39 = vrot.slane %v9380_v21, 4  ;;  %v1031_v9 = vmax.f32 %v945_v32, 0.0  ;;  %5600 = vmatprep.subr.bf16.mxu1 %v5958_v46  ;;  %v5360_v7 = vrot.slane %v7168_v4, 11  ;;  %v2069_v14 = vrot.slane %v7274_v28, 7 }
 0x1d0   : > { %2532 = vst.msk [vmem:[#allocation2 + $0x8] sm:$0xf] %vm1458_vm2, %v6887_v27  ;;  %v7317_v27 = vsel %vm6556_vm6, %v5359_v13, %v2738_v8  ;;  %v1217_v60 = vpop.permute.xlu0 %1216  ;;  %v2262_v13 = vsel %vm6311_vm9, %v2260_v49, %v9381_v15  ;;  %v7331_v5 = vpop.f32.mrf.mxu0  ;;  %v2066_v8 = vrot.slane %v7233_v55, 6  ;;  %v2967_v32 = vor.u32 %v2966_v17, %v7210_v38  ;;  %v5960_v46 = vld [vmem:[%s9211_s3 + $0x48] sm:$0xff]  }
 0x1d1   : > { %1258 = vst.msk [vmem:[#allocation2 + $0x30] sm:$0xf] %vm1254_vm14, %v1219_v31  ;;  %1801 = vrot.lane.b32.xlu1 %v7230_v25, %s6089_s21  ;;  %1257 = vst.msk [vmem:[#allocation2 + $0x20] sm:$0xf] %vm1254_vm14, %v1217_v60  ;;  %v961_v15 = vadd.f32 %v6768_v45, %v7246_v54  ;;  %v1768_v21 = vrot.slane %v1766_v23, 4  ;;  %v9287_v60 = vrot.slane %v7233_v55, 7  ;;  %v7373_v25 = vadd.f32 %v6768_v45, %v7129_v37 }
 0x1d2   : > { %1462 = vst.msk [vmem:[#allocation2 + $0x30] sm:$0xf] %vm1458_vm2, %v6944_v41  ;;  %1461 = vst.msk [vmem:[#allocation2 + $0x20] sm:$0xf] %vm1458_vm2, %v6917_v36  ;;  %2015 = vrot.lane.b32.xlu0 %v1980_v53, %s6088_s16  ;;  %v970_v49 = vpop.f32.mrf.mxu0  ;;  %v7360_v36 = vsel %vm6538_vm15, %v2055_v57, %v7319_v47  ;;  %v7364_v53 = vsel %vm6484_vm12, %v1765_v39, %v1766_v23  ;;  %5601 = vmatpush3.bf16.msra.mxu1 %v5959_v22  ;;  %v1034_v57 = vmax.f32 %v958_v12, 0.0  ;;  %v5961_v37 = vld [vmem:[%s9211_s3 + $0x8] sm:$0xff]  }
 0x1d3   : > { %2304 = vst.msk [vmem:[#allocation2 + $0x68] sm:$0xf] %vm1118_vm0, %v2262_v13  ;;  %v2609_v31 = vpop.permute.xlu1 %2608  ;;  %v7368_v13 = vpack.c.bf16 %v1031_v9, %v1031_v9  ;;  %v1769_v49 = vrot.slane %v7250_v26, 6  ;;  %5602 = vmatprep.subr.bf16.mxu1 %v5960_v46  ;;  %v7380_v39 = vsel %vm6556_vm6, %v2740_v51, %v2741_v19  ;;  %v2062_v23 = vrot.slane %v7319_v47, 4 }
 0x1d4   : > { %2649 = vst.msk [vmem:[#allocation2 + $0x18] sm:$0xf] %vm1653_vm5, %v2609_v31  ;;  %v2607_v54 = vpop.permute.xlu0 %2606  ;;  %v973_v41 = vpop.f32.mrf.mxu0  ;;  %v7383_v9 = vor.u32 %v2069_v14, %v2066_v8  ;;  %v7385_v22 = vrot.slane %v2966_v17, 4  ;;  %v7397_v12 = vsel %vm6599_vm11, %v5360_v7, %v2967_v32  ;;  %v2743_v47 = vrot.slane %v2741_v19, 4 }
 0x1d5   : > { %1803 = vrot.lane.b32.xlu1 %v7244_v44, %s6089_s21  ;;  %2648 = vst.msk [vmem:[#allocation2 + $0x8] sm:$0xf] %vm1653_vm5, %v2607_v54  ;;  %v5962_v44 = vld [vmem:[%s9211_s3 + $0x40] sm:$0xff]   ;;  %v1035_v51 = vmax.f32 %v961_v15, 0.0  ;;  %v966_v17 = vadd.f32 %v6768_v45, %v7285_v62  ;;  %v7404_v46 = vor.u32 %v9287_v60, %v7274_v28  ;;  %v2744_v31 = vrot.slane %v7250_v26, 7 }
 0x1d6   : > { %2182 = vrot.lane.b32.xlu0 %v7296_v56, %s6090_s22  ;;  %v975_v8 = vpop.f32.mrf.mxu0  ;;  %v2076_v56 = vrot.slane %v9288_v3, 6  ;;  %v9382_v7 = vshll.u32 %v7250_v26, 16  ;;  %5603 = vmatpush3.bf16.msra.mxu1 %v5961_v37  ;;  %v7415_v62 = vsel %vm6484_vm12, %v1768_v21, %v1769_v49  ;;  %v7418_v54 = vpack.c.bf16 %v1034_v57, %v1034_v57  ;;  %v7434_v57 = vld [vmem:[%s9210_s2] ss:$0 sm:$0xff] }
 0x1d7   : > { %v1618_v14 = vpop.permute.xlu1 %1617  ;;  %5604 = vmatprep.subr.bf16.mxu1 %v5962_v44  ;;  %v7426_v37 = vsel %vm6538_vm15, %v2062_v23, %v7383_v9  ;;  %v7429_v21 = vrot.slane %v1769_v49, 4  ;;  %v969_v44 = vadd.f32 %v7434_v57, %v7331_v5  ;;  %v7443_v23 = vpack.c.bf16 %v1035_v51, %v1035_v51 }
 0x1d8   : > { %v2079_v32 = vrot.slane %v9382_v7, 7  ;;  %1657 = vst.msk [vmem:[#allocation2 + $0x30] sm:$0xf] %vm1653_vm5, %v1618_v14  ;;  %v1616_v19 = vpop.permute.xlu0 %1615  ;;  %v976_v8 = vpop.f32.mrf.mxu0  ;;  %v2072_v14 = vrot.slane %v7383_v9, 4  ;;  %v1036_v9 = vmax.f32 %v966_v17, 0.0  ;;  %v9289_v49 = vrot.slane %v7418_v54, 6 }
 0x1d9   : > { %2017 = vrot.lane.b32.xlu1 %v7307_v48, %s6088_s16  ;;  %1656 = vst.msk [vmem:[#allocation2 + $0x20] sm:$0xf] %vm1653_vm5, %v1616_v19  ;;  %v5963_v48 = vld [vmem:[%s9211_s3] sm:$0xff]   ;;  %v974_v7 = vadd.f32 %v7434_v57, %v973_v41  ;;  %v7453_v15 = vsel %vm6556_vm6, %v2743_v47, %v2744_v31  ;;  %v9294_v41 = vrot.slane %v7303_v43, 6  ;;  %v9290_v17 = vshrl.u32 %v7418_v54, 16 }
 0x1da   : > { %2779 = vrot.lane.b32.xlu0 %v7317_v27, %s6089_s21  ;;  %v978_v19 = vpop.f32.mrf.mxu0  ;;  %v7455_v60 = vor.u32 %v2079_v32, %v2076_v56  ;;  %v9291_v27 = vshll.u32 %v7418_v54, 16  ;;  %5605 = vmatpush3.bf16.msra.mxu1 %v5963_v48  ;;  %v1787_v5 = vrot.slane %v7443_v23, 6  ;;  %v7471_v47 = vrot.slane %v2744_v31, 4 }
 0x1db   : > { %v2365_v45 = vpop.permute.xlu1 %2364  ;;  %v1786_v19 = vrot.slane %v9289_v49, 4  ;;  %v1037_v56 = vmax.f32 %v969_v44, 0.0  ;;  %v1038_v32 = vmax.f32 %v974_v7, 0.0  ;;  %v9292_v48 = vshll.u32 %v7443_v23, 16 }
 0x1dc   : > { %2403 = vst.msk [vmem:[#allocation2 + $0x38] sm:$0xf] %vm1254_vm14, %v2365_v45  ;;  %v2363_v51 = vpop.permute.xlu0 %2362  ;;  %v7464_v3 = vpop.f32.mrf.mxu0  ;;  %v977_v45 = vadd.f32 %v7434_v57, %v976_v8  ;;  %v2126_v31 = vrot.slane %v9290_v17, 6  ;;  %v9293_v8 = vshrl.u32 %v7443_v23, 16 }
 0x1dd   : > { %2535 = vst.msk [vmem:[#allocation2 + $0x38] sm:$0xf] %vm1458_vm2, %v6967_v34  ;;  %2184 = vrot.lane.b32.xlu1 %v7360_v36, %s6090_s22  ;;  %v7479_v34 = vpack.c.bf16 %v1036_v9, %v1036_v9  ;;  %v7483_v36 = vsel %vm6484_vm12, %v1786_v19, %v1787_v5  ;;  %v2129_v9 = vrot.slane %v9291_v27, 7  ;;  %v7498_v19 = vsel %vm6538_vm15, %v2072_v14, %v7455_v60 }
 0x1de   : > { %2402 = vst.msk [vmem:[#allocation2 + $0x28] sm:$0xf] %vm1254_vm14, %v2363_v51  ;;  %1805 = vrot.lane.b32.xlu0 %v7364_v53, %s6089_s21  ;;  %v983_v44 = vpop.f32.mrf.mxu0  ;;  %v1039_v53 = vmax.f32 %v977_v45, 0.0  ;;  %v7513_v14 = vpack.c.bf16 %v1038_v32, %v1038_v32  ;;  %v1789_v27 = vrot.slane %v1787_v5, 4 }
 0x1df   : > { %2534 = vst.msk [vmem:[#allocation2 + $0x28] sm:$0xf] %vm1458_vm2, %v6946_v52  ;;  %v1223_v7 = vpop.permute.xlu1 %1222  ;;  %v9383_v52 = vshrl.u32 %v7250_v26, 16  ;;  %v9384_v44 = vrot.slane %v7233_v55, 7 }
 0x1e0   : > { %1260 = vst.msk [vmem:[#allocation2 + $0x50] sm:$0xf] %vm1254_vm14, %v1223_v7  ;;  %v1221_v49 = vpop.permute.xlu0 %1220  ;;  %v984_v45 = vpop.f32.mrf.mxu0  ;;  %v7511_v7 = vpack.c.bf16 %v1037_v56, %v1037_v56 }
 0x1e1   : > { %v7490_v51 = vrot.slane %v9383_v52, 7  ;;  %v7502_v17 = vrot.slane %v9384_v44, 4  ;;  %v9296_v52 = vshll.u32 %v7479_v34, 16  ;;  %1464 = vst.msk [vmem:[#allocation2 + $0x50] sm:$0xf] %vm1458_vm2, %v6985_v11  ;;  %2781 = vrot.lane.b32.xlu1 %v7380_v39, %s6089_s21  ;;  %v1790_v44 = vrot.slane %v7479_v34, 6 }
 0x1e2   : > { %1259 = vst.msk [vmem:[#allocation2 + $0x40] sm:$0xf] %vm1254_vm14, %v1221_v49  ;;  %3026 = vrot.lane.b32.xlu0 %v7397_v12, %s6090_s22  ;;  %v7520_v45 = vpack.c.bf16 %v1039_v53, %v1039_v53  ;;  %v7522_v11 = vor.u32 %v2129_v9, %v2126_v31  ;;  %v2136_v39 = vrot.slane %v9293_v8, 6  ;;  %v2139_v49 = vrot.slane %v9292_v48, 7  ;;  %v986_v56 = vpop.f32.mrf.mxu0 }
 0x1e3   : > { %1463 = vst.msk [vmem:[#allocation2 + $0x40] sm:$0xf] %vm1458_vm2, %v6969_v63  ;;  %v2613_v5 = vpop.permute.xlu1 %2612  ;;  %v7533_v63 = vsel %vm6484_vm12, %v7429_v21, %v9294_v41  ;;  %v9385_v12 = vshll.u32 %v7250_v26, 16  ;;  %v9295_v31 = vshrl.u32 %v7479_v34, 16  ;;  %v7543_v53 = vsel %vm6484_vm12, %v1789_v27, %v1790_v44 }
 0x1e4   : > { %2651 = vst.msk [vmem:[#allocation2 + $0x38] sm:$0xf] %vm1653_vm5, %v2613_v5  ;;  %v2611_v9 = vpop.permute.xlu0 %2610  ;;  %v2132_v21 = vrot.slane %v7522_v11, 4  ;;  %v2140_v8 = vor.u32 %v2139_v49, %v2136_v39  ;;  %v2149_v27 = vrot.slane %v9296_v52, 7  ;;  %v1792_v5 = vrot.slane %v1790_v44, 4 }
 0x1e5   : > { %v7538_v32 = vor.u32 %v7490_v51, %v9385_v12  ;;  %1807 = vrot.lane.b32.xlu1 %v7415_v62, %s6089_s21  ;;  %2650 = vst.msk [vmem:[#allocation2 + $0x28] sm:$0xf] %vm1653_vm5, %v2611_v9  ;;  %v2146_v26 = vrot.slane %v9295_v31, 6  ;;  %v1793_v12 = vrot.slane %v7511_v7, 6  ;;  %v9299_v41 = vshrl.u32 %v7511_v7, 16 }
 0x1e6   : > { %2186 = vrot.lane.b32.xlu0 %v7426_v37, %s6090_s22  ;;  %v7564_v49 = vsel %vm6538_vm15, %v2132_v21, %v2140_v8  ;;  %v2142_v31 = vrot.slane %v2140_v8, 4  ;;  %v1796_v39 = vrot.slane %v7513_v14, 6  ;;  %v9386_v21 = vshll.u32 %v7511_v7, 16 }
 0x1e7   : > { %v1622_v9 = vpop.permute.xlu1 %1621  ;;  %v2150_v48 = vor.u32 %v2149_v27, %v2146_v26  ;;  %v7568_v44 = vsel %vm6484_vm12, %v1792_v5, %v1793_v12  ;;  %v1795_v52 = vrot.slane %v1793_v12, 4  ;;  %v2156_v62 = vrot.slane %v9299_v41, 6 }
 0x1e8   : > { %1659 = vst.msk [vmem:[#allocation2 + $0x50] sm:$0xf] %vm1653_vm5, %v1622_v9  ;;  %v1620_v37 = vpop.permute.xlu0 %1619  ;;  %v2159_v29 = vrot.slane %v9386_v21, 7  ;;  %v9387_v8 = vsel %vm6599_vm11, %v7385_v22, %v7404_v46  ;;  %v9388_v5 = vshrl.u32 %v7513_v14, 16  ;;  %v9389_v9 = vshll.u32 %v7513_v14, 16 }
 0x1e9   : > { %3028 = vrot.lane.b32.xlu1 %v9387_v8, %s6090_s22  ;;  %1658 = vst.msk [vmem:[#allocation2 + $0x40] sm:$0xf] %vm1653_vm5, %v1620_v37  ;;  %v7586_v26 = vsel %vm6538_vm15, %v2142_v31, %v2150_v48  ;;  %v2152_v27 = vrot.slane %v2150_v48, 4  ;;  %v7596_v22 = vsel %vm6484_vm12, %v1795_v52, %v1796_v39  ;;  %v1798_v37 = vrot.slane %v1796_v39, 4 }
 0x1ea   : > { %v2166_v12 = vrot.slane %v9388_v5, 6  ;;  %v2169_v21 = vrot.slane %v9389_v9, 7  ;;  %2783 = vrot.lane.b32.xlu0 %v7453_v15, %s6089_s21  ;;  %v2160_v46 = vor.u32 %v2159_v29, %v2156_v62  ;;  %v1799_v8 = vrot.slane %v7520_v45, 6 }
 0x1eb   : > { %v2369_v31 = vpop.permute.xlu1 %2368  ;;  %v9390_v48 = vshrl.u32 %v7303_v43, 16  ;;  %v9301_v5 = vrot.slane %v7418_v54, 7  ;;  %v9391_v9 = vshrl.u32 %v7520_v45, 16  ;;  %v9392_v62 = vshll.u32 %v7520_v45, 16 }
 0x1ec   : > { %v2170_v56 = vor.u32 %v2169_v21, %v2166_v12  ;;  %2405 = vst.msk [vmem:[#allocation2 + $0x58] sm:$0xf] %vm1254_vm14, %v2369_v31  ;;  %v2367_v15 = vpop.permute.xlu0 %2366  ;;  %v7607_v52 = vsel %vm6538_vm15, %v2152_v27, %v2160_v46  ;;  %v2162_v29 = vrot.slane %v2160_v46, 4  ;;  %v7611_v39 = vsel %vm6484_vm12, %v1798_v37, %v1799_v8 }
 0x1ed   : > { %v2086_v41 = vrot.slane %v9390_v48, 6  ;;  %v2176_v28 = vrot.slane %v9391_v9, 6  ;;  %v2179_v48 = vrot.slane %v9392_v62, 7  ;;  %2537 = vst.msk [vmem:[#allocation2 + $0x58] sm:$0xf] %vm1458_vm2, %v7009_v30  ;;  %2188 = vrot.lane.b32.xlu1 %v7498_v19, %s6090_s22  ;;  %v9393_v12 = vshll.u32 %v7303_v43, 16 }
 0x1ee   : > { %2404 = vst.msk [vmem:[#allocation2 + $0x48] sm:$0xf] %vm1254_vm14, %v2367_v15  ;;  %v2172_v21 = vrot.slane %v2170_v56, 4  ;;  %v2761_v46 = vrot.slane %v9301_v5, 4  ;;  %v2762_v37 = vrot.slane %v7443_v23, 7  ;;  %v9302_v8 = vshll.u32 %v7368_v13, 16  ;;  %1809 = vrot.lane.b32.xlu0 %v7533_v63, %s6089_s21 }
 0x1ef   : > { %v2089_v27 = vrot.slane %v9393_v12, 7  ;;  %2536 = vst.msk [vmem:[#allocation2 + $0x48] sm:$0xf] %vm1458_vm2, %v6993_v10  ;;  %v953_v30 = vadd.f32 %v7434_v57, %v7170_v58  ;;  %v7634_v19 = vsel %vm6538_vm15, %v2162_v29, %v2170_v56  ;;  %v2180_v31 = vor.u32 %v2179_v48, %v2176_v28  ;;  %v1227_v9 = vpop.permute.xlu1 %1226 }
 0x1f0   : > { %v9394_v15 = vrot.slane %v7303_v43, 7  ;;  %v9395_v10 = vrot.slane %v7303_v43, 6  ;;  %v1775_v63 = vrot.slane %v7368_v13, 6  ;;  %v7646_v58 = vsel %vm6556_vm6, %v2761_v46, %v2762_v37  ;;  %1262 = vst.msk [vmem:[#allocation2 + $0x70] sm:$0xf] %vm1254_vm14, %v1227_v9  ;;  %v1225_v56 = vpop.permute.xlu0 %1224 }
 0x1f1   : > { %v9396_v28 = vshrl.u32 %v7303_v43, 16  ;;  %v7655_v48 = vsel %vm6538_vm15, %v2172_v21, %v2180_v31  ;;  %1466 = vst.msk [vmem:[#allocation2 + $0x70] sm:$0xf] %vm1458_vm2, %v7042_v33  ;;  %v2976_v21 = vsel %vm6599_vm11, %v7502_v17, %v7538_v32  ;;  %v2082_v46 = vrot.slane %v7455_v60, 4 }
 0x1f2   : > { %v2748_v62 = vsel %vm6556_vm6, %v7471_v47, %v9394_v15  ;;  %v1774_v12 = vrot.slane %v9395_v10, 4  ;;  %v2764_v47 = vrot.slane %v2762_v37, 4  ;;  %v2765_v15 = vrot.slane %v7479_v34, 7  ;;  %1261 = vst.msk [vmem:[#allocation2 + $0x60] sm:$0xf] %vm1254_vm14, %v1225_v56  ;;  %3030 = vrot.lane.b32.xlu0 %v2976_v21, %s6090_s22 }
 0x1f3   : > { %v7651_v29 = vrot.slane %v9396_v28, 7  ;;  %v9397_v10 = vmax.f32 %v7373_v25, 0.0  ;;  %2785 = vrot.lane.b32.xlu1 %v2748_v62, %s6089_s21  ;;  %v2090_v37 = vor.u32 %v2089_v27, %v2086_v41  ;;  %1465 = vst.msk [vmem:[#allocation2 + $0x60] sm:$0xf] %vm1458_vm2, %v7014_v24  ;;  %v1033_v25 = vmax.f32 %v953_v30, 0.0  ;;  %v2617_v56 = vpop.permute.xlu1 %2616 }
 0x1f4   : > { %v9398_v33 = vrot.slane %v7303_v43, 7  ;;  %v2750_v9 = vrot.slane %v7368_v13, 7  ;;  %v7680_v62 = vsel %vm6556_vm6, %v2764_v47, %v2765_v15  ;;  %v9399_v17 = vshrl.u32 %v7368_v13, 16  ;;  %2653 = vst.msk [vmem:[#allocation2 + $0x58] sm:$0xf] %vm1653_vm5, %v2617_v56  ;;  %v2615_v30 = vpop.permute.xlu0 %2614 }
 0x1f5   : > { %v7661_v5 = vpack.c.bf16 %v9397_v10, %v9397_v10  ;;  %v2099_v41 = vrot.slane %v9302_v8, 7  ;;  %v9400_v24 = vshrl.u32 %v7418_v54, 16  ;;  %v1776_v27 = vsel %vm6484_vm12, %v1774_v12, %v1775_v63  ;;  %2652 = vst.msk [vmem:[#allocation2 + $0x48] sm:$0xf] %vm1653_vm5, %v2615_v30 }
 0x1f6   : > { %v2749_v31 = vrot.slane %v9398_v33, 4  ;;  %v2096_v60 = vrot.slane %v9399_v17, 6  ;;  %v2977_v28 = vrot.slane %v7490_v51, 4  ;;  %v9401_v47 = vshll.u32 %v7303_v43, 16 }
 0x1f7   : > { %v7688_v32 = vrot.slane %v9400_v24, 7  ;;  %1811 = vrot.lane.b32.xlu1 %v1776_v27, %s6089_s21  ;;  %v2091_v21 = vsel %vm6538_vm15, %v2082_v46, %v2090_v37  ;;  %v9402_v56 = vshrl.u32 %v7443_v23, 16  ;;  %v2104_v12 = vshrl.u32 %v7661_v5, 16  ;;  %v1626_v27 = vpop.permute.xlu1 %1625 }
 0x1f8   : > { %v2979_v10 = vor.u32 %v7651_v29, %v9401_v47  ;;  %v7706_v24 = vpack.c.bf16 %v1033_v25, %v1033_v25  ;;  %2190 = vrot.lane.b32.xlu0 %v2091_v21, %s6090_s22  ;;  %v2751_v43 = vsel %vm6556_vm6, %v2749_v31, %v2750_v9  ;;  %v2092_v30 = vrot.slane %v2090_v37, 4  ;;  %1661 = vst.msk [vmem:[#allocation2 + $0x70] sm:$0xf] %vm1653_vm5, %v1626_v27  ;;  %v1624_v21 = vpop.permute.xlu0 %1623 }
 0x1f9   : > { %v2997_v33 = vrot.slane %v7688_v32, 4  ;;  %v2998_v17 = vrot.slane %v9402_v56, 7  ;;  %v7711_v47 = vor.u32 %v2099_v41, %v2096_v60  ;;  %v9403_v46 = vshrl.u32 %v7368_v13, 16  ;;  %1660 = vst.msk [vmem:[#allocation2 + $0x60] sm:$0xf] %vm1653_vm5, %v1624_v21 }
 0x1fa   : > { %v9404_v56 = vshll.u32 %v7443_v23, 16  ;;  %v2980_v25 = vsel %vm6599_vm11, %v2977_v28, %v2979_v10  ;;  %v1777_v51 = vrot.slane %v1775_v63, 4  ;;  %v9405_v31 = vshrl.u32 %v7479_v34, 16  ;;  %v5971_v63 = vld [vmem:[%s9211_s3 + $0xf8] sm:$0xff]  }
 0x1fb   : > { %v7715_v8 = vrot.slane %v9403_v46, 7  ;;  %v3001_v38 = vrot.slane %v2998_v17, 4  ;;  %3032 = vrot.lane.b32.xlu1 %v2980_v25, %s6090_s22  ;;  %v1778_v60 = vrot.slane %v7661_v5, 6  ;;  %v2767_v41 = vrot.slane %v2765_v15, 4  ;;  %5648 = vmatprep.subr.bf16.mxu1 %v5971_v63 }
 0x1fc   : > { %v2999_v55 = vor.u32 %v2998_v17, %v9404_v56  ;;  %v7724_v37 = vrot.slane %v9405_v31, 7  ;;  %v2768_v28 = vrot.slane %v7511_v7, 7  ;;  %2787 = vrot.lane.b32.xlu0 %v2751_v43, %s6089_s21  ;;  %v2752_v10 = vrot.slane %v2750_v9, 4 }
 0x1fd   : > { %v2753_v17 = vrot.slane %v7661_v5, 7  ;;  %v2981_v27 = vrot.slane %v7651_v29, 4  ;;  %v9406_v46 = vshll.u32 %v7479_v34, 16  ;;  %v2101_v15 = vsel %vm6538_vm15, %v2092_v30, %v7711_v47  ;;  %v2371_v34 = vpop.permute.xlu0 %2370 }
 0x1fe   : > { %v7731_v23 = vsel %vm6599_vm11, %v2997_v33, %v2999_v55  ;;  %v2373_v55 = vpop.permute.xlu1 %2372  ;;  %v9407_v33 = vshll.u32 %v7368_v13, 16  ;;  %v2106_v21 = vrot.slane %v2104_v12, 6  ;;  %v7751_v9 = vsel %vm6556_vm6, %v2767_v41, %v2768_v28  ;;  %2406 = vst.msk [vmem:[#allocation2 + $0x68] sm:$0xf] %vm1254_vm14, %v2371_v34 }
 0x1ff   : > { %v3003_v56 = vor.u32 %v7724_v37, %v9406_v46  ;;  %2407 = vst.msk [vmem:[#allocation2 + $0x78] sm:$0xf] %vm1254_vm14, %v2373_v55  ;;  %v9408_v29 = vshll.u32 %v7661_v5, 16  ;;  %v2770_v30 = vrot.slane %v2768_v28, 4  ;;  %v2771_v13 = vrot.slane %v7513_v14, 7  ;;  %2192 = vrot.lane.b32.xlu1 %v2101_v15, %s6090_s22  ;;  %v9409_v46 = vld [vmem:[#allocation22_spill] sm:$0xff] }
 0x200   : > { %v2983_v25 = vor.u32 %v7715_v8, %v9407_v33  ;;  %2539 = vst.msk [vmem:[#allocation2 + $0x78] sm:$0xf] %vm1458_vm2, %v7068_v1  ;;  %v1779_v41 = vsel %vm6484_vm12, %v1777_v51, %v1778_v60  ;;  %v7767_v63 = vrot.slane %v2104_v12, 7  ;;  %v5357_v55 = vrot.slane %v9409_v46, 9  ;;  %v9410_v33 = vld [vmem:[#allocation23_spill] sm:$0xff] }
 0x201   : > { %v2109_v43 = vrot.slane %v9408_v29, 7  ;;  %v7758_v31 = vsel %vm6599_vm11, %v3001_v38, %v3003_v56  ;;  %v2664_v38 = vrot.slane %v9410_v33, 5  ;;  %v9411_v56 = vld [vmem:[#allocation45_spill] sm:$0xff]  ;;  %1813 = vrot.lane.b32.xlu0 %v1779_v41, %s6089_s21  ;;  %v2754_v1 = vsel %vm6556_vm6, %v2752_v10, %v2753_v17  ;;  %v1229_v41 = vpop.permute.xlu0 %1228 }
 0x202   : > { %2538 = vst.msk [vmem:[#allocation2 + $0x68] sm:$0xf] %vm1458_vm2, %v9411_v56  ;;  %v982_v15 = vadd.f32 %v7434_v57, %v7464_v3  ;;  %v7781_v12 = vsel %vm6556_vm6, %v2770_v30, %v2771_v13  ;;  %v1231_v51 = vpop.permute.xlu1 %1230  ;;  %v1780_v34 = vrot.slane %v1778_v60, 4  ;;  %v1781_v29 = vrot.slane %v7706_v24, 6  ;;  %v9412_v30 = vld [vmem:[#allocation25_spill] sm:$0xff] }
 0x203   : > { %v2102_v28 = vrot.slane %v7711_v47, 4  ;;  %v2665_v56 = vsel %vm6311_vm9, %v5357_v55, %v2664_v38  ;;  %1264 = vst.msk [vmem:[#allocation2 + $0x90] sm:$0xf] %vm1254_vm14, %v1231_v51  ;;  %v2984_v10 = vsel %vm6599_vm11, %v2981_v27, %v2983_v25  ;;  %v7790_v3 = vor.u32 %v2109_v43, %v2106_v21  ;;  %2789 = vrot.lane.b32.xlu1 %v2754_v1, %s6089_s21 }
 0x204   : > { %2719 = vst.msk [vmem:[#allocation2 + $0xc] sm:$0xf] %vm1118_vm0, %v2665_v56  ;;  %v2666_v57 = vrot.slane %v2664_v38, 4  ;;  %v2667_v60 = vrot.slane %v9412_v30, 5  ;;  %v2985_v47 = vrot.slane %v7715_v8, 4  ;;  %v9413_v55 = vshll.u32 %v7661_v5, 16 }
 0x205   : > { %1468 = vst.msk [vmem:[#allocation2 + $0x90] sm:$0xf] %vm1458_vm2, %v7105_v50  ;;  %v2755_v25 = vrot.slane %v2753_v17, 4  ;;  %v2756_v21 = vrot.slane %v7706_v24, 7  ;;  %v2114_v43 = vshrl.u32 %v7706_v24, 16  ;;  %v9414_v38 = vld [vmem:[#allocation46_spill] sm:$0xff]  ;;  %3034 = vrot.lane.b32.xlu0 %v2984_v10, %s6090_s22  ;;  %v1782_v56 = vsel %vm6484_vm12, %v1780_v34, %v1781_v29 }
 0x206   : > { %1263 = vst.msk [vmem:[#allocation2 + $0x80] sm:$0xf] %vm1254_vm14, %v1229_v41  ;;  %v2987_v27 = vor.u32 %v7767_v63, %v9413_v55  ;;  %v1040_v50 = vmax.f32 %v982_v15, 0.0  ;;  %v2668_v1 = vsel %vm6311_vm9, %v2666_v57, %v2667_v60  ;;  %v2621_v51 = vpop.permute.xlu1 %2620  ;;  %v3005_v5 = vrot.slane %v7724_v37, 4  ;;  %v2619_v41 = vpop.permute.xlu0 %2618 }
 0x207   : > { %1467 = vst.msk [vmem:[#allocation2 + $0x80] sm:$0xf] %vm1458_vm2, %v9414_v38  ;;  %v9415_v8 = vshrl.u32 %v7511_v7, 16  ;;  %v2111_v15 = vsel %vm6538_vm15, %v2102_v28, %v7790_v3  ;;  %v2116_v10 = vrot.slane %v2114_v43, 6  ;;  %v9416_v57 = vshll.u32 %v7706_v24, 16  ;;  %1815 = vrot.lane.b32.xlu1 %v1782_v56, %s6089_s21 }
 0x208   : > { %2720 = vst.msk [vmem:[#allocation2 + $0x1c] sm:$0xf] %vm1118_vm0, %v2668_v1  ;;  %v2988_v37 = vsel %vm6599_vm11, %v2985_v47, %v2987_v27  ;;  %v2757_v55 = vsel %vm6556_vm6, %v2755_v25, %v2756_v21  ;;  %v2112_v34 = vrot.slane %v7790_v3, 4  ;;  %v9417_v38 = vshll.u32 %v7511_v7, 16  ;;  %v9419_v27 = vld [vmem:[#allocation27_spill] sm:$0xff] }
 0x209   : > { %v3006_v17 = vrot.slane %v9415_v8, 7  ;;  %2655 = vst.msk [vmem:[#allocation2 + $0x78] sm:$0xf] %vm1653_vm5, %v2621_v51  ;;  %v2119_v30 = vrot.slane %v9416_v57, 7  ;;  %2654 = vst.msk [vmem:[#allocation2 + $0x68] sm:$0xf] %vm1653_vm5, %v2619_v41  ;;  %2194 = vrot.lane.b32.xlu0 %v2111_v15, %s6090_s22  ;;  %v7831_v28 = vpack.c.bf16 %v1040_v50, %v1040_v50 }
 0x20a   : > { %v9418_v8 = vshrl.u32 %v7513_v14, 16  ;;  %v2669_v41 = vrot.slane %v2667_v60, 4  ;;  %v1630_v57 = vpop.permute.xlu1 %1629  ;;  %v2670_v3 = vrot.slane %v9419_v27, 5  ;;  %v2773_v25 = vrot.slane %v2771_v13, 4  ;;  %v1628_v50 = vpop.permute.xlu0 %1627 }
 0x20b   : > { %v3007_v1 = vor.u32 %v3006_v17, %v9417_v38  ;;  %v3009_v51 = vrot.slane %v3006_v17, 4  ;;  %v2774_v7 = vrot.slane %v7520_v45, 7  ;;  %1663 = vst.msk [vmem:[#allocation2 + $0x90] sm:$0xf] %vm1653_vm5, %v1630_v57  ;;  %v2120_v15 = vor.u32 %v2119_v30, %v2116_v10  ;;  %3036 = vrot.lane.b32.xlu1 %v2988_v37, %s6090_s22  ;;  %1662 = vst.msk [vmem:[#allocation2 + $0x80] sm:$0xf] %vm1653_vm5, %v1628_v50 }
 0x20c   : > { %v7835_v56 = vrot.slane %v9418_v8, 7  ;;  %v1783_v17 = vrot.slane %v1781_v29, 4  ;;  %v2990_v38 = vrot.slane %v2114_v43, 7  ;;  %v9420_v8 = vshll.u32 %v7513_v14, 16  ;;  %v9421_v57 = vld [vmem:[#allocation30_spill] sm:$0xff] }
 0x20d   : > { %v7839_v47 = vsel %vm6599_vm11, %v3005_v5, %v3007_v1  ;;  %v2671_v5 = vsel %vm6311_vm9, %v2669_v41, %v2670_v3  ;;  %v7853_v13 = vsel %vm6556_vm6, %v2773_v25, %v2774_v7  ;;  %v2672_v1 = vrot.slane %v2670_v3, 4  ;;  %2791 = vrot.lane.b32.xlu0 %v2757_v55, %s6089_s21  ;;  %v9422_v55 = vld [vmem:[#allocation51_spill] sm:$0xff] }
 0x20e   : > { %v3011_v60 = vor.u32 %v7835_v56, %v9420_v8  ;;  %v2673_v10 = vrot.slane %v9421_v57, 5  ;;  %2721 = vst.msk [vmem:[#allocation2 + $0x2c] sm:$0xf] %vm1118_vm0, %v2671_v5  ;;  %v1235_v29 = vpop.permute.xlu1 %1234  ;;  %v3019_v43 = vshrl.u32 %v7831_v28, 16  ;;  %v2121_v37 = vsel %vm6538_vm15, %v2112_v34, %v2120_v15  ;;  %v1233_v41 = vpop.permute.xlu0 %1232 }
 0x20f   : > { %1266 = vst.msk [vmem:[#allocation2 + $0xb0] sm:$0xf] %vm1254_vm14, %v1235_v29  ;;  %v2758_v27 = vrot.slane %v2756_v21, 4  ;;  %2196 = vrot.lane.b32.xlu1 %v2121_v37, %s6090_s22  ;;  %1265 = vst.msk [vmem:[#allocation2 + $0xa0] sm:$0xf] %vm1254_vm14, %v1233_v41  ;;  %v2989_v25 = vrot.slane %v7767_v63, 4 }
 0x210   : > { %v7859_v14 = vsel %vm6599_vm11, %v3009_v51, %v3011_v60  ;;  %v2674_v30 = vsel %vm6311_vm9, %v2672_v1, %v2673_v10  ;;  %1470 = vst.msk [vmem:[#allocation2 + $0xb0] sm:$0xf] %vm1458_vm2, %v9422_v55  ;;  %v9423_v51 = vrot.slane %v7418_v54, 6  ;;  %v9424_v34 = vshll.u32 %v7706_v24, 16  ;;  %v9425_v21 = vld [vmem:[#allocation47_spill] sm:$0xff]  ;;  %v9427_v63 = vld [vmem:[#allocation32_spill] sm:$0xff] }
 0x211   : > { %2722 = vst.msk [vmem:[#allocation2 + $0x3c] sm:$0xf] %vm1118_vm0, %v2674_v30  ;;  %v2122_v8 = vrot.slane %v2120_v15, 4  ;;  %v2993_v60 = vrot.slane %v2990_v38, 4  ;;  %v2675_v5 = vrot.slane %v2673_v10, 4  ;;  %v9426_v57 = vshll.u32 %v7418_v54, 16 }
 0x212   : > { %v1785_v3 = vsel %vm6484_vm12, %v1783_v17, %v9423_v51  ;;  %v2991_v50 = vor.u32 %v2990_v38, %v9424_v34  ;;  %1469 = vst.msk [vmem:[#allocation2 + $0xa0] sm:$0xf] %vm1458_vm2, %v9425_v21  ;;  %v1634_v1 = vpop.permute.xlu1 %1633  ;;  %v3021_v30 = vrot.slane %v3019_v43, 7  ;;  %v3022_v17 = vshll.u32 %v7831_v28, 16  ;;  %v1632_v15 = vpop.permute.xlu0 %1631  ;;  %v9430_v34 = vld [vmem:[#allocation34_spill] sm:$0xff] }
 0x213   : > { %1817 = vrot.lane.b32.xlu0 %v1785_v3, %s6089_s21  ;;  %v2995_v29 = vor.u32 %v7688_v32, %v9426_v57  ;;  %v2676_v37 = vrot.slane %v9427_v63, 5  ;;  %1665 = vst.msk [vmem:[#allocation2 + $0xb0] sm:$0xf] %vm1653_vm5, %v1634_v1  ;;  %v9428_v24 = vrot.slane %v7418_v54, 7  ;;  %v2777_v38 = vrot.slane %v7831_v28, 7 }
 0x214   : > { %1664 = vst.msk [vmem:[#allocation2 + $0xa0] sm:$0xf] %vm1653_vm5, %v1632_v15  ;;  %v2992_v32 = vsel %vm6599_vm11, %v2989_v25, %v2991_v50  ;;  %v2131_v54 = vsel %vm6538_vm15, %v2122_v8, %v7522_v11  ;;  %v3013_v28 = vrot.slane %v7835_v56, 4  ;;  %v9429_v43 = vshrl.u32 %v7520_v45, 16 }
 0x215   : > { %v2760_v41 = vsel %vm6556_vm6, %v2758_v27, %v9428_v24  ;;  %v2677_v10 = vsel %vm6311_vm9, %v2675_v5, %v2676_v37  ;;  %v2776_v55 = vrot.slane %v2774_v7, 4  ;;  %v2996_v3 = vsel %vm6599_vm11, %v2993_v60, %v2995_v29  ;;  %v9432_v7 = vld [vmem:[#allocation36_spill] sm:$0xff] }
 0x216   : > { %2793 = vrot.lane.b32.xlu1 %v2760_v41, %s6089_s21  ;;  %2723 = vst.msk [vmem:[#allocation2 + $0x4c] sm:$0xf] %vm1118_vm0, %v2677_v10  ;;  %v3014_v27 = vrot.slane %v9429_v43, 7  ;;  %v1239_v51 = vpop.permute.xlu1 %1238  ;;  %v2678_v25 = vrot.slane %v2676_v37, 4  ;;  %v2679_v50 = vrot.slane %v9430_v34, 5  ;;  %v3024_v21 = vor.u32 %v3022_v17, %v3021_v30  ;;  %v1237_v5 = vpop.permute.xlu0 %1236  ;;  %v9433_v29 = vld [vmem:[#allocation40_spill] sm:$0xff] }
 0x217   : > { %3038 = vrot.lane.b32.xlu0 %v2992_v32, %s6090_s22  ;;  %1268 = vst.msk [vmem:[#allocation2 + $0xd0] sm:$0xf] %vm1254_vm14, %v1239_v51  ;;  %v9431_v11 = vshll.u32 %v7520_v45, 16  ;;  %v7916_v56 = vsel %vm6556_vm6, %v2776_v55, %v2777_v38  ;;  %v2682_v57 = vrot.slane %v9432_v7, 5  ;;  %1267 = vst.msk [vmem:[#allocation2 + $0xc0] sm:$0xf] %vm1254_vm14, %v1237_v5 }
 0x218   : > { %v3017_v1 = vrot.slane %v3014_v27, 4  ;;  %1472 = vst.msk [vmem:[#allocation2 + $0xd0] sm:$0xf] %vm1458_vm2, %v7189_v59  ;;  %v2680_v60 = vsel %vm6311_vm9, %v2678_v25, %v2679_v50  ;;  %v2681_v45 = vrot.slane %v2679_v50, 4  ;;  %v2685_v30 = vrot.slane %v9433_v29, 5  ;;  %v9435_v37 = vld [vmem:[#allocation52_spill] sm:$0xff] }
 0x219   : > { %v3015_v8 = vor.u32 %v3014_v27, %v9431_v11  ;;  %v9434_v17 = vrot.slane %v6382_v40, 5  ;;  %1471 = vst.msk [vmem:[#allocation2 + $0xc0] sm:$0xf] %vm1458_vm2, %v9435_v37  ;;  %v2684_v24 = vrot.slane %v2682_v57, 4  ;;  %v9436_v41 = vld [vmem:[#allocation6_spill] sm:$0xff]  ;;  %v9438_v43 = vld [vmem:[#allocation8_spill] sm:$0xff] }
 0x21a   : > { %1819 = vrot.lane.b32.xlu1 %v7483_v36, %s6089_s21  ;;  %2724 = vst.msk [vmem:[#allocation2 + $0x5c] sm:$0xf] %vm1118_vm0, %v2680_v60  ;;  %v7939_v36 = vsel %vm6599_vm11, %v3017_v1, %v3024_v21  ;;  %v2267_v15 = vrot.slane %v9436_v41, 5  ;;  %v1638_v40 = vpop.permute.xlu1 %1637  ;;  %v2683_v38 = vsel %vm6311_vm9, %v2681_v45, %v2682_v57  ;;  %v2687_v32 = vrot.slane %v2685_v30, 4  ;;  %v9437_v10 = vld [vmem:[#allocation42_spill] sm:$0xff]  ;;  %v9439_v34 = vld [vmem:[#allocation9_spill] sm:$0xff] }
 0x21b   : > { %v2266_v63 = vrot.slane %v9434_v17, 4  ;;  %2198 = vrot.lane.b32.xlu0 %v2131_v54, %s6090_s22  ;;  %v7934_v59 = vsel %vm6599_vm11, %v3013_v28, %v3015_v8  ;;  %v2688_v54 = vrot.slane %v9437_v10, 5  ;;  %v2270_v27 = vrot.slane %v9438_v43, 5  ;;  %1667 = vst.msk [vmem:[#allocation2 + $0xd0] sm:$0xf] %vm1653_vm5, %v1638_v40  ;;  %v1636_v28 = vpop.permute.xlu0 %1635  ;;  %v9440_v11 = vld [vmem:[#allocation43_spill] sm:$0xff] }
 0x21c   : > { %2725 = vst.msk [vmem:[#allocation2 + $0x6c] sm:$0xf] %vm1118_vm0, %v2683_v38  ;;  %v2686_v55 = vsel %vm6311_vm9, %v2684_v24, %v2685_v30  ;;  %v2269_v25 = vrot.slane %v2267_v15, 4  ;;  %v2273_v50 = vrot.slane %v9439_v34, 5  ;;  %v2691_v8 = vrot.slane %v9440_v11, 5  ;;  %v9441_v57 = vld [vmem:[#allocation12_spill] sm:$0xff] }
 0x21d   : > { %v2268_v51 = vsel %vm6311_vm9, %v2266_v63, %v2267_v15  ;;  %1666 = vst.msk [vmem:[#allocation2 + $0xc0] sm:$0xf] %vm1653_vm5, %v1636_v28  ;;  %v2689_v21 = vsel %vm6311_vm9, %v2687_v32, %v2688_v54  ;;  %v2690_v5 = vrot.slane %v2688_v54, 4  ;;  %v2272_v1 = vrot.slane %v2270_v27, 4  ;;  %v9442_v45 = vld [vmem:[#allocation15_spill] sm:$0xff]  ;;  %v9443_v63 = vld [vmem:[#allocation18_spill] sm:$0xff] }
 0x21e   : > { %3040 = vrot.lane.b32.xlu1 %v2996_v3, %s6090_s22  ;;  %2726 = vst.msk [vmem:[#allocation2 + $0x7c] sm:$0xf] %vm1118_vm0, %v2686_v55  ;;  %2306 = vst.msk [vmem:[#allocation2 + $0x88] sm:$0xf] %vm1118_vm0, %v2268_v51  ;;  %v2271_v3 = vsel %vm6311_vm9, %v2269_v25, %v2270_v27  ;;  %v2275_v7 = vrot.slane %v2273_v50, 4  ;;  %v2276_v60 = vrot.slane %v9441_v57, 5  ;;  %v7967_v30 = vpop.permute.xlu1 %1993 }
 0x21f   : > { %1821 = vrot.lane.b32.xlu0 %v7543_v53, %s6089_s21  ;;  %2727 = vst.msk [vmem:[#allocation2 + $0x8c] sm:$0xf] %vm1118_vm0, %v2689_v21  ;;  %v2279_v29 = vrot.slane %v9442_v45, 5  ;;  %2307 = vst.msk [vmem:[#allocation2 + $0x98] sm:$0xf] %vm1118_vm0, %v2271_v3  ;;  %v2692_v17 = vsel %vm6311_vm9, %v2690_v5, %v2691_v8  ;;  %v2274_v53 = vsel %vm6311_vm9, %v2272_v1, %v2273_v50  ;;  %v2282_v37 = vrot.slane %v9443_v63, 5  ;;  %v7975_v24 = vpop.permute.xlu0 %1991 }
 0x220   : > { %2728 = vst.msk [vmem:[#allocation2 + $0x9c] sm:$0xf] %vm1118_vm0, %v2692_v17  ;;  %2308 = vst.msk [vmem:[#allocation2 + $0xa8] sm:$0xf] %vm1118_vm0, %v2274_v53  ;;  %v2277_v15 = vsel %vm6311_vm9, %v2275_v7, %v2276_v60  ;;  %v2278_v40 = vrot.slane %v2276_v60, 4  ;;  %v2693_v28 = vrot.slane %v2691_v8, 4 }
 0x221   : > { %v2281_v38 = vrot.slane %v2279_v29, 4  ;;  %2309 = vst.msk [vmem:[#allocation2 + $0xb8] sm:$0xf] %vm1118_vm0, %v2277_v15  ;;  %v9444_v55 = vld [vmem:[#allocation44_spill] sm:$0xff]  ;;  %v2697_v34 = vrot.slane %v7011_v35, 5  ;;  %v9447_v3 = vld [vmem:[#allocation26_spill] sm:$0xff] }
 0x222   : > { %2200 = vrot.lane.b32.xlu1 %v7564_v49, %s6090_s22  ;;  %v2280_v32 = vsel %vm6311_vm9, %v2278_v40, %v2279_v29  ;;  %v7990_v27 = vpop.permute.xlu1 %2910  ;;  %v2694_v51 = vrot.slane %v9444_v55, 5  ;;  %v9445_v8 = vld [vmem:[#allocation24_spill] sm:$0xff]  ;;  %v2341_v7 = vrot.slane %v9447_v3, 7  ;;  %v9448_v60 = vshrl.u32 %v9436_v41, 16 }
 0x223   : > { %2202 = vrot.lane.b32.xlu0 %v7586_v26, %s6090_s22  ;;  %v2283_v54 = vsel %vm6311_vm9, %v2281_v38, %v2282_v37  ;;  %2310 = vst.msk [vmem:[#allocation2 + $0xc8] sm:$0xf] %vm1118_vm0, %v2280_v32  ;;  %v7995_v49 = vpop.permute.xlu0 %2908  ;;  %v9449_v29 = vshll.u32 %v9436_v41, 16  ;;  %v2700_v53 = vrot.slane %v7183_v61, 5  ;;  %v2703_v15 = vrot.slane %v7194_v18, 5  ;;  %v9450_v38 = vld [vmem:[#allocation28_spill] sm:$0xff] }
 0x224   : > { %2311 = vst.msk [vmem:[#allocation2 + $0xd8] sm:$0xf] %vm1118_vm0, %v2283_v54  ;;  %v2695_v26 = vsel %vm6311_vm9, %v2693_v28, %v2694_v51  ;;  %v2696_v25 = vrot.slane %v2694_v51, 4  ;;  %v2461_v45 = vrot.slane %v9448_v60, 5  ;;  %v2343_v40 = vrot.slane %v2341_v7, 4 }
 0x225   : > { %2729 = vst.msk [vmem:[#allocation2 + $0xac] sm:$0xf] %vm1118_vm0, %v2695_v26  ;;  %v2462_v17 = vrot.slane %v9449_v29, 6  ;;  %v2702_v37 = vrot.slane %v2700_v53, 4  ;;  %v2344_v32 = vrot.slane %v9450_v38, 7  ;;  %v9451_v41 = vshrl.u32 %v9437_v10, 16 }
 0x226   : > { %1823 = vrot.lane.b32.xlu1 %v7568_v44, %s6089_s21  ;;  %v8005_v50 = vpop.permute.xlu1 %1997  ;;  %v2698_v21 = vsel %vm6311_vm9, %v2696_v25, %v2697_v34  ;;  %v9446_v44 = vrot.slane %v9445_v8, 7  ;;  %v9452_v28 = vshll.u32 %v9437_v10, 16  ;;  %v9453_v26 = vld [vmem:[#allocation7_spill] sm:$0xff]  ;;  %v9454_v10 = vshrl.u32 %v9438_v43, 16 }
 0x227   : > { %1825 = vrot.lane.b32.xlu0 %v7596_v22, %s6089_s21  ;;  %v8009_v5 = vpop.permute.xlu0 %1995  ;;  %2730 = vst.msk [vmem:[#allocation2 + $0xbc] sm:$0xf] %vm1118_vm0, %v2698_v21  ;;  %v2463_v61 = vor.u32 %v2462_v17, %v2461_v45  ;;  %v2879_v54 = vrot.slane %v9451_v41, 5  ;;  %v2704_v18 = vsel %vm6311_vm9, %v2702_v37, %v2703_v15  ;;  %v2460_v25 = vrot.slane %v9453_v26, 4  ;;  %v9461_v41 = vld [vmem:[#allocation29_spill] sm:$0xff] }
 0x228   : > { %v2340_v1 = vrot.slane %v9446_v44, 4  ;;  %v2880_v55 = vrot.slane %v9452_v28, 6  ;;  %2732 = vst.msk [vmem:[#allocation2 + $0xdc] sm:$0xf] %vm1118_vm0, %v2704_v18  ;;  %v2466_v21 = vrot.slane %v9454_v10, 5  ;;  %v9455_v8 = vshll.u32 %v9438_v43, 16 }
 0x229   : > { %v9458_v45 = vshrl.u32 %v9447_v3, 16  ;;  %v9459_v43 = vshrl.u32 %v9440_v11, 16  ;;  %v9460_v37 = vshll.u32 %v9440_v11, 16  ;;  %v9462_v28 = vshll.u32 %v9447_v3, 16 }
 0x22a   : > { %2204 = vrot.lane.b32.xlu1 %v7607_v52, %s6090_s22  ;;  %v8019_v35 = vpop.permute.xlu1 %2914  ;;  %v2342_v57 = vsel %vm6556_vm6, %v2340_v1, %v2341_v7  ;;  %v2699_v52 = vrot.slane %v2697_v34, 4  ;;  %v2467_v44 = vrot.slane %v9455_v8, 6  ;;  %v2464_v1 = vsel %vm6290_vm8, %v2460_v25, %v2463_v61  ;;  %v9457_v7 = vld [vmem:[#allocation48_spill] sm:$0xff] }
 0x22b   : > { %2206 = vrot.lane.b32.xlu0 %v7634_v19, %s6090_s22  ;;  %v8021_v22 = vpop.permute.xlu0 %2912  ;;  %v2881_v60 = vor.u32 %v2880_v55, %v2879_v54  ;;  %v2583_v29 = vrot.slane %v9458_v45, 7  ;;  %v2885_v15 = vrot.slane %v9460_v37, 6  ;;  %v2582_v54 = vrot.slane %v9461_v41, 4  ;;  %v9465_v45 = vld [vmem:[#allocation31_spill] sm:$0xff] }
 0x22c   : > { %v2701_v63 = vsel %vm6311_vm9, %v2699_v52, %v2700_v53  ;;  %v2468_v53 = vor.u32 %v2467_v44, %v2466_v21  ;;  %v2465_v18 = vrot.slane %v2463_v61, 4  ;;  %v9463_v10 = vshrl.u32 %v9450_v38, 16 }
 0x22d   : > { %2731 = vst.msk [vmem:[#allocation2 + $0xcc] sm:$0xf] %vm1118_vm0, %v2701_v63  ;;  %v2884_v63 = vrot.slane %v9459_v43, 5  ;;  %v2584_v55 = vor.u32 %v2583_v29, %v9462_v28  ;;  %v2347_v43 = vrot.slane %v9465_v45, 7  ;;  %vm3747_vm0 = vcmask 519168  }
 0x22e   : > { %1827 = vrot.lane.b32.xlu1 %v7611_v39, %s6089_s21  ;;  %v8033_v19 = vpop.permute.xlu1 %2001  ;;  %v2469_v11 = vsel %vm6290_vm8, %v2465_v18, %v2468_v53  ;;  %v8095_v21 = vrot.slane %v9463_v10, 7 }
 0x22f   : > { %2374 = vrot.lane.b32.xlu0 %v2342_v57, %s6089_s21  ;;  %v8038_v39 = vpop.permute.xlu0 %1999  ;;  %v2878_v57 = vrot.slane %v9457_v7, 4  ;;  %v2585_v3 = vsel %vm6599_vm11, %v2582_v54, %v2584_v55  ;;  %v9464_v7 = vshll.u32 %v9450_v38, 16  ;;  %v2349_v28 = vrot.slane %v2347_v43, 4  ;;  %v9468_v55 = vld [vmem:[#allocation21_spill] sm:$0xff] }
 0x230   : > { %v2350_v18 = vrot.slane %v9468_v55, 7 }
 0x232   : > { %2208 = vrot.lane.b32.xlu1 %v7655_v48, %s6090_s22  ;;  %v8053_v51 = vpop.permute.xlu1 %2918  ;;  %v2345_v48 = vsel %vm6556_vm6, %v2343_v40, %v2344_v32  ;;  %v2882_v40 = vsel %vm6290_vm8, %v2878_v57, %v2881_v60  ;;  %v2588_v57 = vor.u32 %v8095_v21, %v9464_v7  ;;  %v2470_v7 = vrot.slane %v2468_v53, 4 }
 0x233   : > { %2795 = vrot.lane.b32.xlu0 %v7646_v58, %s6089_s21  ;;  %v8058_v34 = vpop.permute.xlu0 %2916 }
 0x236   : > { %2376 = vrot.lane.b32.xlu1 %v2345_v48, %s6089_s21  ;;  %v8071_v17 = vpop.permute.xlu1 %2005  ;;  %v2883_v48 = vrot.slane %v2881_v60, 4  ;;  %v2346_v60 = vrot.slane %v2344_v32, 4  ;;  %v9467_v32 = vld [vmem:[#allocation10_spill] sm:$0xff] }
 0x237   : > { %2506 = vrot.lane.b32.xlu0 %v2464_v1, %s6088_s16  ;;  %v8073_v52 = vpop.permute.xlu0 %2003  ;;  %v2586_v1 = vrot.slane %v2583_v29, 4  ;;  %v9466_v29 = vld [vmem:[#allocation11_spill] sm:$0xff]  ;;  %v2472_v41 = vrot.slane %v9467_v32, 6 }
 0x238   : > { %v2348_v38 = vsel %vm6556_vm6, %v2346_v60, %v2347_v43 }
 0x239   : > { %v2589_v37 = vsel %vm6599_vm11, %v2586_v1, %v2588_v57  ;;  %v2351_v57 = vsel %vm6556_vm6, %v2349_v28, %v2350_v18  ;;  %v9474_v28 = vld [vmem:[#allocation53_spill] sm:$0xff] }
 0x23a   : > { %2797 = vrot.lane.b32.xlu1 %v7680_v62, %s6089_s21  ;;  %v8087_v26 = vpop.permute.xlu1 %2922  ;;  %v2886_v62 = vor.u32 %v2885_v15, %v2884_v63  ;;  %v2895_v55 = vrot.slane %v9474_v28, 6  ;;  %v9479_v28 = vld [vmem:[#allocation16_spill] sm:$0xff] }
 0x23b   : > { %2924 = vrot.lane.b32.xlu0 %v2882_v40, %s6088_s16  ;;  %v8091_v25 = vpop.permute.xlu0 %2920  ;;  %v2471_v40 = vrot.slane %v9466_v29, 5  ;;  %v9473_v29 = vshrl.u32 %v9465_v45, 16 }
 0x23c   : > { %v2887_v8 = vsel %vm6290_vm8, %v2883_v48, %v2886_v62  ;;  %v9469_v48 = vld [vmem:[#allocation50_spill] sm:$0xff]  ;;  %v2888_v53 = vrot.slane %v2886_v62, 4 }
 0x23d   : > { %v2889_v10 = vrot.slane %v9469_v48, 5  ;;  %v2590_v48 = vrot.slane %v8095_v21, 4  ;;  %v9476_v21 = vld [vmem:[#allocation35_spill] sm:$0xff] }
 0x23e   : > { %2508 = vrot.lane.b32.xlu1 %v2469_v11, %s6088_s16  ;;  %v8101_v61 = vpop.permute.xlu1 %2009  ;;  %v2473_v11 = vor.u32 %v2472_v41, %v2471_v40  ;;  %v2591_v40 = vrot.slane %v9473_v29, 7  ;;  %v5964_v29 = vld [vmem:[#allocation2] ss:$16 sps:$4 sm:$0xff]  }
 0x23f   : > { %2622 = vrot.lane.b32.xlu0 %v2585_v3, %s6090_s22  ;;  %v8105_v44 = vpop.permute.xlu0 %2007  ;;  %v9470_v3 = vld [vmem:[#allocation49_spill] sm:$0xff] }
 0x242   : > { %2926 = vrot.lane.b32.xlu1 %v2887_v8, %s6088_s16  ;;  %v8114_v63 = vpop.permute.xlu1 %2013  ;;  %v2890_v8 = vrot.slane %v9470_v3, 6 }
 0x243   : > { %3042 = vrot.lane.b32.xlu0 %v7731_v23, %s6090_s22  ;;  %v8118_v15 = vpop.permute.xlu0 %2011 }
 0x246   : > { %2624 = vrot.lane.b32.xlu1 %v2589_v37, %s6090_s22  ;;  %v1802_v54 = vpop.permute.xlu1 %1801  ;;  %v9472_v37 = vld [vmem:[#allocation13_spill] sm:$0xff] }
 0x247   : > { %2378 = vrot.lane.b32.xlu0 %v2348_v38, %s6089_s21  ;;  %1843 = vst.msk [vmem:[#allocation2 + $0x4] sm:$0xf] %vm1254_vm14, %v1802_v54  ;;  %v8127_v23 = vpop.permute.xlu0 %2015  ;;  %v2891_v38 = vor.u32 %v2890_v8, %v2889_v10  ;;  %v9475_v10 = vshll.u32 %v9465_v45, 16  ;;  %v2595_v45 = vrot.slane %v9476_v21, 7 }
 0x248   : > { %2033 = vst.msk [vmem:[#allocation2 + $0x4] sm:$0xf] %vm1458_vm2, %v7975_v24  ;;  %v9471_v24 = vld [vmem:[#allocation14_spill] sm:$0xff] }
 0x249   : > { %v2476_v43 = vrot.slane %v9471_v24, 5  ;;  %v2892_v62 = vsel %vm6290_vm8, %v2888_v53, %v2891_v38  ;;  %v2592_v3 = vor.u32 %v2591_v40, %v9475_v10  ;;  %v5972_v53 = vld [vmem:[%s9211_s3 + $0xb8] sm:$0xff]   ;;  %v2356_v10 = vrot.slane %v9410_v33, 7  ;;  %v5975_v33 = vld [vmem:[%s9211_s3 + $0xe8] sm:$0xff]  }
 0x24a   : > { %3044 = vrot.lane.b32.xlu1 %v7758_v31, %s6090_s22  ;;  %v1804_v1 = vpop.permute.xlu1 %1803  ;;  %v2477_v31 = vrot.slane %v9472_v37, 6  ;;  %v9477_v37 = vld [vmem:[#allocation33_spill] sm:$0xff] }
 0x24b   : > { %2799 = vrot.lane.b32.xlu0 %v7751_v9, %s6089_s21  ;;  %1844 = vst.msk [vmem:[#allocation2 + $0x14] sm:$0xf] %vm1254_vm14, %v1804_v1  ;;  %v2183_v60 = vpop.permute.xlu0 %2182  ;;  %v2474_v9 = vsel %vm6290_vm8, %v2470_v7, %v2473_v11  ;;  %v2893_v7 = vrot.slane %v2891_v38, 4 }
 0x24c   : > { %2034 = vst.msk [vmem:[#allocation2 + $0x14] sm:$0xf] %vm1458_vm2, %v7967_v30  ;;  %v8154_v54 = vor.u32 %v2477_v31, %v2476_v43  ;;  %v2894_v30 = vrot.slane %v7168_v4, 5  ;;  %v2475_v4 = vrot.slane %v2473_v11, 4  ;;  %v2594_v43 = vrot.slane %v2591_v40, 4 }
 0x24d   : > { %2224 = vst.msk [vmem:[#allocation2 + $0x4] sm:$0xf] %vm1653_vm5, %v2183_v60  ;;  %v2596_v31 = vor.u32 %v2595_v45, %v9477_v37 }
 0x24e   : > { %2380 = vrot.lane.b32.xlu1 %v2351_v57, %s6089_s21  ;;  %v8152_v32 = vpop.permute.xlu1 %2017  ;;  %v8173_v57 = vor.u32 %v2895_v55, %v2894_v30  ;;  %v2482_v55 = vrot.slane %v9479_v28, 6 }
 0x24f   : > { %2510 = vrot.lane.b32.xlu0 %v2474_v9, %s6088_s16  ;;  %v2780_v41 = vpop.permute.xlu0 %2779  ;;  %v2353_v9 = vrot.slane %v9409_v46, 7  ;;  %v5973_v46 = vld [vmem:[%s9211_s3 + $0xf0] sm:$0xff]  }
 0x250   : > { %2821 = vst.msk [vmem:[#allocation2 + $0xc] sm:$0xf] %vm1254_vm14, %v2780_v41  ;;  %v2897_v60 = vsel %vm6290_vm8, %v2893_v7, %v8173_v57  ;;  %v2899_v7 = vrot.slane %v7255_v2, 5 }
 0x251   : > { %2950 = vst.msk [vmem:[#allocation2 + $0xc] sm:$0xf] %vm1458_vm2, %v7995_v49  ;;  %v2593_v49 = vsel %vm6599_vm11, %v2590_v48, %v2592_v3  ;;  %v2355_v48 = vrot.slane %v2353_v9, 4 }
 0x252   : > { %2801 = vrot.lane.b32.xlu1 %v7781_v12, %s6089_s21  ;;  %v2185_v8 = vpop.permute.xlu1 %2184  ;;  %v2479_v12 = vsel %vm6290_vm8, %v2475_v4, %v8154_v54  ;;  %v9480_v4 = vld [vmem:[#allocation19_spill] sm:$0xff] }
 0x253   : > { %2928 = vrot.lane.b32.xlu0 %v2892_v62, %s6088_s16  ;;  %2225 = vst.msk [vmem:[#allocation2 + $0x14] sm:$0xf] %vm1653_vm5, %v2185_v8  ;;  %v1806_v1 = vpop.permute.xlu0 %1805  ;;  %v2486_v8 = vrot.slane %v9480_v4, 5  ;;  %v5982_v4 = vld [vmem:[%s9211_s3 + $0x98] sm:$0xff]  }
 0x254   : > { %1845 = vst.msk [vmem:[#allocation2 + $0x24] sm:$0xf] %vm1254_vm14, %v1806_v1 }
 0x255   : > { %2035 = vst.msk [vmem:[#allocation2 + $0x24] sm:$0xf] %vm1458_vm2, %v8009_v5  ;;  %v2352_v5 = vrot.slane %v2350_v18, 4  ;;  %v9478_v18 = vld [vmem:[#allocation17_spill] sm:$0xff] }
 0x256   : > { %2512 = vrot.lane.b32.xlu1 %v2479_v12, %s6088_s16  ;;  %v2782_v11 = vpop.permute.xlu1 %2781  ;;  %v2481_v30 = vrot.slane %v9478_v18, 5  ;;  %v9481_v12 = vld [vmem:[#allocation20_spill] sm:$0xff] }
 0x257   : > { %2626 = vrot.lane.b32.xlu0 %v2593_v49, %s6090_s22  ;;  %2822 = vst.msk [vmem:[#allocation2 + $0x1c] sm:$0xf] %vm1254_vm14, %v2782_v11  ;;  %v3027_v24 = vpop.permute.xlu0 %3026  ;;  %v2487_v1 = vrot.slane %v9481_v12, 6  ;;  %v9482_v49 = vld [vmem:[#allocation54_spill] sm:$0xff] }
 0x258   : > { %2951 = vst.msk [vmem:[#allocation2 + $0x1c] sm:$0xf] %vm1458_vm2, %v7990_v27  ;;  %v2597_v27 = vsel %vm6599_vm11, %v2594_v43, %v2596_v31  ;;  %v2900_v11 = vrot.slane %v9482_v49, 6  ;;  %v2480_v43 = vrot.slane %v8154_v54, 4 }
 0x259   : > { %3068 = vst.msk [vmem:[#allocation2 + $0xc] sm:$0xf] %vm1653_vm5, %v3027_v24  ;;  %v2357_v24 = vsel %vm6556_vm6, %v2355_v48, %v2356_v10  ;;  %v2488_v31 = vor.u32 %v2487_v1, %v2486_v8  ;;  %v2598_v10 = vrot.slane %v2595_v45, 4 }
 0x25a   : > { %2930 = vrot.lane.b32.xlu1 %v2897_v60, %s6088_s16  ;;  %v1808_v38 = vpop.permute.xlu1 %1807  ;;  %v5966_v40 = vld [vmem:[#allocation2 + $0x4] ss:$16 sps:$4 sm:$0xff]   ;;  %v2483_v60 = vor.u32 %v2482_v55, %v2481_v30  ;;  %v9486_v55 = vld [vmem:[#allocation38_spill] sm:$0xff] }
 0x25b   : > { %3046 = vrot.lane.b32.xlu0 %v7839_v47, %s6090_s22  ;;  %1846 = vst.msk [vmem:[#allocation2 + $0x34] sm:$0xf] %vm1254_vm14, %v1808_v38  ;;  %v2187_v41 = vpop.permute.xlu0 %2186  ;;  %3545 = vmatprep.mubr.bf16.mxu1 %v5966_v40  ;;  %v2354_v47 = vsel %vm6556_vm6, %v2352_v5, %v2353_v9  ;;  %v2901_v5 = vor.u32 %v2900_v11, %v2899_v7  ;;  %v5979_v38 = vld [vmem:[%s9211_s3 + $0xe0] sm:$0xff]   ;;  %v9488_v11 = vld [vmem:[#allocation41_spill] sm:$0xff] }
 0x25c   : > { %2036 = vst.msk [vmem:[#allocation2 + $0x34] sm:$0xf] %vm1458_vm2, %v8005_v50  ;;  %3546 = vmatmul.mubr.bf16.vlgmr.msra.gmra.mxu1 %v5964_v29  ;;  %v5974_v50 = vld [vmem:[%s9211_s3 + $0xb0] sm:$0xff]   ;;  %v2484_v54 = vsel %vm6290_vm8, %v2480_v43, %v2483_v60  ;;  %v2898_v29 = vrot.slane %v8173_v57, 4  ;;  %v9485_v40 = vld [vmem:[#allocation39_spill] sm:$0xff] }
 0x25d   : > { %2226 = vst.msk [vmem:[#allocation2 + $0x24] sm:$0xf] %vm1653_vm5, %v2187_v41  ;;  %5649 = vmatpush3.bf16.msra.mxu1 %v5972_v53  ;;  %v9484_v53 = vld [vmem:[#allocation56_spill] sm:$0xff]  ;;  %v2485_v41 = vrot.slane %v2483_v60, 4  ;;  %v2903_v30 = vrot.slane %v2901_v5, 4  ;;  %v5985_v60 = vld [vmem:[%s9211_s3 + $0xd0] sm:$0xff]  }
 0x25e   : > { %2628 = vrot.lane.b32.xlu1 %v2597_v27, %s6090_s22  ;;  %v3029_v62 = vpop.permute.xlu1 %3028  ;;  %5650 = vmatprep.subr.bf16.mxu1 %v5973_v46  ;;  %v2599_v27 = vrot.slane %v9485_v40, 7  ;;  %v2902_v48 = vsel %vm6290_vm8, %v2898_v29, %v2901_v5  ;;  %v5986_v43 = vld [vmem:[%s9211_s3 + $0x90] sm:$0xff]   ;;  %v5990_v5 = vld [vmem:[%s9211_s3 + $0x88] sm:$0xff]  }
 0x25f   : > { %2382 = vrot.lane.b32.xlu0 %v2354_v47, %s6089_s21  ;;  %3069 = vst.msk [vmem:[#allocation2 + $0x1c] sm:$0xf] %vm1653_vm5, %v3029_v62  ;;  %v2784_v3 = vpop.permute.xlu0 %2783  ;;  %v5980_v47 = vld [vmem:[%s9211_s3 + $0xa0] sm:$0xff]   ;;  %v2489_v18 = vsel %vm6290_vm8, %v2485_v41, %v2488_v31  ;;  %v2603_v62 = vrot.slane %v9486_v55, 7 }
 0x260   : > { %2823 = vst.msk [vmem:[#allocation2 + $0x2c] sm:$0xf] %vm1254_vm14, %v2784_v3  ;;  %v2602_v49 = vrot.slane %v2599_v27, 4 }
 0x261   : > { %2952 = vst.msk [vmem:[#allocation2 + $0x2c] sm:$0xf] %vm1458_vm2, %v8021_v22  ;;  %5651 = vmatpush3.bf16.msra.mxu1 %v5974_v50  ;;  %v9483_v22 = vld [vmem:[#allocation55_spill] sm:$0xff]  ;;  %v9487_v50 = vld [vmem:[#allocation37_spill] sm:$0xff] }
 0x262   : > { %3048 = vrot.lane.b32.xlu1 %v7859_v14, %s6090_s22  ;;  %v2189_v2 = vpop.permute.xlu1 %2188  ;;  %v5976_v14 = vld [vmem:[%s9211_s3 + $0xa8] sm:$0xff]   ;;  %v2904_v9 = vrot.slane %v9483_v22, 5  ;;  %5652 = vmatprep.subr.bf16.mxu1 %v5975_v33  ;;  %v2600_v3 = vor.u32 %v2599_v27, %v9487_v50  ;;  %v2604_v33 = vor.u32 %v2603_v62, %v9488_v11 }
 0x263   : > { %2803 = vrot.lane.b32.xlu0 %v7853_v13, %s6089_s21  ;;  %2227 = vst.msk [vmem:[#allocation2 + $0x34] sm:$0xf] %vm1653_vm5, %v2189_v2  ;;  %v1810_v37 = vpop.permute.xlu0 %1809  ;;  %v2905_v13 = vrot.slane %v9484_v53, 6 }
 0x264   : > { %1847 = vst.msk [vmem:[#allocation2 + $0x44] sm:$0xf] %vm1254_vm14, %v1810_v37  ;;  %v2601_v2 = vsel %vm6599_vm11, %v2598_v10, %v2600_v3  ;;  %v5989_v37 = vld [vmem:[%s9211_s3 + $0xc8] sm:$0xff]  }
 0x265   : > { %2037 = vst.msk [vmem:[#allocation2 + $0x44] sm:$0xf] %vm1458_vm2, %v8038_v39  ;;  %5653 = vmatpush3.bf16.msra.mxu1 %v5976_v14  ;;  %v2906_v28 = vor.u32 %v2905_v13, %v2904_v9  ;;  %v5981_v39 = vld [vmem:[%s9211_s3 + $0xd8] sm:$0xff]   ;;  %v5993_v9 = vld [vmem:[%s9211_s3 + $0xc0] sm:$0xff]  }
 0x266   : > { %2384 = vrot.lane.b32.xlu1 %v2357_v24, %s6089_s21  ;;  %v2786_v46 = vpop.permute.xlu1 %2785  ;;  %5654 = vmatprep.subr.bf16.mxu1 %v5979_v38 }
 0x267   : > { %2514 = vrot.lane.b32.xlu0 %v2484_v54, %s6088_s16  ;;  %2824 = vst.msk [vmem:[#allocation2 + $0x3c] sm:$0xf] %vm1254_vm14, %v2786_v46  ;;  %v3031_v57 = vpop.permute.xlu0 %3030  ;;  %v2907_v7 = vsel %vm6290_vm8, %v2903_v30, %v2906_v28 }
 0x268   : > { %2953 = vst.msk [vmem:[#allocation2 + $0x3c] sm:$0xf] %vm1458_vm2, %v8019_v35  ;;  %v3086_v35 = vld [vmem:[#allocation2 + $0x20] sm:$0xff] }
 0x269   : > { %3070 = vst.msk [vmem:[#allocation2 + $0x2c] sm:$0xf] %vm1653_vm5, %v3031_v57  ;;  %5655 = vmatpush3.bf16.msra.mxu1 %v5980_v47 }
 0x26a   : > { %2516 = vrot.lane.b32.xlu1 %v2489_v18, %s6088_s16  ;;  %v1812_v8 = vpop.permute.xlu1 %1811  ;;  %v3088_v12 = vld [vmem:[#allocation2 + $0x30] sm:$0xff]  ;;  %5656 = vmatprep.subr.bf16.mxu1 %v5981_v39 }
 0x26b   : > { %2932 = vrot.lane.b32.xlu0 %v2902_v48, %s6088_s16  ;;  %v5967_v1 = vld [vmem:[#allocation2 + $0x24] ss:$16 sps:$4 sm:$0xff]   ;;  %1848 = vst.msk [vmem:[#allocation2 + $0x54] sm:$0xf] %vm1254_vm14, %v1812_v8  ;;  %v2191_v21 = vpop.permute.xlu0 %2190  ;;  %v5366_v45 = vcombine.low %v3086_v35, %v3088_v12 }
 0x26c   : > { %2038 = vst.msk [vmem:[#allocation2 + $0x54] sm:$0xf] %vm1458_vm2, %v8033_v19  ;;  %3553 = vmatprep.mubr.bf16.mxu1 %v5967_v1  ;;  %v2605_v19 = vsel %vm6599_vm11, %v2602_v49, %v2604_v33 }
 0x26d   : > { %2228 = vst.msk [vmem:[#allocation2 + $0x44] sm:$0xf] %vm1653_vm5, %v2191_v21  ;;  %3554 = vmatmul.mubr.bf16.gmra.mxu1 %v5366_v45 }
 0x26e   : > { %2934 = vrot.lane.b32.xlu1 %v2907_v7, %s6088_s16  ;;  %v3033_v24 = vpop.permute.xlu1 %3032  ;;  %5657 = vmatpush3.bf16.msra.mxu1 %v5982_v4 }
 0x26f   : > { %2630 = vrot.lane.b32.xlu0 %v2601_v2, %s6090_s22  ;;  %3071 = vst.msk [vmem:[#allocation2 + $0x3c] sm:$0xf] %vm1653_vm5, %v3033_v24  ;;  %v2788_v14 = vpop.permute.xlu0 %2787  ;;  %5658 = vmatprep.subr.bf16.mxu1 %v5985_v60  ;;  %v5997_v24 = vld [vmem:[#allocation2 + $0xc] ss:$16 sps:$4 sm:$0xff]  }
 0x270   : > { %2825 = vst.msk [vmem:[#allocation2 + $0x4c] sm:$0xf] %vm1254_vm14, %v2788_v14 }
 0x271   : > { %2954 = vst.msk [vmem:[#allocation2 + $0x4c] sm:$0xf] %vm1458_vm2, %v8058_v34  ;;  %v5994_v34 = vld [vmem:[%s9211_s3 + $0x80] sm:$0xff]  }
 0x272   : > { %2632 = vrot.lane.b32.xlu1 %v2605_v19, %s6090_s22  ;;  %v2193_v31 = vpop.permute.xlu1 %2192  ;;  %5659 = vmatpush3.bf16.msra.mxu1 %v5986_v43 }
 0x273   : > { %3050 = vrot.lane.b32.xlu0 %v7934_v59, %s6090_s22  ;;  %2229 = vst.msk [vmem:[#allocation2 + $0x54] sm:$0xf] %vm1653_vm5, %v2193_v31  ;;  %v1814_v22 = vpop.permute.xlu0 %1813  ;;  %5660 = vmatprep.subr.bf16.mxu1 %v5989_v37  ;;  %v5995_v37 = vld [vmem:[#allocation2 + $0x8] ss:$16 sps:$4 sm:$0xff]  }
 0x274   : > { %1849 = vst.msk [vmem:[#allocation2 + $0x64] sm:$0xf] %vm1254_vm14, %v1814_v22 }
 0x275   : > { %2039 = vst.msk [vmem:[#allocation2 + $0x64] sm:$0xf] %vm1458_vm2, %v8073_v52  ;;  %v3090_v52 = vld [vmem:[#allocation2 + $0x40] sm:$0xff] }
 0x276   : > { %2805 = vrot.lane.b32.xlu1 %v7916_v56, %s6089_s21  ;;  %v2790_v59 = vpop.permute.xlu1 %2789  ;;  %5661 = vmatpush3.bf16.msra.mxu1 %v5990_v5  ;;  %v5998_v5 = vld [vmem:[#allocation2 + $0x2c] ss:$16 sps:$4 sm:$0xff]  }
 0x277   : > { %2826 = vst.msk [vmem:[#allocation2 + $0x5c] sm:$0xf] %vm1254_vm14, %v2790_v59  ;;  %v3035_v53 = vpop.permute.xlu0 %3034  ;;  %5662 = vmatprep.subr.bf16.mxu1 %v5993_v9  ;;  %v3089_v59 = vld [vmem:[#allocation2 + $0x38] sm:$0xff] }
 0x278   : > { %2955 = vst.msk [vmem:[#allocation2 + $0x5c] sm:$0xf] %vm1458_vm2, %v8053_v51 }
 0x279   : > { %3072 = vst.msk [vmem:[#allocation2 + $0x4c] sm:$0xf] %vm1653_vm5, %v3035_v53 }
 0x27a   : > { %3052 = vrot.lane.b32.xlu1 %v7939_v36, %s6090_s22  ;;  %v1816_v56 = vpop.permute.xlu1 %1815  ;;  %v3092_v13 = vld [vmem:[#allocation2 + $0x50] sm:$0xff]  ;;  %5663 = vmatpush3.bf16.msra.mxu1 %v5994_v34  ;;  %v3087_v34 = vld [vmem:[#allocation2 + $0x28] sm:$0xff] }
 0x27b   : > { %v5969_v38 = vld [vmem:[#allocation2 + $0x44] ss:$16 sps:$4 sm:$0xff]   ;;  %1850 = vst.msk [vmem:[#allocation2 + $0x74] sm:$0xf] %vm1254_vm14, %v1816_v56  ;;  %v2195_v54 = vpop.permute.xlu0 %2194  ;;  %v5370_v29 = vcombine.low %v3090_v52, %v3092_v13  ;;  %v5368_v52 = vcombine.low %v3087_v34, %v3089_v59  ;;  %v6012_v34 = vld [vmem:[%s9213_s5 + $0x78] sm:$0xff]  }
 0x27c   : > { %2040 = vst.msk [vmem:[#allocation2 + $0x74] sm:$0xf] %vm1458_vm2, %v8071_v17  ;;  %3561 = vmatprep.mubr.bf16.mxu1 %v5969_v38  ;;  %5706 = vmatprep.subr.bf16.mxu1 %v6012_v34 }
 0x27d   : > { %2230 = vst.msk [vmem:[#allocation2 + $0x64] sm:$0xf] %vm1653_vm5, %v2195_v54  ;;  %3562 = vmatmul.mubr.bf16.gmra.mxu1 %v5370_v29 }
 0x27e   : > { %v3037_v51 = vpop.permute.xlu1 %3036 }
 0x27f   : > { %3073 = vst.msk [vmem:[#allocation2 + $0x5c] sm:$0xf] %vm1653_vm5, %v3037_v51  ;;  %v2792_v36 = vpop.permute.xlu0 %2791 }
 0x280   : > { %2827 = vst.msk [vmem:[#allocation2 + $0x6c] sm:$0xf] %vm1254_vm14, %v2792_v36  ;;  %v3091_v51 = vld [vmem:[#allocation2 + $0x48] sm:$0xff] }
 0x281   : > { %2956 = vst.msk [vmem:[#allocation2 + $0x6c] sm:$0xf] %vm1458_vm2, %v8091_v25 }
 0x282   : > { %v2197_v40 = vpop.permute.xlu1 %2196 }
 0x283   : > { %2231 = vst.msk [vmem:[#allocation2 + $0x74] sm:$0xf] %vm1653_vm5, %v2197_v40 }
 0x284   : > { %v3094_v25 = vld [vmem:[#allocation2 + $0x60] sm:$0xff] }
 0x285   : > { %v1818_v27 = vpop.permute.xlu0 %1817 }
 0x286   : > { %1851 = vst.msk [vmem:[#allocation2 + $0x84] sm:$0xf] %vm1254_vm14, %v1818_v27  ;;  %v6000_v13 = vld [vmem:[#allocation2 + $0x4c] ss:$16 sps:$4 sm:$0xff]  }
 0x287   : > { %2041 = vst.msk [vmem:[#allocation2 + $0x84] sm:$0xf] %vm1458_vm2, %v8105_v44  ;;  %v3093_v29 = vld [vmem:[#allocation2 + $0x58] sm:$0xff] }
 0x288   : > { %v2794_v17 = vpop.permute.xlu1 %2793  ;;  %v5372_v27 = vcombine.low %v3091_v51, %v3093_v29 }
 0x289   : > { %2828 = vst.msk [vmem:[#allocation2 + $0x7c] sm:$0xf] %vm1254_vm14, %v2794_v17  ;;  %v3039_v41 = vpop.permute.xlu0 %3038 }
 0x28a   : > { %2957 = vst.msk [vmem:[#allocation2 + $0x7c] sm:$0xf] %vm1458_vm2, %v8087_v26  ;;  %v3096_v47 = vld [vmem:[#allocation2 + $0x70] sm:$0xff] }
 0x28b   : > { %3074 = vst.msk [vmem:[#allocation2 + $0x6c] sm:$0xf] %vm1653_vm5, %v3039_v41  ;;  %v5977_v18 = vld [vmem:[#allocation2 + $0x64] ss:$16 sps:$4 sm:$0xff]   ;;  %v5374_v30 = vcombine.low %v3094_v25, %v3096_v47 }
 0x28c   : > { %v1820_v46 = vpop.permute.xlu1 %1819  ;;  %3569 = vmatprep.mubr.bf16.mxu1 %v5977_v18 }
 0x28d   : > { %1852 = vst.msk [vmem:[#allocation2 + $0x94] sm:$0xf] %vm1254_vm14, %v1820_v46  ;;  %v2199_v57 = vpop.permute.xlu0 %2198  ;;  %3570 = vmatmul.mubr.bf16.gmra.mxu1 %v5374_v30 }
 0x28e   : > { %2042 = vst.msk [vmem:[#allocation2 + $0x94] sm:$0xf] %vm1458_vm2, %v8101_v61 }
 0x28f   : > { %2232 = vst.msk [vmem:[#allocation2 + $0x84] sm:$0xf] %vm1653_vm5, %v2199_v57 }
 0x290   : > { %v3041_v44 = vpop.permute.xlu1 %3040 }
 0x291   : > { %3075 = vst.msk [vmem:[#allocation2 + $0x7c] sm:$0xf] %vm1653_vm5, %v3041_v44  ;;  %v1822_v26 = vpop.permute.xlu0 %1821 }
 0x292   : > { %1853 = vst.msk [vmem:[#allocation2 + $0xa4] sm:$0xf] %vm1254_vm14, %v1822_v26  ;;  %v3095_v47 = vld [vmem:[#allocation2 + $0x68] sm:$0xff] }
 0x293   : > { %2043 = vst.msk [vmem:[#allocation2 + $0xa4] sm:$0xf] %vm1458_vm2, %v8118_v15 }
 0x294   : > { %v2201_v28 = vpop.permute.xlu1 %2200 }
 0x295   : > { %2233 = vst.msk [vmem:[#allocation2 + $0x94] sm:$0xf] %vm1653_vm5, %v2201_v28  ;;  %v2203_v55 = vpop.permute.xlu0 %2202 }
 0x296   : > { %2234 = vst.msk [vmem:[#allocation2 + $0xa4] sm:$0xf] %vm1653_vm5, %v2203_v55  ;;  %v3098_v15 = vld [vmem:[#allocation2 + $0x80] sm:$0xff] }
 0x298   : > { %v1824_v61 = vpop.permute.xlu1 %1823  ;;  %v6002_v17 = vld [vmem:[#allocation2 + $0x6c] ss:$16 sps:$4 sm:$0xff]  }
 0x299   : > { %1854 = vst.msk [vmem:[#allocation2 + $0xb4] sm:$0xf] %vm1254_vm14, %v1824_v61  ;;  %v1826_v62 = vpop.permute.xlu0 %1825  ;;  %v3097_v25 = vld [vmem:[#allocation2 + $0x78] sm:$0xff] }
 0x29a   : > { %2044 = vst.msk [vmem:[#allocation2 + $0xb4] sm:$0xf] %vm1458_vm2, %v8114_v63  ;;  %v5376_v30 = vcombine.low %v3095_v47, %v3097_v25 }
 0x29b   : > { %1855 = vst.msk [vmem:[#allocation2 + $0xc4] sm:$0xf] %vm1254_vm14, %v1826_v62 }
 0x29c   : > { %2045 = vst.msk [vmem:[#allocation2 + $0xc4] sm:$0xf] %vm1458_vm2, %v8127_v23  ;;  %v2205_v39 = vpop.permute.xlu1 %2204  ;;  %v3100_v48 = vld [vmem:[#allocation2 + $0x90] sm:$0xff] }
 0x29d   : > { %v5983_v10 = vld [vmem:[#allocation2 + $0x84] ss:$16 sps:$4 sm:$0xff]   ;;  %2235 = vst.msk [vmem:[#allocation2 + $0xb4] sm:$0xf] %vm1653_vm5, %v2205_v39  ;;  %v2207_v50 = vpop.permute.xlu0 %2206  ;;  %v5378_v3 = vcombine.low %v3098_v15, %v3100_v48 }
 0x29e   : > { %2236 = vst.msk [vmem:[#allocation2 + $0xc4] sm:$0xf] %vm1653_vm5, %v2207_v50  ;;  %3577 = vmatprep.mubr.bf16.mxu1 %v5983_v10  ;;  %v3102_v8 = vld [vmem:[#allocation2 + $0xa0] sm:$0xff] }
 0x29f   : > { %3578 = vmatmul.mubr.bf16.gmra.mxu1 %v5378_v3 }
 0x2a0   : > { %v1828_v4 = vpop.permute.xlu1 %1827 }
 0x2a1   : > { %1856 = vst.msk [vmem:[#allocation2 + $0xd4] sm:$0xf] %vm1254_vm14, %v1828_v4  ;;  %v2375_v63 = vpop.permute.xlu0 %2374 }
 0x2a2   : > { %2046 = vst.msk [vmem:[#allocation2 + $0xd4] sm:$0xf] %vm1458_vm2, %v8152_v32 }
 0x2a3   : > { %2408 = vst.msk [vmem:[#allocation2 + $0x88] sm:$0xf] %vm1254_vm14, %v2375_v63 }
 0x2a4   : > { %v2209_v23 = vpop.permute.xlu1 %2208  ;;  %v3104_v35 = vld [vmem:[#allocation2 + $0xb0] sm:$0xff] }
 0x2a5   : > { %v5987_v12 = vld [vmem:[#allocation2 + $0xa4] ss:$16 sps:$4 sm:$0xff]   ;;  %2237 = vst.msk [vmem:[#allocation2 + $0xd4] sm:$0xf] %vm1653_vm5, %v2209_v23  ;;  %v2796_v1 = vpop.permute.xlu0 %2795  ;;  %v5382_v7 = vcombine.low %v3102_v8, %v3104_v35 }
 0x2a6   : > { %2829 = vst.msk [vmem:[#allocation2 + $0x8c] sm:$0xf] %vm1254_vm14, %v2796_v1  ;;  %3585 = vmatprep.mubr.bf16.mxu1 %v5987_v12  ;;  %v3106_v49 = vld [vmem:[#allocation2 + $0xc0] sm:$0xff] }
 0x2a7   : > { %3586 = vmatmul.mubr.bf16.gmra.mxu1 %v5382_v7 }
 0x2a8   : > { %v2377_v21 = vpop.permute.xlu1 %2376 }
 0x2a9   : > { %2409 = vst.msk [vmem:[#allocation2 + $0x98] sm:$0xf] %vm1254_vm14, %v2377_v21  ;;  %v2507_v45 = vpop.permute.xlu0 %2506 }
 0x2aa   : > { %2540 = vst.msk [vmem:[#allocation2 + $0x88] sm:$0xf] %vm1458_vm2, %v2507_v45 }
 0x2ac   : > { %v2798_v32 = vpop.permute.xlu1 %2797  ;;  %v3108_v11 = vld [vmem:[#allocation2 + $0xd0] sm:$0xff] }
 0x2ad   : > { %v5991_v33 = vld [vmem:[#allocation2 + $0xc4] ss:$16 sps:$4 sm:$0xff]   ;;  %2830 = vst.msk [vmem:[#allocation2 + $0x9c] sm:$0xf] %vm1254_vm14, %v2798_v32  ;;  %v2925_v60 = vpop.permute.xlu0 %2924  ;;  %v5386_v2 = vcombine.low %v3106_v49, %v3108_v11 }
 0x2ae   : > { %2958 = vst.msk [vmem:[#allocation2 + $0x8c] sm:$0xf] %vm1458_vm2, %v2925_v60  ;;  %3593 = vmatprep.mubr.bf16.mxu1 %v5991_v33 }
 0x2af   : > { %3594 = vmatmul.mubr.bf16.gmra.mxu1 %v5386_v2 }
 0x2b0   : > { %v2509_v43 = vpop.permute.xlu1 %2508  ;;  %3634 = vmatprep.mubr.bf16.mxu1 %v5997_v24 }
 0x2b1   : > { %2541 = vst.msk [vmem:[#allocation2 + $0x98] sm:$0xf] %vm1458_vm2, %v2509_v43  ;;  %v2623_v19 = vpop.permute.xlu0 %2622 }
 0x2b2   : > { %2656 = vst.msk [vmem:[#allocation2 + $0x88] sm:$0xf] %vm1653_vm5, %v2623_v19 }
 0x2b4   : > { %v2927_v14 = vpop.permute.xlu1 %2926 }
 0x2b5   : > { %2959 = vst.msk [vmem:[#allocation2 + $0x9c] sm:$0xf] %vm1458_vm2, %v2927_v14  ;;  %v3043_v31 = vpop.permute.xlu0 %3042 }
 0x2b6   : > { %3076 = vst.msk [vmem:[#allocation2 + $0x8c] sm:$0xf] %vm1653_vm5, %v3043_v31 }
 0x2b7   : > { %3635 = vmatmul.mubr.bf16.vlgmr.msra.gmra.mxu1 %v5995_v37 }
 0x2b8   : > { %v2625_v22 = vpop.permute.xlu1 %2624  ;;  %3642 = vmatprep.mubr.bf16.mxu1 %v5998_v5 }
 0x2b9   : > { %2657 = vst.msk [vmem:[#allocation2 + $0x98] sm:$0xf] %vm1653_vm5, %v2625_v22  ;;  %v2379_v9 = vpop.permute.xlu0 %2378 }
 0x2ba   : > { %2410 = vst.msk [vmem:[#allocation2 + $0xa8] sm:$0xf] %vm1254_vm14, %v2379_v9 }
 0x2bc   : > { %v3045_v53 = vpop.permute.xlu1 %3044 }
 0x2bd   : > { %3077 = vst.msk [vmem:[#allocation2 + $0x9c] sm:$0xf] %vm1653_vm5, %v3045_v53  ;;  %v2800_v56 = vpop.permute.xlu0 %2799  ;;  %v3099_v61 = vld [vmem:[#allocation2 + $0x88] sm:$0xff]  ;;  %v6013_v53 = vld [vmem:[%s9213_s5 + $0x38] sm:$0xff]  }
 0x2be   : > { %2831 = vst.msk [vmem:[#allocation2 + $0xac] sm:$0xf] %vm1254_vm14, %v2800_v56  ;;  %5707 = vmatpush3.bf16.msra.mxu1 %v6013_v53 }
 0x2bf   : > { %3643 = vmatmul.mubr.bf16.gmra.mxu1 %v5368_v52  ;;  %v6014_v52 = vld [vmem:[%s9213_s5 + $0x70] sm:$0xff]  }
 0x2c0   : > { %v2381_v38 = vpop.permute.xlu1 %2380  ;;  %3650 = vmatprep.mubr.bf16.mxu1 %v6000_v13  ;;  %5708 = vmatprep.subr.bf16.mxu1 %v6014_v52 }
 0x2c1   : > { %2411 = vst.msk [vmem:[#allocation2 + $0xb8] sm:$0xf] %vm1254_vm14, %v2381_v38  ;;  %v2511_v54 = vpop.permute.xlu0 %2510  ;;  %v6015_v38 = vld [vmem:[%s9213_s5 + $0x30] sm:$0xff]  }
 0x2c2   : > { %2542 = vst.msk [vmem:[#allocation2 + $0xa8] sm:$0xf] %vm1458_vm2, %v2511_v54  ;;  %v6016_v54 = vld [vmem:[%s9213_s5 + $0x68] sm:$0xff]   ;;  %5709 = vmatpush3.bf16.msra.mxu1 %v6015_v38 }
 0x2c3   : > { %5710 = vmatprep.subr.bf16.mxu1 %v6016_v54 }
 0x2c4   : > { %v2802_v36 = vpop.permute.xlu1 %2801  ;;  %v6004_v44 = vld [vmem:[#allocation2 + $0x8c] ss:$16 sps:$4 sm:$0xff]  }
 0x2c5   : > { %2832 = vst.msk [vmem:[#allocation2 + $0xbc] sm:$0xf] %vm1254_vm14, %v2802_v36  ;;  %v2929_v40 = vpop.permute.xlu0 %2928  ;;  %v3101_v55 = vld [vmem:[#allocation2 + $0x98] sm:$0xff]  ;;  %v6017_v36 = vld [vmem:[%s9213_s5 + $0x28] sm:$0xff]  }
 0x2c6   : > { %2960 = vst.msk [vmem:[#allocation2 + $0xac] sm:$0xf] %vm1458_vm2, %v2929_v40  ;;  %v5380_v15 = vcombine.low %v3099_v61, %v3101_v55  ;;  %v6018_v40 = vld [vmem:[%s9213_s5 + $0x60] sm:$0xff]   ;;  %5711 = vmatpush3.bf16.msra.mxu1 %v6017_v36 }
 0x2c7   : > { %3651 = vmatmul.mubr.bf16.gmra.mxu1 %v5372_v27  ;;  %5712 = vmatprep.subr.bf16.mxu1 %v6018_v40  ;;  %v8457_v55 = vld [vmem:[%s9212_s4] ss:$0 sm:$0xff] }
 0x2c8   : > { %v2513_v41 = vpop.permute.xlu1 %2512  ;;  %3658 = vmatprep.mubr.bf16.mxu1 %v6002_v17 }
 0x2c9   : > { %2543 = vst.msk [vmem:[#allocation2 + $0xb8] sm:$0xf] %vm1458_vm2, %v2513_v41  ;;  %v2627_v46 = vpop.permute.xlu0 %2626  ;;  %v6019_v41 = vld [vmem:[%s9213_s5 + $0x20] sm:$0xff]  }
 0x2ca   : > { %2658 = vst.msk [vmem:[#allocation2 + $0xa8] sm:$0xf] %vm1653_vm5, %v2627_v46  ;;  %v6020_v46 = vld [vmem:[%s9213_s5 + $0x58] sm:$0xff]   ;;  %5713 = vmatpush3.bf16.msra.mxu1 %v6019_v41 }
 0x2cb   : > { %5714 = vmatprep.subr.bf16.mxu1 %v6020_v46 }
 0x2cc   : > { %v2931_v18 = vpop.permute.xlu1 %2930 }
 0x2cd   : > { %2961 = vst.msk [vmem:[#allocation2 + $0xbc] sm:$0xf] %vm1458_vm2, %v2931_v18  ;;  %v3047_v57 = vpop.permute.xlu0 %3046  ;;  %v6021_v18 = vld [vmem:[%s9213_s5 + $0x18] sm:$0xff]  }
 0x2ce   : > { %3078 = vst.msk [vmem:[#allocation2 + $0xac] sm:$0xf] %vm1653_vm5, %v3047_v57  ;;  %v6022_v57 = vld [vmem:[%s9213_s5 + $0x50] sm:$0xff]   ;;  %5715 = vmatpush3.bf16.msra.mxu1 %v6021_v18 }
 0x2cf   : > { %3659 = vmatmul.mubr.bf16.gmra.mxu1 %v5376_v30  ;;  %5716 = vmatprep.subr.bf16.mxu1 %v6022_v57 }
 0x2d0   : > { %v2629_v26 = vpop.permute.xlu1 %2628  ;;  %3666 = vmatprep.mubr.bf16.mxu1 %v6004_v44 }
 0x2d1   : > { %2659 = vst.msk [vmem:[#allocation2 + $0xb8] sm:$0xf] %vm1653_vm5, %v2629_v26  ;;  %v2383_v28 = vpop.permute.xlu0 %2382  ;;  %v6023_v26 = vld [vmem:[%s9213_s5 + $0x10] sm:$0xff]  }
 0x2d2   : > { %2412 = vst.msk [vmem:[#allocation2 + $0xc8] sm:$0xf] %vm1254_vm14, %v2383_v28  ;;  %5717 = vmatpush3.bf16.msra.mxu1 %v6023_v26 }
 0x2d4   : > { %v3049_v62 = vpop.permute.xlu1 %3048 }
 0x2d5   : > { %3079 = vst.msk [vmem:[#allocation2 + $0xbc] sm:$0xf] %vm1653_vm5, %v3049_v62  ;;  %v2804_v39 = vpop.permute.xlu0 %2803 }
 0x2d6   : > { %2833 = vst.msk [vmem:[#allocation2 + $0xcc] sm:$0xf] %vm1254_vm14, %v2804_v39 }
 0x2d7   : > { %3667 = vmatmul.mubr.bf16.gmra.mxu1 %v5380_v15 }
 0x2d8   : > { %v2385_v48 = vpop.permute.xlu1 %2384  ;;  %v6008_v4 = vld [vmem:[#allocation2 + $0xa8] ss:$16 sps:$4 sm:$0xff]  }
 0x2d9   : > { %2413 = vst.msk [vmem:[#allocation2 + $0xd8] sm:$0xf] %vm1254_vm14, %v2385_v48  ;;  %v2515_v10 = vpop.permute.xlu0 %2514 }
 0x2da   : > { %2544 = vst.msk [vmem:[#allocation2 + $0xc8] sm:$0xf] %vm1458_vm2, %v2515_v10 }
 0x2dc   : > { %v2517_v50 = vpop.permute.xlu1 %2516  ;;  %v6006_v3 = vld [vmem:[#allocation2 + $0xac] ss:$16 sps:$4 sm:$0xff]  }
 0x2dd   : > { %2545 = vst.msk [vmem:[#allocation2 + $0xd8] sm:$0xf] %vm1458_vm2, %v2517_v50  ;;  %v2933_v63 = vpop.permute.xlu0 %2932  ;;  %3674 = vmatprep.mubr.bf16.mxu1 %v6006_v3 }
 0x2de   : > { %2962 = vst.msk [vmem:[#allocation2 + $0xcc] sm:$0xf] %vm1458_vm2, %v2933_v63 }
 0x2df   : > { %3675 = vmatmul.mubr.bf16.gmra.mxu1 %v6008_v4 }
 0x2e0   : > { %v2935_v23 = vpop.permute.xlu1 %2934 }
 0x2e1   : > { %v2631_v8 = vpop.permute.xlu0 %2630 }
 0x2e2   : > { %2660 = vst.msk [vmem:[#allocation2 + $0xc8] sm:$0xf] %vm1653_vm5, %v2631_v8 }
 0x2e4   : > { %v2633_v35 = vpop.permute.xlu1 %2632 }
 0x2e5   : > { %2661 = vst.msk [vmem:[#allocation2 + $0xd8] sm:$0xf] %vm1653_vm5, %v2633_v35  ;;  %v3051_v12 = vpop.permute.xlu0 %3050 }
 0x2e6   : > { %3080 = vst.msk [vmem:[#allocation2 + $0xcc] sm:$0xf] %vm1653_vm5, %v3051_v12 }
 0x2e8   : > { %v2806_v1 = vpop.permute.xlu1 %2805 }
 0x2e9   : > { %2834 = vst.msk [vmem:[#allocation2 + $0xdc] sm:$0xf] %vm1254_vm14, %v2806_v1  ;;  %vm5029_vm14 = vmand %vm3747_vm0, %vm1269_vm1  ;;  %vm5055_vm1 = vcmask 519171  }
 0x2ea   : > { %2963 = vst.msk [vmem:[#allocation2 + $0xdc] sm:$0xf] %vm1458_vm2, %v2935_v23  ;;  %vm5056_vm2 = vsmask.f32 7950 }
 0x2ec   : > { %v3053_v7 = vpop.permute.xlu1 %3052  ;;  %v6011_v45 = vld [vmem:[#allocation2 + $0xc8] ss:$16 sps:$4 sm:$0xff]  }
 0x2ed   : > { %3081 = vst.msk [vmem:[#allocation2 + $0xdc] sm:$0xf] %vm1653_vm5, %v3053_v7  ;;  %vm5061_vm5 = vcmask 518144  }
 0x2f4   : > { %v6009_v21 = vld [vmem:[#allocation2 + $0xcc] ss:$16 sps:$4 sm:$0xff]  }
 0x2f5   : > { %3682 = vmatprep.mubr.bf16.mxu1 %v6009_v21 }
 0x2f6   : > { %3683 = vmatmul.mubr.bf16.gmra.mxu1 %v6011_v45 }
 0x31c   : > { %v5606_v32 = vpop.f32.mrf.mxu1 }
 0x31e   : > { %v5607_v49 = vpop.f32.mrf.mxu1 }
 0x31f   : > { %v5608_v15 = vadd.f32 %v5607_v49, %v5606_v32 }
 0x320   : > { %v5609_v11 = vpop.f32.mrf.mxu1 }
 0x321   : > { %v3548_v50 = vadd.f32 %v5608_v15, %v8457_v55 }
 0x322   : > { %v5610_v33 = vpop.f32.mrf.mxu1 }
 0x323   : > { %v5611_v3 = vadd.f32 %v5610_v33, %v5609_v11 }
 0x325   : > { %v3551_v12 = vadd.f32 %v5611_v3, %v8457_v55 }
 0x32d   : > { %v5612_v60 = vpop.f32.mrf.mxu1 }
 0x32f   : > { %v5613_v2 = vpop.f32.mrf.mxu1 }
 0x330   : > { %v5614_v8 = vadd.f32 %v5613_v2, %v5612_v60 }
 0x331   : > { %v8402_v24 = vpop.f32.mrf.mxu1 }
 0x332   : > { %v3556_v11 = vadd.f32 %v5614_v8, %v8457_v55 }
 0x333   : > { %v5616_v43 = vpop.f32.mrf.mxu1 }
 0x334   : > { %v5617_v21 = vadd.f32 %v5616_v43, %v8402_v24 }
 0x336   : > { %v3559_v24 = vadd.f32 %v5617_v21, %v8457_v55 }
 0x33d   : > { %v5618_v19 = vpop.f32.mrf.mxu1 }
 0x33f   : > { %v5619_v14 = vpop.f32.mrf.mxu1 }
 0x340   : > { %v5620_v45 = vadd.f32 %v5619_v14, %v5618_v19 }
 0x341   : > { %v5621_v37 = vpop.f32.mrf.mxu1 }
 0x342   : > { %v3564_v43 = vadd.f32 %v5620_v45, %v8457_v55 }
 0x343   : > { %v5622_v31 = vpop.f32.mrf.mxu1 }
 0x344   : > { %v5623_v34 = vadd.f32 %v5622_v31, %v5621_v37  ;;  %v6024_v31 = vld [vmem:[%s9213_s5 + $0x48] sm:$0xff]  }
 0x345   : > { %5718 = vmatprep.subr.bf16.mxu1 %v6024_v31 }
 0x346   : > { %v8471_v19 = vadd.f32 %v5623_v34, %v8457_v55 }
 0x34d   : > { %v5624_v5 = vpop.f32.mrf.mxu1 }
 0x34f   : > { %v5625_v22 = vpop.f32.mrf.mxu1 }
 0x350   : > { %v5626_v32 = vadd.f32 %v5625_v22, %v5624_v5  ;;  %v6025_v5 = vld [vmem:[%s9213_s5 + $0x8] sm:$0xff]  }
 0x351   : > { %v8404_v9 = vpop.f32.mrf.mxu1  ;;  %5719 = vmatpush3.bf16.msra.mxu1 %v6025_v5 }
 0x352   : > { %v8474_v14 = vadd.f32 %v5626_v32, %v8457_v55 }
 0x353   : > { %v5628_v59 = vpop.f32.mrf.mxu1 }
 0x354   : > { %v5629_v33 = vadd.f32 %v5628_v59, %v8404_v9 }
 0x35f   : > { %v5630_v56 = vpop.f32.mrf.mxu1 }
 0x361   : > { %v5631_v13 = vpop.f32.mrf.mxu1 }
 0x362   : > { %v5632_v38 = vadd.f32 %v5631_v13, %v5630_v56  ;;  %v8485_v13 = vadd.f32 %v5629_v33, %v8457_v55 }
 0x363   : > { %v8421_v29 = vpop.f32.mrf.mxu1 }
 0x364   : > { %v8488_v41 = vadd.f32 %v5632_v38, %v8457_v55 }
 0x365   : > { %v8423_v51 = vpop.f32.mrf.mxu1 }
 0x366   : > { %v5635_v46 = vadd.f32 %v8423_v51, %v8421_v29 }
 0x367   : > { %v8431_v27 = vpop.f32.mrf.mxu1 }
 0x369   : > { %v8433_v17 = vpop.f32.mrf.mxu1 }
 0x36a   : > { %v5638_v18 = vadd.f32 %v8433_v17, %v8431_v27 }
 0x36b   : > { %v8441_v25 = vpop.f32.mrf.mxu1 }
 0x36c   : > { %v8509_v3 = vadd.f32 %v5638_v18, %v8457_v55 }
 0x36d   : > { %v8443_v47 = vpop.f32.mrf.mxu1 }
 0x36f   : > { %v5642_v30 = vpop.f32.mrf.mxu1 }
 0x371   : > { %v5643_v44 = vpop.f32.mrf.mxu1 }
 0x372   : > { %v5644_v28 = vadd.f32 %v5643_v44, %v5642_v30 }
 0x373   : > { %v5645_v61 = vpop.f32.mrf.mxu1 }
 0x374   : > { %v8460_v62 = vadd.f32 %v5644_v28, %v8457_v55  ;;  %v5641_v61 = vadd.f32 %v8443_v47, %v8441_v25 }
 0x375   : > { %v5646_v39 = vpop.f32.mrf.mxu1 }
 0x377   : > { %v5664_v48 = vpop.f32.mrf.mxu1 }
 0x379   : > { %v5665_v10 = vpop.f32.mrf.mxu1 }
 0x37a   : > { %v5666_v4 = vadd.f32 %v5665_v10, %v5664_v48 }
 0x37b   : > { %v5667_v63 = vpop.f32.mrf.mxu1 }
 0x37c   : > { %v3637_v23 = vadd.f32 %v5666_v4, %v3548_v50  ;;  %v8506_v50 = vadd.f32 %v5635_v46, %v8457_v55 }
 0x37d   : > { %v5668_v35 = vpop.f32.mrf.mxu1 }
 0x37e   : > { %v3691_v1 = vmax.f32 %v3637_v23, 0.0  ;;  %v5669_v7 = vadd.f32 %v5668_v35, %v5667_v63  ;;  %v6026_v63 = vld [vmem:[%s9213_s5 + $0x40] sm:$0xff]  }
 0x37f   : > { %v5670_v49 = vpop.f32.mrf.mxu1  ;;  %5720 = vmatprep.subr.bf16.mxu1 %v6026_v63  ;;  %v6031_v63 = vld [vmem:[%s9213_s5 + $0xf8] sm:$0xff]  }
 0x380   : > { %v5569_v53 = vpack.c.bf16 %v3691_v1, %v3691_v1  ;;  %v3640_v52 = vadd.f32 %v5669_v7, %v3551_v12 }
 0x381   : > { %v5671_v60 = vpop.f32.mrf.mxu1 }
 0x382   : > { %v3692_v2 = vmax.f32 %v3640_v52, 0.0  ;;  %v5672_v54 = vadd.f32 %v5671_v60, %v5670_v49  ;;  %3748 = vst.msk [vmem:[#allocation3] sm:$0xf] %vm3747_vm0, %v5569_v53  ;;  %v3762_v36 = vshrl.u32 %v5569_v53, 16  ;;  %v3765_v40 = vshll.u32 %v5569_v53, 16 }
 0x383   : > { %v5673_v37 = vpop.f32.mrf.mxu1  ;;  %v5433_v27 = vrot.slane %v5569_v53, 9  ;;  %v8532_v49 = vadd.f32 %v5641_v61, %v8457_v55 }
 0x384   : > { %v8482_v22 = vpack.c.bf16 %v3692_v2, %v3692_v2  ;;  %v3645_v9 = vadd.f32 %v5672_v54, %v3556_v11  ;;  %v3764_v59 = vrot.slane %v3762_v36, 4  ;;  %v3767_v56 = vrot.slane %v3765_v40, 5  ;;  %v6027_v36 = vld [vmem:[%s9213_s5] sm:$0xff]  }
 0x385   : > { %v5674_v57 = vpop.f32.mrf.mxu1  ;;  %5721 = vmatpush3.bf16.msra.mxu1 %v6027_v36 }
 0x386   : > { %v3693_v30 = vmax.f32 %v3645_v9, 0.0  ;;  %v5675_v44 = vadd.f32 %v5674_v57, %v5673_v37  ;;  %3749 = vst.msk [vmem:[#allocation3 + $0x14] sm:$0xf] %vm3747_vm0, %v8482_v22  ;;  %v3768_v26 = vor.u32 %v3767_v56, %v3764_v59  ;;  %v3771_v28 = vshll.u32 %v8482_v22, 16  ;;  %5752 = vmatprep.subr.bf16.mxu1 %v6031_v63 }
 0x387   : > { %v5676_v39 = vpop.f32.mrf.mxu1  ;;  %v3775_v29 = vshrl.u32 %v8482_v22, 16  ;;  %v3908_v51 = vrot.slane %v8482_v22, 5 }
 0x388   : > { %v8501_v17 = vpack.c.bf16 %v3693_v30, %v3693_v30  ;;  %v3648_v15 = vadd.f32 %v5675_v44, %v3559_v24  ;;  %v3769_v48 = vrot.slane %v3768_v26, 4  ;;  %v3773_v10 = vrot.slane %v3771_v28, 5 }
 0x389   : > { %v5677_v25 = vpop.f32.mrf.mxu1  ;;  %v3777_v47 = vrot.slane %v3775_v29, 4  ;;  %v3909_v4 = vsel %vm6311_vm9, %v5433_v27, %v3908_v51  ;;  %v3910_v1 = vrot.slane %v3908_v51, 4 }
 0x38a   : > { %v3694_v23 = vmax.f32 %v3648_v15, 0.0  ;;  %3750 = vst.msk [vmem:[#allocation3 + $0x28] sm:$0xf] %vm3747_vm0, %v8501_v17  ;;  %v5678_v8 = vadd.f32 %v5677_v25, %v5676_v39  ;;  %v3774_v12 = vsel %vm6266_vm3, %v3769_v48, %v3773_v10  ;;  %3947 = vst.msk [vmem:[#allocation3 + $0x4] sm:$0xf] %vm3747_vm0, %v3909_v4  ;;  %v8525_v45 = vshll.u32 %v8501_v17, 16 }
 0x38b   : > { %v5679_v7 = vpop.f32.mrf.mxu1  ;;  %3865 = vrot.lane.b32.xlu0 %v3774_v12, %s6088_s16  ;;  %v3778_v21 = vor.u32 %v3777_v47, %v3773_v10  ;;  %v3911_v34 = vrot.slane %v8501_v17, 5  ;;  %v8529_v32 = vshrl.u32 %v8501_v17, 16  ;;  %v5437_v53 = vrot.slane %v8501_v17, 11 }
 0x38c   : > { %v8535_v52 = vpack.c.bf16 %v3694_v23, %v3694_v23  ;;  %v3653_v11 = vadd.f32 %v5678_v8, %v3564_v43  ;;  %v3783_v60 = vrot.slane %v8525_v45, 5 }
 0x38d   : > { %v5680_v33 = vpop.f32.mrf.mxu1  ;;  %v3779_v38 = vrot.slane %v3778_v21, 4  ;;  %v3912_v2 = vsel %vm6311_vm9, %v3910_v1, %v3911_v34  ;;  %v3913_v54 = vrot.slane %v3911_v34, 4  ;;  %v3787_v5 = vrot.slane %v8529_v32, 4 }
 0x38e   : > { %v4279_v55 = vrot.slane %v8535_v52, 7  ;;  %3751 = vst.msk [vmem:[#allocation3 + $0x3c] sm:$0xf] %vm3747_vm0, %v8535_v52  ;;  %v3695_v40 = vmax.f32 %v3653_v11, 0.0  ;;  %v5681_v24 = vadd.f32 %v5680_v33, %v5679_v7  ;;  %3948 = vst.msk [vmem:[#allocation3 + $0x18] sm:$0xf] %vm3747_vm0, %v3912_v2 }
 0x38f   : > { %v3914_v43 = vrot.slane %v8535_v52, 5  ;;  %v5682_v37 = vpop.f32.mrf.mxu1  ;;  %v3784_v31 = vsel %vm6266_vm3, %v3779_v38, %v3783_v60  ;;  %3962 = vrot.lane.b32.xlu0 %v3912_v2, %s6088_s16  ;;  %v8553_v9 = vshll.u32 %v8535_v52, 16  ;;  %v8556_v59 = vshrl.u32 %v8535_v52, 16 }
 0x390   : > { %v4280_v56 = vsel %vm6556_vm6, %v5437_v53, %v4279_v55  ;;  %v4281_v46 = vrot.slane %v4279_v55, 4  ;;  %v8560_v18 = vpack.c.bf16 %v3695_v40, %v3695_v40  ;;  %v3656_v57 = vadd.f32 %v5681_v24, %v8471_v19  ;;  %3867 = vrot.lane.b32.xlu1 %v3784_v31, %s6088_s16 }
 0x391   : > { %4318 = vst.msk [vmem:[#allocation3 + $0x10] sm:$0xf] %vm3747_vm0, %v4280_v56  ;;  %v5683_v30 = vpop.f32.mrf.mxu1  ;;  %v3915_v44 = vsel %vm6311_vm9, %v3913_v54, %v3914_v43  ;;  %v3788_v26 = vor.u32 %v3787_v5, %v3783_v60  ;;  %v3793_v61 = vrot.slane %v8553_v9, 5  ;;  %v3797_v39 = vrot.slane %v8556_v59, 4 }
 0x392   : > { %v4282_v51 = vrot.slane %v8560_v18, 7  ;;  %3752 = vst.msk [vmem:[#allocation3 + $0x50] sm:$0xf] %vm3747_vm0, %v8560_v18  ;;  %v3696_v27 = vmax.f32 %v3656_v57, 0.0  ;;  %v5684_v19 = vadd.f32 %v5683_v30, %v5682_v37  ;;  %3949 = vst.msk [vmem:[#allocation3 + $0x2c] sm:$0xf] %vm3747_vm0, %v3915_v44 }
 0x393   : > { %v8574_v15 = vshll.u32 %v8560_v18, 16  ;;  %v5685_v48 = vpop.f32.mrf.mxu1  ;;  %v3789_v10 = vrot.slane %v3788_v26, 4  ;;  %v3798_v25 = vor.u32 %v3797_v39, %v3793_v61  ;;  %v3916_v47 = vrot.slane %v3914_v43, 4 }
 0x394   : > { %v3917_v4 = vrot.slane %v8560_v18, 5  ;;  %v4283_v23 = vsel %vm6556_vm6, %v4281_v46, %v4282_v51  ;;  %v4284_v8 = vrot.slane %v4282_v51, 4  ;;  %v8582_v12 = vpack.c.bf16 %v3696_v27, %v3696_v27  ;;  %3964 = vrot.lane.b32.xlu1 %v3915_v44, %s6088_s16 }
 0x395   : > { %v3661_v1 = vadd.f32 %v5684_v19, %v8474_v14  ;;  %4319 = vst.msk [vmem:[#allocation3 + $0x24] sm:$0xf] %vm3747_vm0, %v4283_v23  ;;  %v3794_v7 = vsel %vm6266_vm3, %v3789_v10, %v3793_v61  ;;  %v5686_v21 = vpop.f32.mrf.mxu1  ;;  %v3799_v34 = vrot.slane %v3798_v25, 4  ;;  %v3803_v53 = vrot.slane %v8574_v15, 5 }
 0x396   : > { %v3918_v11 = vsel %vm6311_vm9, %v3916_v47, %v3917_v4  ;;  %v4285_v33 = vrot.slane %v8582_v12, 7  ;;  %3753 = vst.msk [vmem:[#allocation3 + $0x64] sm:$0xf] %vm3747_vm0, %v8582_v12  ;;  %3869 = vrot.lane.b32.xlu0 %v3794_v7, %s6088_s16  ;;  %v5687_v38 = vadd.f32 %v5686_v21, %v5685_v48  ;;  %v3919_v60 = vrot.slane %v3917_v4, 4 }
 0x397   : > { %v3697_v14 = vmax.f32 %v3661_v1, 0.0  ;;  %3950 = vst.msk [vmem:[#allocation3 + $0x40] sm:$0xf] %vm3747_vm0, %v3918_v11  ;;  %v5688_v2 = vpop.f32.mrf.mxu1  ;;  %v3804_v54 = vsel %vm6266_vm3, %v3799_v34, %v3803_v53  ;;  %v3920_v36 = vrot.slane %v8582_v12, 5  ;;  %v8601_v55 = vshrl.u32 %v8560_v18, 16 }
 0x398   : > { %v8604_v40 = vshll.u32 %v8582_v12, 16  ;;  %v4286_v24 = vsel %vm6556_vm6, %v4284_v8, %v4285_v33  ;;  %v4287_v43 = vrot.slane %v4285_v33, 4  ;;  %v3664_v31 = vadd.f32 %v5687_v38, %v8485_v13  ;;  %3871 = vrot.lane.b32.xlu1 %v3804_v54, %s6088_s16 }
 0x399   : > { %v8608_v37 = vpack.c.bf16 %v3697_v14, %v3697_v14  ;;  %4320 = vst.msk [vmem:[#allocation3 + $0x38] sm:$0xf] %vm3747_vm0, %v4286_v24  ;;  %v5689_v5 = vpop.f32.mrf.mxu1  ;;  %v3921_v56 = vsel %vm6311_vm9, %v3919_v60, %v3920_v36  ;;  %v3807_v46 = vrot.slane %v8601_v55, 4  ;;  %v8618_v30 = vshrl.u32 %v8582_v12, 16 }
 0x39a   : > { %v3813_v57 = vrot.slane %v8604_v40, 5  ;;  %v3698_v13 = vmax.f32 %v3664_v31, 0.0  ;;  %3966 = vrot.lane.b32.xlu0 %v3918_v11, %s6088_s16  ;;  %v5690_v26 = vadd.f32 %v5689_v5, %v5688_v2  ;;  %3951 = vst.msk [vmem:[#allocation3 + $0x54] sm:$0xf] %vm3747_vm0, %v3921_v56  ;;  %v3922_v19 = vrot.slane %v3920_v36, 4 }
 0x39b   : > { %v4288_v44 = vrot.slane %v8608_v37, 7  ;;  %3754 = vst.msk [vmem:[#allocation3 + $0x78] sm:$0xf] %vm3747_vm0, %v8608_v37  ;;  %v8626_v61 = vshll.u32 %v8608_v37, 16  ;;  %v5691_v39 = vpop.f32.mrf.mxu1  ;;  %v3808_v51 = vor.u32 %v3807_v46, %v3803_v53  ;;  %v3817_v27 = vrot.slane %v8618_v30, 4 }
 0x39c   : > { %v3923_v48 = vrot.slane %v8608_v37, 5  ;;  %v8632_v47 = vpack.c.bf16 %v3698_v13, %v3698_v13  ;;  %v3669_v4 = vadd.f32 %v5690_v26, %v8488_v41  ;;  %3968 = vrot.lane.b32.xlu1 %v3921_v56, %s6088_s16  ;;  %v8648_v60 = vshrl.u32 %v8608_v37, 16 }
 0x39d   : > { %v4289_v10 = vsel %vm6556_vm6, %v4287_v43, %v4288_v44  ;;  %v4290_v25 = vrot.slane %v4288_v44, 4  ;;  %v3809_v63 = vrot.slane %v3808_v51, 4  ;;  %v5692_v23 = vpop.f32.mrf.mxu1  ;;  %v3818_v8 = vor.u32 %v3817_v27, %v3813_v57 }
 0x39e   : > { %4321 = vst.msk [vmem:[#allocation3 + $0x4c] sm:$0xf] %vm3747_vm0, %v4289_v10  ;;  %v3823_v1 = vrot.slane %v8626_v61, 5  ;;  %v3924_v7 = vsel %vm6311_vm9, %v3922_v19, %v3923_v48  ;;  %v4291_v21 = vrot.slane %v8632_v47, 7  ;;  %3755 = vst.msk [vmem:[#allocation3 + $0x8c] sm:$0xf] %vm3747_vm0, %v8632_v47  ;;  %v5693_v53 = vadd.f32 %v5692_v23, %v5691_v39 }
 0x39f   : > { %v3699_v34 = vmax.f32 %v3669_v4, 0.0  ;;  %3952 = vst.msk [vmem:[#allocation3 + $0x68] sm:$0xf] %vm3747_vm0, %v3924_v7  ;;  %v3925_v41 = vrot.slane %v3923_v48, 4  ;;  %v3814_v11 = vsel %vm6266_vm3, %v3809_v63, %v3813_v57  ;;  %v5694_v33 = vpop.f32.mrf.mxu1  ;;  %v3819_v14 = vrot.slane %v3818_v8, 4 }
 0x3a0   : > { %v3926_v38 = vrot.slane %v8632_v47, 5  ;;  %v4292_v2 = vsel %vm6556_vm6, %v4290_v25, %v4291_v21  ;;  %v4293_v54 = vrot.slane %v4291_v21, 4  ;;  %3873 = vrot.lane.b32.xlu0 %v3814_v11, %s6088_s16  ;;  %v3672_v24 = vadd.f32 %v5693_v53, %v8506_v50 }
 0x3a1   : > { %v8652_v36 = vpack.c.bf16 %v3699_v34, %v3699_v34  ;;  %4322 = vst.msk [vmem:[#allocation3 + $0x60] sm:$0xf] %vm3747_vm0, %v4292_v2  ;;  %v3824_v43 = vsel %vm6266_vm3, %v3819_v14, %v3823_v1  ;;  %v5695_v31 = vpop.f32.mrf.mxu1  ;;  %v3827_v56 = vrot.slane %v8648_v60, 4  ;;  %v8663_v46 = vshll.u32 %v8632_v47, 16 }
 0x3a2   : > { %v3927_v5 = vsel %vm6311_vm9, %v3925_v41, %v3926_v38  ;;  %v3700_v50 = vmax.f32 %v3672_v24, 0.0  ;;  %3875 = vrot.lane.b32.xlu1 %v3824_v43, %s6088_s16  ;;  %v5696_v44 = vadd.f32 %v5695_v31, %v5694_v33  ;;  %v8671_v13 = vshrl.u32 %v8632_v47, 16 }
 0x3a3   : > { %v4294_v57 = vrot.slane %v8652_v36, 7  ;;  %3756 = vst.msk [vmem:[#allocation3 + $0xa0] sm:$0xf] %vm3747_vm0, %v8652_v36  ;;  %3953 = vst.msk [vmem:[#allocation3 + $0x7c] sm:$0xf] %vm3747_vm0, %v3927_v5  ;;  %v5697_v26 = vpop.f32.mrf.mxu1  ;;  %v3828_v39 = vor.u32 %v3827_v56, %v3823_v1  ;;  %v3833_v51 = vrot.slane %v8663_v46, 5 }
 0x3a4   : > { %v8675_v27 = vshll.u32 %v8652_v36, 16  ;;  %v3928_v19 = vrot.slane %v3926_v38, 4  ;;  %v8679_v25 = vpack.c.bf16 %v3700_v50, %v3700_v50  ;;  %3970 = vrot.lane.b32.xlu0 %v3924_v7, %s6088_s16  ;;  %v3677_v4 = vadd.f32 %v5696_v44, %v8509_v3 }
 0x3a5   : > { %v4295_v48 = vsel %vm6556_vm6, %v4293_v54, %v4294_v57  ;;  %v4296_v10 = vrot.slane %v4294_v57, 4  ;;  %v3829_v63 = vrot.slane %v3828_v39, 4  ;;  %v5698_v23 = vpop.f32.mrf.mxu1  ;;  %v3837_v8 = vrot.slane %v8671_v13, 4 }
 0x3a6   : > { %4323 = vst.msk [vmem:[#allocation3 + $0x74] sm:$0xf] %vm3747_vm0, %v4295_v48  ;;  %v3843_v1 = vrot.slane %v8675_v27, 5  ;;  %v3929_v21 = vrot.slane %v8652_v36, 5  ;;  %v4297_v34 = vrot.slane %v8679_v25, 7  ;;  %v3701_v53 = vmax.f32 %v3677_v4, 0.0  ;;  %3972 = vrot.lane.b32.xlu1 %v3927_v5, %s6088_s16 }
 0x3a7   : > { %3757 = vst.msk [vmem:[#allocation3 + $0xb4] sm:$0xf] %vm3747_vm0, %v8679_v25  ;;  %v5699_v7 = vadd.f32 %v5698_v23, %v5697_v26  ;;  %v3932_v3 = vrot.slane %v8679_v25, 5  ;;  %v3834_v41 = vsel %vm6266_vm3, %v3829_v63, %v3833_v51  ;;  %v3838_v11 = vor.u32 %v3837_v8, %v3833_v51 }
 0x3a8   : > { %v3930_v33 = vsel %vm6311_vm9, %v3928_v19, %v3929_v21  ;;  %v3931_v14 = vrot.slane %v3929_v21, 4  ;;  %v4298_v38 = vsel %vm6556_vm6, %v4296_v10, %v4297_v34  ;;  %v4299_v2 = vrot.slane %v4297_v34, 4  ;;  %3877 = vrot.lane.b32.xlu0 %v3834_v41, %s6088_s16 }
 0x3a9   : > { %v8698_v54 = vpack.c.bf16 %v3701_v53, %v3701_v53  ;;  %v3680_v24 = vadd.f32 %v5699_v7, %v8532_v49  ;;  %3954 = vst.msk [vmem:[#allocation3 + $0x90] sm:$0xf] %vm3747_vm0, %v3930_v33  ;;  %4324 = vst.msk [vmem:[#allocation3 + $0x88] sm:$0xf] %vm3747_vm0, %v4298_v38  ;;  %v3839_v43 = vrot.slane %v3838_v11, 4  ;;  %v8707_v5 = vshrl.u32 %v8652_v36, 16 }
 0x3aa   : > { %v3933_v31 = vsel %vm6311_vm9, %v3931_v14, %v3932_v3  ;;  %v8710_v56 = vshll.u32 %v8679_v25, 16  ;;  %v8715_v49 = vshrl.u32 %v8679_v25, 16  ;;  %v4084_v19 = vrot.slane %v8501_v17, 6 }
 0x3ab   : > { %v4300_v57 = vrot.slane %v8698_v54, 7  ;;  %v3702_v50 = vmax.f32 %v3680_v24, 0.0  ;;  %3955 = vst.msk [vmem:[#allocation3 + $0xa4] sm:$0xf] %vm3747_vm0, %v3933_v31  ;;  %v8718_v44 = vshll.u32 %v8698_v54, 16  ;;  %v3844_v26 = vsel %vm6266_vm3, %v3839_v43, %v3843_v1 }
 0x3ac   : > { %v3847_v39 = vrot.slane %v8707_v5, 4  ;;  %v3853_v51 = vrot.slane %v8710_v56, 5  ;;  %3879 = vrot.lane.b32.xlu1 %v3844_v26, %s6088_s16  ;;  %3974 = vrot.lane.b32.xlu0 %v3930_v33, %s6088_s16  ;;  %v3857_v4 = vrot.slane %v8715_v49, 4  ;;  %v3934_v23 = vrot.slane %v3932_v3, 4 }
 0x3ad   : > { %v4301_v48 = vsel %vm6556_vm6, %v4299_v2, %v4300_v57  ;;  %v8727_v10 = vpack.c.bf16 %v3702_v50, %v3702_v50  ;;  %v3935_v8 = vrot.slane %v8698_v54, 5  ;;  %v4302_v21 = vrot.slane %v4300_v57, 4 }
 0x3ae   : > { %4325 = vst.msk [vmem:[#allocation3 + $0x9c] sm:$0xf] %vm3747_vm0, %v4301_v48  ;;  %v3848_v63 = vor.u32 %v3847_v39, %v3843_v1  ;;  %v3858_v34 = vor.u32 %v3857_v4, %v3853_v51  ;;  %v3863_v53 = vrot.slane %v8718_v44, 5  ;;  %v4086_v11 = vrot.slane %v4084_v19, 4 }
 0x3af   : > { %v4303_v17 = vrot.slane %v8727_v10, 7  ;;  %v3936_v41 = vsel %vm6311_vm9, %v3934_v23, %v3935_v8  ;;  %v4087_v33 = vrot.slane %v8535_v52, 6  ;;  %v4179_v52 = vrot.slane %v8529_v32, 6 }
 0x3b0   : > { %v3849_v7 = vrot.slane %v3848_v63, 4  ;;  %3976 = vrot.lane.b32.xlu1 %v3933_v31, %s6088_s16  ;;  %v3859_v3 = vrot.slane %v3858_v34, 4  ;;  %3956 = vst.msk [vmem:[#allocation3 + $0xb8] sm:$0xf] %vm3747_vm0, %v3936_v41  ;;  %v4180_v2 = vrot.slane %v8525_v45, 7  ;;  %v3960_v43 = vrot.slane %v8727_v10, 5 }
 0x3b1   : > { %v4304_v1 = vsel %vm6556_vm6, %v4302_v21, %v4303_v17  ;;  %v4088_v38 = vsel %vm6484_vm12, %v4086_v11, %v4087_v33  ;;  %v4183_v31 = vrot.slane %v8556_v59, 6  ;;  %v4184_v57 = vrot.slane %v8553_v9, 7 }
 0x3b2   : > { %4326 = vst.msk [vmem:[#allocation3 + $0xb0] sm:$0xf] %vm3747_vm0, %v4304_v1  ;;  %v3854_v14 = vsel %vm6266_vm3, %v3849_v7, %v3853_v51  ;;  %v3864_v24 = vsel %vm6266_vm3, %v3859_v3, %v3863_v53  ;;  %4169 = vst.msk [vmem:[#allocation3 + $0xc] sm:$0xf] %vm3747_vm0, %v4088_v38  ;;  %v4089_v50 = vrot.slane %v4087_v33, 4  ;;  %v4090_v26 = vrot.slane %v8560_v18, 6 }
 0x3b3   : > { %3881 = vrot.lane.b32.xlu0 %v3854_v14, %s6088_s16  ;;  %v3959_v39 = vrot.slane %v3935_v8, 4  ;;  %v4188_v51 = vrot.slane %v8601_v55, 6  ;;  %v4093_v48 = vrot.slane %v8582_v12, 6  ;;  %v4181_v4 = vor.u32 %v4180_v2, %v4179_v52 }
 0x3b4   : > { %3883 = vrot.lane.b32.xlu1 %v3864_v24, %s6088_s16  ;;  %v4189_v63 = vrot.slane %v8574_v15, 7  ;;  %v8766_v23 = vsel %vm6484_vm12, %v4089_v50, %v4090_v26  ;;  %v4092_v21 = vrot.slane %v4090_v26, 4  ;;  %v5435_v34 = vrot.slane %v8482_v22, 10 }
 0x3b5   : > { %v3961_v18 = vsel %vm6311_vm9, %v3959_v39, %v3960_v43  ;;  %4170 = vst.msk [vmem:[#allocation3 + $0x20] sm:$0xf] %vm3747_vm0, %v8766_v23  ;;  %v4185_v12 = vor.u32 %v4184_v57, %v4183_v31  ;;  %v4193_v7 = vrot.slane %v8618_v30, 6  ;;  %v4194_v11 = vrot.slane %v8604_v40, 7 }
 0x3b6   : > { %v5700_v8 = vpop.f32.mrf.mxu1  ;;  %v8776_v53 = vsel %vm6484_vm12, %v4092_v21, %v4093_v48  ;;  %v4095_v33 = vrot.slane %v4093_v48, 4  ;;  %v4096_v1 = vrot.slane %v8608_v37, 6  ;;  %v4182_v3 = vrot.slane %v4181_v4, 4 }
 0x3b7   : > { %3978 = vrot.lane.b32.xlu0 %v3936_v41, %s6088_s16  ;;  %v4085_v41 = vsel %vm6484_vm12, %v5435_v34, %v4084_v19  ;;  %4171 = vst.msk [vmem:[#allocation3 + $0x34] sm:$0xf] %vm3747_vm0, %v8776_v53  ;;  %v4190_v52 = vor.u32 %v4189_v63, %v4188_v51  ;;  %v4198_v2 = vrot.slane %v8648_v60, 6  ;;  %v4099_v24 = vrot.slane %v8632_v47, 6 }
 0x3b8   : > { %3980 = vrot.lane.b32.xlu1 %v3961_v18, %s6088_s16  ;;  %v5701_v14 = vpop.f32.mrf.mxu1  ;;  %v4199_v31 = vrot.slane %v8626_v61, 7  ;;  %v8792_v19 = vsel %vm6484_vm12, %v4095_v33, %v4096_v1  ;;  %v4098_v57 = vrot.slane %v4096_v1, 4  ;;  %v4187_v26 = vrot.slane %v4185_v12, 4 }
 0x3b9   : > { %v5702_v43 = vadd.f32 %v5701_v14, %v5700_v8  ;;  %v4195_v37 = vor.u32 %v4194_v11, %v4193_v7  ;;  %4172 = vst.msk [vmem:[#allocation3 + $0x48] sm:$0xf] %vm3747_vm0, %v8792_v19  ;;  %v4203_v39 = vrot.slane %v8671_v13, 6  ;;  %v4204_v47 = vrot.slane %v8663_v46, 7 }
 0x3ba   : > { %v5703_v50 = vpop.f32.mrf.mxu1  ;;  %v8802_v48 = vsel %vm6484_vm12, %v4098_v57, %v4099_v24  ;;  %v4101_v4 = vrot.slane %v4099_v24, 4  ;;  %v4102_v63 = vrot.slane %v8652_v36, 6  ;;  %v4186_v21 = vsel %vm6538_vm15, %v4182_v3, %v4185_v12 }
 0x3bb   : > { %4113 = vrot.lane.b32.xlu0 %v4085_v41, %s6088_s16  ;;  %v3685_v51 = vadd.f32 %v5702_v43, %v8460_v62  ;;  %4173 = vst.msk [vmem:[#allocation3 + $0x5c] sm:$0xf] %vm3747_vm0, %v8802_v48  ;;  %v4208_v34 = vrot.slane %v8707_v5, 6  ;;  %v4105_v62 = vrot.slane %v8679_v25, 6  ;;  %v4200_v7 = vor.u32 %v4199_v31, %v4198_v2 }
 0x3bc   : > { %4115 = vrot.lane.b32.xlu1 %v4088_v38, %s6088_s16  ;;  %v5704_v18 = vpop.f32.mrf.mxu1  ;;  %v4209_v38 = vrot.slane %v8675_v27, 7  ;;  %v8815_v36 = vsel %vm6484_vm12, %v4101_v4, %v4102_v63  ;;  %v4104_v11 = vrot.slane %v4102_v63, 4  ;;  %v4191_v12 = vsel %vm6538_vm15, %v4187_v26, %v4190_v52 }
 0x3bd   : > { %v3703_v8 = vmax.f32 %v3685_v51, 0.0  ;;  %v4192_v41 = vrot.slane %v4190_v52, 4  ;;  %v4197_v33 = vrot.slane %v4195_v37, 4  ;;  %v4205_v1 = vor.u32 %v4204_v47, %v4203_v39  ;;  %4174 = vst.msk [vmem:[#allocation3 + $0x70] sm:$0xf] %vm3747_vm0, %v8815_v36 }
 0x3be   : > { %v8826_v25 = vsel %vm6484_vm12, %v4104_v11, %v4105_v62  ;;  %v4213_v14 = vrot.slane %v8715_v49, 6  ;;  %v4214_v2 = vrot.slane %v8710_v56, 7  ;;  %v4210_v24 = vor.u32 %v4209_v38, %v4208_v34 }
 0x3bf   : > { %4237 = vrot.lane.b32.xlu0 %v4186_v21, %s6088_s16  ;;  %v8821_v3 = vpack.c.bf16 %v3703_v8, %v3703_v8  ;;  %4175 = vst.msk [vmem:[#allocation3 + $0x84] sm:$0xf] %vm3747_vm0, %v8826_v25  ;;  %v4046_v52 = vshrl.u32 %v8698_v54, 16  ;;  %v4107_v43 = vrot.slane %v4105_v62, 4  ;;  %v4108_v31 = vrot.slane %v8698_v54, 6 }
 0x3c0   : > { %4239 = vrot.lane.b32.xlu1 %v4191_v12, %s6088_s16  ;;  %v4305_v57 = vrot.slane %v4303_v17, 4  ;;  %v4202_v26 = vrot.slane %v4200_v7, 4  ;;  %v4111_v39 = vrot.slane %v8727_v10, 6  ;;  %v4196_v47 = vsel %vm6538_vm15, %v4192_v41, %v4195_v37 }
 0x3c1   : > { %v4306_v50 = vrot.slane %v8821_v3, 7  ;;  %v4201_v51 = vsel %vm6538_vm15, %v4197_v33, %v4200_v7  ;;  %v4207_v4 = vrot.slane %v4205_v1, 4  ;;  %v8846_v63 = vsel %vm6484_vm12, %v4107_v43, %v4108_v31 }
 0x3c2   : > { %v8854_v21 = vor.u32 %v4214_v2, %v4213_v14  ;;  %4176 = vst.msk [vmem:[#allocation3 + $0x98] sm:$0xf] %vm3747_vm0, %v8846_v63  ;;  %v4110_v37 = vrot.slane %v4108_v31, 4  ;;  %v4212_v34 = vrot.slane %v4210_v24, 4  ;;  %v4218_v38 = vrot.slane %v4046_v52, 6 }
 0x3c3   : > { %4117 = vrot.lane.b32.xlu0 %v8766_v23, %s6088_s16  ;;  %v4307_v17 = vsel %vm6556_vm6, %v4305_v57, %v4306_v50  ;;  %v4206_v23 = vsel %vm6538_vm15, %v4202_v26, %v4205_v1  ;;  %v4211_v18 = vsel %vm6538_vm15, %v4207_v4, %v4210_v24  ;;  %v4054_v8 = vshrl.u32 %v8727_v10, 16 }
 0x3c4   : > { %4119 = vrot.lane.b32.xlu1 %v8776_v53, %s6088_s16  ;;  %4327 = vst.msk [vmem:[#allocation3 + $0xc4] sm:$0xf] %vm3747_vm0, %v4307_v17  ;;  %v4219_v53 = vrot.slane %v8718_v44, 7  ;;  %v8869_v62 = vsel %vm6484_vm12, %v4110_v37, %v4111_v39  ;;  %v4002_v7 = vrot.slane %v3775_v29, 5  ;;  %v4003_v11 = vrot.slane %v3771_v28, 6 }
 0x3c5   : > { %4177 = vst.msk [vmem:[#allocation3 + $0xac] sm:$0xf] %vm3747_vm0, %v8869_v62  ;;  %v4057_v12 = vshll.u32 %v8727_v10, 16  ;;  %v4006_v41 = vrot.slane %v8529_v32, 5  ;;  %v4007_v33 = vrot.slane %v8525_v45, 6  ;;  %v4011_v1 = vrot.slane %v8556_v59, 5 }
 0x3c6   : > { %v8886_v29 = vsel %vm6538_vm15, %v4212_v34, %v8854_v21  ;;  %v4229_v22 = vshrl.u32 %v8821_v3, 16  ;;  %v4004_v28 = vor.u32 %v4003_v11, %v4002_v7  ;;  %v4012_v14 = vrot.slane %v8553_v9, 6 }
 0x3c7   : > { %4241 = vrot.lane.b32.xlu0 %v4196_v47, %s6088_s16  ;;  %v4217_v2 = vrot.slane %v8854_v21, 4  ;;  %v4008_v24 = vor.u32 %v4007_v33, %v4006_v41  ;;  %v4016_v32 = vrot.slane %v8601_v55, 5  ;;  %v4017_v45 = vrot.slane %v8574_v15, 6 }
 0x3c8   : > { %4243 = vrot.lane.b32.xlu1 %v4201_v51, %s6088_s16  ;;  %v4005_v59 = vrot.slane %v4004_v28, 4  ;;  %v4013_v43 = vor.u32 %v4012_v14, %v4011_v1  ;;  %v4021_v31 = vrot.slane %v8618_v30, 5  ;;  %v4022_v57 = vrot.slane %v8604_v40, 6 }
 0x3c9   : > { %v8897_v50 = vor.u32 %v4219_v53, %v4218_v38  ;;  %v4010_v26 = vrot.slane %v4008_v24, 4  ;;  %v4018_v9 = vor.u32 %v4017_v45, %v4016_v32  ;;  %v4026_v47 = vrot.slane %v8648_v60, 5 }
 0x3ca   : > { %v4009_v15 = vsel %vm6290_vm8, %v4005_v59, %v4008_v24  ;;  %v4015_v55 = vrot.slane %v4013_v43, 4  ;;  %v4027_v51 = vrot.slane %v8626_v61, 6  ;;  %v4232_v30 = vshll.u32 %v8821_v3, 16 }
 0x3cb   : > { %4121 = vrot.lane.b32.xlu0 %v8792_v19, %s6088_s16  ;;  %v4023_v19 = vor.u32 %v4022_v57, %v4021_v31  ;;  %4072 = vst.msk [vmem:[#allocation3 + $0x8] sm:$0xf] %vm3747_vm0, %v4009_v15  ;;  %v4014_v40 = vsel %vm6290_vm8, %v4010_v26, %v4013_v43  ;;  %v4020_v4 = vrot.slane %v4018_v9, 4  ;;  %v4031_v60 = vrot.slane %v8671_v13, 5 }
 0x3cc   : > { %4123 = vrot.lane.b32.xlu1 %v8802_v48, %s6088_s16  ;;  %4073 = vst.msk [vmem:[#allocation3 + $0x1c] sm:$0xf] %vm3747_vm0, %v4014_v40  ;;  %v4019_v48 = vsel %vm6290_vm8, %v4015_v55, %v4018_v9  ;;  %v4028_v37 = vor.u32 %v4027_v51, %v4026_v47  ;;  %v4032_v61 = vrot.slane %v8663_v46, 6  ;;  %v4036_v38 = vrot.slane %v8707_v5, 5  ;;  %v6032_v47 = vld [vmem:[%s9213_s5 + $0xb8] sm:$0xff]   ;;  %v6033_v51 = vld [vmem:[%s9213_s5 + $0xf0] sm:$0xff]  }
 0x3cd   : > { %v4025_v17 = vrot.slane %v4023_v19, 4  ;;  %4074 = vst.msk [vmem:[#allocation3 + $0x30] sm:$0xf] %vm3747_vm0, %v4019_v48  ;;  %v4024_v34 = vsel %vm6290_vm8, %v4020_v4, %v4023_v19  ;;  %v4037_v13 = vrot.slane %v8675_v27, 6  ;;  %v4042_v11 = vrot.slane %v8710_v56, 6  ;;  %v6034_v40 = vld [vmem:[%s9213_s5 + $0xb0] sm:$0xff]  }
 0x3ce   : > { %4075 = vst.msk [vmem:[#allocation3 + $0x44] sm:$0xf] %vm3747_vm0, %v4024_v34  ;;  %v4030_v7 = vrot.slane %v4028_v37, 4  ;;  %v4033_v46 = vor.u32 %v4032_v61, %v4031_v60  ;;  %v4048_v5 = vrot.slane %v4046_v52, 5  ;;  %v4049_v27 = vrot.slane %v8718_v44, 6  ;;  %v6037_v4 = vld [vmem:[%s9213_s5 + $0xe8] sm:$0xff]  }
 0x3cf   : > { %4245 = vrot.lane.b32.xlu0 %v4206_v23, %s6088_s16  ;;  %v4041_v23 = vrot.slane %v8715_v49, 5  ;;  %v4029_v53 = vsel %vm6290_vm8, %v4025_v17, %v4028_v37  ;;  %v4038_v41 = vor.u32 %v4037_v13, %v4036_v38  ;;  %v4056_v49 = vrot.slane %v4054_v8, 5  ;;  %v6038_v48 = vld [vmem:[%s9213_s5 + $0xa8] sm:$0xff]   ;;  %v6039_v13 = vld [vmem:[%s9213_s5 + $0xe0] sm:$0xff]  }
 0x3d0   : > { %4247 = vrot.lane.b32.xlu1 %v4211_v18, %s6088_s16  ;;  %4076 = vst.msk [vmem:[#allocation3 + $0x58] sm:$0xf] %vm3747_vm0, %v4029_v53  ;;  %v4034_v18 = vsel %vm6290_vm8, %v4030_v7, %v4033_v46  ;;  %v4035_v33 = vrot.slane %v4033_v46, 4  ;;  %v4059_v56 = vrot.slane %v4057_v12, 6  ;;  %v4050_v52 = vor.u32 %v4049_v27, %v4048_v5  ;;  %v6042_v7 = vld [vmem:[%s9213_s5 + $0xa0] sm:$0xff]   ;;  %v6043_v46 = vld [vmem:[%s9213_s5 + $0xd8] sm:$0xff]  }
 0x3d1   : > { %v4043_v1 = vor.u32 %v4042_v11, %v4041_v23  ;;  %4077 = vst.msk [vmem:[#allocation3 + $0x6c] sm:$0xf] %vm3747_vm0, %v4034_v18  ;;  %v4040_v54 = vrot.slane %v4038_v41, 4  ;;  %v4156_v44 = vrot.slane %v4111_v39, 4  ;;  %v4157_v28 = vrot.slane %v8821_v3, 6  ;;  %v6044_v5 = vld [vmem:[%s9213_s5 + $0x98] sm:$0xff]  }
 0x3d2   : > { %v4039_v14 = vsel %vm6290_vm8, %v4035_v33, %v4038_v41  ;;  %v4060_v32 = vor.u32 %v4059_v56, %v4056_v49  ;;  %v4224_v45 = vrot.slane %v4057_v12, 7  ;;  %v4052_v59 = vrot.slane %v4050_v52, 4  ;;  %v6047_v27 = vld [vmem:[%s9213_s5 + $0xd0] sm:$0xff]  }
 0x3d3   : > { %4125 = vrot.lane.b32.xlu0 %v8815_v36, %s6088_s16  ;;  %v4223_v36 = vrot.slane %v4054_v8, 6  ;;  %v4045_v24 = vrot.slane %v4043_v1, 4  ;;  %4078 = vst.msk [vmem:[#allocation3 + $0x80] sm:$0xf] %vm3747_vm0, %v4039_v14  ;;  %v4044_v39 = vsel %vm6290_vm8, %v4040_v54, %v4043_v1  ;;  %v4221_v10 = vsel %vm6538_vm15, %v4217_v2, %v8897_v50  ;;  %v6048_v54 = vld [vmem:[%s9213_s5 + $0x90] sm:$0xff]   ;;  %v6053_v14 = vld [vmem:[%s9213_s5 + $0xc0] sm:$0xff]  }
 0x3d4   : > { %4127 = vrot.lane.b32.xlu1 %v8826_v25, %s6088_s16  ;;  %v4158_v25 = vsel %vm6484_vm12, %v4156_v44, %v4157_v28  ;;  %4079 = vst.msk [vmem:[#allocation3 + $0x94] sm:$0xf] %vm3747_vm0, %v4044_v39  ;;  %v4231_v42 = vrot.slane %v4229_v22, 6  ;;  %v4234_v12 = vrot.slane %v4232_v30, 7  ;;  %v4222_v21 = vrot.slane %v8897_v50, 4 }
 0x3d5   : > { %v4051_v8 = vsel %vm6290_vm8, %v4045_v24, %v4050_v52  ;;  %4178 = vst.msk [vmem:[#allocation3 + $0xc0] sm:$0xf] %vm3747_vm0, %v4158_v25  ;;  %v4225_v43 = vor.u32 %v4224_v45, %v4223_v36  ;;  %vm3895_vm12 = vcmask 1043968   ;;  %v6049_v52 = vld [vmem:[%s9213_s5 + $0xc8] sm:$0xff]  }
 0x3d6   : > { %4080 = vst.msk [vmem:[#allocation3 + $0xa8] sm:$0xf] %vm3747_vm0, %v4051_v8  ;;  %v4235_v2 = vor.u32 %v4234_v12, %v4231_v42  ;;  %v6050_v36 = vld [vmem:[%s9213_s5 + $0x88] sm:$0xff]   ;;  %v6091_v12 = vmov 0.0  }
 0x3d7   : > { %4249 = vrot.lane.b32.xlu0 %v8886_v29, %s6088_s16  ;;  %v4061_v29 = vsel %vm6290_vm8, %v4052_v59, %v4060_v32  ;;  %v4226_v3 = vsel %vm6538_vm15, %v4222_v21, %v4225_v43  ;;  %v4227_v22 = vrot.slane %v4225_v43, 4  ;;  %v6054_v32 = vld [vmem:[%s9213_s5 + $0x80] sm:$0xff]  }
 0x3d8   : > { %4251 = vrot.lane.b32.xlu1 %v4221_v10, %s6088_s16  ;;  %4081 = vst.msk [vmem:[#allocation3 + $0xbc] sm:$0xf] %vm3747_vm0, %v4061_v29  ;;  %vm9135_vm0 = vmand %vm5055_vm1, %vm5056_vm2 }
 0x3d9   : > { %v4236_v31 = vsel %vm6538_vm15, %v4227_v22, %v4235_v2  ;;  %vm6092_vm15 = vmmov 0  }
 0x3db   : > { %4129 = vrot.lane.b32.xlu0 %v8846_v63, %s6088_s16 }
 0x3dc   : > { %4131 = vrot.lane.b32.xlu1 %v8869_v62, %s6088_s16 }
 0x3df   : > { %4253 = vrot.lane.b32.xlu0 %v4226_v3, %s6088_s16 }
 0x3e0   : > { %4255 = vrot.lane.b32.xlu1 %v4236_v31, %s6088_s16 }
 0x3fd   : > { %v3866_v57 = vpop.permute.xlu0 %3865 }
 0x3fe   : > { %3896 = vst.msk [vmem:[#allocation3] sm:$0xf] %vm3895_vm12, %v3866_v57 }
 0x401   : > { %v3963_v63 = vpop.permute.xlu0 %3962 }
 0x402   : > { %v3868_v50 = vpop.permute.xlu1 %3867  ;;  %3992 = vst.msk [vmem:[#allocation3 + $0x4] sm:$0xf] %vm3895_vm12, %v3963_v63 }
 0x403   : > { %3897 = vst.msk [vmem:[#allocation3 + $0x14] sm:$0xf] %vm3895_vm12, %v3868_v50  ;;  %v6058_v50 = vld [vmem:[%s9213_s5 + $0x118] sm:$0xff]  }
 0x406   : > { %v3965_v62 = vpop.permute.xlu1 %3964 }
 0x407   : > { %3993 = vst.msk [vmem:[#allocation3 + $0x18] sm:$0xf] %vm3895_vm12, %v3965_v62 }
 0x408   : > { %v3870_v26 = vpop.permute.xlu0 %3869 }
 0x409   : > { %3898 = vst.msk [vmem:[#allocation3 + $0x28] sm:$0xf] %vm3895_vm12, %v3870_v26 }
 0x40a   : > { %v3872_v0 = vpop.permute.xlu1 %3871  ;;  %v6028_v55 = vld [vmem:[#allocation3] ss:$20 sps:$4 sm:$0xff]  }
 0x40b   : > { %3899 = vst.msk [vmem:[#allocation3 + $0x3c] sm:$0xf] %vm3895_vm12, %v3872_v0 }
 0x40c   : > { %v3967_v9 = vpop.permute.xlu0 %3966 }
 0x40d   : > { %3994 = vst.msk [vmem:[#allocation3 + $0x2c] sm:$0xf] %vm3895_vm12, %v3967_v9 }
 0x40e   : > { %v3969_v15 = vpop.permute.xlu1 %3968  ;;  %v6030_v19 = vld [vmem:[#allocation3 + $0x4] ss:$20 sps:$4 sm:$0xff]  }
 0x40f   : > { %3995 = vst.msk [vmem:[#allocation3 + $0x40] sm:$0xf] %vm3895_vm12, %v3969_v15  ;;  %4826 = vmatprep.mubr.bf16.mxu1 %v6030_v19  ;;  %v6061_v15 = vld [vmem:[%s9213_s5 + $0x110] sm:$0xff]   ;;  %v6064_v19 = vld [vmem:[%s9213_s5 + $0x108] sm:$0xff]  }
 0x410   : > { %4827 = vmatmul.mubr.bf16.vlgmr.msra.gmra.mxu1 %v6028_v55 }
 0x411   : > { %5753 = vmatpush3.bf16.msra.mxu1 %v6032_v47 }
 0x412   : > { %v3874_v30 = vpop.permute.xlu0 %3873  ;;  %5754 = vmatprep.subr.bf16.mxu1 %v6033_v51 }
 0x413   : > { %3900 = vst.msk [vmem:[#allocation3 + $0x50] sm:$0xf] %vm3895_vm12, %v3874_v30 }
 0x414   : > { %v3876_v60 = vpop.permute.xlu1 %3875  ;;  %v4334_v37 = vld [vmem:[#allocation3 + $0x28] sm:$0xff] }
 0x415   : > { %3901 = vst.msk [vmem:[#allocation3 + $0x64] sm:$0xf] %vm3895_vm12, %v3876_v60  ;;  %5755 = vmatpush3.bf16.msra.mxu1 %v6034_v40 }
 0x416   : > { %v3971_v17 = vpop.permute.xlu0 %3970  ;;  %v4337_v61 = vld [vmem:[#allocation3 + $0x3c] sm:$0xff]  ;;  %5756 = vmatprep.subr.bf16.mxu1 %v6037_v4 }
 0x417   : > { %v6035_v34 = vld [vmem:[#allocation3 + $0x2c] ss:$20 sps:$4 sm:$0xff]   ;;  %3996 = vst.msk [vmem:[#allocation3 + $0x54] sm:$0xf] %vm3895_vm12, %v3971_v17  ;;  %v5444_v38 = vcombine.low %v4334_v37, %v4337_v61 }
 0x418   : > { %v3973_v23 = vpop.permute.xlu1 %3972  ;;  %4834 = vmatprep.mubr.bf16.mxu1 %v6035_v34  ;;  %v6068_v37 = vld [vmem:[%s9213_s5 + $0x100] sm:$0xff]  }
 0x419   : > { %3997 = vst.msk [vmem:[#allocation3 + $0x68] sm:$0xf] %vm3895_vm12, %v3973_v23  ;;  %4835 = vmatmul.mubr.bf16.gmra.mxu1 %v5444_v38 }
 0x41a   : > { %v3878_v53 = vpop.permute.xlu0 %3877  ;;  %5757 = vmatpush3.bf16.msra.mxu1 %v6038_v48 }
 0x41b   : > { %3902 = vst.msk [vmem:[#allocation3 + $0x78] sm:$0xf] %vm3895_vm12, %v3878_v53  ;;  %5758 = vmatprep.subr.bf16.mxu1 %v6039_v13 }
 0x41e   : > { %v3880_v11 = vpop.permute.xlu1 %3879  ;;  %v3975_v41 = vpop.permute.xlu0 %3974  ;;  %5759 = vmatpush3.bf16.msra.mxu1 %v6042_v7  ;;  %v4340_v49 = vld [vmem:[#allocation3 + $0x50] sm:$0xff] }
 0x41f   : > { %3903 = vst.msk [vmem:[#allocation3 + $0x8c] sm:$0xf] %vm3895_vm12, %v3880_v11  ;;  %3998 = vst.msk [vmem:[#allocation3 + $0x7c] sm:$0xf] %vm3895_vm12, %v3975_v41  ;;  %5760 = vmatprep.subr.bf16.mxu1 %v6043_v46 }
 0x420   : > { %v4343_v18 = vld [vmem:[#allocation3 + $0x64] sm:$0xff] }
 0x421   : > { %v6040_v33 = vld [vmem:[#allocation3 + $0x54] ss:$20 sps:$4 sm:$0xff]   ;;  %v5449_v1 = vcombine.low %v4340_v49, %v4343_v18 }
 0x422   : > { %v3977_v56 = vpop.permute.xlu1 %3976  ;;  %4842 = vmatprep.mubr.bf16.mxu1 %v6040_v33  ;;  %5761 = vmatpush3.bf16.msra.mxu1 %v6044_v5  ;;  %v6072_v33 = vld [vmem:[#allocation3 + $0x10] ss:$20 sps:$4 sm:$0xff]  }
 0x423   : > { %3999 = vst.msk [vmem:[#allocation3 + $0x90] sm:$0xf] %vm3895_vm12, %v3977_v56  ;;  %4843 = vmatmul.mubr.bf16.gmra.mxu1 %v5449_v1  ;;  %5762 = vmatprep.subr.bf16.mxu1 %v6047_v27  ;;  %v6073_v1 = vld [vmem:[#allocation3 + $0x38] ss:$20 sps:$4 sm:$0xff]   ;;  %v6074_v56 = vld [vmem:[#allocation3 + $0x60] ss:$20 sps:$4 sm:$0xff]  }
 0x425   : > { %v3882_v44 = vpop.permute.xlu0 %3881 }
 0x426   : > { %3904 = vst.msk [vmem:[#allocation3 + $0xa0] sm:$0xf] %vm3895_vm12, %v3882_v44  ;;  %v3884_v28 = vpop.permute.xlu1 %3883  ;;  %5763 = vmatpush3.bf16.msra.mxu1 %v6048_v54  ;;  %v4346_v39 = vld [vmem:[#allocation3 + $0x78] sm:$0xff] }
 0x427   : > { %3905 = vst.msk [vmem:[#allocation3 + $0xb4] sm:$0xf] %vm3895_vm12, %v3884_v28  ;;  %5764 = vmatprep.subr.bf16.mxu1 %v6049_v52  ;;  %v6075_v54 = vld [vmem:[#allocation3 + $0x88] ss:$20 sps:$4 sm:$0xff]   ;;  %v6076_v52 = vld [vmem:[#allocation3 + $0xb0] ss:$20 sps:$4 sm:$0xff]  }
 0x429   : > { %v3979_v24 = vpop.permute.xlu0 %3978 }
 0x42a   : > { %4000 = vst.msk [vmem:[#allocation3 + $0xa4] sm:$0xf] %vm3895_vm12, %v3979_v24  ;;  %v3981_v45 = vpop.permute.xlu1 %3980  ;;  %v4349_v59 = vld [vmem:[#allocation3 + $0x8c] sm:$0xff]  ;;  %5765 = vmatpush3.bf16.msra.mxu1 %v6050_v36 }
 0x42b   : > { %v6045_v25 = vld [vmem:[#allocation3 + $0x7c] ss:$20 sps:$4 sm:$0xff]   ;;  %4001 = vst.msk [vmem:[#allocation3 + $0xb8] sm:$0xf] %vm3895_vm12, %v3981_v45  ;;  %v5454_v8 = vcombine.low %v4346_v39, %v4349_v59  ;;  %5766 = vmatprep.subr.bf16.mxu1 %v6053_v14 }
 0x42c   : > { %4850 = vmatprep.mubr.bf16.mxu1 %v6045_v25 }
 0x42d   : > { %v4114_v10 = vpop.permute.xlu0 %4113  ;;  %4851 = vmatmul.mubr.bf16.gmra.mxu1 %v5454_v8 }
 0x42e   : > { %4143 = vst.msk [vmem:[#allocation3 + $0x8] sm:$0xf] %vm3895_vm12, %v4114_v10  ;;  %v4116_v42 = vpop.permute.xlu1 %4115  ;;  %5767 = vmatpush3.bf16.msra.mxu1 %v6054_v32 }
 0x42f   : > { %4144 = vst.msk [vmem:[#allocation3 + $0x1c] sm:$0xf] %vm3895_vm12, %v4116_v42  ;;  %5807 = vmatprep.subr.bf16.mxu1 %v6091_v12 }
 0x431   : > { %v4238_v29 = vpop.permute.xlu0 %4237  ;;  %v4352_v21 = vld [vmem:[#allocation3 + $0xa0] sm:$0xff] }
 0x432   : > { %4267 = vst.msk [vmem:[#allocation3 + $0xc] sm:$0xf] %vm3895_vm12, %v4238_v29  ;;  %v4240_v43 = vpop.permute.xlu1 %4239  ;;  %v4355_v2 = vld [vmem:[#allocation3 + $0xb4] sm:$0xff] }
 0x433   : > { %v6051_v3 = vld [vmem:[#allocation3 + $0xa4] ss:$20 sps:$4 sm:$0xff]   ;;  %4268 = vst.msk [vmem:[#allocation3 + $0x20] sm:$0xf] %vm3895_vm12, %v4240_v43  ;;  %v5459_v22 = vcombine.low %v4352_v21, %v4355_v2 }
 0x434   : > { %4858 = vmatprep.mubr.bf16.mxu1 %v6051_v3 }
 0x435   : > { %v4118_v31 = vpop.permute.xlu0 %4117  ;;  %4859 = vmatmul.mubr.bf16.gmra.mxu1 %v5459_v22 }
 0x436   : > { %4145 = vst.msk [vmem:[#allocation3 + $0x30] sm:$0xf] %vm3895_vm12, %v4118_v31  ;;  %v4120_v57 = vpop.permute.xlu1 %4119  ;;  %v6055_v26 = vld [vmem:[#allocation3 + $0x8] ss:$20 sps:$4 sm:$0xff]  }
 0x437   : > { %4146 = vst.msk [vmem:[#allocation3 + $0x44] sm:$0xf] %vm3895_vm12, %v4120_v57 }
 0x439   : > { %v4242_v63 = vpop.permute.xlu0 %4241 }
 0x43a   : > { %4269 = vst.msk [vmem:[#allocation3 + $0x34] sm:$0xf] %vm3895_vm12, %v4242_v63  ;;  %v4244_v62 = vpop.permute.xlu1 %4243  ;;  %v6057_v0 = vld [vmem:[#allocation3 + $0xc] ss:$20 sps:$4 sm:$0xff]  }
 0x43b   : > { %4270 = vst.msk [vmem:[#allocation3 + $0x48] sm:$0xf] %vm3895_vm12, %v4244_v62  ;;  %4899 = vmatprep.mubr.bf16.mxu1 %v6057_v0 }
 0x43d   : > { %v4122_v9 = vpop.permute.xlu0 %4121  ;;  %4900 = vmatmul.mubr.bf16.vlgmr.msra.gmra.mxu1 %v6055_v26 }
 0x43e   : > { %4147 = vst.msk [vmem:[#allocation3 + $0x58] sm:$0xf] %vm3895_vm12, %v4122_v9  ;;  %v4124_v47 = vpop.permute.xlu1 %4123  ;;  %5808 = vmatpush3.bf16.msra.mxu1 %v6058_v50 }
 0x43f   : > { %4148 = vst.msk [vmem:[#allocation3 + $0x6c] sm:$0xf] %vm3895_vm12, %v4124_v47  ;;  %5809 = vmatprep.subr.bf16.mxu1 %v6091_v12 }
 0x441   : > { %v4246_v55 = vpop.permute.xlu0 %4245  ;;  %v4335_v30 = vld [vmem:[#allocation3 + $0x30] sm:$0xff] }
 0x442   : > { %4271 = vst.msk [vmem:[#allocation3 + $0x5c] sm:$0xf] %vm3895_vm12, %v4246_v55  ;;  %v4248_v51 = vpop.permute.xlu1 %4247  ;;  %v4338_v40 = vld [vmem:[#allocation3 + $0x44] sm:$0xff]  ;;  %5810 = vmatpush3.bf16.msra.mxu1 %v6061_v15 }
 0x443   : > { %v6059_v4 = vld [vmem:[#allocation3 + $0x34] ss:$20 sps:$4 sm:$0xff]   ;;  %4272 = vst.msk [vmem:[#allocation3 + $0x70] sm:$0xf] %vm3895_vm12, %v4248_v51  ;;  %v5446_v60 = vcombine.low %v4335_v30, %v4338_v40  ;;  %5811 = vmatprep.subr.bf16.mxu1 %v6091_v12 }
 0x444   : > { %4907 = vmatprep.mubr.bf16.mxu1 %v6059_v4 }
 0x445   : > { %v4126_v48 = vpop.permute.xlu0 %4125  ;;  %4908 = vmatmul.mubr.bf16.gmra.mxu1 %v5446_v60 }
 0x446   : > { %4149 = vst.msk [vmem:[#allocation3 + $0x80] sm:$0xf] %vm3895_vm12, %v4126_v48  ;;  %v4128_v17 = vpop.permute.xlu1 %4127  ;;  %5812 = vmatpush3.bf16.msra.mxu1 %v6064_v19 }
 0x447   : > { %4150 = vst.msk [vmem:[#allocation3 + $0x94] sm:$0xf] %vm3895_vm12, %v4128_v17  ;;  %5813 = vmatprep.subr.bf16.mxu1 %v6091_v12 }
 0x449   : > { %v4250_v61 = vpop.permute.xlu0 %4249  ;;  %v4341_v38 = vld [vmem:[#allocation3 + $0x58] sm:$0xff] }
 0x44a   : > { %4273 = vst.msk [vmem:[#allocation3 + $0x84] sm:$0xf] %vm3895_vm12, %v4250_v61  ;;  %v4252_v34 = vpop.permute.xlu1 %4251  ;;  %v4344_v13 = vld [vmem:[#allocation3 + $0x6c] sm:$0xff]  ;;  %5814 = vmatpush3.bf16.msra.mxu1 %v6068_v37 }
 0x44b   : > { %v6062_v23 = vld [vmem:[#allocation3 + $0x5c] ss:$20 sps:$4 sm:$0xff]   ;;  %4274 = vst.msk [vmem:[#allocation3 + $0x98] sm:$0xf] %vm3895_vm12, %v4252_v34  ;;  %v5451_v53 = vcombine.low %v4341_v38, %v4344_v13 }
 0x44c   : > { %4915 = vmatprep.mubr.bf16.mxu1 %v6062_v23 }
 0x44d   : > { %v4130_v7 = vpop.permute.xlu0 %4129  ;;  %4916 = vmatmul.mubr.bf16.gmra.mxu1 %v5451_v53 }
 0x44e   : > { %4151 = vst.msk [vmem:[#allocation3 + $0xa8] sm:$0xf] %vm3895_vm12, %v4130_v7  ;;  %v4132_v46 = vpop.permute.xlu1 %4131  ;;  %v6067_v27 = vld [vmem:[#allocation3 + $0x80] ss:$20 sps:$4 sm:$0xff]  }
 0x44f   : > { %4152 = vst.msk [vmem:[#allocation3 + $0xbc] sm:$0xf] %vm3895_vm12, %v4132_v46  ;;  %v9115_v46 = vld [vmem:[%s9214_s6] ss:$0 sm:$0xff] }
 0x451   : > { %v4254_v11 = vpop.permute.xlu0 %4253 }
 0x452   : > { %4275 = vst.msk [vmem:[#allocation3 + $0xac] sm:$0xf] %vm3895_vm12, %v4254_v11  ;;  %v4256_v41 = vpop.permute.xlu1 %4255  ;;  %v6065_v5 = vld [vmem:[#allocation3 + $0x84] ss:$20 sps:$4 sm:$0xff]  }
 0x453   : > { %4276 = vst.msk [vmem:[#allocation3 + $0xc0] sm:$0xf] %vm3895_vm12, %v4256_v41  ;;  %4923 = vmatprep.mubr.bf16.mxu1 %v6065_v5  ;;  %vm9148_vm12 = vmand %vm5061_vm5, %vm2414_vm4  ;;  %vm5108_vm4 = vcmask 517120  }
 0x455   : > { %4924 = vmatmul.mubr.bf16.gmra.mxu1 %v6067_v27 }
 0x456   : > { %v6071_v18 = vld [vmem:[#allocation3 + $0xa8] ss:$20 sps:$4 sm:$0xff]  }
 0x45a   : > { %v6069_v49 = vld [vmem:[#allocation3 + $0xac] ss:$20 sps:$4 sm:$0xff]  }
 0x45b   : > { %4931 = vmatprep.mubr.bf16.mxu1 %v6069_v49 }
 0x45d   : > { %4932 = vmatmul.mubr.bf16.gmra.mxu1 %v6071_v18 }
 0x45e   : > { %5815 = vmatprep.mubr.msk.bf16.mxu1 %vm6092_vm15, %v6091_v12 }
 0x465   : > { %5816 = vmatmul.mubr.msk.bf16.vlgmr.msra.gmra.mxu1 %vm4778_vm10, %v6072_v33 }
 0x466   : > { %5819 = vmatprep.mubr.msk.bf16.mxu1 %vm6092_vm15, %v6091_v12 }
 0x46d   : > { %5820 = vmatmul.mubr.msk.bf16.gmra.mxu1 %vm4778_vm10, %v6073_v1 }
 0x46e   : > { %5823 = vmatprep.mubr.msk.bf16.mxu1 %vm6092_vm15, %v6091_v12 }
 0x475   : > { %5824 = vmatmul.mubr.msk.bf16.gmra.mxu1 %vm4778_vm10, %v6074_v56 }
 0x476   : > { %5827 = vmatprep.mubr.msk.bf16.mxu1 %vm6092_vm15, %v6091_v12 }
 0x47d   : > { %5828 = vmatmul.mubr.msk.bf16.gmra.mxu1 %vm4778_vm10, %v6075_v54 }
 0x47e   : > { %5831 = vmatprep.mubr.msk.bf16.mxu1 %vm6092_vm15, %v6091_v12  ;;  %vm9172_vm15 = vmand %vm5108_vm4, %vm1473_vm13  ;;  %vm5143_vm13 = vsmask.f32 7942 }
 0x485   : > { %5832 = vmatmul.mubr.msk.bf16.gmra.mxu1 %vm4778_vm10, %v6076_v52 }
 0x4d0   : > { %v5722_v44 = vpop.f32.mrf.mxu1 }
 0x4d2   : > { %v5723_v28 = vpop.f32.mrf.mxu1 }
 0x4d3   : > { %v5724_v36 = vadd.f32 %v5723_v28, %v5722_v44 }
 0x4d4   : > { %v5725_v14 = vpop.f32.mrf.mxu1 }
 0x4d5   : > { %v4829_v27 = vadd.f32 %v5724_v36, %v9115_v46 }
 0x4d6   : > { %v5726_v24 = vpop.f32.mrf.mxu1 }
 0x4d7   : > { %v5727_v32 = vadd.f32 %v5726_v24, %v5725_v14 }
 0x4d9   : > { %v5728_v45 = vpop.f32.mrf.mxu1  ;;  %v4832_v33 = vadd.f32 %v5727_v32, %v9115_v46 }
 0x4db   : > { %v5729_v39 = vpop.f32.mrf.mxu1 }
 0x4dc   : > { %v5730_v59 = vadd.f32 %v5729_v39, %v5728_v45 }
 0x4dd   : > { %v5731_v25 = vpop.f32.mrf.mxu1 }
 0x4de   : > { %v4837_v14 = vadd.f32 %v5730_v59, %v9115_v46 }
 0x4df   : > { %v5732_v8 = vpop.f32.mrf.mxu1 }
 0x4e0   : > { %v5733_v10 = vadd.f32 %v5732_v8, %v5731_v25 }
 0x4e2   : > { %v4840_v8 = vadd.f32 %v5733_v10, %v9115_v46 }
 0x4e3   : > { %v5734_v42 = vpop.f32.mrf.mxu1 }
 0x4e5   : > { %v5735_v29 = vpop.f32.mrf.mxu1 }
 0x4e6   : > { %v9090_v43 = vadd.f32 %v5735_v29, %v5734_v42  ;;  %v5030_v42 = vld [vmem:[%s9124_s12] sm:$0xf] }
 0x4e7   : > { %v5737_v21 = vpop.f32.mrf.mxu1 }
 0x4e9   : > { %v5738_v12 = vpop.f32.mrf.mxu1 }
 0x4ea   : > { %v9092_v2 = vadd.f32 %v5738_v12, %v5737_v21 }
 0x4ed   : > { %v5740_v3 = vpop.f32.mrf.mxu1 }
 0x4ef   : > { %v5741_v22 = vpop.f32.mrf.mxu1 }
 0x4f0   : > { %v9094_v31 = vadd.f32 %v5741_v22, %v5740_v3 }
 0x4f1   : > { %v5743_v57 = vpop.f32.mrf.mxu1 }
 0x4f3   : > { %v5744_v63 = vpop.f32.mrf.mxu1 }
 0x4f4   : > { %v9096_v50 = vadd.f32 %v5744_v63, %v5743_v57 }
 0x4f5   : > { %v5746_v62 = vpop.f32.mrf.mxu1 }
 0x4f7   : > { %v5747_v26 = vpop.f32.mrf.mxu1 }
 0x4f8   : > { %v9098_v0 = vadd.f32 %v5747_v26, %v5746_v62 }
 0x4f9   : > { %v5749_v9 = vpop.f32.mrf.mxu1 }
 0x4fb   : > { %v5750_v47 = vpop.f32.mrf.mxu1 }
 0x4fd   : > { %v5768_v15 = vpop.f32.mrf.mxu1 }
 0x4ff   : > { %v5769_v55 = vpop.f32.mrf.mxu1 }
 0x500   : > { %v5770_v41 = vadd.f32 %v5769_v55, %v5768_v15 }
 0x501   : > { %v5771_v19 = vpop.f32.mrf.mxu1 }
 0x502   : > { %v4902_v1 = vadd.f32 %v5770_v41, %v4829_v27 }
 0x503   : > { %v5772_v51 = vpop.f32.mrf.mxu1 }
 0x504   : > { %v5773_v49 = vadd.f32 %v5772_v51, %v5771_v19  ;;  %v4845_v51 = vadd.f32 %v9090_v43, %v9115_v46 }
 0x505   : > { %v5774_v30 = vpop.f32.mrf.mxu1 }
 0x506   : > { %v4905_v44 = vadd.f32 %v5773_v49, %v4832_v33  ;;  %v5075_v33 = vld [vmem:[%s9124_s12 + $0x8] sm:$0x7] }
 0x507   : > { %v5775_v40 = vpop.f32.mrf.mxu1 }
 0x508   : > { %v5776_v54 = vadd.f32 %v5775_v40, %v5774_v30 }
 0x509   : > { %v5777_v4 = vpop.f32.mrf.mxu1 }
 0x50a   : > { %v4910_v25 = vadd.f32 %v5776_v54, %v4837_v14 }
 0x50b   : > { %v5778_v60 = vpop.f32.mrf.mxu1 }
 0x50c   : > { %v5779_v24 = vadd.f32 %v5778_v60, %v5777_v4 }
 0x50d   : > { %v5780_v48 = vpop.f32.mrf.mxu1 }
 0x50e   : > { %v4913_v22 = vadd.f32 %v5779_v24, %v4840_v8 }
 0x50f   : > { %v5781_v17 = vpop.f32.mrf.mxu1 }
 0x510   : > { %v5782_v9 = vadd.f32 %v5781_v17, %v5780_v48  ;;  %v4848_v48 = vadd.f32 %v9092_v2, %v9115_v46 }
 0x511   : > { %v5783_v37 = vpop.f32.mrf.mxu1 }
 0x512   : > { %v4918_v17 = vadd.f32 %v5782_v9, %v4845_v51 }
 0x513   : > { %v5784_v61 = vpop.f32.mrf.mxu1 }
 0x514   : > { %v5785_v30 = vadd.f32 %v5784_v61, %v5783_v37 }
 0x515   : > { %v9100_v34 = vpop.f32.mrf.mxu1 }
 0x517   : > { %v9102_v38 = vpop.f32.mrf.mxu1 }
 0x518   : > { %v5788_v49 = vadd.f32 %v9102_v38, %v9100_v34  ;;  %v4853_v34 = vadd.f32 %v9094_v31, %v9115_v46 }
 0x519   : > { %v9104_v13 = vpop.f32.mrf.mxu1 }
 0x51b   : > { %v9106_v23 = vpop.f32.mrf.mxu1 }
 0x51d   : > { %v9108_v53 = vpop.f32.mrf.mxu1 }
 0x51f   : > { %v9110_v7 = vpop.f32.mrf.mxu1 }
 0x521   : > { %v5795_v11 = vpop.f32.mrf.mxu1 }
 0x523   : > { %v5796_v5 = vpop.f32.mrf.mxu1 }
 0x525   : > { %v4974_v18 = vpop.f32.mrf.mxu1 }
 0x526   : > { %v4975_v52 = vadd.f32 %v4974_v18, %v4902_v1 }
 0x527   : > { %v5817_v56 = vpop.f32.mrf.mxu1 }
 0x528   : > { %v5013_v39 = vmax.f32 %v4975_v52, 0.0  ;;  %v4921_v56 = vadd.f32 %v5785_v30, %v4848_v48  ;;  %v4861_v30 = vadd.f32 %v9098_v0, %v9115_v46 }
 0x529   : > { %v4977_v28 = vpop.f32.mrf.mxu1 }
 0x52a   : > { %v4978_v36 = vadd.f32 %v4977_v28, %v4905_v44 }
 0x52b   : > { %v5818_v45 = vpop.f32.mrf.mxu1 }
 0x52c   : > { %v5014_v32 = vmax.f32 %v4978_v36, 0.0 }
 0x52d   : > { %v4982_v59 = vpop.f32.mrf.mxu1 }
 0x52e   : > { %v5023_v29 = vpack.c.bf16 %v5014_v32, %v5013_v39  ;;  %v5582_v21 = vpack.c.bf16 %v5014_v32, %v5014_v32  ;;  %v4983_v12 = vadd.f32 %v4982_v59, %v4910_v25  ;;  %v5791_v59 = vadd.f32 %v9106_v23, %v9104_v13 }
 0x52f   : > { %v5821_v3 = vpop.f32.mrf.mxu1  ;;  %v5794_v23 = vadd.f32 %v9110_v7, %v9108_v53  ;;  %v5120_v53 = vld [vmem:[%s9124_s12 + $0x10] sm:$0x3] }
 0x530   : > { %v5031_v57 = vsel %vm5029_vm14, %v5023_v29, %v5030_v42  ;;  %v5040_v63 = vshll.u32 %v5582_v21, 16  ;;  %v5043_v62 = vshrl.u32 %v5582_v21, 16  ;;  %v5015_v26 = vmax.f32 %v4983_v12, 0.0 }
 0x531   : > { %5032 = vst [vmem:[%s9124_s12] sm:$0xf] %v5031_v57  ;;  %v4985_v47 = vpop.f32.mrf.mxu1  ;;  %v4926_v12 = vadd.f32 %v5788_v49, %v4853_v34  ;;  %v4856_v57 = vadd.f32 %v9096_v50, %v9115_v46  ;;  %vm5148_vm14 = vcmask 516096  }
 0x532   : > { %v5042_v15 = vrot.slane %v5040_v63, 6  ;;  %v5045_v55 = vrot.slane %v5043_v62, 5  ;;  %v5583_v10 = vpack.c.bf16 %v5015_v26, %v5015_v26  ;;  %v4986_v19 = vadd.f32 %v4985_v47, %v4913_v22  ;;  %vm5163_vm2 = vmand %vm5148_vm14, %vm2546_vm7 }
 0x533   : > { %v5822_v40 = vpop.f32.mrf.mxu1  ;;  %v4929_v50 = vadd.f32 %v5791_v59, %v4856_v57 }
 0x534   : > { %v5046_v4 = vor.u32 %v5045_v55, %v5042_v15  ;;  %v5049_v60 = vshll.u32 %v5583_v10, 16  ;;  %v5065_v11 = vrot.slane %v5583_v10, 7  ;;  %v5016_v41 = vmax.f32 %v4986_v19, 0.0 }
 0x535   : > { %v4990_v5 = vpop.f32.mrf.mxu1 }
 0x536   : > { %v5047_v27 = vrot.slane %v5046_v4, 4  ;;  %v5051_v37 = vrot.slane %v5049_v60, 6  ;;  %5072 = vst.msk [vmem:[%s9124_s12 + $0x4] sm:$0x8] %vm5055_vm1, %v5065_v11  ;;  %v5584_v61 = vpack.c.bf16 %v5016_v41, %v5016_v41  ;;  %v5066_v18 = vrot.slane %v5065_v11, 4 }
 0x537   : > { %v4991_v1 = vadd.f32 %v4990_v5, %v4918_v17  ;;  %v5825_v2 = vpop.f32.mrf.mxu1 }
 0x538   : > { %v5058_v54 = vld [vmem:[%s9124_s12] sm:$0x8]  ;;  %v5052_v52 = vsel %vm6290_vm8, %v5047_v27, %v5051_v37  ;;  %v5067_v28 = vrot.slane %v5584_v61, 7  ;;  %v5082_v14 = vshrl.u32 %v5584_v61, 16  ;;  %v5085_v36 = vshll.u32 %v5584_v61, 16 }
 0x539   : > { %v5059_v38 = vsel %vm9135_vm0, %v5042_v15, %v5058_v54  ;;  %5062 = vst.msk [vmem:[%s9124_s12 + $0x4] sm:$0x7] %vm5061_vm5, %v5052_v52  ;;  %v5017_v58 = vmax.f32 %v4991_v1, 0.0  ;;  %v4993_v24 = vpop.f32.mrf.mxu1  ;;  %vm5102_vm8 = vcmask 519170   ;;  %v4934_v27 = vadd.f32 %v5794_v23, %v4861_v30 }
 0x53a   : > { %5060 = vst [vmem:[%s9124_s12] sm:$0x8] %v5059_v38  ;;  %v5068_v45 = vsel %vm6556_vm6, %v5066_v18, %v5067_v28  ;;  %v5084_v39 = vrot.slane %v5082_v14, 4  ;;  %v5087_v32 = vrot.slane %v5085_v36, 5  ;;  %v4994_v25 = vadd.f32 %v4993_v24, %v4921_v56 }
 0x53b   : > { %v5076_v8 = vsel %vm9148_vm12, %v5068_v45, %v5075_v33  ;;  %v5585_v42 = vpack.c.bf16 %v5017_v58, %v5017_v58  ;;  %v5826_v31 = vpop.f32.mrf.mxu1  ;;  %vm5103_vm6 = vsmask.f32 7946  ;;  %v5164_v58 = vld [vmem:[%s9124_s12 + $0x18] sm:$0x1] }
 0x53c   : > { %5077 = vst [vmem:[%s9124_s12 + $0x8] sm:$0x7] %v5076_v8  ;;  %v5088_v29 = vor.u32 %v5087_v32, %v5084_v39  ;;  %v5018_v21 = vmax.f32 %v4994_v25, 0.0  ;;  %vm5104_vm10 = vmand %vm5102_vm8, %vm5103_vm6 }
 0x53d   : > { %v5091_v3 = vshll.u32 %v5585_v42, 16  ;;  %v5095_v22 = vshrl.u32 %v5585_v42, 16  ;;  %v4998_v20 = vpop.f32.mrf.mxu1 }
 0x53e   : > { %v5089_v63 = vrot.slane %v5088_v29, 4  ;;  %v5586_v62 = vpack.c.bf16 %v5018_v21, %v5018_v21  ;;  %v4999_v26 = vadd.f32 %v4998_v20, %v4926_v12 }
 0x53f   : > { %v5093_v9 = vrot.slane %v5091_v3, 5  ;;  %v5097_v47 = vrot.slane %v5095_v22, 4  ;;  %v5829_v13 = vpop.f32.mrf.mxu1 }
 0x540   : > { %v5112_v15 = vrot.slane %v5586_v62, 6  ;;  %v5019_v10 = vmax.f32 %v4999_v26, 0.0 }
 0x541   : > { %v5094_v19 = vsel %vm6266_vm3, %v5089_v63, %v5093_v9  ;;  %v5098_v51 = vor.u32 %v5097_v47, %v5093_v9  ;;  %v5001_v7 = vpop.f32.mrf.mxu1  ;;  %vm5142_vm3 = vcmask 519169  }
 0x542   : > { %v5113_v40 = vrot.slane %v5112_v15, 4  ;;  %5117 = vst.msk [vmem:[%s9124_s12 + $0xc] sm:$0xc] %vm5102_vm8, %v5112_v15  ;;  %v5587_v4 = vpack.c.bf16 %v5019_v10, %v5019_v10  ;;  %v5002_v60 = vadd.f32 %v5001_v7, %v4929_v50  ;;  %vm5144_vm1 = vmand %vm5142_vm3, %vm5143_vm13 }
 0x543   : > { %v5099_v11 = vrot.slane %v5098_v51, 4  ;;  %v5105_v35 = vld [vmem:[%s9124_s12 + $0x8] sm:$0xc]  ;;  %v5830_v41 = vpop.f32.mrf.mxu1 }
 0x544   : > { %v5106_v48 = vsel %vm5104_vm10, %v5094_v19, %v5105_v35  ;;  %v5121_v17 = vsel %vm9172_vm15, %v5113_v40, %v5120_v53  ;;  %v5129_v5 = vshrl.u32 %v5587_v4, 16  ;;  %v5020_v43 = vmax.f32 %v5002_v60, 0.0 }
 0x545   : > { %5109 = vst.msk [vmem:[%s9124_s12 + $0xc] sm:$0x3] %vm5108_vm4, %v5099_v11  ;;  %5107 = vst [vmem:[%s9124_s12 + $0x8] sm:$0xc] %v5106_v48  ;;  %v5006_v0 = vpop.f32.mrf.mxu1  ;;  %v5132_v1 = vshll.u32 %v5587_v4, 16 }
 0x546   : > { %5122 = vst [vmem:[%s9124_s12 + $0x10] sm:$0x3] %v5121_v17  ;;  %v5131_v46 = vrot.slane %v5129_v5, 7  ;;  %v5007_v37 = vadd.f32 %v5006_v0, %v4934_v27  ;;  %v5588_v61 = vpack.c.bf16 %v5020_v43, %v5020_v43 }
 0x547   : > { %v5833_v49 = vpop.f32.mrf.mxu1 }
 0x548   : > { %v5135_v18 = vrot.slane %v5131_v46, 4  ;;  %v5021_v33 = vmax.f32 %v5007_v37, 0.0  ;;  %v5137_v2 = vshll.u32 %v5588_v61, 16  ;;  %v5134_v52 = vor.u32 %v5132_v1, %v5131_v46 }
 0x549   : > { %v5009_v56 = vpop.f32.mrf.mxu1  ;;  %v5513_v36 = vrot.slane %v5588_v61, 9 }
 0x54a   : > { %v5589_v54 = vpack.c.bf16 %v5021_v33, %v5021_v33  ;;  %v5139_v44 = vsel %vm6599_vm11, %v5135_v18, %v5137_v2 }
 0x54b   : > { %v5834_v28 = vpop.f32.mrf.mxu1  ;;  %5149 = vst.msk [vmem:[%s9124_s12 + $0x14] sm:$0x1] %vm5148_vm14, %v5139_v44 }
 0x54c   : > { %v5155_v34 = vrot.slane %v5589_v54, 5 }
 0x54d   : > { %v5145_v14 = vld [vmem:[%s9124_s12 + $0x10] sm:$0xe] }
 0x54e   : > { %v5146_v38 = vsel %vm5144_vm1, %v5134_v52, %v5145_v14  ;;  %v5156_v24 = vsel %vm6311_vm9, %v5513_v36, %v5155_v34  ;;  %v5157_v45 = vrot.slane %v5155_v34, 4 }
 0x54f   : > { %5147 = vst [vmem:[%s9124_s12 + $0x10] sm:$0xe] %v5146_v38  ;;  %5161 = vst.msk [vmem:[%s9124_s12 + $0x14] sm:$0xe] %vm5142_vm3, %v5156_v24 }
 0x550   : > { %v5165_v39 = vsel %vm5163_vm2, %v5157_v45, %v5164_v58 }
 0x551   : > { %5166 = vst [vmem:[%s9124_s12 + $0x18] sm:$0x1] %v5165_v39 }
 0x552 PF: > { %s17_s24 = sadd.s32 1, %s6085_s24  }
 0x553   : > { %p14_p4 = scmp.ge.s32.totalorder %s17_s24, 4  }
 0x555   :  { %16 = sbr.rel (!%p14_p4) target bundleno = 1 (0x1), region = 78 }

// kernel: cnn_forward.3
= control target key start
LH: loop header
LB: loop body
LE: loop exit
PB: predicated region body
PF: predicated region fallthrough
CT: control target
= control target key end

     0   :  { %v806_v36 = vlaneseq  ;;  %v8039_v37 = vmov 1966171168   ;;  %vm4935_vm0 = vcmask 523264   ;;  %s10673_s0 = inlined_call_operand.vmem [shape: bf16[2,3136], index: 0, kind: input, shape index: {}]   ;;  %s10674_s1 = inlined_call_operand.vmem [shape: bf16[3136,512], index: 1, kind: input, shape index: {}]   ;;  %s10675_s2 = inlined_call_operand.vmem [shape: f32[1,512], index: 2, kind: input, shape index: {}]   ;;  %s10676_s3 = inlined_call_operand.hbm [shape: f32[2,512], index: 3, kind: output, shape index: {}]  }
   0x1   :  { %v6837_v0 = vld [vmem:[%s10674_s1 + $0xe4] ss:$16 sps:$4 sm:$0xff]   ;;  %v6841_v2 = vld [vmem:[%s10674_s1 + $0xe0] ss:$16 sps:$4 sm:$0xff]   ;;  %v832_v38 = vunpack.c.l.s4 %v8039_v37 }
   0x2   :  { %v6839_v1 = vld [vmem:[%s10674_s1 + $0x2e4] ss:$16 sps:$4 sm:$0xff]   ;;  %4939 = vmatprep.subr.bf16.mxu0 %v6837_v0  ;;  %v6842_v3 = vld [vmem:[%s10674_s1 + $0x2e0] ss:$16 sps:$4 sm:$0xff]   ;;  %v8180_v42 = vshrl.u32 %v806_v36, 7 }
   0x3   :  { %4980 = vmatprep.subr.bf16.mxu1 %v6839_v1  ;;  %v6843_v4 = vld [vmem:[%s10674_s1 + $0xc4] ss:$16 sps:$4 sm:$0xff]   ;;  %4940 = vmatpush1.bf16.msra.mxu0 %v6841_v2  ;;  %v6847_v6 = vld [vmem:[%s10674_s1 + $0xc0] ss:$16 sps:$4 sm:$0xff]   ;;  %v833_v43 = vunpack.c.0.s8 %v832_v38 }
   0x4   :  { %4981 = vmatpush1.bf16.msra.mxu1 %v6842_v3  ;;  %v6845_v5 = vld [vmem:[%s10674_s1 + $0x2c4] ss:$16 sps:$4 sm:$0xff]   ;;  %4941 = vmatprep.subr.bf16.mxu0 %v6843_v4  ;;  %v6848_v7 = vld [vmem:[%s10674_s1 + $0x2c0] ss:$16 sps:$4 sm:$0xff]  }
   0x5   :  { %4982 = vmatprep.subr.bf16.mxu1 %v6845_v5  ;;  %v6849_v8 = vld [vmem:[%s10674_s1 + $0xa4] ss:$16 sps:$4 sm:$0xff]   ;;  %v6853_v10 = vld [vmem:[%s10674_s1 + $0xa0] ss:$16 sps:$4 sm:$0xff]   ;;  %v8198_v49 = vsub.s32 %v833_v43, %v8180_v42 }
   0x6   :  { %v6851_v9 = vld [vmem:[%s10674_s1 + $0x2a4] ss:$16 sps:$4 sm:$0xff]   ;;  %v6854_v11 = vld [vmem:[%s10674_s1 + $0x2a0] ss:$16 sps:$4 sm:$0xff]  }
   0x7   :  { %4942 = vmatpush1.bf16.msra.mxu0 %v6847_v6  ;;  %v6855_v12 = vld [vmem:[%s10674_s1 + $0x84] ss:$16 sps:$4 sm:$0xff]   ;;  %v6859_v14 = vld [vmem:[%s10674_s1 + $0x80] ss:$16 sps:$4 sm:$0xff]  }
   0x8   :  { %4983 = vmatpush1.bf16.msra.mxu1 %v6848_v7  ;;  %4943 = vmatprep.subr.bf16.mxu0 %v6849_v8  ;;  %v6857_v13 = vld [vmem:[%s10674_s1 + $0x284] ss:$16 sps:$4 sm:$0xff]   ;;  %v6860_v15 = vld [vmem:[%s10674_s1 + $0x280] ss:$16 sps:$4 sm:$0xff]  }
   0x9   :  { %4984 = vmatprep.subr.bf16.mxu1 %v6851_v9  ;;  %v6861_v16 = vld [vmem:[%s10674_s1 + $0x64] ss:$16 sps:$4 sm:$0xff]   ;;  %v6865_v18 = vld [vmem:[%s10674_s1 + $0x60] ss:$16 sps:$4 sm:$0xff]  }
   0xa   :  { %v6863_v17 = vld [vmem:[%s10674_s1 + $0x264] ss:$16 sps:$4 sm:$0xff]   ;;  %v6866_v19 = vld [vmem:[%s10674_s1 + $0x260] ss:$16 sps:$4 sm:$0xff]  }
   0xb   :  { %4944 = vmatpush1.bf16.msra.mxu0 %v6853_v10  ;;  %v6867_v20 = vld [vmem:[%s10674_s1 + $0x44] ss:$16 sps:$4 sm:$0xff]   ;;  %v6871_v22 = vld [vmem:[%s10674_s1 + $0x40] ss:$16 sps:$4 sm:$0xff]  }
   0xc   :  { %4985 = vmatpush1.bf16.msra.mxu1 %v6854_v11  ;;  %4945 = vmatprep.subr.bf16.mxu0 %v6855_v12  ;;  %v6869_v21 = vld [vmem:[%s10674_s1 + $0x244] ss:$16 sps:$4 sm:$0xff]   ;;  %v6872_v23 = vld [vmem:[%s10674_s1 + $0x240] ss:$16 sps:$4 sm:$0xff]  }
   0xd   :  { %4986 = vmatprep.subr.bf16.mxu1 %v6857_v13  ;;  %v6873_v24 = vld [vmem:[%s10674_s1 + $0x24] ss:$16 sps:$4 sm:$0xff]   ;;  %v6877_v26 = vld [vmem:[%s10674_s1 + $0x20] ss:$16 sps:$4 sm:$0xff]  }
   0xe   :  { %v6875_v25 = vld [vmem:[%s10674_s1 + $0x224] ss:$16 sps:$4 sm:$0xff]   ;;  %v6878_v27 = vld [vmem:[%s10674_s1 + $0x220] ss:$16 sps:$4 sm:$0xff]  }
   0xf   :  { %4946 = vmatpush1.bf16.msra.mxu0 %v6859_v14  ;;  %v6879_v28 = vld [vmem:[%s10674_s1 + $0x4] ss:$16 sps:$4 sm:$0xff]   ;;  %v6883_v30 = vld [vmem:[%s10674_s1] ss:$16 sps:$4 sm:$0xff]  }
  0x10   :  { %4987 = vmatpush1.bf16.msra.mxu1 %v6860_v15  ;;  %4947 = vmatprep.subr.bf16.mxu0 %v6861_v16  ;;  %v6881_v29 = vld [vmem:[%s10674_s1 + $0x204] ss:$16 sps:$4 sm:$0xff]   ;;  %v6884_v31 = vld [vmem:[%s10674_s1 + $0x200] ss:$16 sps:$4 sm:$0xff]  }
  0x11   :  { %4988 = vmatprep.subr.bf16.mxu1 %v6863_v17  ;;  %v6885_v32 = vld [vmem:[%s10674_s1 + $0x1e4] ss:$16 sps:$4 sm:$0xff]   ;;  %v6889_v34 = vld [vmem:[%s10674_s1 + $0x1e0] ss:$16 sps:$4 sm:$0xff]  }
  0x12   :  { %v6887_v33 = vld [vmem:[%s10674_s1 + $0x3e4] ss:$16 sps:$4 sm:$0xff]   ;;  %v6890_v35 = vld [vmem:[%s10674_s1 + $0x3e0] ss:$16 sps:$4 sm:$0xff]  }
  0x13   :  { %4948 = vmatpush1.bf16.msra.mxu0 %v6865_v18  ;;  %v6891_v39 = vld [vmem:[%s10674_s1 + $0x1c4] ss:$16 sps:$4 sm:$0xff]   ;;  %v6895_v41 = vld [vmem:[%s10674_s1 + $0x1c0] ss:$16 sps:$4 sm:$0xff]  }
  0x14   :  { %4989 = vmatpush1.bf16.msra.mxu1 %v6866_v19  ;;  %4949 = vmatprep.subr.bf16.mxu0 %v6867_v20  ;;  %v6893_v40 = vld [vmem:[%s10674_s1 + $0x3c4] ss:$16 sps:$4 sm:$0xff]   ;;  %v6896_v44 = vld [vmem:[%s10674_s1 + $0x3c0] ss:$16 sps:$4 sm:$0xff]  }
  0x15   :  { %4990 = vmatprep.subr.bf16.mxu1 %v6869_v21  ;;  %v6897_v45 = vld [vmem:[%s10674_s1 + $0x1a4] ss:$16 sps:$4 sm:$0xff]   ;;  %v6901_v47 = vld [vmem:[%s10674_s1 + $0x1a0] ss:$16 sps:$4 sm:$0xff]  }
  0x16   :  { %v6899_v46 = vld [vmem:[%s10674_s1 + $0x3a4] ss:$16 sps:$4 sm:$0xff]   ;;  %v6902_v48 = vld [vmem:[%s10674_s1 + $0x3a0] ss:$16 sps:$4 sm:$0xff]  }
  0x17   :  { %4950 = vmatpush1.bf16.msra.mxu0 %v6871_v22  ;;  %v6903_v50 = vld [vmem:[%s10674_s1 + $0x184] ss:$16 sps:$4 sm:$0xff]   ;;  %v6907_v53 = vld [vmem:[%s10674_s1 + $0x180] ss:$16 sps:$4 sm:$0xff]  }
  0x18   :  { %4991 = vmatpush1.bf16.msra.mxu1 %v6872_v23  ;;  %4951 = vmatprep.subr.bf16.mxu0 %v6873_v24  ;;  %v6905_v51 = vld [vmem:[%s10674_s1 + $0x384] ss:$16 sps:$4 sm:$0xff]   ;;  %v6908_v55 = vld [vmem:[%s10674_s1 + $0x380] ss:$16 sps:$4 sm:$0xff]  }
  0x19   :  { %4992 = vmatprep.subr.bf16.mxu1 %v6875_v25  ;;  %v16_v52 = vld [vmem:[%s10673_s0] sm:$0xff] }
  0x1a   :  { %v837_v54 = vrot.slane %v16_v52, %v8198_v49  ;;  %v6909_v56 = vld [vmem:[%s10674_s1 + $0x164] ss:$16 sps:$4 sm:$0xff]   ;;  %v6913_v59 = vld [vmem:[%s10674_s1 + $0x160] ss:$16 sps:$4 sm:$0xff]   ;;  %v830_v1 = vcombine.high %v16_v52, %v16_v52 }
  0x1b   :  { %4952 = vmatpush1.bf16.msra.mxu0 %v6877_v26  ;;  %v6911_v57 = vld [vmem:[%s10674_s1 + $0x364] ss:$16 sps:$4 sm:$0xff]   ;;  %v6914_v61 = vld [vmem:[%s10674_s1 + $0x360] ss:$16 sps:$4 sm:$0xff]  }
  0x1c   :  { %4993 = vmatpush1.bf16.msra.mxu1 %v6878_v27  ;;  %4953 = vmatprep.subr.bf16.mxu0 %v6879_v28  ;;  %v845_v58 = vcombine.high %v837_v54, %v837_v54  ;;  %v6915_v62 = vld [vmem:[%s10674_s1 + $0x144] ss:$16 sps:$4 sm:$0xff]   ;;  %v6919_v2 = vld [vmem:[%s10674_s1 + $0x140] ss:$16 sps:$4 sm:$0xff]   ;;  %v8256_v6 = vrot.slane %v830_v1, %v8198_v49  ;;  %v8276_v13 = vrot.slane %v837_v54, %v8198_v49 }
  0x1d   :  { %4994 = vmatprep.subr.bf16.mxu1 %v6881_v29  ;;  %v6917_v63 = vld [vmem:[%s10674_s1 + $0x344] ss:$16 sps:$4 sm:$0xff]   ;;  %v6920_v3 = vld [vmem:[%s10674_s1 + $0x340] ss:$16 sps:$4 sm:$0xff]  }
  0x1e   :  { %v8226_v60 = vrot.slane %v845_v58, %v8198_v49  ;;  %v6921_v4 = vld [vmem:[%s10674_s1 + $0x124] ss:$16 sps:$4 sm:$0xff]   ;;  %v6925_v7 = vld [vmem:[%s10674_s1 + $0x120] ss:$16 sps:$4 sm:$0xff]   ;;  %v846_v11 = vcombine.high %v8256_v6, %v8256_v6  ;;  %v8292_v18 = vcombine.high %v8276_v13, %v8276_v13 }
  0x1f   :  { %4954 = vmatpush1.bf16.msra.mxu0 %v6883_v30  ;;  %v6923_v5 = vld [vmem:[%s10674_s1 + $0x324] ss:$16 sps:$4 sm:$0xff]   ;;  %v6926_v8 = vld [vmem:[%s10674_s1 + $0x320] ss:$16 sps:$4 sm:$0xff]  }
  0x20   :  { %4995 = vmatpush1.bf16.msra.mxu1 %v6884_v31  ;;  %4955 = vmatprep.subr.bf16.mxu0 %v6885_v32  ;;  %v8239_v0 = vcombine.high %v8226_v60, %v8226_v60  ;;  %v6927_v9 = vld [vmem:[%s10674_s1 + $0x104] ss:$16 sps:$4 sm:$0xff]   ;;  %v6931_v12 = vld [vmem:[%s10674_s1 + $0x100] ss:$16 sps:$4 sm:$0xff]   ;;  %v8288_v17 = vrot.slane %v846_v11, %v8198_v49 }
  0x21   :  { %4996 = vmatprep.subr.bf16.mxu1 %v6887_v33  ;;  %4971 = vmatprep.mubr.bf16.mxu0 %v8226_v60  ;;  %v6929_v10 = vld [vmem:[%s10674_s1 + $0x304] ss:$16 sps:$4 sm:$0xff]   ;;  %v6932_v14 = vld [vmem:[%s10674_s1 + $0x300] ss:$16 sps:$4 sm:$0xff]  }
  0x22   :  { %5012 = vmatprep.mubr.bf16.mxu1 %v8239_v0  ;;  %v6935_v15 = vld [vmem:[%s10674_s1 + $0x4e4] ss:$16 sps:$4 sm:$0xff]   ;;  %v6933_v19 = vld [vmem:[%s10674_s1 + $0x4e0] ss:$16 sps:$4 sm:$0xff]   ;;  %v8308_v23 = vcombine.high %v8288_v17, %v8288_v17 }
  0x23   :  { %4956 = vmatpush2.bf16.msra.mxu0 %v6889_v34  ;;  %v6938_v16 = vld [vmem:[%s10674_s1 + $0x6e4] ss:$16 sps:$4 sm:$0xff]   ;;  %v6936_v20 = vld [vmem:[%s10674_s1 + $0x6e0] ss:$16 sps:$4 sm:$0xff]  }
  0x24   :  { %4997 = vmatpush2.bf16.msra.mxu1 %v6890_v35  ;;  %4957 = vmatprep.subr.bf16.mxu0 %v6891_v39  ;;  %v6941_v21 = vld [vmem:[%s10674_s1 + $0x4c4] ss:$16 sps:$4 sm:$0xff]   ;;  %v6939_v24 = vld [vmem:[%s10674_s1 + $0x4c0] ss:$16 sps:$4 sm:$0xff]  }
  0x25   :  { %4998 = vmatprep.subr.bf16.mxu1 %v6893_v40  ;;  %v6944_v22 = vld [vmem:[%s10674_s1 + $0x6c4] ss:$16 sps:$4 sm:$0xff]   ;;  %v6942_v25 = vld [vmem:[%s10674_s1 + $0x6c0] ss:$16 sps:$4 sm:$0xff]  }
  0x26   :  { %v6947_v26 = vld [vmem:[%s10674_s1 + $0x4a4] ss:$16 sps:$4 sm:$0xff]   ;;  %v6945_v28 = vld [vmem:[%s10674_s1 + $0x4a0] ss:$16 sps:$4 sm:$0xff]  }
  0x27   :  { %4958 = vmatpush2.bf16.msra.mxu0 %v6895_v41  ;;  %v6950_v27 = vld [vmem:[%s10674_s1 + $0x6a4] ss:$16 sps:$4 sm:$0xff]   ;;  %v6948_v29 = vld [vmem:[%s10674_s1 + $0x6a0] ss:$16 sps:$4 sm:$0xff]  }
  0x28   :  { %4999 = vmatpush2.bf16.msra.mxu1 %v6896_v44  ;;  %4959 = vmatprep.subr.bf16.mxu0 %v6897_v45  ;;  %v6953_v30 = vld [vmem:[%s10674_s1 + $0x484] ss:$16 sps:$4 sm:$0xff]   ;;  %v6951_v32 = vld [vmem:[%s10674_s1 + $0x480] ss:$16 sps:$4 sm:$0xff]  }
  0x29   :  { %5000 = vmatprep.subr.bf16.mxu1 %v6899_v46  ;;  %v6956_v31 = vld [vmem:[%s10674_s1 + $0x684] ss:$16 sps:$4 sm:$0xff]   ;;  %v6954_v33 = vld [vmem:[%s10674_s1 + $0x680] ss:$16 sps:$4 sm:$0xff]  }
  0x2a   :  { %v6959_v34 = vld [vmem:[%s10674_s1 + $0x464] ss:$16 sps:$4 sm:$0xff]   ;;  %v6957_v36 = vld [vmem:[%s10674_s1 + $0x460] ss:$16 sps:$4 sm:$0xff]  }
  0x2b   :  { %4960 = vmatpush2.bf16.msra.mxu0 %v6901_v47  ;;  %v6962_v35 = vld [vmem:[%s10674_s1 + $0x664] ss:$16 sps:$4 sm:$0xff]   ;;  %v6960_v37 = vld [vmem:[%s10674_s1 + $0x660] ss:$16 sps:$4 sm:$0xff]  }
  0x2c   :  { %5001 = vmatpush2.bf16.msra.mxu1 %v6902_v48  ;;  %4961 = vmatprep.subr.bf16.mxu0 %v6903_v50  ;;  %v6965_v38 = vld [vmem:[%s10674_s1 + $0x444] ss:$16 sps:$4 sm:$0xff]   ;;  %v6963_v40 = vld [vmem:[%s10674_s1 + $0x440] ss:$16 sps:$4 sm:$0xff]  }
  0x2d   :  { %5002 = vmatprep.subr.bf16.mxu1 %v6905_v51  ;;  %v6968_v39 = vld [vmem:[%s10674_s1 + $0x644] ss:$16 sps:$4 sm:$0xff]   ;;  %v6966_v41 = vld [vmem:[%s10674_s1 + $0x640] ss:$16 sps:$4 sm:$0xff]  }
  0x2e   :  { %v6971_v43 = vld [vmem:[%s10674_s1 + $0x424] ss:$16 sps:$4 sm:$0xff]   ;;  %v6969_v45 = vld [vmem:[%s10674_s1 + $0x420] ss:$16 sps:$4 sm:$0xff]  }
  0x2f   :  { %4962 = vmatpush2.bf16.msra.mxu0 %v6907_v53  ;;  %v6974_v44 = vld [vmem:[%s10674_s1 + $0x624] ss:$16 sps:$4 sm:$0xff]   ;;  %v6972_v46 = vld [vmem:[%s10674_s1 + $0x620] ss:$16 sps:$4 sm:$0xff]  }
  0x30   :  { %5003 = vmatpush2.bf16.msra.mxu1 %v6908_v55  ;;  %4963 = vmatprep.subr.bf16.mxu0 %v6909_v56  ;;  %v6977_v47 = vld [vmem:[%s10674_s1 + $0x404] ss:$16 sps:$4 sm:$0xff]   ;;  %v6975_v50 = vld [vmem:[%s10674_s1 + $0x400] ss:$16 sps:$4 sm:$0xff]  }
  0x31   :  { %5004 = vmatprep.subr.bf16.mxu1 %v6911_v57  ;;  %v6980_v48 = vld [vmem:[%s10674_s1 + $0x604] ss:$16 sps:$4 sm:$0xff]   ;;  %v6978_v51 = vld [vmem:[%s10674_s1 + $0x600] ss:$16 sps:$4 sm:$0xff]  }
  0x32   :  { %v6983_v52 = vld [vmem:[%s10674_s1 + $0x5e4] ss:$16 sps:$4 sm:$0xff]   ;;  %v6981_v54 = vld [vmem:[%s10674_s1 + $0x5e0] ss:$16 sps:$4 sm:$0xff]  }
  0x33   :  { %4964 = vmatpush2.bf16.msra.mxu0 %v6913_v59  ;;  %v6986_v53 = vld [vmem:[%s10674_s1 + $0x7e4] ss:$16 sps:$4 sm:$0xff]   ;;  %v6984_v55 = vld [vmem:[%s10674_s1 + $0x7e0] ss:$16 sps:$4 sm:$0xff]  }
  0x34   :  { %5005 = vmatpush2.bf16.msra.mxu1 %v6914_v61  ;;  %4965 = vmatprep.subr.bf16.mxu0 %v6915_v62  ;;  %v6989_v56 = vld [vmem:[%s10674_s1 + $0x5c4] ss:$16 sps:$4 sm:$0xff]   ;;  %v6987_v58 = vld [vmem:[%s10674_s1 + $0x5c0] ss:$16 sps:$4 sm:$0xff]  }
  0x35   :  { %5006 = vmatprep.subr.bf16.mxu1 %v6917_v63  ;;  %v6992_v57 = vld [vmem:[%s10674_s1 + $0x7c4] ss:$16 sps:$4 sm:$0xff]   ;;  %v6990_v59 = vld [vmem:[%s10674_s1 + $0x7c0] ss:$16 sps:$4 sm:$0xff]  }
  0x36   :  { %v6995_v61 = vld [vmem:[%s10674_s1 + $0x5a4] ss:$16 sps:$4 sm:$0xff]   ;;  %v6993_v63 = vld [vmem:[%s10674_s1 + $0x5a0] ss:$16 sps:$4 sm:$0xff]  }
  0x37   :  { %4966 = vmatpush2.bf16.msra.mxu0 %v6919_v2  ;;  %v6998_v62 = vld [vmem:[%s10674_s1 + $0x7a4] ss:$16 sps:$4 sm:$0xff]   ;;  %v6996_v1 = vld [vmem:[%s10674_s1 + $0x7a0] ss:$16 sps:$4 sm:$0xff]  }
  0x38   :  { %5007 = vmatpush2.bf16.msra.mxu1 %v6920_v3  ;;  %4967 = vmatprep.subr.bf16.mxu0 %v6921_v4  ;;  %v7001_v2 = vld [vmem:[%s10674_s1 + $0x584] ss:$16 sps:$4 sm:$0xff]   ;;  %v6999_v4 = vld [vmem:[%s10674_s1 + $0x580] ss:$16 sps:$4 sm:$0xff]  }
  0x39   :  { %5008 = vmatprep.subr.bf16.mxu1 %v6923_v5  ;;  %v7004_v3 = vld [vmem:[%s10674_s1 + $0x784] ss:$16 sps:$4 sm:$0xff]   ;;  %v7002_v5 = vld [vmem:[%s10674_s1 + $0x780] ss:$16 sps:$4 sm:$0xff]  }
  0x3a   :  { %v7013_v11 = vld [vmem:[%s10674_s1 + $0x544] ss:$16 sps:$4 sm:$0xff]  }
  0x3b   :  { %4968 = vmatpush2.bf16.msra.mxu0 %v6925_v7  ;;  %v7007_v7 = vld [vmem:[%s10674_s1 + $0x564] ss:$16 sps:$4 sm:$0xff]  }
  0x3c   :  { %5009 = vmatpush2.bf16.msra.mxu1 %v6926_v8  ;;  %4969 = vmatprep.subr.bf16.mxu0 %v6927_v9  ;;  %v7010_v8 = vld [vmem:[%s10674_s1 + $0x764] ss:$16 sps:$4 sm:$0xff]   ;;  %v7005_v9 = vld [vmem:[%s10674_s1 + $0x560] ss:$16 sps:$4 sm:$0xff]  }
  0x3d   :  { %5010 = vmatprep.subr.bf16.mxu1 %v6929_v10  ;;  %v7008_v10 = vld [vmem:[%s10674_s1 + $0x760] ss:$16 sps:$4 sm:$0xff]  }
  0x3f   :  { %4970 = vmatpush2.bf16.msra.mxu0 %v6931_v12  ;;  %v7016_v12 = vld [vmem:[%s10674_s1 + $0x744] ss:$16 sps:$4 sm:$0xff]  }
  0x40   :  { %5011 = vmatpush2.bf16.msra.mxu1 %v6932_v14  ;;  %5021 = vmatprep.subr.bf16.mxu0 %v6935_v15  ;;  %v7011_v14 = vld [vmem:[%s10674_s1 + $0x540] ss:$16 sps:$4 sm:$0xff]  }
  0x41   :  { %5062 = vmatprep.subr.bf16.mxu1 %v6938_v16  ;;  %v7014_v15 = vld [vmem:[%s10674_s1 + $0x740] ss:$16 sps:$4 sm:$0xff]   ;;  %v7019_v16 = vld [vmem:[%s10674_s1 + $0x524] ss:$16 sps:$4 sm:$0xff]  }
  0x42   :  { %4972 = vmatmul.mubr.bf16.vlgmr.msra.gmra.mxu0 %v8276_v13 }
  0x43   :  { %5013 = vmatmul.mubr.bf16.vlgmr.msra.gmra.mxu1 %v8292_v18  ;;  %5022 = vmatpush1.bf16.msra.mxu0 %v6933_v19  ;;  %v7022_v19 = vld [vmem:[%s10674_s1 + $0x724] ss:$16 sps:$4 sm:$0xff]  }
  0x44   :  { %5063 = vmatpush1.bf16.msra.mxu1 %v6936_v20  ;;  %5023 = vmatprep.subr.bf16.mxu0 %v6941_v21  ;;  %v7017_v20 = vld [vmem:[%s10674_s1 + $0x520] ss:$16 sps:$4 sm:$0xff]  }
  0x45   :  { %5064 = vmatprep.subr.bf16.mxu1 %v6944_v22  ;;  %5053 = vmatprep.mubr.bf16.mxu0 %v8288_v17  ;;  %v7020_v21 = vld [vmem:[%s10674_s1 + $0x720] ss:$16 sps:$4 sm:$0xff]   ;;  %v7025_v22 = vld [vmem:[%s10674_s1 + $0x504] ss:$16 sps:$4 sm:$0xff]  }
  0x46   :  { %5094 = vmatprep.mubr.bf16.mxu1 %v8308_v23 }
  0x47   :  { %5024 = vmatpush1.bf16.msra.mxu0 %v6939_v24  ;;  %v7028_v24 = vld [vmem:[%s10674_s1 + $0x704] ss:$16 sps:$4 sm:$0xff]  }
  0x48   :  { %5065 = vmatpush1.bf16.msra.mxu1 %v6942_v25  ;;  %5025 = vmatprep.subr.bf16.mxu0 %v6947_v26  ;;  %v7023_v25 = vld [vmem:[%s10674_s1 + $0x500] ss:$16 sps:$4 sm:$0xff]   ;;  %v8487_v26 = vrot.slane %v8256_v6, %v8198_v49 }
  0x49   :  { %5066 = vmatprep.subr.bf16.mxu1 %v6950_v27  ;;  %v7026_v27 = vld [vmem:[%s10674_s1 + $0x700] ss:$16 sps:$4 sm:$0xff]  }
  0x4a   :  { %v8500_v6 = vcombine.high %v8487_v26, %v8487_v26 }
  0x4b   :  { %5026 = vmatpush1.bf16.msra.mxu0 %v6945_v28  ;;  %v7032_v28 = vld [vmem:[%s10674_s1 + $0x8e4] ss:$16 sps:$4 sm:$0xff]  }
  0x4c   :  { %5067 = vmatpush1.bf16.msra.mxu1 %v6948_v29  ;;  %5027 = vmatprep.subr.bf16.mxu0 %v6953_v30  ;;  %v7035_v29 = vld [vmem:[%s10674_s1 + $0xae4] ss:$16 sps:$4 sm:$0xff]   ;;  %v7030_v30 = vld [vmem:[%s10674_s1 + $0x8e0] ss:$16 sps:$4 sm:$0xff]  }
  0x4d   :  { %5068 = vmatprep.subr.bf16.mxu1 %v6956_v31  ;;  %v7033_v31 = vld [vmem:[%s10674_s1 + $0xae0] ss:$16 sps:$4 sm:$0xff]  }
  0x4f   :  { %5028 = vmatpush1.bf16.msra.mxu0 %v6951_v32  ;;  %v8511_v32 = vld [vmem:[%s10673_s0 + $0x8] sm:$0xff] }
  0x50   :  { %5069 = vmatpush1.bf16.msra.mxu1 %v6954_v33  ;;  %5029 = vmatprep.subr.bf16.mxu0 %v6959_v34  ;;  %v7038_v33 = vld [vmem:[%s10674_s1 + $0x8c4] ss:$16 sps:$4 sm:$0xff]  }
  0x51   :  { %5070 = vmatprep.subr.bf16.mxu1 %v6962_v35  ;;  %v7041_v34 = vld [vmem:[%s10674_s1 + $0xac4] ss:$16 sps:$4 sm:$0xff]   ;;  %v8521_v35 = vrot.slane %v8511_v32, %v8198_v49 }
  0x53   :  { %5030 = vmatpush1.bf16.msra.mxu0 %v6957_v36  ;;  %v894_v36 = vcombine.high %v8521_v35, %v8521_v35 }
  0x54   :  { %5071 = vmatpush1.bf16.msra.mxu1 %v6960_v37  ;;  %5031 = vmatprep.subr.bf16.mxu0 %v6965_v38  ;;  %v7036_v37 = vld [vmem:[%s10674_s1 + $0x8c0] ss:$16 sps:$4 sm:$0xff]  }
  0x55   :  { %5072 = vmatprep.subr.bf16.mxu1 %v6968_v39  ;;  %v7039_v38 = vld [vmem:[%s10674_s1 + $0xac0] ss:$16 sps:$4 sm:$0xff]   ;;  %v7044_v39 = vld [vmem:[%s10674_s1 + $0x8a4] ss:$16 sps:$4 sm:$0xff]  }
  0x57   :  { %5032 = vmatpush1.bf16.msra.mxu0 %v6963_v40  ;;  %v7047_v40 = vld [vmem:[%s10674_s1 + $0xaa4] ss:$16 sps:$4 sm:$0xff]  }
  0x58   :  { %5073 = vmatpush1.bf16.msra.mxu1 %v6966_v41  ;;  %5033 = vmatprep.subr.bf16.mxu0 %v6971_v43  ;;  %v8540_v41 = vrot.slane %v894_v36, %v8198_v49  ;;  %v7108_v36 = vld [vmem:[%s10674_s1 + $0x940] ss:$16 sps:$4 sm:$0xff]  }
  0x59   :  { %5074 = vmatprep.subr.bf16.mxu1 %v6974_v44  ;;  %v7042_v44 = vld [vmem:[%s10674_s1 + $0x8a0] ss:$16 sps:$4 sm:$0xff]  }
  0x5a   :  { %v8545_v43 = vcombine.high %v8540_v41, %v8540_v41 }
  0x5b   :  { %5034 = vmatpush1.bf16.msra.mxu0 %v6969_v45  ;;  %v7045_v45 = vld [vmem:[%s10674_s1 + $0xaa0] ss:$16 sps:$4 sm:$0xff]  }
  0x5c   :  { %5075 = vmatpush1.bf16.msra.mxu1 %v6972_v46  ;;  %5035 = vmatprep.subr.bf16.mxu0 %v6977_v47  ;;  %v7050_v46 = vld [vmem:[%s10674_s1 + $0x884] ss:$16 sps:$4 sm:$0xff]  }
  0x5d   :  { %5076 = vmatprep.subr.bf16.mxu1 %v6980_v48  ;;  %v7053_v47 = vld [vmem:[%s10674_s1 + $0xa84] ss:$16 sps:$4 sm:$0xff]   ;;  %v7048_v48 = vld [vmem:[%s10674_s1 + $0x880] ss:$16 sps:$4 sm:$0xff]  }
  0x5f   :  { %5036 = vmatpush1.bf16.msra.mxu0 %v6975_v50  ;;  %v7051_v50 = vld [vmem:[%s10674_s1 + $0xa80] ss:$16 sps:$4 sm:$0xff]  }
  0x60   :  { %5077 = vmatpush1.bf16.msra.mxu1 %v6978_v51  ;;  %5037 = vmatprep.subr.bf16.mxu0 %v6983_v52  ;;  %v7056_v51 = vld [vmem:[%s10674_s1 + $0x864] ss:$16 sps:$4 sm:$0xff]  }
  0x61   :  { %5078 = vmatprep.subr.bf16.mxu1 %v6986_v53  ;;  %v7059_v52 = vld [vmem:[%s10674_s1 + $0xa64] ss:$16 sps:$4 sm:$0xff]   ;;  %v7054_v53 = vld [vmem:[%s10674_s1 + $0x860] ss:$16 sps:$4 sm:$0xff]  }
  0x63   :  { %5038 = vmatpush2.bf16.msra.mxu0 %v6981_v54  ;;  %v7057_v54 = vld [vmem:[%s10674_s1 + $0xa60] ss:$16 sps:$4 sm:$0xff]  }
  0x64   :  { %5079 = vmatpush2.bf16.msra.mxu1 %v6984_v55  ;;  %5039 = vmatprep.subr.bf16.mxu0 %v6989_v56  ;;  %v7062_v55 = vld [vmem:[%s10674_s1 + $0x844] ss:$16 sps:$4 sm:$0xff]  }
  0x65   :  { %5080 = vmatprep.subr.bf16.mxu1 %v6992_v57  ;;  %v7065_v56 = vld [vmem:[%s10674_s1 + $0xa44] ss:$16 sps:$4 sm:$0xff]   ;;  %v7060_v57 = vld [vmem:[%s10674_s1 + $0x840] ss:$16 sps:$4 sm:$0xff]  }
  0x67   :  { %5040 = vmatpush2.bf16.msra.mxu0 %v6987_v58  ;;  %v7063_v58 = vld [vmem:[%s10674_s1 + $0xa40] ss:$16 sps:$4 sm:$0xff]  }
  0x68   :  { %5081 = vmatpush2.bf16.msra.mxu1 %v6990_v59  ;;  %5041 = vmatprep.subr.bf16.mxu0 %v6995_v61  ;;  %v7068_v59 = vld [vmem:[%s10674_s1 + $0x824] ss:$16 sps:$4 sm:$0xff]  }
  0x69   :  { %5082 = vmatprep.subr.bf16.mxu1 %v6998_v62  ;;  %v7071_v61 = vld [vmem:[%s10674_s1 + $0xa24] ss:$16 sps:$4 sm:$0xff]   ;;  %v7066_v62 = vld [vmem:[%s10674_s1 + $0x820] ss:$16 sps:$4 sm:$0xff]  }
  0x6b   :  { %5042 = vmatpush2.bf16.msra.mxu0 %v6993_v63  ;;  %v7069_v63 = vld [vmem:[%s10674_s1 + $0xa20] ss:$16 sps:$4 sm:$0xff]  }
  0x6c   :  { %5083 = vmatpush2.bf16.msra.mxu1 %v6996_v1  ;;  %5043 = vmatprep.subr.bf16.mxu0 %v7001_v2  ;;  %v7074_v1 = vld [vmem:[%s10674_s1 + $0x804] ss:$16 sps:$4 sm:$0xff]  }
  0x6d   :  { %5084 = vmatprep.subr.bf16.mxu1 %v7004_v3  ;;  %v7077_v2 = vld [vmem:[%s10674_s1 + $0xa04] ss:$16 sps:$4 sm:$0xff]   ;;  %v7072_v3 = vld [vmem:[%s10674_s1 + $0x800] ss:$16 sps:$4 sm:$0xff]  }
  0x6f   :  { %5044 = vmatpush2.bf16.msra.mxu0 %v6999_v4  ;;  %v7075_v4 = vld [vmem:[%s10674_s1 + $0xa00] ss:$16 sps:$4 sm:$0xff]  }
  0x70   :  { %5085 = vmatpush2.bf16.msra.mxu1 %v7002_v5  ;;  %5045 = vmatprep.subr.bf16.mxu0 %v7007_v7  ;;  %v7080_v5 = vld [vmem:[%s10674_s1 + $0x9e4] ss:$16 sps:$4 sm:$0xff]  }
  0x71   :  { %5086 = vmatprep.subr.bf16.mxu1 %v7010_v8  ;;  %v7083_v7 = vld [vmem:[%s10674_s1 + $0xbe4] ss:$16 sps:$4 sm:$0xff]   ;;  %v7078_v8 = vld [vmem:[%s10674_s1 + $0x9e0] ss:$16 sps:$4 sm:$0xff]  }
  0x73   :  { %5046 = vmatpush2.bf16.msra.mxu0 %v7005_v9  ;;  %v7081_v9 = vld [vmem:[%s10674_s1 + $0xbe0] ss:$16 sps:$4 sm:$0xff]  }
  0x74   :  { %5087 = vmatpush2.bf16.msra.mxu1 %v7008_v10  ;;  %5047 = vmatprep.subr.bf16.mxu0 %v7013_v11  ;;  %v7086_v10 = vld [vmem:[%s10674_s1 + $0x9c4] ss:$16 sps:$4 sm:$0xff]  }
  0x75   :  { %5088 = vmatprep.subr.bf16.mxu1 %v7016_v12  ;;  %v7089_v11 = vld [vmem:[%s10674_s1 + $0xbc4] ss:$16 sps:$4 sm:$0xff]   ;;  %v7084_v12 = vld [vmem:[%s10674_s1 + $0x9c0] ss:$16 sps:$4 sm:$0xff]  }
  0x77   :  { %5048 = vmatpush2.bf16.msra.mxu0 %v7011_v14  ;;  %v7087_v14 = vld [vmem:[%s10674_s1 + $0xbc0] ss:$16 sps:$4 sm:$0xff]  }
  0x78   :  { %5089 = vmatpush2.bf16.msra.mxu1 %v7014_v15  ;;  %5049 = vmatprep.subr.bf16.mxu0 %v7019_v16  ;;  %v7092_v15 = vld [vmem:[%s10674_s1 + $0x9a4] ss:$16 sps:$4 sm:$0xff]  }
  0x79   :  { %5090 = vmatprep.subr.bf16.mxu1 %v7022_v19  ;;  %v7095_v16 = vld [vmem:[%s10674_s1 + $0xba4] ss:$16 sps:$4 sm:$0xff]   ;;  %v7090_v19 = vld [vmem:[%s10674_s1 + $0x9a0] ss:$16 sps:$4 sm:$0xff]  }
  0x7b   :  { %5050 = vmatpush2.bf16.msra.mxu0 %v7017_v20  ;;  %v7093_v20 = vld [vmem:[%s10674_s1 + $0xba0] ss:$16 sps:$4 sm:$0xff]  }
  0x7c   :  { %5091 = vmatpush2.bf16.msra.mxu1 %v7020_v21  ;;  %5051 = vmatprep.subr.bf16.mxu0 %v7025_v22  ;;  %v7098_v21 = vld [vmem:[%s10674_s1 + $0x984] ss:$16 sps:$4 sm:$0xff]  }
  0x7d   :  { %5092 = vmatprep.subr.bf16.mxu1 %v7028_v24  ;;  %v7101_v22 = vld [vmem:[%s10674_s1 + $0xb84] ss:$16 sps:$4 sm:$0xff]   ;;  %v7096_v24 = vld [vmem:[%s10674_s1 + $0x980] ss:$16 sps:$4 sm:$0xff]  }
  0x7f   :  { %5052 = vmatpush2.bf16.msra.mxu0 %v7023_v25  ;;  %v7099_v25 = vld [vmem:[%s10674_s1 + $0xb80] ss:$16 sps:$4 sm:$0xff]  }
  0x80   :  { %5093 = vmatpush2.bf16.msra.mxu1 %v7026_v27  ;;  %5103 = vmatprep.subr.bf16.mxu0 %v7032_v28  ;;  %v7104_v27 = vld [vmem:[%s10674_s1 + $0x964] ss:$16 sps:$4 sm:$0xff]  }
  0x81   :  { %5144 = vmatprep.subr.bf16.mxu1 %v7035_v29  ;;  %v7107_v28 = vld [vmem:[%s10674_s1 + $0xb64] ss:$16 sps:$4 sm:$0xff]   ;;  %v7102_v29 = vld [vmem:[%s10674_s1 + $0x960] ss:$16 sps:$4 sm:$0xff]  }
  0x82   :  { %5054 = vmatmul.mubr.bf16.vlgmr.msra.gmra.mxu0 %v8487_v26 }
  0x83   :  { %5095 = vmatmul.mubr.bf16.vlgmr.msra.gmra.mxu1 %v8500_v6  ;;  %5104 = vmatpush1.bf16.msra.mxu0 %v7030_v30  ;;  %v7105_v30 = vld [vmem:[%s10674_s1 + $0xb60] ss:$16 sps:$4 sm:$0xff]  }
  0x84   :  { %5145 = vmatpush1.bf16.msra.mxu1 %v7033_v31  ;;  %5105 = vmatprep.subr.bf16.mxu0 %v7038_v33  ;;  %v7110_v31 = vld [vmem:[%s10674_s1 + $0x944] ss:$16 sps:$4 sm:$0xff]  }
  0x85   :  { %5146 = vmatprep.subr.bf16.mxu1 %v7041_v34  ;;  %5135 = vmatprep.mubr.bf16.mxu0 %v8540_v41  ;;  %v7113_v33 = vld [vmem:[%s10674_s1 + $0xb44] ss:$16 sps:$4 sm:$0xff]   ;;  %v879_v34 = vcombine.high %v8511_v32, %v8511_v32 }
  0x86   :  { %5176 = vmatprep.mubr.bf16.mxu1 %v8545_v43  ;;  %v7119_v32 = vld [vmem:[%s10674_s1 + $0xb24] ss:$16 sps:$4 sm:$0xff]  }
  0x87   :  { %5106 = vmatpush1.bf16.msra.mxu0 %v7036_v37  ;;  %v7111_v37 = vld [vmem:[%s10674_s1 + $0xb40] ss:$16 sps:$4 sm:$0xff]  }
  0x88   :  { %5147 = vmatpush1.bf16.msra.mxu1 %v7039_v38  ;;  %5107 = vmatprep.subr.bf16.mxu0 %v7044_v39  ;;  %v7116_v38 = vld [vmem:[%s10674_s1 + $0x924] ss:$16 sps:$4 sm:$0xff]   ;;  %v8695_v39 = vrot.slane %v879_v34, %v8198_v49  ;;  %v7177_v34 = vld [vmem:[%s10674_s1 + $0xfe0] ss:$16 sps:$4 sm:$0xff]  }
  0x89   :  { %5148 = vmatprep.subr.bf16.mxu1 %v7047_v40  ;;  %v7114_v40 = vld [vmem:[%s10674_s1 + $0x920] ss:$16 sps:$4 sm:$0xff]  }
  0x8b   :  { %5108 = vmatpush1.bf16.msra.mxu0 %v7042_v44  ;;  %v7117_v44 = vld [vmem:[%s10674_s1 + $0xb20] ss:$16 sps:$4 sm:$0xff]  }
  0x8c   :  { %5149 = vmatpush1.bf16.msra.mxu1 %v7045_v45  ;;  %5109 = vmatprep.subr.bf16.mxu0 %v7050_v46  ;;  %v7122_v45 = vld [vmem:[%s10674_s1 + $0x904] ss:$16 sps:$4 sm:$0xff]  }
  0x8d   :  { %5150 = vmatprep.subr.bf16.mxu1 %v7053_v47  ;;  %v7125_v46 = vld [vmem:[%s10674_s1 + $0xb04] ss:$16 sps:$4 sm:$0xff]   ;;  %v895_v47 = vcombine.high %v8695_v39, %v8695_v39 }
  0x8f   :  { %5110 = vmatpush1.bf16.msra.mxu0 %v7048_v48  ;;  %v7120_v48 = vld [vmem:[%s10674_s1 + $0x900] ss:$16 sps:$4 sm:$0xff]  }
  0x90   :  { %5151 = vmatpush1.bf16.msra.mxu1 %v7051_v50  ;;  %5111 = vmatprep.subr.bf16.mxu0 %v7056_v51  ;;  %v8716_v50 = vrot.slane %v8521_v35, %v8198_v49  ;;  %v7123_v51 = vld [vmem:[%s10674_s1 + $0xb00] ss:$16 sps:$4 sm:$0xff]  }
  0x91   :  { %5152 = vmatprep.subr.bf16.mxu1 %v7059_v52  ;;  %v7128_v52 = vld [vmem:[%s10674_s1 + $0xce4] ss:$16 sps:$4 sm:$0xff]  }
  0x92   :  { %v8732_v35 = vcombine.high %v8716_v50, %v8716_v50 }
  0x93   :  { %5112 = vmatpush1.bf16.msra.mxu0 %v7054_v53  ;;  %v7131_v53 = vld [vmem:[%s10674_s1 + $0xee4] ss:$16 sps:$4 sm:$0xff]  }
  0x94   :  { %5153 = vmatpush1.bf16.msra.mxu1 %v7057_v54  ;;  %5113 = vmatprep.subr.bf16.mxu0 %v7062_v55  ;;  %v8728_v54 = vrot.slane %v895_v47, %v8198_v49  ;;  %v7126_v55 = vld [vmem:[%s10674_s1 + $0xce0] ss:$16 sps:$4 sm:$0xff]   ;;  %v7194_v47 = vld [vmem:[%s10674_s1 + $0xd84] ss:$16 sps:$4 sm:$0xff]  }
  0x95   :  { %5154 = vmatprep.subr.bf16.mxu1 %v7065_v56  ;;  %v7129_v56 = vld [vmem:[%s10674_s1 + $0xee0] ss:$16 sps:$4 sm:$0xff]  }
  0x97   :  { %5114 = vmatpush1.bf16.msra.mxu0 %v7060_v57  ;;  %v7134_v57 = vld [vmem:[%s10674_s1 + $0xcc4] ss:$16 sps:$4 sm:$0xff]  }
  0x98   :  { %5155 = vmatpush1.bf16.msra.mxu1 %v7063_v58  ;;  %5115 = vmatprep.subr.bf16.mxu0 %v7068_v59  ;;  %v7137_v58 = vld [vmem:[%s10674_s1 + $0xec4] ss:$16 sps:$4 sm:$0xff]   ;;  %v8748_v59 = vcombine.high %v8728_v54, %v8728_v54 }
  0x99   :  { %5156 = vmatprep.subr.bf16.mxu1 %v7071_v61  ;;  %v7132_v61 = vld [vmem:[%s10674_s1 + $0xcc0] ss:$16 sps:$4 sm:$0xff]  }
  0x9b   :  { %5116 = vmatpush1.bf16.msra.mxu0 %v7066_v62  ;;  %v7135_v62 = vld [vmem:[%s10674_s1 + $0xec0] ss:$16 sps:$4 sm:$0xff]  }
  0x9c   :  { %5157 = vmatpush1.bf16.msra.mxu1 %v7069_v63  ;;  %5117 = vmatprep.subr.bf16.mxu0 %v7074_v1  ;;  %v7140_v63 = vld [vmem:[%s10674_s1 + $0xca4] ss:$16 sps:$4 sm:$0xff]  }
  0x9d   :  { %5158 = vmatprep.subr.bf16.mxu1 %v7077_v2  ;;  %v7143_v1 = vld [vmem:[%s10674_s1 + $0xea4] ss:$16 sps:$4 sm:$0xff]   ;;  %v7138_v2 = vld [vmem:[%s10674_s1 + $0xca0] ss:$16 sps:$4 sm:$0xff]  }
  0x9f   :  { %5118 = vmatpush1.bf16.msra.mxu0 %v7072_v3  ;;  %v7141_v3 = vld [vmem:[%s10674_s1 + $0xea0] ss:$16 sps:$4 sm:$0xff]  }
  0xa0   :  { %5159 = vmatpush1.bf16.msra.mxu1 %v7075_v4  ;;  %5119 = vmatprep.subr.bf16.mxu0 %v7080_v5  ;;  %v7146_v4 = vld [vmem:[%s10674_s1 + $0xc84] ss:$16 sps:$4 sm:$0xff]  }
  0xa1   :  { %5160 = vmatprep.subr.bf16.mxu1 %v7083_v7  ;;  %v7149_v5 = vld [vmem:[%s10674_s1 + $0xe84] ss:$16 sps:$4 sm:$0xff]   ;;  %v7144_v7 = vld [vmem:[%s10674_s1 + $0xc80] ss:$16 sps:$4 sm:$0xff]  }
  0xa3   :  { %5120 = vmatpush2.bf16.msra.mxu0 %v7078_v8  ;;  %v7147_v8 = vld [vmem:[%s10674_s1 + $0xe80] ss:$16 sps:$4 sm:$0xff]  }
  0xa4   :  { %5161 = vmatpush2.bf16.msra.mxu1 %v7081_v9  ;;  %5121 = vmatprep.subr.bf16.mxu0 %v7086_v10  ;;  %v7152_v9 = vld [vmem:[%s10674_s1 + $0xc64] ss:$16 sps:$4 sm:$0xff]  }
  0xa5   :  { %5162 = vmatprep.subr.bf16.mxu1 %v7089_v11  ;;  %v7155_v10 = vld [vmem:[%s10674_s1 + $0xe64] ss:$16 sps:$4 sm:$0xff]   ;;  %v7150_v11 = vld [vmem:[%s10674_s1 + $0xc60] ss:$16 sps:$4 sm:$0xff]  }
  0xa7   :  { %5122 = vmatpush2.bf16.msra.mxu0 %v7084_v12  ;;  %v7153_v12 = vld [vmem:[%s10674_s1 + $0xe60] ss:$16 sps:$4 sm:$0xff]  }
  0xa8   :  { %5163 = vmatpush2.bf16.msra.mxu1 %v7087_v14  ;;  %5123 = vmatprep.subr.bf16.mxu0 %v7092_v15  ;;  %v7158_v14 = vld [vmem:[%s10674_s1 + $0xc44] ss:$16 sps:$4 sm:$0xff]  }
  0xa9   :  { %5164 = vmatprep.subr.bf16.mxu1 %v7095_v16  ;;  %v7161_v15 = vld [vmem:[%s10674_s1 + $0xe44] ss:$16 sps:$4 sm:$0xff]   ;;  %v7156_v16 = vld [vmem:[%s10674_s1 + $0xc40] ss:$16 sps:$4 sm:$0xff]  }
  0xab   :  { %5124 = vmatpush2.bf16.msra.mxu0 %v7090_v19  ;;  %v7159_v19 = vld [vmem:[%s10674_s1 + $0xe40] ss:$16 sps:$4 sm:$0xff]  }
  0xac   :  { %5165 = vmatpush2.bf16.msra.mxu1 %v7093_v20  ;;  %5125 = vmatprep.subr.bf16.mxu0 %v7098_v21  ;;  %v7164_v20 = vld [vmem:[%s10674_s1 + $0xc24] ss:$16 sps:$4 sm:$0xff]  }
  0xad   :  { %5166 = vmatprep.subr.bf16.mxu1 %v7101_v22  ;;  %v7167_v21 = vld [vmem:[%s10674_s1 + $0xe24] ss:$16 sps:$4 sm:$0xff]   ;;  %v7162_v22 = vld [vmem:[%s10674_s1 + $0xc20] ss:$16 sps:$4 sm:$0xff]  }
  0xaf   :  { %5126 = vmatpush2.bf16.msra.mxu0 %v7096_v24  ;;  %v7165_v24 = vld [vmem:[%s10674_s1 + $0xe20] ss:$16 sps:$4 sm:$0xff]  }
  0xb0   :  { %5167 = vmatpush2.bf16.msra.mxu1 %v7099_v25  ;;  %5127 = vmatprep.subr.bf16.mxu0 %v7104_v27  ;;  %v7170_v25 = vld [vmem:[%s10674_s1 + $0xc04] ss:$16 sps:$4 sm:$0xff]  }
  0xb1   :  { %5168 = vmatprep.subr.bf16.mxu1 %v7107_v28  ;;  %v7173_v27 = vld [vmem:[%s10674_s1 + $0xe04] ss:$16 sps:$4 sm:$0xff]   ;;  %v7168_v28 = vld [vmem:[%s10674_s1 + $0xc00] ss:$16 sps:$4 sm:$0xff]  }
  0xb3   :  { %5128 = vmatpush2.bf16.msra.mxu0 %v7102_v29  ;;  %v7171_v29 = vld [vmem:[%s10674_s1 + $0xe00] ss:$16 sps:$4 sm:$0xff]  }
  0xb4   :  { %5169 = vmatpush2.bf16.msra.mxu1 %v7105_v30  ;;  %5129 = vmatprep.subr.bf16.mxu0 %v7110_v31  ;;  %v7176_v30 = vld [vmem:[%s10674_s1 + $0xde4] ss:$16 sps:$4 sm:$0xff]  }
  0xb5   :  { %5170 = vmatprep.subr.bf16.mxu1 %v7113_v33  ;;  %v7179_v31 = vld [vmem:[%s10674_s1 + $0xfe4] ss:$16 sps:$4 sm:$0xff]   ;;  %v7174_v33 = vld [vmem:[%s10674_s1 + $0xde0] ss:$16 sps:$4 sm:$0xff]  }
  0xb7   :  { %5130 = vmatpush2.bf16.msra.mxu0 %v7108_v36  ;;  %v7182_v36 = vld [vmem:[%s10674_s1 + $0xdc4] ss:$16 sps:$4 sm:$0xff]  }
  0xb8   :  { %5171 = vmatpush2.bf16.msra.mxu1 %v7111_v37  ;;  %5131 = vmatprep.subr.bf16.mxu0 %v7116_v38  ;;  %v7185_v37 = vld [vmem:[%s10674_s1 + $0xfc4] ss:$16 sps:$4 sm:$0xff]   ;;  %v7180_v38 = vld [vmem:[%s10674_s1 + $0xdc0] ss:$16 sps:$4 sm:$0xff]  }
  0xb9   :  { %5172 = vmatprep.subr.bf16.mxu1 %v7119_v32  ;;  %v7183_v32 = vld [vmem:[%s10674_s1 + $0xfc0] ss:$16 sps:$4 sm:$0xff]  }
  0xbb   :  { %5132 = vmatpush2.bf16.msra.mxu0 %v7114_v40  ;;  %v7188_v40 = vld [vmem:[%s10674_s1 + $0xda4] ss:$16 sps:$4 sm:$0xff]  }
  0xbc   :  { %5173 = vmatpush2.bf16.msra.mxu1 %v7117_v44  ;;  %5133 = vmatprep.subr.bf16.mxu0 %v7122_v45  ;;  %v7191_v44 = vld [vmem:[%s10674_s1 + $0xfa4] ss:$16 sps:$4 sm:$0xff]   ;;  %v7186_v45 = vld [vmem:[%s10674_s1 + $0xda0] ss:$16 sps:$4 sm:$0xff]  }
  0xbd   :  { %5174 = vmatprep.subr.bf16.mxu1 %v7125_v46  ;;  %v7189_v46 = vld [vmem:[%s10674_s1 + $0xfa0] ss:$16 sps:$4 sm:$0xff]  }
  0xbf   :  { %5134 = vmatpush2.bf16.msra.mxu0 %v7120_v48  ;;  %v7197_v48 = vld [vmem:[%s10674_s1 + $0xf84] ss:$16 sps:$4 sm:$0xff]  }
  0xc0   :  { %5175 = vmatpush2.bf16.msra.mxu1 %v7123_v51  ;;  %5185 = vmatprep.subr.bf16.mxu0 %v7128_v52  ;;  %v7192_v51 = vld [vmem:[%s10674_s1 + $0xd80] ss:$16 sps:$4 sm:$0xff]  }
  0xc1   :  { %5226 = vmatprep.subr.bf16.mxu1 %v7131_v53  ;;  %v7195_v52 = vld [vmem:[%s10674_s1 + $0xf80] ss:$16 sps:$4 sm:$0xff]   ;;  %v7200_v53 = vld [vmem:[%s10674_s1 + $0xd64] ss:$16 sps:$4 sm:$0xff]  }
  0xc2   :  { %5136 = vmatmul.mubr.bf16.vlgmr.msra.gmra.mxu0 %v8716_v50 }
  0xc3   :  { %5177 = vmatmul.mubr.bf16.vlgmr.msra.gmra.mxu1 %v8732_v35  ;;  %5186 = vmatpush1.bf16.msra.mxu0 %v7126_v55  ;;  %v7203_v55 = vld [vmem:[%s10674_s1 + $0xf64] ss:$16 sps:$4 sm:$0xff]  }
  0xc4   :  { %5227 = vmatpush1.bf16.msra.mxu1 %v7129_v56  ;;  %5187 = vmatprep.subr.bf16.mxu0 %v7134_v57  ;;  %v7198_v56 = vld [vmem:[%s10674_s1 + $0xd60] ss:$16 sps:$4 sm:$0xff]  }
  0xc5   :  { %5228 = vmatprep.subr.bf16.mxu1 %v7137_v58  ;;  %5217 = vmatprep.mubr.bf16.mxu0 %v8728_v54  ;;  %v7201_v57 = vld [vmem:[%s10674_s1 + $0xf60] ss:$16 sps:$4 sm:$0xff]   ;;  %v7206_v58 = vld [vmem:[%s10674_s1 + $0xd44] ss:$16 sps:$4 sm:$0xff]  }
  0xc6   :  { %5258 = vmatprep.mubr.bf16.mxu1 %v8748_v59 }
  0xc7   :  { %5188 = vmatpush1.bf16.msra.mxu0 %v7132_v61  ;;  %v7209_v61 = vld [vmem:[%s10674_s1 + $0xf44] ss:$16 sps:$4 sm:$0xff]  }
  0xc8   :  { %5229 = vmatpush1.bf16.msra.mxu1 %v7135_v62  ;;  %5189 = vmatprep.subr.bf16.mxu0 %v7140_v63  ;;  %v7204_v62 = vld [vmem:[%s10674_s1 + $0xd40] ss:$16 sps:$4 sm:$0xff]  }
  0xc9   :  { %5230 = vmatprep.subr.bf16.mxu1 %v7143_v1  ;;  %v7207_v63 = vld [vmem:[%s10674_s1 + $0xf40] ss:$16 sps:$4 sm:$0xff]  }
  0xca   :  { %v8907_v1 = vld [vmem:[%s10673_s0 + $0x10] sm:$0xff] }
  0xcb   :  { %5190 = vmatpush1.bf16.msra.mxu0 %v7138_v2  ;;  %v7212_v2 = vld [vmem:[%s10674_s1 + $0xd24] ss:$16 sps:$4 sm:$0xff]  }
  0xcc   :  { %5231 = vmatpush1.bf16.msra.mxu1 %v7141_v3  ;;  %5191 = vmatprep.subr.bf16.mxu0 %v7146_v4  ;;  %v7215_v3 = vld [vmem:[%s10674_s1 + $0xf24] ss:$16 sps:$4 sm:$0xff]   ;;  %v8917_v4 = vrot.slane %v8907_v1, %v8198_v49 }
  0xcd   :  { %5232 = vmatprep.subr.bf16.mxu1 %v7149_v5  ;;  %v7210_v5 = vld [vmem:[%s10674_s1 + $0xd20] ss:$16 sps:$4 sm:$0xff]  }
  0xcf   :  { %5192 = vmatpush1.bf16.msra.mxu0 %v7144_v7  ;;  %v7213_v7 = vld [vmem:[%s10674_s1 + $0xf20] ss:$16 sps:$4 sm:$0xff]  }
  0xd0   :  { %5233 = vmatpush1.bf16.msra.mxu1 %v7147_v8  ;;  %5193 = vmatprep.subr.bf16.mxu0 %v7152_v9  ;;  %v7218_v8 = vld [vmem:[%s10674_s1 + $0xd04] ss:$16 sps:$4 sm:$0xff]  }
  0xd1   :  { %5234 = vmatprep.subr.bf16.mxu1 %v7155_v10  ;;  %v7221_v9 = vld [vmem:[%s10674_s1 + $0xf04] ss:$16 sps:$4 sm:$0xff]   ;;  %v7216_v10 = vld [vmem:[%s10674_s1 + $0xd00] ss:$16 sps:$4 sm:$0xff]  }
  0xd3   :  { %5194 = vmatpush1.bf16.msra.mxu0 %v7150_v11  ;;  %v943_v11 = vcombine.high %v8917_v4, %v8917_v4 }
  0xd4   :  { %5235 = vmatpush1.bf16.msra.mxu1 %v7153_v12  ;;  %5195 = vmatprep.subr.bf16.mxu0 %v7158_v14  ;;  %v7219_v12 = vld [vmem:[%s10674_s1 + $0xf00] ss:$16 sps:$4 sm:$0xff]  }
  0xd5   :  { %5236 = vmatprep.subr.bf16.mxu1 %v7161_v15  ;;  %v804_v14 = vld [vmem:[%s10675_s2] sm:$0xf]  ;;  %v8944_v15 = vrot.slane %v8695_v39, %v8198_v49 }
  0xd7   :  { %5196 = vmatpush1.bf16.msra.mxu0 %v7156_v16  ;;  %v808_v16 = vsub.s32 0, %v8180_v42  ;;  %v8959_v39 = vcombine.high %v8944_v15, %v8944_v15 }
  0xd8   :  { %5237 = vmatpush1.bf16.msra.mxu1 %v7159_v19  ;;  %5197 = vmatprep.subr.bf16.mxu0 %v7164_v20  ;;  %v7225_v19 = vld [vmem:[%s10674_s1 + $0x10e4] ss:$16 sps:$4 sm:$0xff]  }
  0xd9   :  { %5238 = vmatprep.subr.bf16.mxu1 %v7167_v21  ;;  %v7228_v20 = vld [vmem:[%s10674_s1 + $0x12e4] ss:$16 sps:$4 sm:$0xff]   ;;  %v812_v21 = vsub.s32 1, %v8180_v42 }
  0xdb   :  { %5198 = vmatpush1.bf16.msra.mxu0 %v7162_v22  ;;  %v8955_v22 = vrot.slane %v943_v11, %v8198_v49  ;;  %v7256_v11 = vld [vmem:[%s10674_s1 + $0x1240] ss:$16 sps:$4 sm:$0xff]  }
  0xdc   :  { %5239 = vmatpush1.bf16.msra.mxu1 %v7165_v24  ;;  %5199 = vmatprep.subr.bf16.mxu0 %v7170_v25  ;;  %v7223_v24 = vld [vmem:[%s10674_s1 + $0x10e0] ss:$16 sps:$4 sm:$0xff]  }
  0xdd   :  { %5240 = vmatprep.subr.bf16.mxu1 %v7173_v27  ;;  %v7226_v25 = vld [vmem:[%s10674_s1 + $0x12e0] ss:$16 sps:$4 sm:$0xff]   ;;  %v809_v27 = vrot.slane %v804_v14, %v808_v16 }
  0xde   :  { %v7259_v16 = vld [vmem:[%s10674_s1 + $0x1020] ss:$16 sps:$4 sm:$0xff]  }
  0xdf   :  { %5200 = vmatpush1.bf16.msra.mxu0 %v7168_v28  ;;  %v7231_v28 = vld [vmem:[%s10674_s1 + $0x10c4] ss:$16 sps:$4 sm:$0xff]  }
  0xe0   :  { %5241 = vmatpush1.bf16.msra.mxu1 %v7171_v29  ;;  %5201 = vmatprep.subr.bf16.mxu0 %v7176_v30  ;;  %v7234_v29 = vld [vmem:[%s10674_s1 + $0x12c4] ss:$16 sps:$4 sm:$0xff]   ;;  %v813_v30 = vrot.slane %v804_v14, %v812_v21 }
  0xe1   :  { %5242 = vmatprep.subr.bf16.mxu1 %v7179_v31  ;;  %v8975_v31 = vcombine.high %v8955_v22, %v8955_v22  ;;  %v7264_v14 = vld [vmem:[%s10674_s1 + $0x1224] ss:$16 sps:$4 sm:$0xff]  }
  0xe2   :  { %v7270_v21 = vld [vmem:[%s10674_s1 + $0x1204] ss:$16 sps:$4 sm:$0xff]  }
  0xe3   :  { %5202 = vmatpush2.bf16.msra.mxu0 %v7174_v33 }
  0xe4   :  { %5243 = vmatpush2.bf16.msra.mxu1 %v7177_v34  ;;  %5203 = vmatprep.subr.bf16.mxu0 %v7182_v36  ;;  %v7229_v36 = vld [vmem:[%s10674_s1 + $0x10c0] ss:$16 sps:$4 sm:$0xff]  }
  0xe5   :  { %5244 = vmatprep.subr.bf16.mxu1 %v7185_v37  ;;  %v7232_v37 = vld [vmem:[%s10674_s1 + $0x12c0] ss:$16 sps:$4 sm:$0xff]  }
  0xe7   :  { %5204 = vmatpush2.bf16.msra.mxu0 %v7180_v38 }
  0xe8   :  { %5245 = vmatpush2.bf16.msra.mxu1 %v7183_v32  ;;  %5205 = vmatprep.subr.bf16.mxu0 %v7188_v40 }
  0xe9   :  { %5246 = vmatprep.subr.bf16.mxu1 %v7191_v44  ;;  %v7237_v44 = vld [vmem:[%s10674_s1 + $0x10a4] ss:$16 sps:$4 sm:$0xff]  }
  0xeb   :  { %5206 = vmatpush2.bf16.msra.mxu0 %v7186_v45  ;;  %v7240_v45 = vld [vmem:[%s10674_s1 + $0x12a4] ss:$16 sps:$4 sm:$0xff]  }
  0xec   :  { %5247 = vmatpush2.bf16.msra.mxu1 %v7189_v46  ;;  %5207 = vmatprep.subr.bf16.mxu0 %v7194_v47 }
  0xed   :  { %5248 = vmatprep.subr.bf16.mxu1 %v7197_v48  ;;  %v7235_v48 = vld [vmem:[%s10674_s1 + $0x10a0] ss:$16 sps:$4 sm:$0xff]  }
  0xef   :  { %5208 = vmatpush2.bf16.msra.mxu0 %v7192_v51  ;;  %v7238_v51 = vld [vmem:[%s10674_s1 + $0x12a0] ss:$16 sps:$4 sm:$0xff]  }
  0xf0   :  { %5249 = vmatpush2.bf16.msra.mxu1 %v7195_v52  ;;  %5209 = vmatprep.subr.bf16.mxu0 %v7200_v53 }
  0xf1   :  { %5250 = vmatprep.subr.bf16.mxu1 %v7203_v55 }
  0xf3   :  { %5210 = vmatpush2.bf16.msra.mxu0 %v7198_v56 }
  0xf4   :  { %5251 = vmatpush2.bf16.msra.mxu1 %v7201_v57  ;;  %5211 = vmatprep.subr.bf16.mxu0 %v7206_v58  ;;  %v7243_v58 = vld [vmem:[%s10674_s1 + $0x1084] ss:$16 sps:$4 sm:$0xff]  }
  0xf5   :  { %5252 = vmatprep.subr.bf16.mxu1 %v7209_v61  ;;  %v7246_v61 = vld [vmem:[%s10674_s1 + $0x1284] ss:$16 sps:$4 sm:$0xff]  }
  0xf7   :  { %5212 = vmatpush2.bf16.msra.mxu0 %v7204_v62  ;;  %v7241_v62 = vld [vmem:[%s10674_s1 + $0x1080] ss:$16 sps:$4 sm:$0xff]  }
  0xf8   :  { %5253 = vmatpush2.bf16.msra.mxu1 %v7207_v63  ;;  %5213 = vmatprep.subr.bf16.mxu0 %v7212_v2  ;;  %v7244_v63 = vld [vmem:[%s10674_s1 + $0x1280] ss:$16 sps:$4 sm:$0xff]   ;;  %v7249_v2 = vld [vmem:[%s10674_s1 + $0x1064] ss:$16 sps:$4 sm:$0xff]  }
  0xf9   :  { %5254 = vmatprep.subr.bf16.mxu1 %v7215_v3  ;;  %v7252_v3 = vld [vmem:[%s10674_s1 + $0x1264] ss:$16 sps:$4 sm:$0xff]  }
  0xfb   :  { %5214 = vmatpush2.bf16.msra.mxu0 %v7210_v5  ;;  %v7247_v5 = vld [vmem:[%s10674_s1 + $0x1060] ss:$16 sps:$4 sm:$0xff]  }
  0xfc   :  { %5255 = vmatpush2.bf16.msra.mxu1 %v7213_v7  ;;  %5215 = vmatprep.subr.bf16.mxu0 %v7218_v8  ;;  %v7250_v7 = vld [vmem:[%s10674_s1 + $0x1260] ss:$16 sps:$4 sm:$0xff]   ;;  %v7255_v8 = vld [vmem:[%s10674_s1 + $0x1044] ss:$16 sps:$4 sm:$0xff]  }
  0xfd   :  { %5256 = vmatprep.subr.bf16.mxu1 %v7221_v9  ;;  %v7258_v9 = vld [vmem:[%s10674_s1 + $0x1244] ss:$16 sps:$4 sm:$0xff]  }
  0xff   :  { %5216 = vmatpush2.bf16.msra.mxu0 %v7216_v10  ;;  %v7253_v10 = vld [vmem:[%s10674_s1 + $0x1040] ss:$16 sps:$4 sm:$0xff]  }
 0x100   :  { %5257 = vmatpush2.bf16.msra.mxu1 %v7219_v12  ;;  %5267 = vmatprep.subr.bf16.mxu0 %v7225_v19  ;;  %v7261_v12 = vld [vmem:[%s10674_s1 + $0x1024] ss:$16 sps:$4 sm:$0xff]   ;;  %v7262_v19 = vld [vmem:[%s10674_s1 + $0x1220] ss:$16 sps:$4 sm:$0xff]  }
 0x101   :  { %5308 = vmatprep.subr.bf16.mxu1 %v7228_v20  ;;  %v7267_v20 = vld [vmem:[%s10674_s1 + $0x1004] ss:$16 sps:$4 sm:$0xff]  }
 0x102   :  { %v4973_v33 = vpop.f32.mrf.mxu0  ;;  %5218 = vmatmul.mubr.bf16.vlgmr.msra.gmra.mxu0 %v8944_v15 }
 0x103   :  { %v5014_v34 = vpop.f32.mrf.mxu1  ;;  %5259 = vmatmul.mubr.bf16.vlgmr.msra.gmra.mxu1 %v8959_v39  ;;  %v4974_v38 = vadd.f32 %v4973_v33, %v809_v27  ;;  %5268 = vmatpush1.bf16.msra.mxu0 %v7223_v24  ;;  %v7265_v24 = vld [vmem:[%s10674_s1 + $0x1000] ss:$16 sps:$4 sm:$0xff]   ;;  %v7273_v27 = vld [vmem:[%s10674_s1 + $0x11e4] ss:$16 sps:$4 sm:$0xff]  }
 0x104   :  { %5309 = vmatpush1.bf16.msra.mxu1 %v7226_v25  ;;  %v4975_v32 = vpop.f32.mrf.mxu0  ;;  %5269 = vmatprep.subr.bf16.mxu0 %v7231_v28  ;;  %v7268_v25 = vld [vmem:[%s10674_s1 + $0x1200] ss:$16 sps:$4 sm:$0xff]   ;;  %v7276_v28 = vld [vmem:[%s10674_s1 + $0x13e4] ss:$16 sps:$4 sm:$0xff]  }
 0x105   :  { %v5016_v40 = vpop.f32.mrf.mxu1  ;;  %5310 = vmatprep.subr.bf16.mxu1 %v7234_v29  ;;  %v8991_v46 = vadd.f32 %v5014_v34, %v4974_v38  ;;  %v4976_v47 = vadd.f32 %v4975_v32, %v813_v30  ;;  %5299 = vmatprep.mubr.bf16.mxu0 %v8955_v22  ;;  %v7271_v29 = vld [vmem:[%s10674_s1 + $0x11e0] ss:$16 sps:$4 sm:$0xff]   ;;  %v7279_v33 = vld [vmem:[%s10674_s1 + $0x11c4] ss:$16 sps:$4 sm:$0xff]  }
 0x106   :  { %5340 = vmatprep.mubr.bf16.mxu1 %v8975_v31  ;;  %v4977_v52 = vpop.f32.mrf.mxu0  ;;  %v7274_v30 = vld [vmem:[%s10674_s1 + $0x13e0] ss:$16 sps:$4 sm:$0xff]   ;;  %v7282_v34 = vld [vmem:[%s10674_s1 + $0x13c4] ss:$16 sps:$4 sm:$0xff]  }
 0x107   :  { %v5018_v53 = vpop.f32.mrf.mxu1  ;;  %v9001_v55 = vadd.f32 %v5016_v40, %v4976_v47  ;;  %5270 = vmatpush1.bf16.msra.mxu0 %v7229_v36  ;;  %v7277_v36 = vld [vmem:[%s10674_s1 + $0x11c0] ss:$16 sps:$4 sm:$0xff]   ;;  %v7285_v38 = vld [vmem:[%s10674_s1 + $0x11a4] ss:$16 sps:$4 sm:$0xff]  }
 0x108   :  { %5311 = vmatpush1.bf16.msra.mxu1 %v7232_v37  ;;  %v4978_v56 = vpop.f32.mrf.mxu0  ;;  %5271 = vmatprep.subr.bf16.mxu0 %v7237_v44  ;;  %v7280_v37 = vld [vmem:[%s10674_s1 + $0x13c0] ss:$16 sps:$4 sm:$0xff]   ;;  %v7288_v32 = vld [vmem:[%s10674_s1 + $0x13a4] ss:$16 sps:$4 sm:$0xff]  }
 0x109   :  { %v5019_v57 = vpop.f32.mrf.mxu1  ;;  %5312 = vmatprep.subr.bf16.mxu1 %v7240_v45  ;;  %v7283_v40 = vld [vmem:[%s10674_s1 + $0x11a0] ss:$16 sps:$4 sm:$0xff]   ;;  %v7291_v45 = vld [vmem:[%s10674_s1 + $0x1184] ss:$16 sps:$4 sm:$0xff]  }
 0x10a   :  { %v7286_v44 = vld [vmem:[%s10674_s1 + $0x13a0] ss:$16 sps:$4 sm:$0xff]   ;;  %v7294_v47 = vld [vmem:[%s10674_s1 + $0x1384] ss:$16 sps:$4 sm:$0xff]  }
 0x10b   :  { %5272 = vmatpush1.bf16.msra.mxu0 %v7235_v48  ;;  %v7289_v48 = vld [vmem:[%s10674_s1 + $0x1180] ss:$16 sps:$4 sm:$0xff]   ;;  %v7297_v52 = vld [vmem:[%s10674_s1 + $0x1164] ss:$16 sps:$4 sm:$0xff]  }
 0x10c   :  { %5313 = vmatpush1.bf16.msra.mxu1 %v7238_v51  ;;  %5273 = vmatprep.subr.bf16.mxu0 %v7243_v58  ;;  %v7292_v51 = vld [vmem:[%s10674_s1 + $0x1380] ss:$16 sps:$4 sm:$0xff]   ;;  %v7300_v53 = vld [vmem:[%s10674_s1 + $0x1364] ss:$16 sps:$4 sm:$0xff]  }
 0x10d   :  { %5314 = vmatprep.subr.bf16.mxu1 %v7246_v61  ;;  %v7295_v56 = vld [vmem:[%s10674_s1 + $0x1160] ss:$16 sps:$4 sm:$0xff]   ;;  %v7303_v58 = vld [vmem:[%s10674_s1 + $0x1144] ss:$16 sps:$4 sm:$0xff]  }
 0x10e   :  { %v7298_v57 = vld [vmem:[%s10674_s1 + $0x1360] ss:$16 sps:$4 sm:$0xff]   ;;  %v7306_v61 = vld [vmem:[%s10674_s1 + $0x1344] ss:$16 sps:$4 sm:$0xff]  }
 0x10f   :  { %5274 = vmatpush1.bf16.msra.mxu0 %v7241_v62  ;;  %v928_v62 = vcombine.high %v8907_v1, %v8907_v1  ;;  %v7312_v1 = vld [vmem:[%s10674_s1 + $0x1324] ss:$16 sps:$4 sm:$0xff]  }
 0x110   :  { %5315 = vmatpush1.bf16.msra.mxu1 %v7244_v63  ;;  %5275 = vmatprep.subr.bf16.mxu0 %v7249_v2  ;;  %v7301_v63 = vld [vmem:[%s10674_s1 + $0x1140] ss:$16 sps:$4 sm:$0xff]  }
 0x111   :  { %5316 = vmatprep.subr.bf16.mxu1 %v7252_v3  ;;  %v7304_v2 = vld [vmem:[%s10674_s1 + $0x1340] ss:$16 sps:$4 sm:$0xff]   ;;  %v7309_v3 = vld [vmem:[%s10674_s1 + $0x1124] ss:$16 sps:$4 sm:$0xff]  }
 0x113   :  { %5276 = vmatpush1.bf16.msra.mxu0 %v7247_v5  ;;  %v9144_v5 = vrot.slane %v928_v62, %v8198_v49  ;;  %v7340_v62 = vld [vmem:[%s10674_s1 + $0x1680] ss:$16 sps:$4 sm:$0xff]  }
 0x114   :  { %5317 = vmatpush1.bf16.msra.mxu1 %v7250_v7  ;;  %5277 = vmatprep.subr.bf16.mxu0 %v7255_v8  ;;  %v7307_v7 = vld [vmem:[%s10674_s1 + $0x1120] ss:$16 sps:$4 sm:$0xff]  }
 0x115   :  { %5318 = vmatprep.subr.bf16.mxu1 %v7258_v9  ;;  %v7310_v8 = vld [vmem:[%s10674_s1 + $0x1320] ss:$16 sps:$4 sm:$0xff]   ;;  %v7315_v9 = vld [vmem:[%s10674_s1 + $0x1104] ss:$16 sps:$4 sm:$0xff]  }
 0x117   :  { %5278 = vmatpush1.bf16.msra.mxu0 %v7253_v10  ;;  %v7318_v10 = vld [vmem:[%s10674_s1 + $0x1304] ss:$16 sps:$4 sm:$0xff]  }
 0x118   :  { %5319 = vmatpush1.bf16.msra.mxu1 %v7256_v11  ;;  %5279 = vmatprep.subr.bf16.mxu0 %v7261_v12  ;;  %v944_v11 = vcombine.high %v9144_v5, %v9144_v5  ;;  %v9162_v12 = vrot.slane %v8917_v4, %v8198_v49  ;;  %v7324_v4 = vld [vmem:[%s10674_s1 + $0x16e4] ss:$16 sps:$4 sm:$0xff]  }
 0x119   :  { %5320 = vmatprep.subr.bf16.mxu1 %v7264_v14  ;;  %v7313_v14 = vld [vmem:[%s10674_s1 + $0x1100] ss:$16 sps:$4 sm:$0xff]  }
 0x11b   :  { %5280 = vmatpush1.bf16.msra.mxu0 %v7259_v16  ;;  %v7316_v16 = vld [vmem:[%s10674_s1 + $0x1300] ss:$16 sps:$4 sm:$0xff]  }
 0x11c   :  { %5321 = vmatpush1.bf16.msra.mxu1 %v7262_v19  ;;  %5281 = vmatprep.subr.bf16.mxu0 %v7267_v20  ;;  %v7321_v19 = vld [vmem:[%s10674_s1 + $0x14e4] ss:$16 sps:$4 sm:$0xff]   ;;  %v7319_v20 = vld [vmem:[%s10674_s1 + $0x14e0] ss:$16 sps:$4 sm:$0xff]  }
 0x11d   :  { %5322 = vmatprep.subr.bf16.mxu1 %v7270_v21  ;;  %v7322_v21 = vld [vmem:[%s10674_s1 + $0x16e0] ss:$16 sps:$4 sm:$0xff]  }
 0x11f   :  { %5282 = vmatpush1.bf16.msra.mxu0 %v7265_v24  ;;  %v9183_v24 = vrot.slane %v944_v11, %v8198_v49  ;;  %v7357_v11 = vld [vmem:[%s10674_s1 + $0x1424] ss:$16 sps:$4 sm:$0xff]  }
 0x120   :  { %5323 = vmatpush1.bf16.msra.mxu1 %v7268_v25  ;;  %5283 = vmatprep.subr.bf16.mxu0 %v7273_v27  ;;  %v9187_v25 = vcombine.high %v9162_v12, %v9162_v12  ;;  %v7327_v27 = vld [vmem:[%s10674_s1 + $0x14c4] ss:$16 sps:$4 sm:$0xff]  }
 0x121   :  { %5324 = vmatprep.subr.bf16.mxu1 %v7276_v28  ;;  %v7330_v28 = vld [vmem:[%s10674_s1 + $0x16c4] ss:$16 sps:$4 sm:$0xff]  }
 0x123   :  { %5284 = vmatpush2.bf16.msra.mxu0 %v7271_v29  ;;  %v7325_v29 = vld [vmem:[%s10674_s1 + $0x14c0] ss:$16 sps:$4 sm:$0xff]  }
 0x124   :  { %5325 = vmatpush2.bf16.msra.mxu1 %v7274_v30  ;;  %5285 = vmatprep.subr.bf16.mxu0 %v7279_v33  ;;  %v7328_v30 = vld [vmem:[%s10674_s1 + $0x16c0] ss:$16 sps:$4 sm:$0xff]   ;;  %v9203_v33 = vcombine.high %v9183_v24, %v9183_v24 }
 0x125   :  { %5326 = vmatprep.subr.bf16.mxu1 %v7282_v34 }
 0x127   :  { %5286 = vmatpush2.bf16.msra.mxu0 %v7277_v36 }
 0x128   :  { %5327 = vmatpush2.bf16.msra.mxu1 %v7280_v37  ;;  %5287 = vmatprep.subr.bf16.mxu0 %v7285_v38 }
 0x129   :  { %5328 = vmatprep.subr.bf16.mxu1 %v7288_v32 }
 0x12b   :  { %5288 = vmatpush2.bf16.msra.mxu0 %v7283_v40  ;;  %v7333_v40 = vld [vmem:[%s10674_s1 + $0x14a4] ss:$16 sps:$4 sm:$0xff]  }
 0x12c   :  { %5329 = vmatpush2.bf16.msra.mxu1 %v7286_v44  ;;  %5289 = vmatprep.subr.bf16.mxu0 %v7291_v45  ;;  %v7336_v44 = vld [vmem:[%s10674_s1 + $0x16a4] ss:$16 sps:$4 sm:$0xff]  }
 0x12d   :  { %5330 = vmatprep.subr.bf16.mxu1 %v7294_v47 }
 0x12f   :  { %5290 = vmatpush2.bf16.msra.mxu0 %v7289_v48  ;;  %v7334_v48 = vld [vmem:[%s10674_s1 + $0x16a0] ss:$16 sps:$4 sm:$0xff]  }
 0x130   :  { %5331 = vmatpush2.bf16.msra.mxu1 %v7292_v51  ;;  %5291 = vmatprep.subr.bf16.mxu0 %v7297_v52 }
 0x131   :  { %5332 = vmatprep.subr.bf16.mxu1 %v7300_v53 }
 0x133   :  { %5292 = vmatpush2.bf16.msra.mxu0 %v7295_v56 }
 0x134   :  { %5333 = vmatpush2.bf16.msra.mxu1 %v7298_v57  ;;  %5293 = vmatprep.subr.bf16.mxu0 %v7303_v58  ;;  %v7339_v57 = vld [vmem:[%s10674_s1 + $0x1484] ss:$16 sps:$4 sm:$0xff]  }
 0x135   :  { %5334 = vmatprep.subr.bf16.mxu1 %v7306_v61  ;;  %v7342_v58 = vld [vmem:[%s10674_s1 + $0x1684] ss:$16 sps:$4 sm:$0xff]   ;;  %v7337_v61 = vld [vmem:[%s10674_s1 + $0x1480] ss:$16 sps:$4 sm:$0xff]  }
 0x137   :  { %5294 = vmatpush2.bf16.msra.mxu0 %v7301_v63  ;;  %v7345_v63 = vld [vmem:[%s10674_s1 + $0x1464] ss:$16 sps:$4 sm:$0xff]  }
 0x138   :  { %5335 = vmatpush2.bf16.msra.mxu1 %v7304_v2  ;;  %5295 = vmatprep.subr.bf16.mxu0 %v7309_v3  ;;  %v7348_v2 = vld [vmem:[%s10674_s1 + $0x1664] ss:$16 sps:$4 sm:$0xff]   ;;  %v7343_v3 = vld [vmem:[%s10674_s1 + $0x1460] ss:$16 sps:$4 sm:$0xff]  }
 0x139   :  { %5336 = vmatprep.subr.bf16.mxu1 %v7312_v1  ;;  %v7346_v1 = vld [vmem:[%s10674_s1 + $0x1660] ss:$16 sps:$4 sm:$0xff]  }
 0x13b   :  { %5296 = vmatpush2.bf16.msra.mxu0 %v7307_v7  ;;  %v7351_v7 = vld [vmem:[%s10674_s1 + $0x1444] ss:$16 sps:$4 sm:$0xff]  }
 0x13c   :  { %5337 = vmatpush2.bf16.msra.mxu1 %v7310_v8  ;;  %5297 = vmatprep.subr.bf16.mxu0 %v7315_v9  ;;  %v7354_v8 = vld [vmem:[%s10674_s1 + $0x1644] ss:$16 sps:$4 sm:$0xff]   ;;  %v7349_v9 = vld [vmem:[%s10674_s1 + $0x1440] ss:$16 sps:$4 sm:$0xff]  }
 0x13d   :  { %5338 = vmatprep.subr.bf16.mxu1 %v7318_v10  ;;  %v7352_v10 = vld [vmem:[%s10674_s1 + $0x1640] ss:$16 sps:$4 sm:$0xff]  }
 0x13f   :  { %5298 = vmatpush2.bf16.msra.mxu0 %v7313_v14  ;;  %v7360_v14 = vld [vmem:[%s10674_s1 + $0x1624] ss:$16 sps:$4 sm:$0xff]  }
 0x140   :  { %5339 = vmatpush2.bf16.msra.mxu1 %v7316_v16  ;;  %5349 = vmatprep.subr.bf16.mxu0 %v7321_v19  ;;  %v7355_v16 = vld [vmem:[%s10674_s1 + $0x1420] ss:$16 sps:$4 sm:$0xff]  }
 0x141   :  { %5390 = vmatprep.subr.bf16.mxu1 %v7324_v4  ;;  %v7358_v19 = vld [vmem:[%s10674_s1 + $0x1620] ss:$16 sps:$4 sm:$0xff]   ;;  %v7363_v4 = vld [vmem:[%s10674_s1 + $0x1404] ss:$16 sps:$4 sm:$0xff]  }
 0x142   :  { %v5055_v34 = vpop.f32.mrf.mxu0  ;;  %5300 = vmatmul.mubr.bf16.vlgmr.msra.gmra.mxu0 %v9162_v12 }
 0x143   :  { %v5096_v36 = vpop.f32.mrf.mxu1  ;;  %5341 = vmatmul.mubr.bf16.vlgmr.msra.gmra.mxu1 %v9187_v25  ;;  %v5056_v37 = vadd.f32 %v5055_v34, %v8991_v46  ;;  %5350 = vmatpush1.bf16.msra.mxu0 %v7319_v20  ;;  %v7331_v46 = vld [vmem:[%s10674_s1 + $0x14a0] ss:$16 sps:$4 sm:$0xff]   ;;  %v7366_v20 = vld [vmem:[%s10674_s1 + $0x1604] ss:$16 sps:$4 sm:$0xff]  }
 0x144   :  { %5391 = vmatpush1.bf16.msra.mxu1 %v7322_v21  ;;  %v5057_v38 = vpop.f32.mrf.mxu0  ;;  %5351 = vmatprep.subr.bf16.mxu0 %v7327_v27  ;;  %v7361_v21 = vld [vmem:[%s10674_s1 + $0x1400] ss:$16 sps:$4 sm:$0xff]  }
 0x145   :  { %v5098_v32 = vpop.f32.mrf.mxu1  ;;  %5392 = vmatprep.subr.bf16.mxu1 %v7330_v28  ;;  %v9214_v45 = vadd.f32 %v5096_v36, %v5056_v37  ;;  %v5058_v47 = vadd.f32 %v5057_v38, %v9001_v55  ;;  %5381 = vmatprep.mubr.bf16.mxu0 %v9183_v24  ;;  %v7364_v27 = vld [vmem:[%s10674_s1 + $0x1600] ss:$16 sps:$4 sm:$0xff]   ;;  %v7369_v28 = vld [vmem:[%s10674_s1 + $0x15e4] ss:$16 sps:$4 sm:$0xff]  }
 0x146   :  { %5422 = vmatprep.mubr.bf16.mxu1 %v9203_v33  ;;  %v5059_v51 = vpop.f32.mrf.mxu0  ;;  %v7370_v34 = vld [vmem:[%s10674_s1 + $0x17e0] ss:$16 sps:$4 sm:$0xff]   ;;  %v7375_v36 = vld [vmem:[%s10674_s1 + $0x15c4] ss:$16 sps:$4 sm:$0xff]  }
 0x147   :  { %v5100_v52 = vpop.f32.mrf.mxu1  ;;  %v9225_v53 = vadd.f32 %v5098_v32, %v5058_v47  ;;  %5352 = vmatpush1.bf16.msra.mxu0 %v7325_v29  ;;  %v7372_v29 = vld [vmem:[%s10674_s1 + $0x17e4] ss:$16 sps:$4 sm:$0xff]   ;;  %v7373_v38 = vld [vmem:[%s10674_s1 + $0x15c0] ss:$16 sps:$4 sm:$0xff]  }
 0x148   :  { %5393 = vmatpush1.bf16.msra.mxu1 %v7328_v30  ;;  %v5060_v56 = vpop.f32.mrf.mxu0  ;;  %5353 = vmatprep.subr.bf16.mxu0 %v7333_v40  ;;  %v7367_v30 = vld [vmem:[%s10674_s1 + $0x15e0] ss:$16 sps:$4 sm:$0xff]   ;;  %v7378_v37 = vld [vmem:[%s10674_s1 + $0x17c4] ss:$16 sps:$4 sm:$0xff]  }
 0x149   :  { %v5101_v55 = vpop.f32.mrf.mxu1  ;;  %5394 = vmatprep.subr.bf16.mxu1 %v7336_v44  ;;  %v7376_v32 = vld [vmem:[%s10674_s1 + $0x17c0] ss:$16 sps:$4 sm:$0xff]   ;;  %v7381_v40 = vld [vmem:[%s10674_s1 + $0x15a4] ss:$16 sps:$4 sm:$0xff]  }
 0x14a   :  { %v7384_v44 = vld [vmem:[%s10674_s1 + $0x17a4] ss:$16 sps:$4 sm:$0xff]   ;;  %v7379_v47 = vld [vmem:[%s10674_s1 + $0x15a0] ss:$16 sps:$4 sm:$0xff]  }
 0x14b   :  { %5354 = vmatpush1.bf16.msra.mxu0 %v7331_v46  ;;  %v7382_v46 = vld [vmem:[%s10674_s1 + $0x17a0] ss:$16 sps:$4 sm:$0xff]   ;;  %v7390_v51 = vld [vmem:[%s10674_s1 + $0x1784] ss:$16 sps:$4 sm:$0xff]  }
 0x14c   :  { %5395 = vmatpush1.bf16.msra.mxu1 %v7334_v48  ;;  %5355 = vmatprep.subr.bf16.mxu0 %v7339_v57  ;;  %v7387_v48 = vld [vmem:[%s10674_s1 + $0x1584] ss:$16 sps:$4 sm:$0xff]   ;;  %v7385_v52 = vld [vmem:[%s10674_s1 + $0x1580] ss:$16 sps:$4 sm:$0xff]  }
 0x14d   :  { %5396 = vmatprep.subr.bf16.mxu1 %v7342_v58  ;;  %v7388_v56 = vld [vmem:[%s10674_s1 + $0x1780] ss:$16 sps:$4 sm:$0xff]   ;;  %v7393_v55 = vld [vmem:[%s10674_s1 + $0x1564] ss:$16 sps:$4 sm:$0xff]  }
 0x14e   :  { %v7396_v57 = vld [vmem:[%s10674_s1 + $0x1764] ss:$16 sps:$4 sm:$0xff]   ;;  %v7391_v58 = vld [vmem:[%s10674_s1 + $0x1560] ss:$16 sps:$4 sm:$0xff]  }
 0x14f   :  { %5356 = vmatpush1.bf16.msra.mxu0 %v7337_v61  ;;  %v7394_v61 = vld [vmem:[%s10674_s1 + $0x1760] ss:$16 sps:$4 sm:$0xff]  }
 0x150   :  { %5397 = vmatpush1.bf16.msra.mxu1 %v7340_v62  ;;  %5357 = vmatprep.subr.bf16.mxu0 %v7345_v63  ;;  %v7399_v62 = vld [vmem:[%s10674_s1 + $0x1544] ss:$16 sps:$4 sm:$0xff]  }
 0x151   :  { %5398 = vmatprep.subr.bf16.mxu1 %v7348_v2  ;;  %v7402_v63 = vld [vmem:[%s10674_s1 + $0x1744] ss:$16 sps:$4 sm:$0xff]   ;;  %v7397_v2 = vld [vmem:[%s10674_s1 + $0x1540] ss:$16 sps:$4 sm:$0xff]  }
 0x153   :  { %5358 = vmatpush1.bf16.msra.mxu0 %v7343_v3  ;;  %v7400_v3 = vld [vmem:[%s10674_s1 + $0x1740] ss:$16 sps:$4 sm:$0xff]  }
 0x154   :  { %5399 = vmatpush1.bf16.msra.mxu1 %v7346_v1  ;;  %5359 = vmatprep.subr.bf16.mxu0 %v7351_v7  ;;  %v7405_v1 = vld [vmem:[%s10674_s1 + $0x1524] ss:$16 sps:$4 sm:$0xff]  }
 0x155   :  { %5400 = vmatprep.subr.bf16.mxu1 %v7354_v8  ;;  %v7408_v7 = vld [vmem:[%s10674_s1 + $0x1724] ss:$16 sps:$4 sm:$0xff]   ;;  %v7403_v8 = vld [vmem:[%s10674_s1 + $0x1520] ss:$16 sps:$4 sm:$0xff]  }
 0x157   :  { %5360 = vmatpush1.bf16.msra.mxu0 %v7349_v9  ;;  %v7406_v9 = vld [vmem:[%s10674_s1 + $0x1720] ss:$16 sps:$4 sm:$0xff]  }
 0x158   :  { %5401 = vmatpush1.bf16.msra.mxu1 %v7352_v10  ;;  %5361 = vmatprep.subr.bf16.mxu0 %v7357_v11  ;;  %v7411_v10 = vld [vmem:[%s10674_s1 + $0x1504] ss:$16 sps:$4 sm:$0xff]  }
 0x159   :  { %5402 = vmatprep.subr.bf16.mxu1 %v7360_v14  ;;  %v7414_v11 = vld [vmem:[%s10674_s1 + $0x1704] ss:$16 sps:$4 sm:$0xff]   ;;  %v9379_v14 = vrot.slane %v9144_v5, %v8198_v49  ;;  %v7421_v5 = vld [vmem:[%s10674_s1 + $0xec] ss:$16 sps:$4 sm:$0xff]  }
 0x15b   :  { %5362 = vmatpush1.bf16.msra.mxu0 %v7355_v16  ;;  %v7409_v16 = vld [vmem:[%s10674_s1 + $0x1500] ss:$16 sps:$4 sm:$0xff]  }
 0x15c   :  { %5403 = vmatpush1.bf16.msra.mxu1 %v7358_v19  ;;  %5363 = vmatprep.subr.bf16.mxu0 %v7363_v4  ;;  %v7412_v19 = vld [vmem:[%s10674_s1 + $0x1700] ss:$16 sps:$4 sm:$0xff]   ;;  %v7418_v4 = vld [vmem:[%s10674_s1 + $0x1864] ss:$16 sps:$4 sm:$0xff]  }
 0x15d   :  { %5404 = vmatprep.subr.bf16.mxu1 %v7366_v20  ;;  %v7416_v20 = vld [vmem:[%s10674_s1 + $0x1860] ss:$16 sps:$4 sm:$0xff]  }
 0x15f   :  { %5364 = vmatpush1.bf16.msra.mxu0 %v7361_v21  ;;  %v7419_v21 = vld [vmem:[%s10674_s1 + $0xe8] ss:$16 sps:$4 sm:$0xff]  }
 0x160   :  { %5405 = vmatpush1.bf16.msra.mxu1 %v7364_v27  ;;  %5365 = vmatprep.subr.bf16.mxu0 %v7369_v28  ;;  %v9401_v27 = vcombine.high %v9379_v14, %v9379_v14  ;;  %v7424_v28 = vld [vmem:[%s10674_s1 + $0x1844] ss:$16 sps:$4 sm:$0xff]  }
 0x161   :  { %5406 = vmatprep.subr.bf16.mxu1 %v7372_v29  ;;  %v7427_v29 = vld [vmem:[%s10674_s1 + $0xcc] ss:$16 sps:$4 sm:$0xff]  }
 0x163   :  { %5366 = vmatpush2.bf16.msra.mxu0 %v7367_v30  ;;  %v7422_v30 = vld [vmem:[%s10674_s1 + $0x1840] ss:$16 sps:$4 sm:$0xff]  }
 0x164   :  { %5407 = vmatpush2.bf16.msra.mxu1 %v7370_v34  ;;  %5367 = vmatprep.subr.bf16.mxu0 %v7375_v36  ;;  %v7425_v34 = vld [vmem:[%s10674_s1 + $0xc8] ss:$16 sps:$4 sm:$0xff]  }
 0x165   :  { %5408 = vmatprep.subr.bf16.mxu1 %v7378_v37 }
 0x167   :  { %5368 = vmatpush2.bf16.msra.mxu0 %v7373_v38 }
 0x168   :  { %5409 = vmatpush2.bf16.msra.mxu1 %v7376_v32  ;;  %5369 = vmatprep.subr.bf16.mxu0 %v7381_v40 }
 0x169   :  { %5410 = vmatprep.subr.bf16.mxu1 %v7384_v44  ;;  %v7430_v44 = vld [vmem:[%s10674_s1 + $0x1824] ss:$16 sps:$4 sm:$0xff]  }
 0x16b   :  { %5370 = vmatpush2.bf16.msra.mxu0 %v7379_v47  ;;  %v7433_v47 = vld [vmem:[%s10674_s1 + $0xac] ss:$16 sps:$4 sm:$0xff]  }
 0x16c   :  { %5411 = vmatpush2.bf16.msra.mxu1 %v7382_v46  ;;  %5371 = vmatprep.subr.bf16.mxu0 %v7387_v48 }
 0x16d   :  { %5412 = vmatprep.subr.bf16.mxu1 %v7390_v51  ;;  %v7431_v51 = vld [vmem:[%s10674_s1 + $0xa8] ss:$16 sps:$4 sm:$0xff]  }
 0x16f   :  { %5372 = vmatpush2.bf16.msra.mxu0 %v7385_v52  ;;  %v8040_v52 = vmov 0  }
 0x170   :  { %5413 = vmatpush2.bf16.msra.mxu1 %v7388_v56  ;;  %5373 = vmatprep.subr.bf16.mxu0 %v7393_v55 }
 0x171   :  { %5414 = vmatprep.subr.bf16.mxu1 %v7396_v57 }
 0x173   :  { %5374 = vmatpush2.bf16.msra.mxu0 %v7391_v58 }
 0x174   :  { %5415 = vmatpush2.bf16.msra.mxu1 %v7394_v61  ;;  %5375 = vmatprep.subr.bf16.mxu0 %v7399_v62  ;;  %v7436_v61 = vld [vmem:[%s10674_s1 + $0x1804] ss:$16 sps:$4 sm:$0xff]   ;;  %v7439_v62 = vld [vmem:[%s10674_s1 + $0x8c] ss:$16 sps:$4 sm:$0xff]  }
 0x175   :  { %5416 = vmatprep.subr.bf16.mxu1 %v7402_v63  ;;  %v7437_v63 = vld [vmem:[%s10674_s1 + $0x88] ss:$16 sps:$4 sm:$0xff]  }
 0x177   :  { %5376 = vmatpush2.bf16.msra.mxu0 %v7397_v2  ;;  %v6046_v2 = vld.sshfl [vmem:[%s10673_s0 + $0x18] sm:$0x1 pattern:$0x75316420] }
 0x178   :  { %5417 = vmatpush2.bf16.msra.mxu1 %v7400_v3  ;;  %5377 = vmatprep.subr.bf16.mxu0 %v7405_v1  ;;  %v7442_v3 = vld [vmem:[%s10674_s1 + $0x6c] ss:$16 sps:$4 sm:$0xff]  }
 0x179   :  { %5418 = vmatprep.subr.bf16.mxu1 %v7408_v7  ;;  %v7445_v1 = vld [vmem:[%s10674_s1 + $0x2ec] ss:$16 sps:$4 sm:$0xff]   ;;  %v7440_v7 = vld [vmem:[%s10674_s1 + $0x68] ss:$16 sps:$4 sm:$0xff]  }
 0x17b   :  { %5378 = vmatpush2.bf16.msra.mxu0 %v7403_v8  ;;  %v7443_v8 = vld [vmem:[%s10674_s1 + $0x2e8] ss:$16 sps:$4 sm:$0xff]  }
 0x17c   :  { %5419 = vmatpush2.bf16.msra.mxu1 %v7406_v9  ;;  %5379 = vmatprep.subr.bf16.mxu0 %v7411_v10  ;;  %v9465_v9 = vrot.slane %v6046_v2, %v8198_v49  ;;  %v7448_v10 = vld [vmem:[%s10674_s1 + $0x4c] ss:$16 sps:$4 sm:$0xff]   ;;  %v7446_v49 = vld [vmem:[%s10674_s1 + $0x48] ss:$16 sps:$4 sm:$0xff]  }
 0x17d   :  { %5420 = vmatprep.subr.bf16.mxu1 %v7414_v11  ;;  %v7451_v11 = vld [vmem:[%s10674_s1 + $0x2cc] ss:$16 sps:$4 sm:$0xff]  }
 0x17e   :  { %v7496_v2 = vld [vmem:[%s10674_s1 + $0x14c] ss:$16 sps:$4 sm:$0xff]  }
 0x17f   :  { %5380 = vmatpush2.bf16.msra.mxu0 %v7409_v16  ;;  %v7449_v16 = vld [vmem:[%s10674_s1 + $0x2c8] ss:$16 sps:$4 sm:$0xff]  }
 0x180   :  { %5421 = vmatpush2.bf16.msra.mxu1 %v7412_v19  ;;  %5439 = vmatprep.subr.bf16.mxu0 %v7418_v4  ;;  %v7454_v19 = vld [vmem:[%s10674_s1 + $0x2c] ss:$16 sps:$4 sm:$0xff]  }
 0x181   :  { %5472 = vmatprep.subr.bf16.mxu1 %v7421_v5  ;;  %v7457_v4 = vld [vmem:[%s10674_s1 + $0x2ac] ss:$16 sps:$4 sm:$0xff]   ;;  %v7452_v5 = vld [vmem:[%s10674_s1 + $0x28] ss:$16 sps:$4 sm:$0xff]  }
 0x182   :  { %v5137_v36 = vpop.f32.mrf.mxu0  ;;  %5382 = vmatmul.mubr.bf16.vlgmr.msra.gmra.mxu0 %v9379_v14 }
 0x183   :  { %v5178_v37 = vpop.f32.mrf.mxu1  ;;  %5423 = vmatmul.mubr.bf16.vlgmr.msra.gmra.mxu1 %v9401_v27  ;;  %v5138_v38 = vadd.f32 %v5137_v36, %v9214_v45  ;;  %5440 = vmatpush1.bf16.msra.mxu0 %v7416_v20  ;;  %v7428_v45 = vld [vmem:[%s10674_s1 + $0x1820] ss:$16 sps:$4 sm:$0xff]   ;;  %v7455_v20 = vld [vmem:[%s10674_s1 + $0x2a8] ss:$16 sps:$4 sm:$0xff]  }
 0x184   :  { %5473 = vmatpush1.bf16.msra.mxu1 %v7419_v21  ;;  %v5139_v32 = vpop.f32.mrf.mxu0  ;;  %5441 = vmatprep.subr.bf16.mxu0 %v7424_v28  ;;  %v7460_v21 = vld [vmem:[%s10674_s1 + $0xc] ss:$16 sps:$4 sm:$0xff]   ;;  %v7458_v28 = vld [vmem:[%s10674_s1 + $0x8] ss:$16 sps:$4 sm:$0xff]  }
 0x185   :  { %v5180_v40 = vpop.f32.mrf.mxu1  ;;  %5474 = vmatprep.subr.bf16.mxu1 %v7427_v29  ;;  %v9424_v46 = vadd.f32 %v5178_v37, %v5138_v38  ;;  %v5140_v48 = vadd.f32 %v5139_v32, %v9225_v53  ;;  %5463 = vmatprep.mubr.bf16.mxu0 %v8040_v52  ;;  %v7461_v29 = vld [vmem:[%s10674_s1 + $0x288] ss:$16 sps:$4 sm:$0xff]   ;;  %v7472_v38 = vld [vmem:[%s10674_s1 + $0x1cc] ss:$16 sps:$4 sm:$0xff]  }
 0x186   :  { %5504 = vmatprep.mubr.bf16.mxu1 %v8226_v60  ;;  %v5141_v56 = vpop.f32.mrf.mxu0  ;;  %v7434_v60 = vld [vmem:[%s10674_s1 + $0x1800] ss:$16 sps:$4 sm:$0xff]   ;;  %v7464_v36 = vld [vmem:[%s10674_s1 + $0x1e8] ss:$16 sps:$4 sm:$0xff]   ;;  %v7475_v32 = vld [vmem:[%s10674_s1 + $0x24c] ss:$16 sps:$4 sm:$0xff]  }
 0x187   :  { %v5182_v55 = vpop.f32.mrf.mxu1  ;;  %v9435_v57 = vadd.f32 %v5180_v40, %v5140_v48  ;;  %5442 = vmatpush1.bf16.msra.mxu0 %v7422_v30  ;;  %v7466_v30 = vld [vmem:[%s10674_s1 + $0x1ec] ss:$16 sps:$4 sm:$0xff]   ;;  %v7467_v37 = vld [vmem:[%s10674_s1 + $0x268] ss:$16 sps:$4 sm:$0xff]  }
 0x188   :  { %5475 = vmatpush1.bf16.msra.mxu1 %v7425_v34  ;;  %v5142_v53 = vpop.f32.mrf.mxu0  ;;  %5443 = vmatprep.subr.bf16.mxu0 %v7430_v44  ;;  %v7469_v34 = vld [vmem:[%s10674_s1 + $0x26c] ss:$16 sps:$4 sm:$0xff]   ;;  %v7470_v40 = vld [vmem:[%s10674_s1 + $0x1c8] ss:$16 sps:$4 sm:$0xff]  }
 0x189   :  { %v5183_v58 = vpop.f32.mrf.mxu1  ;;  %5476 = vmatprep.subr.bf16.mxu1 %v7433_v47  ;;  %v7473_v44 = vld [vmem:[%s10674_s1 + $0x248] ss:$16 sps:$4 sm:$0xff]   ;;  %v7478_v47 = vld [vmem:[%s10674_s1 + $0x1ac] ss:$16 sps:$4 sm:$0xff]  }
 0x18a   :  { %v7481_v48 = vld [vmem:[%s10674_s1 + $0x22c] ss:$16 sps:$4 sm:$0xff]   ;;  %v7482_v53 = vld [vmem:[%s10674_s1 + $0x188] ss:$16 sps:$4 sm:$0xff]  }
 0x18b   :  { %5444 = vmatpush1.bf16.msra.mxu0 %v7428_v45  ;;  %v7476_v45 = vld [vmem:[%s10674_s1 + $0x1a8] ss:$16 sps:$4 sm:$0xff]   ;;  %v7484_v56 = vld [vmem:[%s10674_s1 + $0x18c] ss:$16 sps:$4 sm:$0xff]  }
 0x18c   :  { %5477 = vmatpush1.bf16.msra.mxu1 %v7431_v51  ;;  %5445 = vmatprep.subr.bf16.mxu0 %v7436_v61  ;;  %v7479_v51 = vld [vmem:[%s10674_s1 + $0x228] ss:$16 sps:$4 sm:$0xff]   ;;  %v7487_v55 = vld [vmem:[%s10674_s1 + $0x20c] ss:$16 sps:$4 sm:$0xff]  }
 0x18d   :  { %5478 = vmatprep.subr.bf16.mxu1 %v7439_v62  ;;  %v7485_v58 = vld [vmem:[%s10674_s1 + $0x208] ss:$16 sps:$4 sm:$0xff]   ;;  %v7490_v61 = vld [vmem:[%s10674_s1 + $0x16c] ss:$16 sps:$4 sm:$0xff]  }
 0x18e   :  { %v7493_v62 = vld [vmem:[%s10674_s1 + $0x3ec] ss:$16 sps:$4 sm:$0xff]  }
 0x18f   :  { %5446 = vmatpush1.bf16.msra.mxu0 %v7434_v60  ;;  %v7488_v60 = vld [vmem:[%s10674_s1 + $0x168] ss:$16 sps:$4 sm:$0xff]  }
 0x190   :  { %5479 = vmatpush1.bf16.msra.mxu1 %v7437_v63  ;;  %5513 = vmatprep.subr.bf16.mxu0 %v7445_v1  ;;  %v7491_v63 = vld [vmem:[%s10674_s1 + $0x3e8] ss:$16 sps:$4 sm:$0xff]  }
 0x191   :  { %5480 = vmatprep.subr.bf16.mxu1 %v7442_v3  ;;  %v7499_v3 = vld [vmem:[%s10674_s1 + $0x3cc] ss:$16 sps:$4 sm:$0xff]   ;;  %v7494_v1 = vld [vmem:[%s10674_s1 + $0x148] ss:$16 sps:$4 sm:$0xff]  }
 0x192   :  { %6831 = vmatmul.mubr.msk.bf16.vlgmr.msra.gmra.mxu0 %vm4935_vm0, %v9465_v9 }
 0x193   :  { %5514 = vmatpush1.bf16.msra.mxu0 %v7443_v8  ;;  %5545 = vmatprep.mubr.bf16.mxu0 %v8239_v0  ;;  %v7463_v0 = vld [vmem:[%s10674_s1 + $0x28c] ss:$16 sps:$4 sm:$0xff]  }
 0x194   :  { %5481 = vmatpush1.bf16.msra.mxu1 %v7440_v7  ;;  %5515 = vmatprep.subr.bf16.mxu0 %v7451_v11  ;;  %v7497_v7 = vld [vmem:[%s10674_s1 + $0x3c8] ss:$16 sps:$4 sm:$0xff]   ;;  %v7502_v8 = vld [vmem:[%s10674_s1 + $0x12c] ss:$16 sps:$4 sm:$0xff]  }
 0x195   :  { %5482 = vmatprep.subr.bf16.mxu1 %v7448_v10  ;;  %v7505_v10 = vld [vmem:[%s10674_s1 + $0x3ac] ss:$16 sps:$4 sm:$0xff]   ;;  %v7500_v11 = vld [vmem:[%s10674_s1 + $0x128] ss:$16 sps:$4 sm:$0xff]  }
 0x197   :  { %5516 = vmatpush1.bf16.msra.mxu0 %v7449_v16  ;;  %v7508_v16 = vld [vmem:[%s10674_s1 + $0x10c] ss:$16 sps:$4 sm:$0xff]  }
 0x198   :  { %5483 = vmatpush1.bf16.msra.mxu1 %v7446_v49  ;;  %5517 = vmatprep.subr.bf16.mxu0 %v7457_v4  ;;  %v7503_v49 = vld [vmem:[%s10674_s1 + $0x3a8] ss:$16 sps:$4 sm:$0xff]  }
 0x199   :  { %5484 = vmatprep.subr.bf16.mxu1 %v7454_v19  ;;  %v7511_v19 = vld [vmem:[%s10674_s1 + $0x38c] ss:$16 sps:$4 sm:$0xff]   ;;  %v7506_v4 = vld [vmem:[%s10674_s1 + $0x108] ss:$16 sps:$4 sm:$0xff]  }
 0x19b   :  { %5518 = vmatpush1.bf16.msra.mxu0 %v7455_v20  ;;  %v7514_v20 = vld [vmem:[%s10674_s1 + $0x36c] ss:$16 sps:$4 sm:$0xff]  }
 0x19c   :  { %5485 = vmatpush1.bf16.msra.mxu1 %v7452_v5  ;;  %5519 = vmatprep.subr.bf16.mxu0 %v7463_v0  ;;  %v7509_v5 = vld [vmem:[%s10674_s1 + $0x388] ss:$16 sps:$4 sm:$0xff]  }
 0x19d   :  { %5486 = vmatprep.subr.bf16.mxu1 %v7460_v21  ;;  %v7517_v21 = vld [vmem:[%s10674_s1 + $0x4ec] ss:$16 sps:$4 sm:$0xff]   ;;  %v7512_v0 = vld [vmem:[%s10674_s1 + $0x368] ss:$16 sps:$4 sm:$0xff]  }
 0x19f   :  { %5520 = vmatpush1.bf16.msra.mxu0 %v7461_v29  ;;  %v7520_v29 = vld [vmem:[%s10674_s1 + $0x34c] ss:$16 sps:$4 sm:$0xff]  }
 0x1a0   :  { %5487 = vmatpush1.bf16.msra.mxu1 %v7458_v28  ;;  %5521 = vmatprep.subr.bf16.mxu0 %v7469_v34  ;;  %v7515_v28 = vld [vmem:[%s10674_s1 + $0x4e8] ss:$16 sps:$4 sm:$0xff]  }
 0x1a1   :  { %5488 = vmatprep.subr.bf16.mxu1 %v7466_v30  ;;  %v7523_v30 = vld [vmem:[%s10674_s1 + $0x4cc] ss:$16 sps:$4 sm:$0xff]   ;;  %v7518_v34 = vld [vmem:[%s10674_s1 + $0x348] ss:$16 sps:$4 sm:$0xff]  }
 0x1a3   :  { %5522 = vmatpush1.bf16.msra.mxu0 %v7467_v37 }
 0x1a4   :  { %5489 = vmatpush2.bf16.msra.mxu1 %v7464_v36  ;;  %5523 = vmatprep.subr.bf16.mxu0 %v7475_v32  ;;  %v7521_v36 = vld [vmem:[%s10674_s1 + $0x4c8] ss:$16 sps:$4 sm:$0xff]  }
 0x1a5   :  { %5490 = vmatprep.subr.bf16.mxu1 %v7472_v38 }
 0x1a7   :  { %5524 = vmatpush1.bf16.msra.mxu0 %v7473_v44 }
 0x1a8   :  { %5491 = vmatpush2.bf16.msra.mxu1 %v7470_v40  ;;  %5525 = vmatprep.subr.bf16.mxu0 %v7481_v48  ;;  %v7529_v48 = vld [vmem:[%s10674_s1 + $0x4ac] ss:$16 sps:$4 sm:$0xff]  }
 0x1a9   :  { %5492 = vmatprep.subr.bf16.mxu1 %v7478_v47  ;;  %v7526_v47 = vld [vmem:[%s10674_s1 + $0x32c] ss:$16 sps:$4 sm:$0xff]  }
 0x1ab   :  { %5526 = vmatpush1.bf16.msra.mxu0 %v7479_v51  ;;  %v7527_v51 = vld [vmem:[%s10674_s1 + $0x4a8] ss:$16 sps:$4 sm:$0xff]  }
 0x1ac   :  { %5493 = vmatpush2.bf16.msra.mxu1 %v7476_v45  ;;  %5527 = vmatprep.subr.bf16.mxu0 %v7487_v55 }
 0x1ad   :  { %5494 = vmatprep.subr.bf16.mxu1 %v7484_v56 }
 0x1af   :  { %5528 = vmatpush1.bf16.msra.mxu0 %v7485_v58 }
 0x1b0   :  { %5495 = vmatpush2.bf16.msra.mxu1 %v7482_v53  ;;  %5529 = vmatprep.subr.bf16.mxu0 %v7493_v62  ;;  %v7535_v62 = vld [vmem:[%s10674_s1 + $0x48c] ss:$16 sps:$4 sm:$0xff]  }
 0x1b1   :  { %5496 = vmatprep.subr.bf16.mxu1 %v7490_v61 }
 0x1b3   :  { %5530 = vmatpush2.bf16.msra.mxu0 %v7491_v63 }
 0x1b4   :  { %5497 = vmatpush2.bf16.msra.mxu1 %v7488_v60  ;;  %5531 = vmatprep.subr.bf16.mxu0 %v7499_v3 }
 0x1b5   :  { %5498 = vmatprep.subr.bf16.mxu1 %v7496_v2 }
 0x1b7   :  { %5532 = vmatpush2.bf16.msra.mxu0 %v7497_v7 }
 0x1b8   :  { %5499 = vmatpush2.bf16.msra.mxu1 %v7494_v1  ;;  %5533 = vmatprep.subr.bf16.mxu0 %v7505_v10 }
 0x1b9   :  { %5500 = vmatprep.subr.bf16.mxu1 %v7502_v8 }
 0x1bb   :  { %5534 = vmatpush2.bf16.msra.mxu0 %v7503_v49 }
 0x1bc   :  { %5501 = vmatpush2.bf16.msra.mxu1 %v7500_v11  ;;  %5535 = vmatprep.subr.bf16.mxu0 %v7511_v19 }
 0x1bd   :  { %5502 = vmatprep.subr.bf16.mxu1 %v7508_v16 }
 0x1bf   :  { %5536 = vmatpush2.bf16.msra.mxu0 %v7509_v5 }
 0x1c0   :  { %5503 = vmatpush2.bf16.msra.mxu1 %v7506_v4  ;;  %5537 = vmatprep.subr.bf16.mxu0 %v7514_v20 }
 0x1c1   :  { %5554 = vmatprep.subr.bf16.mxu1 %v7517_v21 }
 0x1c2   :  { %v5219_v37 = vpop.f32.mrf.mxu0 }
 0x1c3   :  { %v5260_v38 = vpop.f32.mrf.mxu1  ;;  %5505 = vmatmul.mubr.bf16.vlgmr.msra.gmra.mxu1 %v8276_v13  ;;  %v5220_v32 = vadd.f32 %v5219_v37, %v9424_v46  ;;  %5538 = vmatpush2.bf16.msra.mxu0 %v7512_v0  ;;  %v7524_v46 = vld [vmem:[%s10674_s1 + $0x328] ss:$16 sps:$4 sm:$0xff]  }
 0x1c4   :  { %5555 = vmatpush1.bf16.msra.mxu1 %v7515_v28  ;;  %v5221_v40 = vpop.f32.mrf.mxu0  ;;  %5539 = vmatprep.subr.bf16.mxu0 %v7520_v29 }
 0x1c5   :  { %v5262_v44 = vpop.f32.mrf.mxu1  ;;  %5556 = vmatprep.subr.bf16.mxu1 %v7523_v30  ;;  %v9634_v45 = vadd.f32 %v5260_v38, %v5220_v32  ;;  %v5222_v13 = vadd.f32 %v5221_v40, %v9435_v57  ;;  %5586 = vmatprep.mubr.bf16.mxu1 %v8288_v17  ;;  %v7532_v57 = vld [vmem:[%s10674_s1 + $0x30c] ss:$16 sps:$4 sm:$0xff]  }
 0x1c6   :  { %v5223_v56 = vpop.f32.mrf.mxu0 }
 0x1c7   :  { %v5264_v55 = vpop.f32.mrf.mxu1  ;;  %v9644_v53 = vadd.f32 %v5262_v44, %v5222_v13  ;;  %5540 = vmatpush2.bf16.msra.mxu0 %v7518_v34 }
 0x1c8   :  { %5557 = vmatpush1.bf16.msra.mxu1 %v7521_v36  ;;  %v5224_v58 = vpop.f32.mrf.mxu0  ;;  %5541 = vmatprep.subr.bf16.mxu0 %v7526_v47 }
 0x1c9   :  { %v5265_v61 = vpop.f32.mrf.mxu1  ;;  %5558 = vmatprep.subr.bf16.mxu1 %v7529_v48 }
 0x1ca   :  { %8 = vsyncpa [#allocation3], 0  ;;  %v7530_v17 = vld [vmem:[%s10674_s1 + $0x308] ss:$16 sps:$4 sm:$0xff]   ;;  %v7538_v63 = vld [vmem:[%s10674_s1 + $0x46c] ss:$16 sps:$4 sm:$0xff]  }
 0x1cb   :  { %5542 = vmatpush2.bf16.msra.mxu0 %v7524_v46  ;;  %v7533_v60 = vld [vmem:[%s10674_s1 + $0x488] ss:$16 sps:$4 sm:$0xff]   ;;  %v7541_v2 = vld [vmem:[%s10674_s1 + $0x6ec] ss:$16 sps:$4 sm:$0xff]  }
 0x1cc   :  { %5559 = vmatpush1.bf16.msra.mxu1 %v7527_v51  ;;  %5543 = vmatprep.subr.bf16.mxu0 %v7532_v57  ;;  %v7536_v3 = vld [vmem:[%s10674_s1 + $0x468] ss:$16 sps:$4 sm:$0xff]   ;;  %v7544_v7 = vld [vmem:[%s10674_s1 + $0x44c] ss:$16 sps:$4 sm:$0xff]  }
 0x1cd   :  { %5560 = vmatprep.subr.bf16.mxu1 %v7535_v62  ;;  %v7539_v1 = vld [vmem:[%s10674_s1 + $0x6e8] ss:$16 sps:$4 sm:$0xff]   ;;  %v7547_v8 = vld [vmem:[%s10674_s1 + $0x6cc] ss:$16 sps:$4 sm:$0xff]  }
 0x1ce   :  { %v7542_v10 = vld [vmem:[%s10674_s1 + $0x448] ss:$16 sps:$4 sm:$0xff]   ;;  %v7550_v49 = vld [vmem:[%s10674_s1 + $0x42c] ss:$16 sps:$4 sm:$0xff]  }
 0x1cf   :  { %5544 = vmatpush2.bf16.msra.mxu0 %v7530_v17  ;;  %v7545_v11 = vld [vmem:[%s10674_s1 + $0x6c8] ss:$16 sps:$4 sm:$0xff]   ;;  %v7556_v4 = vld [vmem:[%s10674_s1 + $0x40c] ss:$16 sps:$4 sm:$0xff]  }
 0x1d0   :  { %5561 = vmatpush1.bf16.msra.mxu1 %v7533_v60  ;;  %5595 = vmatprep.subr.bf16.mxu0 %v7541_v2  ;;  %v7548_v16 = vld [vmem:[%s10674_s1 + $0x428] ss:$16 sps:$4 sm:$0xff]   ;;  %v7562_v21 = vld [vmem:[%s10674_s1 + $0x5ec] ss:$16 sps:$4 sm:$0xff]  }
 0x1d1   :  { %5562 = vmatprep.subr.bf16.mxu1 %v7538_v63  ;;  %v7551_v19 = vld [vmem:[%s10674_s1 + $0x6a8] ss:$16 sps:$4 sm:$0xff]   ;;  %v7565_v0 = vld [vmem:[%s10674_s1 + $0x66c] ss:$16 sps:$4 sm:$0xff]  }
 0x1d2   :  { %5546 = vmatmul.mubr.bf16.vlgmr.msra.gmra.mxu0 %v8292_v18  ;;  %v7553_v18 = vld [vmem:[%s10674_s1 + $0x6ac] ss:$16 sps:$4 sm:$0xff]   ;;  %v7554_v5 = vld [vmem:[%s10674_s1 + $0x408] ss:$16 sps:$4 sm:$0xff]  }
 0x1d3   :  { %5596 = vmatpush1.bf16.msra.mxu0 %v7539_v1  ;;  %5627 = vmatprep.mubr.bf16.mxu0 %v8308_v23  ;;  %v7559_v23 = vld [vmem:[%s10674_s1 + $0x68c] ss:$16 sps:$4 sm:$0xff]   ;;  %v7557_v20 = vld [vmem:[%s10674_s1 + $0x688] ss:$16 sps:$4 sm:$0xff]  }
 0x1d4   :  { %5563 = vmatpush1.bf16.msra.mxu1 %v7536_v3  ;;  %5597 = vmatprep.subr.bf16.mxu0 %v7547_v8  ;;  %v7560_v28 = vld [vmem:[%s10674_s1 + $0x5e8] ss:$16 sps:$4 sm:$0xff]   ;;  %v7568_v30 = vld [vmem:[%s10674_s1 + $0x5cc] ss:$16 sps:$4 sm:$0xff]  }
 0x1d5   :  { %5564 = vmatprep.subr.bf16.mxu1 %v7544_v7  ;;  %v7563_v29 = vld [vmem:[%s10674_s1 + $0x668] ss:$16 sps:$4 sm:$0xff]   ;;  %v7571_v34 = vld [vmem:[%s10674_s1 + $0x64c] ss:$16 sps:$4 sm:$0xff]  }
 0x1d6   :  { %v7566_v36 = vld [vmem:[%s10674_s1 + $0x5c8] ss:$16 sps:$4 sm:$0xff]   ;;  %v7574_v38 = vld [vmem:[%s10674_s1 + $0x5ac] ss:$16 sps:$4 sm:$0xff]  }
 0x1d7   :  { %5598 = vmatpush1.bf16.msra.mxu0 %v7545_v11  ;;  %v7569_v37 = vld [vmem:[%s10674_s1 + $0x648] ss:$16 sps:$4 sm:$0xff]   ;;  %v7577_v32 = vld [vmem:[%s10674_s1 + $0x62c] ss:$16 sps:$4 sm:$0xff]  }
 0x1d8   :  { %5565 = vmatpush1.bf16.msra.mxu1 %v7542_v10  ;;  %5599 = vmatprep.subr.bf16.mxu0 %v7553_v18  ;;  %v7572_v40 = vld [vmem:[%s10674_s1 + $0x5a8] ss:$16 sps:$4 sm:$0xff]   ;;  %v7580_v47 = vld [vmem:[%s10674_s1 + $0x58c] ss:$16 sps:$4 sm:$0xff]  }
 0x1d9   :  { %5566 = vmatprep.subr.bf16.mxu1 %v7550_v49  ;;  %v7575_v44 = vld [vmem:[%s10674_s1 + $0x628] ss:$16 sps:$4 sm:$0xff]   ;;  %v7583_v48 = vld [vmem:[%s10674_s1 + $0x60c] ss:$16 sps:$4 sm:$0xff]  }
 0x1da   :  { %v7578_v13 = vld [vmem:[%s10674_s1 + $0x588] ss:$16 sps:$4 sm:$0xff]   ;;  %v7586_v51 = vld [vmem:[%s10674_s1 + $0x56c] ss:$16 sps:$4 sm:$0xff]  }
 0x1db   :  { %5600 = vmatpush1.bf16.msra.mxu0 %v7551_v19  ;;  %v7581_v46 = vld [vmem:[%s10674_s1 + $0x608] ss:$16 sps:$4 sm:$0xff]   ;;  %v7589_v56 = vld [vmem:[%s10674_s1 + $0x7ec] ss:$16 sps:$4 sm:$0xff]  }
 0x1dc   :  { %5567 = vmatpush1.bf16.msra.mxu1 %v7548_v16  ;;  %5601 = vmatprep.subr.bf16.mxu0 %v7559_v23  ;;  %v7584_v55 = vld [vmem:[%s10674_s1 + $0x568] ss:$16 sps:$4 sm:$0xff]   ;;  %v7592_v61 = vld [vmem:[%s10674_s1 + $0x54c] ss:$16 sps:$4 sm:$0xff]  }
 0x1dd   :  { %5568 = vmatprep.subr.bf16.mxu1 %v7556_v4  ;;  %v7587_v58 = vld [vmem:[%s10674_s1 + $0x7e8] ss:$16 sps:$4 sm:$0xff]   ;;  %v7595_v57 = vld [vmem:[%s10674_s1 + $0x7cc] ss:$16 sps:$4 sm:$0xff]  }
 0x1de   :  { %v7590_v62 = vld [vmem:[%s10674_s1 + $0x548] ss:$16 sps:$4 sm:$0xff]   ;;  %v7598_v60 = vld [vmem:[%s10674_s1 + $0x52c] ss:$16 sps:$4 sm:$0xff]  }
 0x1df   :  { %5602 = vmatpush1.bf16.msra.mxu0 %v7557_v20  ;;  %v7593_v17 = vld [vmem:[%s10674_s1 + $0x7c8] ss:$16 sps:$4 sm:$0xff]   ;;  %v7601_v63 = vld [vmem:[%s10674_s1 + $0x7ac] ss:$16 sps:$4 sm:$0xff]  }
 0x1e0   :  { %5569 = vmatpush1.bf16.msra.mxu1 %v7554_v5  ;;  %5603 = vmatprep.subr.bf16.mxu0 %v7565_v0  ;;  %v7596_v2 = vld [vmem:[%s10674_s1 + $0x528] ss:$16 sps:$4 sm:$0xff]   ;;  %v7604_v1 = vld [vmem:[%s10674_s1 + $0x50c] ss:$16 sps:$4 sm:$0xff]  }
 0x1e1   :  { %5570 = vmatprep.subr.bf16.mxu1 %v7562_v21  ;;  %v7599_v3 = vld [vmem:[%s10674_s1 + $0x7a8] ss:$16 sps:$4 sm:$0xff]   ;;  %v7607_v7 = vld [vmem:[%s10674_s1 + $0x78c] ss:$16 sps:$4 sm:$0xff]  }
 0x1e2   :  { %v7602_v8 = vld [vmem:[%s10674_s1 + $0x508] ss:$16 sps:$4 sm:$0xff]   ;;  %v7610_v11 = vld [vmem:[%s10674_s1 + $0x76c] ss:$16 sps:$4 sm:$0xff]  }
 0x1e3   :  { %5604 = vmatpush1.bf16.msra.mxu0 %v7563_v29  ;;  %v7605_v10 = vld [vmem:[%s10674_s1 + $0x788] ss:$16 sps:$4 sm:$0xff]   ;;  %v7613_v49 = vld [vmem:[%s10674_s1 + $0x8ec] ss:$16 sps:$4 sm:$0xff]  }
 0x1e4   :  { %5571 = vmatpush2.bf16.msra.mxu1 %v7560_v28  ;;  %5605 = vmatprep.subr.bf16.mxu0 %v7571_v34  ;;  %v7608_v18 = vld [vmem:[%s10674_s1 + $0x768] ss:$16 sps:$4 sm:$0xff]   ;;  %v7616_v19 = vld [vmem:[%s10674_s1 + $0x74c] ss:$16 sps:$4 sm:$0xff]  }
 0x1e5   :  { %5572 = vmatprep.subr.bf16.mxu1 %v7568_v30  ;;  %v7611_v16 = vld [vmem:[%s10674_s1 + $0x8e8] ss:$16 sps:$4 sm:$0xff]   ;;  %v7619_v4 = vld [vmem:[%s10674_s1 + $0x8cc] ss:$16 sps:$4 sm:$0xff]  }
 0x1e6   :  { %v7614_v21 = vld [vmem:[%s10674_s1 + $0x748] ss:$16 sps:$4 sm:$0xff]  }
 0x1e7   :  { %5606 = vmatpush1.bf16.msra.mxu0 %v7569_v37  ;;  %v7617_v0 = vld [vmem:[%s10674_s1 + $0x8c8] ss:$16 sps:$4 sm:$0xff]  }
 0x1e8   :  { %5573 = vmatpush2.bf16.msra.mxu1 %v7566_v36  ;;  %5607 = vmatprep.subr.bf16.mxu0 %v7577_v32  ;;  %v7620_v32 = vld [vmem:[%s10674_s1 + $0x728] ss:$16 sps:$4 sm:$0xff]  }
 0x1e9   :  { %5574 = vmatprep.subr.bf16.mxu1 %v7574_v38 }
 0x1eb   :  { %5608 = vmatpush1.bf16.msra.mxu0 %v7575_v44 }
 0x1ec   :  { %5575 = vmatpush2.bf16.msra.mxu1 %v7572_v40  ;;  %5609 = vmatprep.subr.bf16.mxu0 %v7583_v48  ;;  %v7623_v40 = vld [vmem:[%s10674_s1 + $0x8a8] ss:$16 sps:$4 sm:$0xff]  }
 0x1ed   :  { %5576 = vmatprep.subr.bf16.mxu1 %v7580_v47  ;;  %v7626_v48 = vld [vmem:[%s10674_s1 + $0x708] ss:$16 sps:$4 sm:$0xff]  }
 0x1ef   :  { %5610 = vmatpush1.bf16.msra.mxu0 %v7581_v46  ;;  %v7634_v46 = vld [vmem:[%s10674_s1 + $0x86c] ss:$16 sps:$4 sm:$0xff]  }
 0x1f0   :  { %5577 = vmatpush2.bf16.msra.mxu1 %v7578_v13  ;;  %5611 = vmatprep.subr.bf16.mxu0 %v7589_v56  ;;  %v7629_v13 = vld [vmem:[%s10674_s1 + $0x888] ss:$16 sps:$4 sm:$0xff]  }
 0x1f1   :  { %5578 = vmatprep.subr.bf16.mxu1 %v7586_v51  ;;  %v7637_v51 = vld [vmem:[%s10674_s1 + $0xaec] ss:$16 sps:$4 sm:$0xff]   ;;  %v7632_v56 = vld [vmem:[%s10674_s1 + $0x868] ss:$16 sps:$4 sm:$0xff]  }
 0x1f3   :  { %5612 = vmatpush2.bf16.msra.mxu0 %v7587_v58  ;;  %v7640_v58 = vld [vmem:[%s10674_s1 + $0x84c] ss:$16 sps:$4 sm:$0xff]  }
 0x1f4   :  { %5579 = vmatpush2.bf16.msra.mxu1 %v7584_v55  ;;  %5613 = vmatprep.subr.bf16.mxu0 %v7595_v57  ;;  %v7635_v55 = vld [vmem:[%s10674_s1 + $0xae8] ss:$16 sps:$4 sm:$0xff]  }
 0x1f5   :  { %5580 = vmatprep.subr.bf16.mxu1 %v7592_v61  ;;  %v7643_v61 = vld [vmem:[%s10674_s1 + $0xacc] ss:$16 sps:$4 sm:$0xff]   ;;  %v7638_v57 = vld [vmem:[%s10674_s1 + $0x848] ss:$16 sps:$4 sm:$0xff]  }
 0x1f7   :  { %5614 = vmatpush2.bf16.msra.mxu0 %v7593_v17  ;;  %v7646_v17 = vld [vmem:[%s10674_s1 + $0x82c] ss:$16 sps:$4 sm:$0xff]  }
 0x1f8   :  { %5581 = vmatpush2.bf16.msra.mxu1 %v7590_v62  ;;  %5615 = vmatprep.subr.bf16.mxu0 %v7601_v63  ;;  %v7641_v62 = vld [vmem:[%s10674_s1 + $0xac8] ss:$16 sps:$4 sm:$0xff]  }
 0x1f9   :  { %5582 = vmatprep.subr.bf16.mxu1 %v7598_v60  ;;  %v7644_v60 = vld [vmem:[%s10674_s1 + $0x828] ss:$16 sps:$4 sm:$0xff]  }
 0x1fa   :  { %v7647_v63 = vld [vmem:[%s10674_s1 + $0xaa8] ss:$16 sps:$4 sm:$0xff]  }
 0x1fb   :  { %5616 = vmatpush2.bf16.msra.mxu0 %v7599_v3  ;;  %v7650_v3 = vld [vmem:[%s10674_s1 + $0x808] ss:$16 sps:$4 sm:$0xff]  }
 0x1fc   :  { %5583 = vmatpush2.bf16.msra.mxu1 %v7596_v2  ;;  %5617 = vmatprep.subr.bf16.mxu0 %v7607_v7  ;;  %v7652_v2 = vld [vmem:[%s10674_s1 + $0x80c] ss:$16 sps:$4 sm:$0xff]  }
 0x1fd   :  { %5584 = vmatprep.subr.bf16.mxu1 %v7604_v1  ;;  %v7653_v1 = vld [vmem:[%s10674_s1 + $0xa88] ss:$16 sps:$4 sm:$0xff]   ;;  %v7658_v7 = vld [vmem:[%s10674_s1 + $0x9ec] ss:$16 sps:$4 sm:$0xff]  }
 0x1ff   :  { %5618 = vmatpush2.bf16.msra.mxu0 %v7605_v10  ;;  %v7656_v10 = vld [vmem:[%s10674_s1 + $0x9e8] ss:$16 sps:$4 sm:$0xff]  }
 0x200   :  { %5585 = vmatpush2.bf16.msra.mxu1 %v7602_v8  ;;  %5619 = vmatprep.subr.bf16.mxu0 %v7610_v11  ;;  %v7661_v8 = vld [vmem:[%s10674_s1 + $0xa6c] ss:$16 sps:$4 sm:$0xff]   ;;  %v7659_v11 = vld [vmem:[%s10674_s1 + $0xa68] ss:$16 sps:$4 sm:$0xff]  }
 0x201   :  { %5636 = vmatprep.subr.bf16.mxu1 %v7613_v49  ;;  %v7664_v49 = vld [vmem:[%s10674_s1 + $0x9cc] ss:$16 sps:$4 sm:$0xff]  }
 0x202   :  { %v5301_v23 = vpop.f32.mrf.mxu0 }
 0x203   :  { %v5342_v5 = vpop.f32.mrf.mxu1  ;;  %5587 = vmatmul.mubr.bf16.vlgmr.msra.gmra.mxu1 %v8487_v26  ;;  %v5302_v20 = vadd.f32 %v5301_v23, %v9634_v45  ;;  %5620 = vmatpush2.bf16.msra.mxu0 %v7608_v18  ;;  %v7622_v26 = vld [vmem:[%s10674_s1 + $0x72c] ss:$16 sps:$4 sm:$0xff]  }
 0x204   :  { %5637 = vmatpush1.bf16.msra.mxu1 %v7611_v16  ;;  %v5303_v28 = vpop.f32.mrf.mxu0  ;;  %5621 = vmatprep.subr.bf16.mxu0 %v7616_v19  ;;  %v7625_v45 = vld [vmem:[%s10674_s1 + $0x8ac] ss:$16 sps:$4 sm:$0xff]   ;;  %v7662_v16 = vld [vmem:[%s10674_s1 + $0x9c8] ss:$16 sps:$4 sm:$0xff]  }
 0x205   :  { %v5344_v29 = vpop.f32.mrf.mxu1  ;;  %5638 = vmatprep.subr.bf16.mxu1 %v7619_v4  ;;  %v9836_v30 = vadd.f32 %v5342_v5, %v5302_v20  ;;  %v5304_v34 = vadd.f32 %v5303_v28, %v9644_v53  ;;  %5668 = vmatprep.mubr.bf16.mxu1 %v8540_v41  ;;  %v7628_v41 = vld [vmem:[%s10674_s1 + $0x70c] ss:$16 sps:$4 sm:$0xff]   ;;  %v7665_v19 = vld [vmem:[%s10674_s1 + $0xa48] ss:$16 sps:$4 sm:$0xff]  }
 0x206   :  { %v5305_v36 = vpop.f32.mrf.mxu0  ;;  %v7631_v53 = vld [vmem:[%s10674_s1 + $0x88c] ss:$16 sps:$4 sm:$0xff]   ;;  %v7668_v5 = vld [vmem:[%s10674_s1 + $0x9a8] ss:$16 sps:$4 sm:$0xff]  }
 0x207   :  { %v5346_v37 = vpop.f32.mrf.mxu1  ;;  %v9840_v38 = vadd.f32 %v5344_v29, %v5304_v34  ;;  %5622 = vmatpush2.bf16.msra.mxu0 %v7614_v21  ;;  %v7667_v18 = vld [vmem:[%s10674_s1 + $0xa4c] ss:$16 sps:$4 sm:$0xff]   ;;  %v7671_v20 = vld [vmem:[%s10674_s1 + $0xa28] ss:$16 sps:$4 sm:$0xff]  }
 0x208   :  { %5639 = vmatpush1.bf16.msra.mxu1 %v7617_v0  ;;  %v5306_v44 = vpop.f32.mrf.mxu0  ;;  %5623 = vmatprep.subr.bf16.mxu0 %v7622_v26  ;;  %v7670_v4 = vld [vmem:[%s10674_s1 + $0x9ac] ss:$16 sps:$4 sm:$0xff]   ;;  %v7674_v28 = vld [vmem:[%s10674_s1 + $0x988] ss:$16 sps:$4 sm:$0xff]  }
 0x209   :  { %v5347_v47 = vpop.f32.mrf.mxu1  ;;  %5640 = vmatprep.subr.bf16.mxu1 %v7625_v45  ;;  %v7673_v23 = vld [vmem:[%s10674_s1 + $0xa2c] ss:$16 sps:$4 sm:$0xff]   ;;  %v7677_v29 = vld [vmem:[%s10674_s1 + $0xa08] ss:$16 sps:$4 sm:$0xff]  }
 0x20a   :  { %v7676_v21 = vld [vmem:[%s10674_s1 + $0x98c] ss:$16 sps:$4 sm:$0xff]   ;;  %v7680_v34 = vld [vmem:[%s10674_s1 + $0x968] ss:$16 sps:$4 sm:$0xff]  }
 0x20b   :  { %5624 = vmatpush2.bf16.msra.mxu0 %v7620_v32  ;;  %v7679_v0 = vld [vmem:[%s10674_s1 + $0xa0c] ss:$16 sps:$4 sm:$0xff]   ;;  %v7683_v36 = vld [vmem:[%s10674_s1 + $0xbe8] ss:$16 sps:$4 sm:$0xff]  }
 0x20c   :  { %5641 = vmatpush1.bf16.msra.mxu1 %v7623_v40  ;;  %5625 = vmatprep.subr.bf16.mxu0 %v7628_v41  ;;  %v7682_v26 = vld [vmem:[%s10674_s1 + $0x96c] ss:$16 sps:$4 sm:$0xff]   ;;  %v7686_v40 = vld [vmem:[%s10674_s1 + $0x948] ss:$16 sps:$4 sm:$0xff]  }
 0x20d   :  { %5642 = vmatprep.subr.bf16.mxu1 %v7631_v53  ;;  %v7685_v45 = vld [vmem:[%s10674_s1 + $0xbec] ss:$16 sps:$4 sm:$0xff]   ;;  %v7689_v44 = vld [vmem:[%s10674_s1 + $0xbc8] ss:$16 sps:$4 sm:$0xff]  }
 0x20e   :  { %v7688_v37 = vld [vmem:[%s10674_s1 + $0x94c] ss:$16 sps:$4 sm:$0xff]   ;;  %v7692_v53 = vld [vmem:[%s10674_s1 + $0x928] ss:$16 sps:$4 sm:$0xff]  }
 0x20f   :  { %5626 = vmatpush2.bf16.msra.mxu0 %v7626_v48  ;;  %v7691_v32 = vld [vmem:[%s10674_s1 + $0xbcc] ss:$16 sps:$4 sm:$0xff]   ;;  %v7695_v48 = vld [vmem:[%s10674_s1 + $0xba8] ss:$16 sps:$4 sm:$0xff]  }
 0x210   :  { %5643 = vmatpush1.bf16.msra.mxu1 %v7629_v13  ;;  %5677 = vmatprep.subr.bf16.mxu0 %v7637_v51  ;;  %v7694_v47 = vld [vmem:[%s10674_s1 + $0x92c] ss:$16 sps:$4 sm:$0xff]   ;;  %v7698_v51 = vld [vmem:[%s10674_s1 + $0x908] ss:$16 sps:$4 sm:$0xff]  }
 0x211   :  { %5644 = vmatprep.subr.bf16.mxu1 %v7634_v46  ;;  %v7697_v41 = vld [vmem:[%s10674_s1 + $0xbac] ss:$16 sps:$4 sm:$0xff]  }
 0x212   :  { %5628 = vmatmul.mubr.bf16.vlgmr.msra.gmra.mxu0 %v8500_v6  ;;  %v7649_v6 = vld [vmem:[%s10674_s1 + $0xaac] ss:$16 sps:$4 sm:$0xff]  }
 0x213   :  { %5678 = vmatpush1.bf16.msra.mxu0 %v7635_v55  ;;  %5709 = vmatprep.mubr.bf16.mxu0 %v8545_v43  ;;  %v7655_v43 = vld [vmem:[%s10674_s1 + $0xa8c] ss:$16 sps:$4 sm:$0xff]  }
 0x214   :  { %5645 = vmatpush1.bf16.msra.mxu1 %v7632_v56  ;;  %5679 = vmatprep.subr.bf16.mxu0 %v7643_v61  ;;  %v7700_v13 = vld [vmem:[%s10674_s1 + $0x90c] ss:$16 sps:$4 sm:$0xff]   ;;  %v7701_v56 = vld [vmem:[%s10674_s1 + $0xb88] ss:$16 sps:$4 sm:$0xff]  }
 0x215   :  { %5646 = vmatprep.subr.bf16.mxu1 %v7640_v58  ;;  %v7703_v46 = vld [vmem:[%s10674_s1 + $0xb8c] ss:$16 sps:$4 sm:$0xff]   ;;  %v7704_v61 = vld [vmem:[%s10674_s1 + $0xb68] ss:$16 sps:$4 sm:$0xff]  }
 0x216   :  { %v7706_v55 = vld [vmem:[%s10674_s1 + $0xb6c] ss:$16 sps:$4 sm:$0xff]  }
 0x217   :  { %5680 = vmatpush1.bf16.msra.mxu0 %v7641_v62  ;;  %v7709_v58 = vld [vmem:[%s10674_s1 + $0xcec] ss:$16 sps:$4 sm:$0xff]  }
 0x218   :  { %5647 = vmatpush1.bf16.msra.mxu1 %v7638_v57  ;;  %5681 = vmatprep.subr.bf16.mxu0 %v7649_v6  ;;  %v7707_v57 = vld [vmem:[%s10674_s1 + $0xce8] ss:$16 sps:$4 sm:$0xff]   ;;  %v7712_v62 = vld [vmem:[%s10674_s1 + $0xb4c] ss:$16 sps:$4 sm:$0xff]  }
 0x219   :  { %5648 = vmatprep.subr.bf16.mxu1 %v7646_v17  ;;  %v7715_v17 = vld [vmem:[%s10674_s1 + $0xccc] ss:$16 sps:$4 sm:$0xff]  }
 0x21b   :  { %5682 = vmatpush1.bf16.msra.mxu0 %v7647_v63 }
 0x21c   :  { %5649 = vmatpush1.bf16.msra.mxu1 %v7644_v60  ;;  %5683 = vmatprep.subr.bf16.mxu0 %v7655_v43  ;;  %v7713_v43 = vld [vmem:[%s10674_s1 + $0xcc8] ss:$16 sps:$4 sm:$0xff]  }
 0x21d   :  { %5650 = vmatprep.subr.bf16.mxu1 %v7652_v2  ;;  %v7710_v2 = vld [vmem:[%s10674_s1 + $0xb48] ss:$16 sps:$4 sm:$0xff]  }
 0x21f   :  { %5684 = vmatpush1.bf16.msra.mxu0 %v7653_v1 }
 0x220   :  { %5651 = vmatpush1.bf16.msra.mxu1 %v7650_v3  ;;  %5685 = vmatprep.subr.bf16.mxu0 %v7661_v8 }
 0x221   :  { %5652 = vmatprep.subr.bf16.mxu1 %v7658_v7 }
 0x223   :  { %5686 = vmatpush1.bf16.msra.mxu0 %v7659_v11 }
 0x224   :  { %5653 = vmatpush2.bf16.msra.mxu1 %v7656_v10  ;;  %5687 = vmatprep.subr.bf16.mxu0 %v7667_v18  ;;  %v7716_v18 = vld [vmem:[%s10674_s1 + $0xb28] ss:$16 sps:$4 sm:$0xff]  }
 0x225   :  { %5654 = vmatprep.subr.bf16.mxu1 %v7664_v49 }
 0x227   :  { %5688 = vmatpush1.bf16.msra.mxu0 %v7665_v19 }
 0x228   :  { %5655 = vmatpush2.bf16.msra.mxu1 %v7662_v16  ;;  %5689 = vmatprep.subr.bf16.mxu0 %v7673_v23  ;;  %v7719_v16 = vld [vmem:[%s10674_s1 + $0xca8] ss:$16 sps:$4 sm:$0xff]  }
 0x229   :  { %5656 = vmatprep.subr.bf16.mxu1 %v7670_v4  ;;  %v7722_v23 = vld [vmem:[%s10674_s1 + $0xb08] ss:$16 sps:$4 sm:$0xff]  }
 0x22b   :  { %5690 = vmatpush1.bf16.msra.mxu0 %v7671_v20  ;;  %v7730_v20 = vld [vmem:[%s10674_s1 + $0xc6c] ss:$16 sps:$4 sm:$0xff]  }
 0x22c   :  { %5657 = vmatpush2.bf16.msra.mxu1 %v7668_v5  ;;  %5691 = vmatprep.subr.bf16.mxu0 %v7679_v0  ;;  %v7725_v5 = vld [vmem:[%s10674_s1 + $0xc88] ss:$16 sps:$4 sm:$0xff]  }
 0x22d   :  { %5658 = vmatprep.subr.bf16.mxu1 %v7676_v21  ;;  %v7733_v21 = vld [vmem:[%s10674_s1 + $0xeec] ss:$16 sps:$4 sm:$0xff]   ;;  %v7728_v0 = vld [vmem:[%s10674_s1 + $0xc68] ss:$16 sps:$4 sm:$0xff]  }
 0x22f   :  { %5692 = vmatpush1.bf16.msra.mxu0 %v7677_v29  ;;  %v7736_v29 = vld [vmem:[%s10674_s1 + $0xc4c] ss:$16 sps:$4 sm:$0xff]  }
 0x230   :  { %5659 = vmatpush2.bf16.msra.mxu1 %v7674_v28  ;;  %5693 = vmatprep.subr.bf16.mxu0 %v7685_v45  ;;  %v7731_v28 = vld [vmem:[%s10674_s1 + $0xee8] ss:$16 sps:$4 sm:$0xff]  }
 0x231   :  { %5660 = vmatprep.subr.bf16.mxu1 %v7682_v26  ;;  %v7739_v26 = vld [vmem:[%s10674_s1 + $0xecc] ss:$16 sps:$4 sm:$0xff]  }
 0x233   :  { %5694 = vmatpush2.bf16.msra.mxu0 %v7683_v36  ;;  %v7734_v36 = vld [vmem:[%s10674_s1 + $0xc48] ss:$16 sps:$4 sm:$0xff]  }
 0x234   :  { %5661 = vmatpush2.bf16.msra.mxu1 %v7680_v34  ;;  %5695 = vmatprep.subr.bf16.mxu0 %v7691_v32 }
 0x235   :  { %5662 = vmatprep.subr.bf16.mxu1 %v7688_v37  ;;  %v7737_v37 = vld [vmem:[%s10674_s1 + $0xec8] ss:$16 sps:$4 sm:$0xff]  }
 0x237   :  { %5696 = vmatpush2.bf16.msra.mxu0 %v7689_v44 }
 0x238   :  { %5663 = vmatpush2.bf16.msra.mxu1 %v7686_v40  ;;  %5697 = vmatprep.subr.bf16.mxu0 %v7697_v41  ;;  %v7742_v40 = vld [vmem:[%s10674_s1 + $0xc2c] ss:$16 sps:$4 sm:$0xff]  }
 0x239   :  { %5664 = vmatprep.subr.bf16.mxu1 %v7694_v47 }
 0x23b   :  { %5698 = vmatpush2.bf16.msra.mxu0 %v7695_v48  ;;  %v7740_v48 = vld [vmem:[%s10674_s1 + $0xc28] ss:$16 sps:$4 sm:$0xff]  }
 0x23c   :  { %5665 = vmatpush2.bf16.msra.mxu1 %v7692_v53  ;;  %5699 = vmatprep.subr.bf16.mxu0 %v7703_v46 }
 0x23d   :  { %5666 = vmatprep.subr.bf16.mxu1 %v7700_v13  ;;  %v7743_v13 = vld [vmem:[%s10674_s1 + $0xea8] ss:$16 sps:$4 sm:$0xff]  }
 0x23f   :  { %5700 = vmatpush2.bf16.msra.mxu0 %v7701_v56 }
 0x240   :  { %5667 = vmatpush2.bf16.msra.mxu1 %v7698_v51  ;;  %5701 = vmatprep.subr.bf16.mxu0 %v7706_v55  ;;  %v7751_v51 = vld [vmem:[%s10674_s1 + $0xe8c] ss:$16 sps:$4 sm:$0xff]   ;;  %v7746_v55 = vld [vmem:[%s10674_s1 + $0xc08] ss:$16 sps:$4 sm:$0xff]  }
 0x241   :  { %5718 = vmatprep.subr.bf16.mxu1 %v7709_v58  ;;  %v7749_v58 = vld [vmem:[%s10674_s1 + $0xe88] ss:$16 sps:$4 sm:$0xff]  }
 0x242   :  { %v5383_v6 = vpop.f32.mrf.mxu0 }
 0x243   :  { %v5424_v60 = vpop.f32.mrf.mxu1  ;;  %5669 = vmatmul.mubr.bf16.vlgmr.msra.gmra.mxu1 %v8716_v50  ;;  %v5384_v63 = vadd.f32 %v5383_v6, %v9836_v30  ;;  %5702 = vmatpush2.bf16.msra.mxu0 %v7704_v61  ;;  %v7718_v50 = vld [vmem:[%s10674_s1 + $0xb2c] ss:$16 sps:$4 sm:$0xff]  }
 0x244   :  { %5719 = vmatpush1.bf16.msra.mxu1 %v7707_v57  ;;  %v5385_v3 = vpop.f32.mrf.mxu0  ;;  %5703 = vmatprep.subr.bf16.mxu0 %v7712_v62  ;;  %v7721_v30 = vld [vmem:[%s10674_s1 + $0xcac] ss:$16 sps:$4 sm:$0xff]   ;;  %v7752_v62 = vld [vmem:[%s10674_s1 + $0xde8] ss:$16 sps:$4 sm:$0xff]  }
 0x245   :  { %v5426_v1 = vpop.f32.mrf.mxu1  ;;  %5720 = vmatprep.subr.bf16.mxu1 %v7715_v17  ;;  %v5425_v7 = vadd.f32 %v5424_v60, %v5384_v63  ;;  %v5386_v8 = vadd.f32 %v5385_v3, %v9840_v38  ;;  %5750 = vmatprep.mubr.bf16.mxu1 %v8728_v54  ;;  %v7724_v54 = vld [vmem:[%s10674_s1 + $0xb0c] ss:$16 sps:$4 sm:$0xff]   ;;  %v7755_v17 = vld [vmem:[%s10674_s1 + $0xe68] ss:$16 sps:$4 sm:$0xff]  }
 0x246   :  { %v5387_v10 = vpop.f32.mrf.mxu0  ;;  %v7727_v38 = vld [vmem:[%s10674_s1 + $0xc8c] ss:$16 sps:$4 sm:$0xff]   ;;  %v7758_v63 = vld [vmem:[%s10674_s1 + $0xdc8] ss:$16 sps:$4 sm:$0xff]  }
 0x247   :  { %v5428_v11 = vpop.f32.mrf.mxu1  ;;  %v5427_v49 = vadd.f32 %v5426_v1, %v5386_v8  ;;  %5704 = vmatpush2.bf16.msra.mxu0 %v7710_v2  ;;  %v7754_v61 = vld [vmem:[%s10674_s1 + $0xdec] ss:$16 sps:$4 sm:$0xff]   ;;  %v7761_v2 = vld [vmem:[%s10674_s1 + $0xe48] ss:$16 sps:$4 sm:$0xff]  }
 0x248   :  { %5721 = vmatpush1.bf16.msra.mxu1 %v7713_v43  ;;  %v5388_v19 = vpop.f32.mrf.mxu0  ;;  %5705 = vmatprep.subr.bf16.mxu0 %v7718_v50  ;;  %v7757_v57 = vld [vmem:[%s10674_s1 + $0xe6c] ss:$16 sps:$4 sm:$0xff]   ;;  %v7764_v1 = vld [vmem:[%s10674_s1 + $0xda8] ss:$16 sps:$4 sm:$0xff]  }
 0x249   :  { %v5429_v4 = vpop.f32.mrf.mxu1  ;;  %5722 = vmatprep.subr.bf16.mxu1 %v7721_v30  ;;  %v7760_v6 = vld [vmem:[%s10674_s1 + $0xdcc] ss:$16 sps:$4 sm:$0xff]   ;;  %v7767_v50 = vld [vmem:[%s10674_s1 + $0xe28] ss:$16 sps:$4 sm:$0xff]  }
 0x24a   :  { %v7763_v60 = vld [vmem:[%s10674_s1 + $0xe4c] ss:$16 sps:$4 sm:$0xff]   ;;  %v7770_v8 = vld [vmem:[%s10674_s1 + $0xd88] ss:$16 sps:$4 sm:$0xff]  }
 0x24b   :  { %5706 = vmatpush2.bf16.msra.mxu0 %v7716_v18  ;;  %v7766_v43 = vld [vmem:[%s10674_s1 + $0xdac] ss:$16 sps:$4 sm:$0xff]   ;;  %v7773_v10 = vld [vmem:[%s10674_s1 + $0xe08] ss:$16 sps:$4 sm:$0xff]  }
 0x24c   :  { %5723 = vmatpush1.bf16.msra.mxu1 %v7719_v16  ;;  %5707 = vmatprep.subr.bf16.mxu0 %v7724_v54  ;;  %v7769_v3 = vld [vmem:[%s10674_s1 + $0xe2c] ss:$16 sps:$4 sm:$0xff]   ;;  %v7776_v18 = vld [vmem:[%s10674_s1 + $0xd68] ss:$16 sps:$4 sm:$0xff]  }
 0x24d   :  { %5724 = vmatprep.subr.bf16.mxu1 %v7727_v38  ;;  %v7772_v30 = vld [vmem:[%s10674_s1 + $0xd8c] ss:$16 sps:$4 sm:$0xff]   ;;  %v7779_v16 = vld [vmem:[%s10674_s1 + $0xfe8] ss:$16 sps:$4 sm:$0xff]  }
 0x24e   :  { %v7778_v11 = vld [vmem:[%s10674_s1 + $0xd6c] ss:$16 sps:$4 sm:$0xff]   ;;  %v7782_v54 = vld [vmem:[%s10674_s1 + $0xd48] ss:$16 sps:$4 sm:$0xff]  }
 0x24f   :  { %5708 = vmatpush2.bf16.msra.mxu0 %v7722_v23  ;;  %v7784_v19 = vld [vmem:[%s10674_s1 + $0xd4c] ss:$16 sps:$4 sm:$0xff]   ;;  %v7785_v38 = vld [vmem:[%s10674_s1 + $0xfc8] ss:$16 sps:$4 sm:$0xff]  }
 0x250   :  { %5725 = vmatpush1.bf16.msra.mxu1 %v7725_v5  ;;  %5759 = vmatprep.subr.bf16.mxu0 %v7733_v21  ;;  %v7787_v4 = vld [vmem:[%s10674_s1 + $0xfcc] ss:$16 sps:$4 sm:$0xff]   ;;  %v7791_v21 = vld [vmem:[%s10674_s1 + $0xfa8] ss:$16 sps:$4 sm:$0xff]  }
 0x251   :  { %5726 = vmatprep.subr.bf16.mxu1 %v7730_v20  ;;  %v7790_v23 = vld [vmem:[%s10674_s1 + $0xd2c] ss:$16 sps:$4 sm:$0xff]   ;;  %v7788_v20 = vld [vmem:[%s10674_s1 + $0xd28] ss:$16 sps:$4 sm:$0xff]  }
 0x252   :  { %v5465_v45 = vpop.f32.mrf.mxu0  ;;  %5710 = vmatmul.mubr.bf16.vlgmr.msra.gmra.mxu0 %v8732_v35  ;;  %v7745_v35 = vld [vmem:[%s10674_s1 + $0xeac] ss:$16 sps:$4 sm:$0xff]  }
 0x253   :  { %v5466_v34 = vadd.f32 %v5465_v45, %v5425_v7  ;;  %5760 = vmatpush1.bf16.msra.mxu0 %v7731_v28  ;;  %5791 = vmatprep.mubr.bf16.mxu0 %v8748_v59  ;;  %v7748_v59 = vld [vmem:[%s10674_s1 + $0xc0c] ss:$16 sps:$4 sm:$0xff]  }
 0x254   :  { %5727 = vmatpush1.bf16.msra.mxu1 %v7728_v0  ;;  %v5467_v32 = vpop.f32.mrf.mxu0  ;;  %5761 = vmatprep.subr.bf16.mxu0 %v7739_v26  ;;  %v7775_v7 = vld [vmem:[%s10674_s1 + $0xe0c] ss:$16 sps:$4 sm:$0xff]   ;;  %v7797_v26 = vld [vmem:[%s10674_s1 + $0xf88] ss:$16 sps:$4 sm:$0xff]  }
 0x255   :  { %5728 = vmatprep.subr.bf16.mxu1 %v7736_v29  ;;  %v5468_v44 = vadd.f32 %v5467_v32, %v5427_v49  ;;  %v6005_v41 = vmax.f32 %v5466_v34, 0.0  ;;  %v7781_v49 = vld [vmem:[%s10674_s1 + $0xfec] ss:$16 sps:$4 sm:$0xff]   ;;  %v7794_v29 = vld [vmem:[%s10674_s1 + $0xd08] ss:$16 sps:$4 sm:$0xff]  }
 0x256   :  { %v5469_v47 = vpop.f32.mrf.mxu0  ;;  %v7793_v5 = vld [vmem:[%s10674_s1 + $0xfac] ss:$16 sps:$4 sm:$0xff]  }
 0x257   :  { %v6006_v53 = vmax.f32 %v5468_v44, 0.0  ;;  %5762 = vmatpush1.bf16.msra.mxu0 %v7737_v37  ;;  %v7796_v0 = vld [vmem:[%s10674_s1 + $0xd0c] ss:$16 sps:$4 sm:$0xff]   ;;  %v7803_v37 = vld [vmem:[%s10674_s1 + $0x10e8] ss:$16 sps:$4 sm:$0xff]  }
 0x258   :  { %5729 = vmatpush1.bf16.msra.mxu1 %v7734_v36  ;;  %v5470_v46 = vpop.f32.mrf.mxu0  ;;  %5763 = vmatprep.subr.bf16.mxu0 %v7745_v35  ;;  %v7799_v28 = vld [vmem:[%s10674_s1 + $0xf8c] ss:$16 sps:$4 sm:$0xff]   ;;  %v7800_v36 = vld [vmem:[%s10674_s1 + $0xf68] ss:$16 sps:$4 sm:$0xff]  }
 0x259   :  { %5730 = vmatprep.subr.bf16.mxu1 %v7742_v40  ;;  %v10102_v56 = vcombine.low %v6005_v41, %v6006_v53  ;;  %v7802_v45 = vld [vmem:[%s10674_s1 + $0xf6c] ss:$16 sps:$4 sm:$0xff]   ;;  %v7806_v44 = vld [vmem:[%s10674_s1 + $0xf48] ss:$16 sps:$4 sm:$0xff]  }
 0x25a   :  { %v7805_v34 = vld [vmem:[%s10674_s1 + $0x10ec] ss:$16 sps:$4 sm:$0xff]   ;;  %v7809_v47 = vld [vmem:[%s10674_s1 + $0x10c8] ss:$16 sps:$4 sm:$0xff]  }
 0x25b   :  { %5764 = vmatpush1.bf16.msra.mxu0 %v7743_v13  ;;  %v7808_v32 = vld [vmem:[%s10674_s1 + $0xf4c] ss:$16 sps:$4 sm:$0xff]   ;;  %v7812_v13 = vld [vmem:[%s10674_s1 + $0xf28] ss:$16 sps:$4 sm:$0xff]  }
 0x25c   :  { %5731 = vmatpush1.bf16.msra.mxu1 %v7740_v48  ;;  %5765 = vmatprep.subr.bf16.mxu0 %v7751_v51  ;;  %v7811_v40 = vld [vmem:[%s10674_s1 + $0x10cc] ss:$16 sps:$4 sm:$0xff]   ;;  %v7815_v46 = vld [vmem:[%s10674_s1 + $0x10a8] ss:$16 sps:$4 sm:$0xff]  }
 0x25d   :  { %5732 = vmatprep.subr.bf16.mxu1 %v7748_v59  ;;  %v7814_v53 = vld [vmem:[%s10674_s1 + $0xf2c] ss:$16 sps:$4 sm:$0xff]  }
 0x25e   :  { %v7820_v51 = vld [vmem:[%s10674_s1 + $0xf0c] ss:$16 sps:$4 sm:$0xff]  }
 0x25f   :  { %5766 = vmatpush1.bf16.msra.mxu0 %v7749_v58  ;;  %v820_v58 = vsub.s32 3, %v8180_v42 }
 0x260   :  { %5733 = vmatpush1.bf16.msra.mxu1 %v7746_v55  ;;  %5767 = vmatprep.subr.bf16.mxu0 %v7757_v57  ;;  %v816_v55 = vsub.s32 2, %v8180_v42  ;;  %v7821_v57 = vld [vmem:[%s10674_s1 + $0x1088] ss:$16 sps:$4 sm:$0xff]  }
 0x261   :  { %5734 = vmatprep.subr.bf16.mxu1 %v7754_v61  ;;  %v7818_v61 = vld [vmem:[%s10674_s1 + $0xf08] ss:$16 sps:$4 sm:$0xff]  }
 0x263   :  { %5768 = vmatpush1.bf16.msra.mxu0 %v7755_v17  ;;  %v7829_v17 = vld [vmem:[%s10674_s1 + $0x12ec] ss:$16 sps:$4 sm:$0xff]  }
 0x264   :  { %5735 = vmatpush2.bf16.msra.mxu1 %v7752_v62  ;;  %5769 = vmatprep.subr.bf16.mxu0 %v7763_v60  ;;  %v7826_v62 = vld [vmem:[%s10674_s1 + $0x106c] ss:$16 sps:$4 sm:$0xff]  }
 0x265   :  { %5736 = vmatprep.subr.bf16.mxu1 %v7760_v6  ;;  %v8016_v6 = vld [vmem:[%s10675_s2] sm:$0xf] }
 0x266   :  { %v817_v60 = vrot.slane %v8016_v6, %v816_v55  ;;  %v7881_v55 = vld [vmem:[%s10674_s1 + $0x13c8] ss:$16 sps:$4 sm:$0xff]  }
 0x267   :  { %5770 = vmatpush1.bf16.msra.mxu0 %v7761_v2  ;;  %v7824_v2 = vld [vmem:[%s10674_s1 + $0x1068] ss:$16 sps:$4 sm:$0xff]  }
 0x268   :  { %5737 = vmatpush2.bf16.msra.mxu1 %v7758_v63  ;;  %5771 = vmatprep.subr.bf16.mxu0 %v7769_v3  ;;  %v821_v63 = vrot.slane %v8016_v6, %v820_v58  ;;  %v7832_v3 = vld [vmem:[%s10674_s1 + $0x104c] ss:$16 sps:$4 sm:$0xff]  }
 0x269   :  { %5738 = vmatprep.subr.bf16.mxu1 %v7766_v43  ;;  %v7827_v43 = vld [vmem:[%s10674_s1 + $0x12e8] ss:$16 sps:$4 sm:$0xff]   ;;  %v7886_v58 = vld [vmem:[%s10674_s1 + $0x112c] ss:$16 sps:$4 sm:$0xff]  }
 0x26a   :  { %v7895_v6 = vld [vmem:[%s10674_s1 + $0x138c] ss:$16 sps:$4 sm:$0xff]  }
 0x26b   :  { %5772 = vmatpush1.bf16.msra.mxu0 %v7767_v50 }
 0x26c   :  { %5739 = vmatpush2.bf16.msra.mxu1 %v7764_v1  ;;  %5773 = vmatprep.subr.bf16.mxu0 %v7775_v7  ;;  %v7835_v1 = vld [vmem:[%s10674_s1 + $0x12cc] ss:$16 sps:$4 sm:$0xff]  }
 0x26d   :  { %5740 = vmatprep.subr.bf16.mxu1 %v7772_v30 }
 0x26f   :  { %5774 = vmatpush1.bf16.msra.mxu0 %v7773_v10  ;;  %v7830_v10 = vld [vmem:[%s10674_s1 + $0x1048] ss:$16 sps:$4 sm:$0xff]  }
 0x270   :  { %5741 = vmatpush2.bf16.msra.mxu1 %v7770_v8  ;;  %5775 = vmatprep.subr.bf16.mxu0 %v7781_v49 }
 0x271   :  { %5742 = vmatprep.subr.bf16.mxu1 %v7778_v11  ;;  %v7833_v11 = vld [vmem:[%s10674_s1 + $0x12c8] ss:$16 sps:$4 sm:$0xff]  }
 0x273   :  { %5776 = vmatpush2.bf16.msra.mxu0 %v7779_v16 }
 0x274   :  { %5743 = vmatpush2.bf16.msra.mxu1 %v7776_v18  ;;  %5777 = vmatprep.subr.bf16.mxu0 %v7787_v4  ;;  %v7841_v18 = vld [vmem:[%s10674_s1 + $0x12ac] ss:$16 sps:$4 sm:$0xff]   ;;  %v7836_v4 = vld [vmem:[%s10674_s1 + $0x1028] ss:$16 sps:$4 sm:$0xff]  }
 0x275   :  { %5744 = vmatprep.subr.bf16.mxu1 %v7784_v19 }
 0x277   :  { %5778 = vmatpush2.bf16.msra.mxu0 %v7785_v38 }
 0x278   :  { %5745 = vmatpush2.bf16.msra.mxu1 %v7782_v54  ;;  %5779 = vmatprep.subr.bf16.mxu0 %v7793_v5  ;;  %v7839_v54 = vld [vmem:[%s10674_s1 + $0x12a8] ss:$16 sps:$4 sm:$0xff]  }
 0x279   :  { %5746 = vmatprep.subr.bf16.mxu1 %v7790_v23  ;;  %v7844_v23 = vld [vmem:[%s10674_s1 + $0x100c] ss:$16 sps:$4 sm:$0xff]   ;;  %v7842_v5 = vld [vmem:[%s10674_s1 + $0x1008] ss:$16 sps:$4 sm:$0xff]  }
 0x27b   :  { %5780 = vmatpush2.bf16.msra.mxu0 %v7791_v21  ;;  %v7850_v21 = vld [vmem:[%s10674_s1 + $0x11ec] ss:$16 sps:$4 sm:$0xff]  }
 0x27c   :  { %5747 = vmatpush2.bf16.msra.mxu1 %v7788_v20  ;;  %5781 = vmatprep.subr.bf16.mxu0 %v7799_v28  ;;  %v7845_v20 = vld [vmem:[%s10674_s1 + $0x1288] ss:$16 sps:$4 sm:$0xff]  }
 0x27d   :  { %5748 = vmatprep.subr.bf16.mxu1 %v7796_v0  ;;  %v7853_v0 = vld [vmem:[%s10674_s1 + $0x126c] ss:$16 sps:$4 sm:$0xff]   ;;  %v7848_v28 = vld [vmem:[%s10674_s1 + $0x11e8] ss:$16 sps:$4 sm:$0xff]  }
 0x27f   :  { %5782 = vmatpush2.bf16.msra.mxu0 %v7797_v26  ;;  %v7856_v26 = vld [vmem:[%s10674_s1 + $0x11cc] ss:$16 sps:$4 sm:$0xff]  }
 0x280   :  { %5749 = vmatpush2.bf16.msra.mxu1 %v7794_v29  ;;  %5783 = vmatprep.subr.bf16.mxu0 %v7802_v45  ;;  %v7851_v29 = vld [vmem:[%s10674_s1 + $0x1268] ss:$16 sps:$4 sm:$0xff]   ;;  %v7859_v45 = vld [vmem:[%s10674_s1 + $0x124c] ss:$16 sps:$4 sm:$0xff]  }
 0x281   :  { %5800 = vmatprep.subr.bf16.mxu1 %v7805_v34  ;;  %v7854_v34 = vld [vmem:[%s10674_s1 + $0x11c8] ss:$16 sps:$4 sm:$0xff]  }
 0x283   :  { %v5506_v35 = vpop.f32.mrf.mxu1  ;;  %5751 = vmatmul.mubr.bf16.vlgmr.msra.gmra.mxu1 %v8944_v15  ;;  %5784 = vmatpush2.bf16.msra.mxu0 %v7800_v36  ;;  %v7817_v15 = vld [vmem:[%s10674_s1 + $0x10ac] ss:$16 sps:$4 sm:$0xff]   ;;  %v7857_v36 = vld [vmem:[%s10674_s1 + $0x1248] ss:$16 sps:$4 sm:$0xff]  }
 0x284   :  { %5801 = vmatpush1.bf16.msra.mxu1 %v7803_v37  ;;  %5785 = vmatprep.subr.bf16.mxu0 %v7808_v32  ;;  %v5507_v50 = vadd.f32 %v5506_v35, %v817_v60  ;;  %v7862_v37 = vld [vmem:[%s10674_s1 + $0x11ac] ss:$16 sps:$4 sm:$0xff]   ;;  %v7863_v35 = vld [vmem:[%s10674_s1 + $0x1228] ss:$16 sps:$4 sm:$0xff]  }
 0x285   :  { %v5508_v41 = vpop.f32.mrf.mxu1  ;;  %5802 = vmatprep.subr.bf16.mxu1 %v7811_v40  ;;  %5832 = vmatprep.mubr.bf16.mxu1 %v8955_v22  ;;  %v7823_v22 = vld [vmem:[%s10674_s1 + $0x108c] ss:$16 sps:$4 sm:$0xff]   ;;  %v7860_v40 = vld [vmem:[%s10674_s1 + $0x11a8] ss:$16 sps:$4 sm:$0xff]  }
 0x286   :  { %v5509_v7 = vadd.f32 %v5508_v41, %v821_v63  ;;  %v7865_v32 = vld [vmem:[%s10674_s1 + $0x122c] ss:$16 sps:$4 sm:$0xff]   ;;  %v7866_v41 = vld [vmem:[%s10674_s1 + $0x1188] ss:$16 sps:$4 sm:$0xff]  }
 0x287   :  { %v5510_v48 = vpop.f32.mrf.mxu1  ;;  %5786 = vmatpush2.bf16.msra.mxu0 %v7806_v44  ;;  %v7868_v44 = vld [vmem:[%s10674_s1 + $0x118c] ss:$16 sps:$4 sm:$0xff]   ;;  %v7890_v60 = vld [vmem:[%s10674_s1 + $0x1108] ss:$16 sps:$4 sm:$0xff]  }
 0x288   :  { %5803 = vmatpush1.bf16.msra.mxu1 %v7809_v47  ;;  %5787 = vmatprep.subr.bf16.mxu0 %v7814_v53  ;;  %v7871_v47 = vld [vmem:[%s10674_s1 + $0x120c] ss:$16 sps:$4 sm:$0xff]   ;;  %v7869_v53 = vld [vmem:[%s10674_s1 + $0x1208] ss:$16 sps:$4 sm:$0xff]  }
 0x289   :  { %v5511_v59 = vpop.f32.mrf.mxu1  ;;  %5804 = vmatprep.subr.bf16.mxu1 %v7817_v15  ;;  %v7874_v15 = vld [vmem:[%s10674_s1 + $0x116c] ss:$16 sps:$4 sm:$0xff]   ;;  %v7893_v63 = vld [vmem:[%s10674_s1 + $0x1388] ss:$16 sps:$4 sm:$0xff]  }
 0x28a   :  { %v7877_v48 = vld [vmem:[%s10674_s1 + $0x13ec] ss:$16 sps:$4 sm:$0xff]  }
 0x28b   :  { %5788 = vmatpush2.bf16.msra.mxu0 %v7812_v13  ;;  %v7872_v13 = vld [vmem:[%s10674_s1 + $0x1168] ss:$16 sps:$4 sm:$0xff]   ;;  %v7880_v59 = vld [vmem:[%s10674_s1 + $0x114c] ss:$16 sps:$4 sm:$0xff]  }
 0x28c   :  { %5805 = vmatpush1.bf16.msra.mxu1 %v7815_v46  ;;  %5789 = vmatprep.subr.bf16.mxu0 %v7820_v51  ;;  %v7875_v46 = vld [vmem:[%s10674_s1 + $0x13e8] ss:$16 sps:$4 sm:$0xff]   ;;  %v7883_v51 = vld [vmem:[%s10674_s1 + $0x13cc] ss:$16 sps:$4 sm:$0xff]  }
 0x28d   :  { %5806 = vmatprep.subr.bf16.mxu1 %v7823_v22  ;;  %v7878_v22 = vld [vmem:[%s10674_s1 + $0x1148] ss:$16 sps:$4 sm:$0xff]  }
 0x28f   :  { %5790 = vmatpush2.bf16.msra.mxu0 %v7818_v61  ;;  %v7889_v61 = vld [vmem:[%s10674_s1 + $0x13ac] ss:$16 sps:$4 sm:$0xff]  }
 0x290   :  { %5807 = vmatpush1.bf16.msra.mxu1 %v7821_v57  ;;  %5841 = vmatprep.subr.bf16.mxu0 %v7829_v17  ;;  %v7884_v57 = vld [vmem:[%s10674_s1 + $0x1128] ss:$16 sps:$4 sm:$0xff]   ;;  %v7892_v17 = vld [vmem:[%s10674_s1 + $0x110c] ss:$16 sps:$4 sm:$0xff]  }
 0x291   :  { %5808 = vmatprep.subr.bf16.mxu1 %v7826_v62  ;;  %v7887_v62 = vld [vmem:[%s10674_s1 + $0x13a8] ss:$16 sps:$4 sm:$0xff]  }
 0x292   :  { %v5547_v30 = vpop.f32.mrf.mxu0  ;;  %5792 = vmatmul.mubr.bf16.vlgmr.msra.gmra.mxu0 %v8959_v39  ;;  %v7838_v39 = vld [vmem:[%s10674_s1 + $0x102c] ss:$16 sps:$4 sm:$0xff]  }
 0x293   :  { %v10280_v8 = vadd.f32 %v5547_v30, %v5507_v50  ;;  %5842 = vmatpush1.bf16.msra.mxu0 %v7827_v43  ;;  %5873 = vmatprep.mubr.bf16.mxu0 %v8975_v31  ;;  %v7847_v31 = vld [vmem:[%s10674_s1 + $0x128c] ss:$16 sps:$4 sm:$0xff]  }
 0x294   :  { %5809 = vmatpush1.bf16.msra.mxu1 %v7824_v2  ;;  %v5549_v49 = vpop.f32.mrf.mxu0  ;;  %5843 = vmatprep.subr.bf16.mxu0 %v7835_v1  ;;  %v7898_v2 = vld [vmem:[%s10674_s1 + $0x136c] ss:$16 sps:$4 sm:$0xff]   ;;  %v7899_v1 = vld [vmem:[%s10674_s1 + $0x14e8] ss:$16 sps:$4 sm:$0xff]  }
 0x295   :  { %5810 = vmatprep.subr.bf16.mxu1 %v7832_v3  ;;  %v10294_v16 = vadd.f32 %v5549_v49, %v5509_v7  ;;  %v7901_v43 = vld [vmem:[%s10674_s1 + $0x14ec] ss:$16 sps:$4 sm:$0xff]   ;;  %v7896_v3 = vld [vmem:[%s10674_s1 + $0x1368] ss:$16 sps:$4 sm:$0xff]  }
 0x296   :  { %v5551_v19 = vpop.f32.mrf.mxu0  ;;  %v7904_v50 = vld [vmem:[%s10674_s1 + $0x134c] ss:$16 sps:$4 sm:$0xff]   ;;  %v7905_v49 = vld [vmem:[%s10674_s1 + $0x14c8] ss:$16 sps:$4 sm:$0xff]  }
 0x297   :  { %5844 = vmatpush1.bf16.msra.mxu0 %v7833_v11  ;;  %v7907_v30 = vld [vmem:[%s10674_s1 + $0x14cc] ss:$16 sps:$4 sm:$0xff]   ;;  %v7902_v11 = vld [vmem:[%s10674_s1 + $0x1348] ss:$16 sps:$4 sm:$0xff]  }
 0x298   :  { %5811 = vmatpush1.bf16.msra.mxu1 %v7830_v10  ;;  %v5552_v38 = vpop.f32.mrf.mxu0  ;;  %5845 = vmatprep.subr.bf16.mxu0 %v7841_v18  ;;  %v7910_v18 = vld [vmem:[%s10674_s1 + $0x132c] ss:$16 sps:$4 sm:$0xff]  }
 0x299   :  { %5812 = vmatprep.subr.bf16.mxu1 %v7838_v39 }
 0x29b   :  { %5846 = vmatpush1.bf16.msra.mxu0 %v7839_v54  ;;  %v7911_v54 = vld [vmem:[%s10674_s1 + $0x14a8] ss:$16 sps:$4 sm:$0xff]  }
 0x29c   :  { %5813 = vmatpush1.bf16.msra.mxu1 %v7836_v4  ;;  %5847 = vmatprep.subr.bf16.mxu0 %v7847_v31  ;;  %v7908_v4 = vld [vmem:[%s10674_s1 + $0x1328] ss:$16 sps:$4 sm:$0xff]  }
 0x29d   :  { %5814 = vmatprep.subr.bf16.mxu1 %v7844_v23  ;;  %v7914_v23 = vld [vmem:[%s10674_s1 + $0x1308] ss:$16 sps:$4 sm:$0xff]  }
 0x29e   :  { %v7917_v31 = vld [vmem:[%s10674_s1 + $0x1488] ss:$16 sps:$4 sm:$0xff]  }
 0x29f   :  { %5848 = vmatpush1.bf16.msra.mxu0 %v7845_v20  ;;  %v7925_v20 = vld [vmem:[%s10674_s1 + $0x16ec] ss:$16 sps:$4 sm:$0xff]  }
 0x2a0   :  { %5815 = vmatpush1.bf16.msra.mxu1 %v7842_v5  ;;  %5849 = vmatprep.subr.bf16.mxu0 %v7853_v0  ;;  %v7922_v5 = vld [vmem:[%s10674_s1 + $0x146c] ss:$16 sps:$4 sm:$0xff]   ;;  %v7923_v0 = vld [vmem:[%s10674_s1 + $0x16e8] ss:$16 sps:$4 sm:$0xff]  }
 0x2a1   :  { %5816 = vmatprep.subr.bf16.mxu1 %v7850_v21  ;;  %v7920_v21 = vld [vmem:[%s10674_s1 + $0x1468] ss:$16 sps:$4 sm:$0xff]  }
 0x2a3   :  { %5850 = vmatpush1.bf16.msra.mxu0 %v7851_v29  ;;  %v7931_v29 = vld [vmem:[%s10674_s1 + $0x16cc] ss:$16 sps:$4 sm:$0xff]  }
 0x2a4   :  { %5817 = vmatpush2.bf16.msra.mxu1 %v7848_v28  ;;  %5851 = vmatprep.subr.bf16.mxu0 %v7859_v45  ;;  %v7928_v28 = vld [vmem:[%s10674_s1 + $0x144c] ss:$16 sps:$4 sm:$0xff]  }
 0x2a5   :  { %5818 = vmatprep.subr.bf16.mxu1 %v7856_v26 }
 0x2a7   :  { %5852 = vmatpush1.bf16.msra.mxu0 %v7857_v36  ;;  %v7929_v36 = vld [vmem:[%s10674_s1 + $0x16c8] ss:$16 sps:$4 sm:$0xff]  }
 0x2a8   :  { %5819 = vmatpush2.bf16.msra.mxu1 %v7854_v34  ;;  %5853 = vmatprep.subr.bf16.mxu0 %v7865_v32  ;;  %v7926_v34 = vld [vmem:[%s10674_s1 + $0x1448] ss:$16 sps:$4 sm:$0xff]   ;;  %v7934_v32 = vld [vmem:[%s10674_s1 + $0x142c] ss:$16 sps:$4 sm:$0xff]  }
 0x2a9   :  { %5820 = vmatprep.subr.bf16.mxu1 %v7862_v37 }
 0x2ab   :  { %5854 = vmatpush1.bf16.msra.mxu0 %v7863_v35 }
 0x2ac   :  { %5821 = vmatpush2.bf16.msra.mxu1 %v7860_v40  ;;  %5855 = vmatprep.subr.bf16.mxu0 %v7871_v47  ;;  %v7935_v47 = vld [vmem:[%s10674_s1 + $0x16a8] ss:$16 sps:$4 sm:$0xff]  }
 0x2ad   :  { %5822 = vmatprep.subr.bf16.mxu1 %v7868_v44  ;;  %v7932_v44 = vld [vmem:[%s10674_s1 + $0x1428] ss:$16 sps:$4 sm:$0xff]  }
 0x2af   :  { %5856 = vmatpush1.bf16.msra.mxu0 %v7869_v53  ;;  %v7940_v53 = vld [vmem:[%s10674_s1 + $0x140c] ss:$16 sps:$4 sm:$0xff]  }
 0x2b0   :  { %5823 = vmatpush2.bf16.msra.mxu1 %v7866_v41  ;;  %5857 = vmatprep.subr.bf16.mxu0 %v7877_v48  ;;  %v7941_v48 = vld [vmem:[%s10674_s1 + $0x1688] ss:$16 sps:$4 sm:$0xff]  }
 0x2b1   :  { %5824 = vmatprep.subr.bf16.mxu1 %v7874_v15  ;;  %v7938_v15 = vld [vmem:[%s10674_s1 + $0x1408] ss:$16 sps:$4 sm:$0xff]  }
 0x2b3   :  { %5858 = vmatpush2.bf16.msra.mxu0 %v7875_v46  ;;  %v7949_v46 = vld [vmem:[%s10674_s1 + $0x166c] ss:$16 sps:$4 sm:$0xff]  }
 0x2b4   :  { %5825 = vmatpush2.bf16.msra.mxu1 %v7872_v13  ;;  %5859 = vmatprep.subr.bf16.mxu0 %v7883_v51  ;;  %v7946_v13 = vld [vmem:[%s10674_s1 + $0x15ec] ss:$16 sps:$4 sm:$0xff]   ;;  %v7947_v51 = vld [vmem:[%s10674_s1 + $0x1668] ss:$16 sps:$4 sm:$0xff]  }
 0x2b5   :  { %5826 = vmatprep.subr.bf16.mxu1 %v7880_v59  ;;  %v7944_v59 = vld [vmem:[%s10674_s1 + $0x15e8] ss:$16 sps:$4 sm:$0xff]  }
 0x2b7   :  { %5860 = vmatpush2.bf16.msra.mxu0 %v7881_v55  ;;  %v7955_v55 = vld [vmem:[%s10674_s1 + $0x164c] ss:$16 sps:$4 sm:$0xff]  }
 0x2b8   :  { %5827 = vmatpush2.bf16.msra.mxu1 %v7878_v22  ;;  %5861 = vmatprep.subr.bf16.mxu0 %v7889_v61  ;;  %v7952_v22 = vld [vmem:[%s10674_s1 + $0x15cc] ss:$16 sps:$4 sm:$0xff]   ;;  %v7953_v61 = vld [vmem:[%s10674_s1 + $0x1648] ss:$16 sps:$4 sm:$0xff]  }
 0x2b9   :  { %5828 = vmatprep.subr.bf16.mxu1 %v7886_v58  ;;  %v7950_v58 = vld [vmem:[%s10674_s1 + $0x15c8] ss:$16 sps:$4 sm:$0xff]  }
 0x2bb   :  { %5862 = vmatpush2.bf16.msra.mxu0 %v7887_v62  ;;  %v7961_v62 = vld [vmem:[%s10674_s1 + $0x162c] ss:$16 sps:$4 sm:$0xff]  }
 0x2bc   :  { %5829 = vmatpush2.bf16.msra.mxu1 %v7884_v57  ;;  %5863 = vmatprep.subr.bf16.mxu0 %v7895_v6  ;;  %v7958_v57 = vld [vmem:[%s10674_s1 + $0x15ac] ss:$16 sps:$4 sm:$0xff]   ;;  %v7959_v6 = vld [vmem:[%s10674_s1 + $0x1628] ss:$16 sps:$4 sm:$0xff]  }
 0x2bd   :  { %5830 = vmatprep.subr.bf16.mxu1 %v7892_v17  ;;  %v7956_v17 = vld [vmem:[%s10674_s1 + $0x15a8] ss:$16 sps:$4 sm:$0xff]  }
 0x2bf   :  { %5864 = vmatpush2.bf16.msra.mxu0 %v7893_v63  ;;  %v7967_v63 = vld [vmem:[%s10674_s1 + $0x160c] ss:$16 sps:$4 sm:$0xff]  }
 0x2c0   :  { %5831 = vmatpush2.bf16.msra.mxu1 %v7890_v60  ;;  %5865 = vmatprep.subr.bf16.mxu0 %v7898_v2  ;;  %v7964_v60 = vld [vmem:[%s10674_s1 + $0x158c] ss:$16 sps:$4 sm:$0xff]   ;;  %v7962_v2 = vld [vmem:[%s10674_s1 + $0x1588] ss:$16 sps:$4 sm:$0xff]  }
 0x2c1   :  { %5882 = vmatprep.subr.bf16.mxu1 %v7901_v43  ;;  %v7965_v43 = vld [vmem:[%s10674_s1 + $0x1608] ss:$16 sps:$4 sm:$0xff]  }
 0x2c3   :  { %v5588_v7 = vpop.f32.mrf.mxu1  ;;  %5833 = vmatmul.mubr.bf16.vlgmr.msra.gmra.mxu1 %v9162_v12  ;;  %5866 = vmatpush2.bf16.msra.mxu0 %v7896_v3  ;;  %v7913_v12 = vld [vmem:[%s10674_s1 + $0x14ac] ss:$16 sps:$4 sm:$0xff]  }
 0x2c4   :  { %v5589_v10 = vadd.f32 %v5588_v7, %v10280_v8  ;;  %5883 = vmatpush1.bf16.msra.mxu1 %v7899_v1  ;;  %5867 = vmatprep.subr.bf16.mxu0 %v7904_v50  ;;  %v7970_v3 = vld [vmem:[%s10674_s1 + $0x156c] ss:$16 sps:$4 sm:$0xff]   ;;  %v7968_v50 = vld [vmem:[%s10674_s1 + $0x1568] ss:$16 sps:$4 sm:$0xff]  }
 0x2c5   :  { %v5590_v39 = vpop.f32.mrf.mxu1  ;;  %5884 = vmatprep.subr.bf16.mxu1 %v7907_v30  ;;  %5914 = vmatprep.mubr.bf16.mxu1 %v9183_v24  ;;  %v7919_v24 = vld [vmem:[%s10674_s1 + $0x148c] ss:$16 sps:$4 sm:$0xff]   ;;  %v7971_v30 = vld [vmem:[%s10674_s1 + $0x17e8] ss:$16 sps:$4 sm:$0xff]  }
 0x2c6   :  { %v5591_v8 = vadd.f32 %v5590_v39, %v10294_v16  ;;  %v7916_v16 = vld [vmem:[%s10674_s1 + $0x130c] ss:$16 sps:$4 sm:$0xff]  }
 0x2c7   :  { %v5592_v19 = vpop.f32.mrf.mxu1  ;;  %5868 = vmatpush2.bf16.msra.mxu0 %v7902_v11  ;;  %v7973_v1 = vld [vmem:[%s10674_s1 + $0x17ec] ss:$16 sps:$4 sm:$0xff]   ;;  %v7974_v11 = vld [vmem:[%s10674_s1 + $0x1548] ss:$16 sps:$4 sm:$0xff]  }
 0x2c8   :  { %5885 = vmatpush1.bf16.msra.mxu1 %v7905_v49  ;;  %5869 = vmatprep.subr.bf16.mxu0 %v7910_v18  ;;  %v7976_v7 = vld [vmem:[%s10674_s1 + $0x154c] ss:$16 sps:$4 sm:$0xff]   ;;  %v7977_v49 = vld [vmem:[%s10674_s1 + $0x17c8] ss:$16 sps:$4 sm:$0xff]  }
 0x2c9   :  { %v5593_v38 = vpop.f32.mrf.mxu1  ;;  %5886 = vmatprep.subr.bf16.mxu1 %v7913_v12  ;;  %v7982_v39 = vld [vmem:[%s10674_s1 + $0x152c] ss:$16 sps:$4 sm:$0xff]   ;;  %v7980_v12 = vld [vmem:[%s10674_s1 + $0x1528] ss:$16 sps:$4 sm:$0xff]  }
 0x2ca   :  { %v7985_v18 = vld [vmem:[%s10674_s1 + $0x17ac] ss:$16 sps:$4 sm:$0xff]   ;;  %v7989_v38 = vld [vmem:[%s10674_s1 + $0x1788] ss:$16 sps:$4 sm:$0xff]  }
 0x2cb   :  { %5870 = vmatpush2.bf16.msra.mxu0 %v7908_v4  ;;  %v7988_v19 = vld [vmem:[%s10674_s1 + $0x150c] ss:$16 sps:$4 sm:$0xff]  }
 0x2cc   :  { %5887 = vmatpush1.bf16.msra.mxu1 %v7911_v54  ;;  %5871 = vmatprep.subr.bf16.mxu0 %v7916_v16  ;;  %v7991_v4 = vld [vmem:[%s10674_s1 + $0x178c] ss:$16 sps:$4 sm:$0xff]   ;;  %v7986_v54 = vld [vmem:[%s10674_s1 + $0x1508] ss:$16 sps:$4 sm:$0xff]  }
 0x2cd   :  { %5888 = vmatprep.subr.bf16.mxu1 %v7919_v24  ;;  %v7994_v16 = vld [vmem:[%s10674_s1 + $0x176c] ss:$16 sps:$4 sm:$0xff]  }
 0x2ce   :  { %v7997_v24 = vld [vmem:[%s10674_s1 + $0x186c] ss:$16 sps:$4 sm:$0xff]  }
 0x2cf   :  { %5872 = vmatpush2.bf16.msra.mxu0 %v7914_v23  ;;  %v7992_v23 = vld [vmem:[%s10674_s1 + $0x1768] ss:$16 sps:$4 sm:$0xff]  }
 0x2d0   :  { %5889 = vmatpush1.bf16.msra.mxu1 %v7917_v31  ;;  %5923 = vmatprep.subr.bf16.mxu0 %v7925_v20  ;;  %v7995_v31 = vld [vmem:[%s10674_s1 + $0x1868] ss:$16 sps:$4 sm:$0xff]   ;;  %v8003_v20 = vld [vmem:[%s10674_s1 + $0x184c] ss:$16 sps:$4 sm:$0xff]  }
 0x2d1   :  { %5890 = vmatprep.subr.bf16.mxu1 %v7922_v5  ;;  %v8000_v5 = vld [vmem:[%s10674_s1 + $0x174c] ss:$16 sps:$4 sm:$0xff]  }
 0x2d2   :  { %v5629_v26 = vpop.f32.mrf.mxu0  ;;  %5874 = vmatmul.mubr.bf16.vlgmr.msra.gmra.mxu0 %v9187_v25  ;;  %v7937_v25 = vld [vmem:[%s10674_s1 + $0x16ac] ss:$16 sps:$4 sm:$0xff]  }
 0x2d3   :  { %v10482_v45 = vadd.f32 %v5629_v26, %v5589_v10  ;;  %5924 = vmatpush1.bf16.msra.mxu0 %v7923_v0  ;;  %5955 = vmatprep.mubr.bf16.mxu0 %v9203_v33  ;;  %v7943_v33 = vld [vmem:[%s10674_s1 + $0x168c] ss:$16 sps:$4 sm:$0xff]  }
 0x2d4   :  { %5891 = vmatpush1.bf16.msra.mxu1 %v7920_v21  ;;  %v5631_v37 = vpop.f32.mrf.mxu0  ;;  %5925 = vmatprep.subr.bf16.mxu0 %v7931_v29  ;;  %v7979_v10 = vld [vmem:[%s10674_s1 + $0x17cc] ss:$16 sps:$4 sm:$0xff]   ;;  %v8001_v29 = vld [vmem:[%s10674_s1 + $0x1848] ss:$16 sps:$4 sm:$0xff]  }
 0x2d5   :  { %5892 = vmatprep.subr.bf16.mxu1 %v7928_v28  ;;  %v10496_v40 = vadd.f32 %v5631_v37, %v5591_v8  ;;  %v7983_v8 = vld [vmem:[%s10674_s1 + $0x17a8] ss:$16 sps:$4 sm:$0xff]  }
 0x2d6   :  { %v5633_v35 = vpop.f32.mrf.mxu0  ;;  %v7998_v28 = vld [vmem:[%s10674_s1 + $0x1748] ss:$16 sps:$4 sm:$0xff]  }
 0x2d7   :  { %5926 = vmatpush1.bf16.msra.mxu0 %v7929_v36  ;;  %v8004_v37 = vld [vmem:[%s10674_s1 + $0x1728] ss:$16 sps:$4 sm:$0xff]  }
 0x2d8   :  { %5893 = vmatpush1.bf16.msra.mxu1 %v7926_v34  ;;  %v5634_v41 = vpop.f32.mrf.mxu0  ;;  %5927 = vmatprep.subr.bf16.mxu0 %v7937_v25  ;;  %v8006_v34 = vld [vmem:[%s10674_s1 + $0x172c] ss:$16 sps:$4 sm:$0xff]   ;;  %v8010_v35 = vld [vmem:[%s10674_s1 + $0x1708] ss:$16 sps:$4 sm:$0xff]  }
 0x2d9   :  { %5894 = vmatprep.subr.bf16.mxu1 %v7934_v32  ;;  %v8007_v32 = vld [vmem:[%s10674_s1 + $0x1828] ss:$16 sps:$4 sm:$0xff]  }
 0x2db   :  { %5928 = vmatpush1.bf16.msra.mxu0 %v7935_v47 }
 0x2dc   :  { %5895 = vmatpush1.bf16.msra.mxu1 %v7932_v44  ;;  %5929 = vmatprep.subr.bf16.mxu0 %v7943_v33  ;;  %v8013_v44 = vld [vmem:[%s10674_s1 + $0x1808] ss:$16 sps:$4 sm:$0xff]  }
 0x2dd   :  { %5896 = vmatprep.subr.bf16.mxu1 %v7940_v53 }
 0x2df   :  { %5930 = vmatpush1.bf16.msra.mxu0 %v7941_v48 }
 0x2e0   :  { %5897 = vmatpush1.bf16.msra.mxu1 %v7938_v15  ;;  %5931 = vmatprep.subr.bf16.mxu0 %v7949_v46 }
 0x2e1   :  { %5898 = vmatprep.subr.bf16.mxu1 %v7946_v13 }
 0x2e3   :  { %5932 = vmatpush1.bf16.msra.mxu0 %v7947_v51 }
 0x2e4   :  { %5899 = vmatpush2.bf16.msra.mxu1 %v7944_v59  ;;  %5933 = vmatprep.subr.bf16.mxu0 %v7955_v55 }
 0x2e5   :  { %5900 = vmatprep.subr.bf16.mxu1 %v7952_v22 }
 0x2e7   :  { %5934 = vmatpush1.bf16.msra.mxu0 %v7953_v61 }
 0x2e8   :  { %5901 = vmatpush2.bf16.msra.mxu1 %v7950_v58  ;;  %5935 = vmatprep.subr.bf16.mxu0 %v7961_v62 }
 0x2e9   :  { %5902 = vmatprep.subr.bf16.mxu1 %v7958_v57 }
 0x2eb   :  { %5936 = vmatpush1.bf16.msra.mxu0 %v7959_v6 }
 0x2ec   :  { %5903 = vmatpush2.bf16.msra.mxu1 %v7956_v17  ;;  %5937 = vmatprep.subr.bf16.mxu0 %v7967_v63 }
 0x2ed   :  { %5904 = vmatprep.subr.bf16.mxu1 %v7964_v60 }
 0x2ef   :  { %5938 = vmatpush1.bf16.msra.mxu0 %v7965_v43 }
 0x2f0   :  { %5905 = vmatpush2.bf16.msra.mxu1 %v7962_v2  ;;  %5939 = vmatprep.subr.bf16.mxu0 %v7973_v1 }
 0x2f1   :  { %5906 = vmatprep.subr.bf16.mxu1 %v7970_v3 }
 0x2f3   :  { %5940 = vmatpush2.bf16.msra.mxu0 %v7971_v30 }
 0x2f4   :  { %5907 = vmatpush2.bf16.msra.mxu1 %v7968_v50  ;;  %5941 = vmatprep.subr.bf16.mxu0 %v7979_v10 }
 0x2f5   :  { %5908 = vmatprep.subr.bf16.mxu1 %v7976_v7 }
 0x2f7   :  { %5942 = vmatpush2.bf16.msra.mxu0 %v7977_v49 }
 0x2f8   :  { %5909 = vmatpush2.bf16.msra.mxu1 %v7974_v11  ;;  %5943 = vmatprep.subr.bf16.mxu0 %v7985_v18 }
 0x2f9   :  { %5910 = vmatprep.subr.bf16.mxu1 %v7982_v39 }
 0x2fb   :  { %5944 = vmatpush2.bf16.msra.mxu0 %v7983_v8  ;;  %v8041_v8 = vmov 1983009808  }
 0x2fc   :  { %5911 = vmatpush2.bf16.msra.mxu1 %v7980_v12  ;;  %5945 = vmatprep.subr.bf16.mxu0 %v7991_v4 }
 0x2fd   :  { %5912 = vmatprep.subr.bf16.mxu1 %v7988_v19  ;;  %v6016_v19 = vunpack.c.l.s4 %v8041_v8 }
 0x2ff   :  { %5946 = vmatpush2.bf16.msra.mxu0 %v7989_v38 }
 0x300   :  { %5913 = vmatpush2.bf16.msra.mxu1 %v7986_v54  ;;  %5947 = vmatprep.subr.bf16.mxu0 %v7994_v16 }
 0x301   :  { %5972 = vmatprep.subr.bf16.mxu1 %v7997_v24 }
 0x303   :  { %v5670_v21 = vpop.f32.mrf.mxu1  ;;  %5915 = vmatmul.mubr.bf16.vlgmr.msra.gmra.mxu1 %v9379_v14  ;;  %5948 = vmatpush2.bf16.msra.mxu0 %v7992_v23  ;;  %v8009_v14 = vld [vmem:[%s10674_s1 + $0x182c] ss:$16 sps:$4 sm:$0xff]  }
 0x304   :  { %v5671_v0 = vadd.f32 %v5670_v21, %v10482_v45  ;;  %5973 = vmatpush1.bf16.msra.mxu1 %v7995_v31  ;;  %5949 = vmatprep.subr.bf16.mxu0 %v8000_v5 }
 0x305   :  { %v5672_v26 = vpop.f32.mrf.mxu1  ;;  %5974 = vmatprep.subr.bf16.mxu1 %v8003_v20  ;;  %5996 = vmatprep.mubr.bf16.mxu1 %v8040_v52  ;;  %v8015_v52 = vld [vmem:[%s10674_s1 + $0x180c] ss:$16 sps:$4 sm:$0xff]   ;;  %v6017_v20 = vunpack.c.0.s8 %v6016_v19 }
 0x306   :  { %v5673_v45 = vadd.f32 %v5672_v26, %v10496_v40  ;;  %v8012_v40 = vld [vmem:[%s10674_s1 + $0x170c] ss:$16 sps:$4 sm:$0xff]   ;;  %s8042_s1 = smov [#allocation2]  }
 0x307   :  { %v5674_v36 = vpop.f32.mrf.mxu1  ;;  %5950 = vmatpush2.bf16.msra.mxu0 %v7998_v28  ;;  %s6038_s17 = sshll.u32 %s8042_s1, 4  ;;  %s6039_s17 = int_to_ptr.vmem [resolvable:$true] %s6038_s17 }
 0x308   :  { %5975 = vmatpush1.bf16.msra.mxu1 %v8001_v29  ;;  %5951 = vmatprep.subr.bf16.mxu0 %v8006_v34  ;;  %s8017_s18 = scalar_lea.vmem %s6039_s17, 128  ;;  %p8022_p1 = scmp.lt.s32.totalorder %s6039_s17, %s6039_s17 }
 0x309   :  { %v5675_v25 = vpop.f32.mrf.mxu1  ;;  %5976 = vmatprep.subr.bf16.mxu1 %v8009_v14  ;;  %p8018_p0 = scmp.ne.s32.totalorder %s6039_s17, %s8017_s18  ;;  %p8023_p2 = scmp.lt.s32.totalorder %s8017_s18, %s8017_s18 }
 0x30b   :  { %5952 = vmatpush2.bf16.msra.mxu0 %v8004_v37  ;;  %p8024_p3 = por %p8023_p2, %p8022_p1 }
 0x30c   :  { %5977 = vmatpush1.bf16.msra.mxu1 %v8007_v32  ;;  %5953 = vmatprep.subr.bf16.mxu0 %v8012_v40 }
 0x30d   :  { %5978 = vmatprep.subr.bf16.mxu1 %v8015_v52  ;;  %p8025_p4 = pnand %p8024_p3, %p8018_p0 }
 0x30f   :  { %5954 = vmatpush2.bf16.msra.mxu0 %v8010_v35 }
 0x310   :  { %5979 = vmatpush1.bf16.msra.mxu1 %v8013_v44 }
 0x312   :  { %v5711_v47 = vpop.f32.mrf.mxu0  ;;  %5956 = vmatmul.mubr.bf16.vlgmr.msra.gmra.mxu0 %v9401_v27 }
 0x313   :  { %6832 = vmatmul.mubr.msk.bf16.vlgmr.msra.gmra.mxu1 %vm4935_vm0, %v9465_v9  ;;  %v5712_v41 = vadd.f32 %v5711_v47, %v5671_v0 }
 0x314   :  { %v5713_v53 = vpop.f32.mrf.mxu0 }
 0x315   :  { %v5714_v33 = vadd.f32 %v5713_v53, %v5673_v45  ;;  %v6020_v45 = vsub.s32 %v6017_v20, %v8180_v42 }
 0x316   :  { %v5715_v15 = vpop.f32.mrf.mxu0 }
 0x317   :  { %v6021_v37 = vrot.slane %v10102_v56, %v6020_v45 }
 0x318   :  { %v5716_v48 = vpop.f32.mrf.mxu0 }
 0x343   :  { %v5752_v13 = vpop.f32.mrf.mxu1 }
 0x344   :  { %v5753_v46 = vadd.f32 %v5752_v13, %v5712_v41 }
 0x345   :  { %v5754_v59 = vpop.f32.mrf.mxu1 }
 0x346   :  { %v5755_v51 = vadd.f32 %v5754_v59, %v5714_v33 }
 0x347   :  { %v5756_v22 = vpop.f32.mrf.mxu1 }
 0x349   :  { %v5757_v55 = vpop.f32.mrf.mxu1 }
 0x352   :  { %v5793_v58 = vpop.f32.mrf.mxu0 }
 0x353   :  { %v5794_v61 = vadd.f32 %v5793_v58, %v5753_v46 }
 0x354   :  { %v5795_v57 = vpop.f32.mrf.mxu0 }
 0x355   :  { %v5796_v62 = vadd.f32 %v5795_v57, %v5755_v51 }
 0x356   :  { %v5797_v17 = vpop.f32.mrf.mxu0 }
 0x358   :  { %v5798_v27 = vpop.f32.mrf.mxu0 }
 0x383   :  { %v5834_v6 = vpop.f32.mrf.mxu1 }
 0x384   :  { %v5835_v60 = vadd.f32 %v5834_v6, %v5794_v61 }
 0x385   :  { %v5836_v9 = vpop.f32.mrf.mxu1 }
 0x386   :  { %v5837_v63 = vadd.f32 %v5836_v9, %v5796_v62 }
 0x387   :  { %v5838_v2 = vpop.f32.mrf.mxu1 }
 0x389   :  { %v5839_v43 = vpop.f32.mrf.mxu1 }
 0x392   :  { %v5875_v3 = vpop.f32.mrf.mxu0 }
 0x393   :  { %v5876_v39 = vadd.f32 %v5875_v3, %v5835_v60 }
 0x394   :  { %v5877_v1 = vpop.f32.mrf.mxu0 }
 0x395   :  { %v5878_v18 = vadd.f32 %v5877_v1, %v5837_v63 }
 0x396   :  { %v5879_v50 = vpop.f32.mrf.mxu0 }
 0x398   :  { %v5880_v30 = vpop.f32.mrf.mxu0 }
 0x3c3   :  { %v5916_v7 = vpop.f32.mrf.mxu1 }
 0x3c4   :  { %v5917_v12 = vadd.f32 %v5916_v7, %v5876_v39 }
 0x3c5   :  { %v5918_v10 = vpop.f32.mrf.mxu1 }
 0x3c6   :  { %v5919_v38 = vadd.f32 %v5918_v10, %v5878_v18 }
 0x3c7   :  { %v5920_v11 = vpop.f32.mrf.mxu1 }
 0x3c9   :  { %v5921_v49 = vpop.f32.mrf.mxu1 }
 0x3d2   :  { %v5957_v4 = vpop.f32.mrf.mxu0 }
 0x3d3   :  { %v5998_v54 = vpop.f32.mrf.mxu1  ;;  %v5958_v16 = vadd.f32 %v5957_v4, %v5917_v12 }
 0x3d4   :  { %v5959_v24 = vpop.f32.mrf.mxu0 }
 0x3d5   :  { %v6000_v23 = vpop.f32.mrf.mxu1  ;;  %v5999_v31 = vadd.f32 %v5998_v54, %v5958_v16  ;;  %v5960_v5 = vadd.f32 %v5959_v24, %v5919_v38 }
 0x3d6   :  { %v5961_v21 = vpop.f32.mrf.mxu0 }
 0x3d7   :  { %v6002_v0 = vpop.f32.mrf.mxu1  ;;  %v6001_v28 = vadd.f32 %v6000_v23, %v5960_v5  ;;  %v6007_v34 = vmax.f32 %v5999_v31, 0.0 }
 0x3d8   :  { %v5962_v29 = vpop.f32.mrf.mxu0 }
 0x3d9   :  { %v6003_v26 = vpop.f32.mrf.mxu1  ;;  %v6008_v14 = vmax.f32 %v6001_v28, 0.0 }
 0x3db   :  { %v6014_v36 = vcombine.low %v6007_v34, %v6008_v14 }
 0x3dd   :  { %v6028_v32 = vrot.slane %v6014_v36, %v6020_v45 }
 0x3df   :  { %v6029_v25 = vcombine.low %v6021_v37, %v6028_v32 }
 0x3e1   :  { %6031 = vst [vmem:[#allocation2] sm:$0xff] %v6029_v25 }
 0x3e2   :  { %8028 = shalt.err (!%p8025_p4)
}
 0x3e3   :  { %6041 = dma.vmem_to_hbm [thread:$0]  %s6039_s17, 128, %s10676_s3, [#allocation3]  }
 0x3e4   :  { %8037 = dma.done.wait [#allocation3], 128  }
 0x3e5   :  { %8038 = vsyncadd [#allocation3], 4294967168 }
 0x3e6   :  { %6045 = vsyncpa [#allocation3], 1 }

</bundles_post_ra>
